<compile_context>
chip_gen: v7x
topology: tpu7x:2x2x1
jax: 0.10.0
libtpu: 0.0.40
codegen_flags: <defaults>
</compile_context>

<pallas_src>
import jax
import jax.numpy as jnp
from jax.experimental import pallas as pl
from jax.experimental.pallas import tpu as pltpu

CATEGORY = 22                       # len(DICT)
H_IN, W_IN = 32, 64                 # input spatial size
H1, W1 = 16, 32                     # after pool1
H2, W2 = 7, 15                      # after pool2
C1, C2 = 4, 8                       # conv channel counts
FLAT = C2 * H2 * W2                 # 840 (PyTorch .view order)
FC1, FC2 = 512, 128
OUT_PAD = 128                       # class dim padded to a full vreg
B_T = 8                             # images packed along the lane axis per grid step
XB = 16                             # 64-wide feature blocks per image (15 valid + 1 pad)
RPAD = C2 * 8                       # padded pool2 rows (co*8 + y, y<7 valid) = 64
FLAT_PAD = XB * RPAD                # 1024 (kernel-internal flattened feature width)


# ----------------------------- Pallas kernel -------------------------------

def net_kernel(x_ref, w1_ref, b1_ref, L_ref, b2_ref,
               r1_ref, c1_ref, r2_ref, c2_ref,
               fw1_ref, fb1_ref, fw2_ref, fb2_ref, fw3_ref, fb3_ref,
               out_ref,
               xslab_ref, hstack_ref, taps_ref, abig_ref):
    """Full forward pass for one group of B_T images.

    x_ref block: (B_T, 32, 64).  Output block: (B_T, OUT_PAD) log-probs
    (lanes >= CATEGORY are padding and sliced away by the wrapper).
    """
    LW = B_T * W_IN                                            # 512
    LW1 = B_T * W1                                             # 256

    # ---- pack B_T images side by side along lanes: (B_T,32,64) -> (32,512) ----
    for n in range(B_T):
        xslab_ref[:, n * W_IN:(n + 1) * W_IN] = x_ref[n]
    xs = xslab_ref[...]

    # ---- conv1 (1x1, cin=1): stack the 4 channel maps along sublanes ----
    for ci in range(C1):
        hstack_ref[ci * H_IN:(ci + 1) * H_IN, :] = xs * w1_ref[ci] + b1_ref[ci]
    hm = hstack_ref[...]                                       # (128, 512)

    # ---- pool1 (2x2): pairwise max via rolls + stride-2 pick via 0/1 matmuls.
    # Rolled-in rows/cols only pollute odd rows / cols within each block,
    # which the selection matrices never pick.
    hm = jnp.maximum(hm, pltpu.roll(hm, LW - 1, axis=1))        # max(col, col+1)
    hm = jnp.maximum(hm, pltpu.roll(hm, C1 * H_IN - 1, axis=0)) # max(row, row+1)
    s1 = jnp.dot(jnp.dot(r1_ref[...], hm, preferred_element_type=jnp.float32),
                 c1_ref[...], preferred_element_type=jnp.float32)
    s1 = jnp.maximum(s1, 0.0)                                   # (64, 256)

    # ---- 3x3 taps of s1 stacked along sublanes -> (576, 256).  Wrapped rows/
    # cols only hit the invalid conv2 border (y in {14,15}, x in {30,31}).
    for dy in range(3):
        sy = s1 if dy == 0 else pltpu.roll(s1, C1 * H1 - dy, axis=0)
        for dx in range(3):
            t = sy if dx == 0 else pltpu.roll(sy, LW1 - dx, axis=1)
            k = dy * 3 + dx
            taps_ref[k * (C1 * H1):(k + 1) * (C1 * H1), :] = t

    # ---- conv2 (3x3 valid, 4->8) as ONE MXU matmul ----
    acc = jnp.dot(L_ref[...], taps_ref[...], preferred_element_type=jnp.float32)
    acc = acc + b2_ref[...]                                     # (128, 256) + (128, 1)

    # ---- pool2 (2x2) + relu -> p (64, 128); cols ordered (x-major, n-minor),
    # rows ordered co*8 + y (y == 7 rows and x == 15 cols are exact zeros).
    m2 = jnp.maximum(acc, pltpu.roll(acc, LW1 - 1, axis=1))
    m2 = jnp.maximum(m2, pltpu.roll(m2, C2 * H1 - 1, axis=0))
    p = jnp.dot(jnp.dot(r2_ref[...], m2, preferred_element_type=jnp.float32),
                c2_ref[...], preferred_element_type=jnp.float32)
    p = jnp.maximum(p, 0.0)                                     # (64, 128)

    # ---- feature handoff: one (64,128) transpose + 16 aligned 64-wide writes
    # into an (8, 1024) activation tile (batch on sublanes, features on lanes).
    pT = jnp.transpose(p)                                       # (128, 64), rows = x*8 + n
    for xb in range(XB):
        abig_ref[:, xb * RPAD:(xb + 1) * RPAD] = pT[xb * B_T:(xb + 1) * B_T, :]

    # ---- MLP (weights stay VMEM-resident via constant index maps) ----
    h = jnp.dot(abig_ref[...], fw1_ref[...],
                preferred_element_type=jnp.float32) + fb1_ref[...]
    h = jnp.maximum(h, 0.0)                                     # (8, 512)
    h = jnp.dot(h, fw2_ref[...], preferred_element_type=jnp.float32) + fb2_ref[...]
    h = jnp.maximum(h, 0.0)                                     # (8, 128)
    logits = jnp.dot(h, fw3_ref[...], preferred_element_type=jnp.float32) + fb3_ref[...]
    m = jnp.max(logits, axis=-1, keepdims=True)
    e = jnp.exp(logits - m)
    lse = m + jnp.log(jnp.sum(e, axis=-1, keepdims=True))
    out_ref[...] = logits - lse                                 # (8, 128)


# ------------------------------ Python wrapper ------------------------------

def _selection_matrices():
    f32 = jnp.float32
    # pool1 rows: out i <- in 2i                    (64, 128)
    r1 = (jnp.arange(C1 * H_IN)[None, :] ==
          2 * jnp.arange(C1 * H1)[:, None]).astype(f32)
    # pool1 cols: out j <- in 2j                    (512, 256)
    c1 = (jnp.arange(B_T * W_IN)[:, None] ==
          2 * jnp.arange(B_T * W1)[None, :]).astype(f32)
    # pool2 rows: out co*8+y <- in co*16+2y (y<7); rows y==7 are zero   (64, 128)
    ri = jnp.arange(RPAD); co = ri // 8; y = ri % 8
    r2 = ((jnp.arange(C2 * H1)[None, :] == (co * H1 + 2 * y)[:, None])
          & (y < H2)[:, None]).astype(f32)
    # pool2 cols: out x*8+n <- in n*32+2x (x<15); cols x==15 are zero   (256, 128)
    cj = jnp.arange(B_T * 16); xx = cj // B_T; nn = cj % B_T
    c2 = ((jnp.arange(B_T * W1)[:, None] == (nn * W1 + 2 * xx)[None, :])
          & (xx < W2)[None, :]).astype(f32)
    return r1, c1, r2, c2


def prepare_params(params):
    """One-time host-side prep: conv2-as-matmul weight, pooling selection
    matrices, fc weights pre-transposed and permuted to the kernel's feature
    order k = x*64 + co*8 + y, class dim padded to 128."""
    (w1, b1, w2, b2, fw1, fb1, fw2, fb2, fw3, fb3) = params
    f32 = jnp.float32
    # L[co*16 + r, (3*dy+dx)*64 + ci*16 + r] = w2[co, ci, dy, dx]
    eye = jnp.eye(H1, dtype=f32)
    w2p = jnp.transpose(w2.reshape(C2, C1, 9).astype(f32), (0, 2, 1))   # (C2, 9, C1)
    L = (w2p[:, None, :, :, None] * eye[None, :, None, None, :]
         ).reshape(C2 * H1, 9 * C1 * H1)                                # (128, 576)
    b2col = jnp.repeat(b2.astype(f32), H1)[:, None]                     # (128, 1)
    r1, c1, r2, c2 = _selection_matrices()

    # fc1: row k = x*64 + co*8 + y  <-  PyTorch flat index co*105 + y*15 + x
    wt = jnp.transpose(fw1.astype(f32).reshape(FC1, C2, H2, W2), (3, 1, 2, 0))
    fw1p = jnp.zeros((XB, C2, 8, FC1), f32).at[:W2, :, :H2, :].set(wt)
    fw1p = fw1p.reshape(FLAT_PAD, FC1)                                  # (1024, 512)
    fb1r = fb1.astype(f32)[None, :]                                     # (1, 512)
    fw2p = fw2.T.astype(f32)                                            # (512, 128)
    fb2r = fb2.astype(f32)[None, :]                                     # (1, 128)
    fw3p = jnp.zeros((FC2, OUT_PAD), f32).at[:, :CATEGORY].set(fw3.T.astype(f32))
    fb3r = jnp.full((1, OUT_PAD), -1e30, f32).at[0, :CATEGORY].set(fb3.astype(f32))
    # TODO(synk): optional bf16 cast of L/fw1p/fw2p/fw3p would halve the one-time
    # weight DMA and resident VMEM on v6e/v7x; kept f32 for numerical parity.
    return (w1.astype(f32), b1.astype(f32), L, b2col, r1, c1, r2, c2,
            fw1p, fb1r, fw2p, fb2r, fw3p, fb3r)


@jax.jit
def net_forward(x, prepared):
    """x: (N, 1, 32, 64) float32 (NCHW, as in the PyTorch module)."""
    (w1, b1, L, b2col, r1, c1, r2, c2,
     fw1p, fb1r, fw2p, fb2r, fw3p, fb3r) = prepared
    N = x.shape[0]

    # Pad the batch to a multiple of B_T (cheap contiguous pad; zero images are
    # harmless).  For N > B_T the grid has >= 2 steps, so both v7x TensorCores
    # get work via the 'parallel' dimension semantics.
    n_pad = ((N + B_T - 1) // B_T) * B_T
    G = n_pad // B_T

    x3 = x[:, 0].astype(jnp.float32)                            # (N, 32, 64)
    if n_pad != N:
        x3 = jnp.pad(x3, ((0, n_pad - N), (0, 0), (0, 0)))

    smem = pl.BlockSpec(memory_space=pltpu.MemorySpace.SMEM)

    def const(shape):
        return pl.BlockSpec(shape, lambda g: (0, 0))

    out_p = pl.pallas_call(
        net_kernel,
        out_shape=jax.ShapeDtypeStruct((n_pad, OUT_PAD), jnp.float32),
        grid=(G,),
        in_specs=[
            pl.BlockSpec((B_T, H_IN, W_IN), lambda g: (g, 0, 0)),   # images
            smem, smem,                                             # conv1 w, b
            const((C2 * H1, 9 * C1 * H1)),                          # L (128, 576)
            const((C2 * H1, 1)),                                    # b2col (128, 1)
            const((C1 * H1, C1 * H_IN)),                            # r1 (64, 128)
            const((B_T * W_IN, B_T * W1)),                          # c1 (512, 256)
            const((RPAD, C2 * H1)),                                 # r2 (64, 128)
            const((B_T * W1, B_T * 16)),                            # c2 (256, 128)
            const((FLAT_PAD, FC1)),                                 # fc1 W (1024, 512)
            const((1, FC1)),
            const((FC1, FC2)),                                      # fc2 W (512, 128)
            const((1, FC2)),
            const((FC2, OUT_PAD)),                                  # fc3 W (128, 128)
            const((1, OUT_PAD)),
        ],
        out_specs=pl.BlockSpec((B_T, OUT_PAD), lambda g: (g, 0)),
        scratch_shapes=[
            pltpu.VMEM((H_IN, B_T * W_IN), jnp.float32),            # xslab  (32, 512)
            pltpu.VMEM((C1 * H_IN, B_T * W_IN), jnp.float32),       # hstack (128, 512)
            pltpu.VMEM((9 * C1 * H1, B_T * W1), jnp.float32),       # taps   (576, 256)
            pltpu.VMEM((B_T, FLAT_PAD), jnp.float32),               # abig   (8, 1024)
        ],
        compiler_params=pltpu.CompilerParams(dimension_semantics=("parallel",)),
    )(x3, w1, b1, L, b2col, r1, c1, r2, c2, fw1p, fb1r, fw2p, fb2r, fw3p, fb3r)

    return out_p[:N, :CATEGORY]


# ------------------------- params / reference / main ------------------------

def init_params(key):
    ks = jax.random.split(key, 10)
    w1 = jax.random.normal(ks[0], (C1,), jnp.float32) * 0.5            # conv1 (4,1,1,1) squeezed
    b1 = jax.random.normal(ks[1], (C1,), jnp.float32) * 0.1
    w2 = jax.random.normal(ks[2], (C2, C1, 3, 3), jnp.float32) / 6.0   # conv2 OIHW
    b2 = jax.random.normal(ks[3], (C2,), jnp.float32) * 0.1
    fw1 = jax.random.normal(ks[4], (FC1, FLAT), jnp.float32) / jnp.sqrt(float(FLAT))
    fb1 = jax.random.normal(ks[5], (FC1,), jnp.float32) * 0.05
    fw2 = jax.random.normal(ks[6], (FC2, FC1), jnp.float32) / jnp.sqrt(float(FC1))
    fb2 = jax.random.normal(ks[7], (FC2,), jnp.float32) * 0.05
    fw3 = jax.random.normal(ks[8], (CATEGORY, FC2), jnp.float32) / jnp.sqrt(float(FC2))
    fb3 = jax.random.normal(ks[9], (CATEGORY,), jnp.float32) * 0.05
    return (w1, b1, w2, b2, fw1, fb1, fw2, fb2, fw3, fb3)


def reference_forward(x, params):
    """Pure-JAX reference matching the PyTorch forward pass."""
    (w1, b1, w2, b2, fw1, fb1, fw2, fb2, fw3, fb3) = params
    N = x.shape[0]
    h = x * w1.reshape(1, C1, 1, 1) + b1.reshape(1, C1, 1, 1)          # conv1 1x1
    h = jnp.max(h.reshape(N, C1, H_IN // 2, 2, W_IN // 2, 2), axis=(3, 5))
    h = jnp.maximum(h, 0.0)
    h = jax.lax.conv_general_dilated(h, w2, (1, 1), "VALID",
                                     dimension_numbers=("NCHW", "OIHW", "NCHW"))
    h = h + b2.reshape(1, C2, 1, 1)
    h = jnp.max(h.reshape(N, C2, H2, 2, W2, 2), axis=(3, 5))
    h = jnp.maximum(h, 0.0)
    h = h.reshape(N, FLAT)
    h = jnp.maximum(h @ fw1.T + fb1, 0.0)
    h = jnp.maximum(h @ fw2.T + fb2, 0.0)
    logits = h @ fw3.T + fb3
    return jax.nn.log_softmax(logits, axis=-1)


if __name__ == "__main__":
    key = jax.random.PRNGKey(0)
    kx, kp = jax.random.split(key)
    x = jax.random.normal(kx, (2, 1, H_IN, W_IN), jnp.float32)   # NCHW input
    params = init_params(kp)
    prepared = prepare_params(params)

    out = net_forward(x, prepared)
    out = jax.block_until_ready(out)

    ref = reference_forward(x, params)
    if out.shape != (2, CATEGORY):
        raise AssertionError(f"bad output shape {out.shape}")
    if not jnp.allclose(out, ref, atol=1e-2, rtol=1e-2):
        raise AssertionError(
            f"mismatch vs reference, max abs err = {float(jnp.max(jnp.abs(out - ref)))}")
    print("KERNEL_OK")
</pallas_src>

<mosaic_0001>
module attributes {stable_mosaic.version = 11 : i64} {
  func.func @net_kernel(%arg0: i32, %arg1: memref<8x32x64xf32, #tpu.memory_space<vmem>>, %arg2: memref<4xf32, #tpu.memory_space<smem>>, %arg3: memref<4xf32, #tpu.memory_space<smem>>, %arg4: memref<128x576xf32, #tpu.memory_space<vmem>>, %arg5: memref<128x1xf32, #tpu.memory_space<vmem>>, %arg6: memref<64x128xf32, #tpu.memory_space<vmem>>, %arg7: memref<512x256xf32, #tpu.memory_space<vmem>>, %arg8: memref<64x128xf32, #tpu.memory_space<vmem>>, %arg9: memref<256x128xf32, #tpu.memory_space<vmem>>, %arg10: memref<1024x512xf32, #tpu.memory_space<vmem>>, %arg11: memref<1x512xf32, #tpu.memory_space<vmem>>, %arg12: memref<512x128xf32, #tpu.memory_space<vmem>>, %arg13: memref<1x128xf32, #tpu.memory_space<vmem>>, %arg14: memref<128x128xf32, #tpu.memory_space<vmem>>, %arg15: memref<1x128xf32, #tpu.memory_space<vmem>>, %arg16: memref<8x128xf32, #tpu.memory_space<vmem>>, %arg17: memref<32x512xf32, #tpu.memory_space<vmem>>, %arg18: memref<128x512xf32, #tpu.memory_space<vmem>>, %arg19: memref<576x256xf32, #tpu.memory_space<vmem>>, %arg20: memref<8x1024xf32, #tpu.memory_space<vmem>>) attributes {dimension_semantics = [#tpu.dimension_semantics<parallel>], iteration_bounds = array<i64: 1>, scalar_prefetch = 0 : i64, scratch_operands = 4 : i64, tpu.core_type = #tpu.core_type<tc>, window_params = [{transform_indices = @transform_0, window_bounds = array<i64: 8, 32, 64>}, {transform_indices = @transform_1, window_bounds = array<i64: 4>}, {transform_indices = @transform_2, window_bounds = array<i64: 4>}, {pipeline_mode = #tpu.pipeline_mode<synchronous>, transform_indices = @transform_3, window_bounds = array<i64: 128, 576>}, {pipeline_mode = #tpu.pipeline_mode<synchronous>, transform_indices = @transform_4, window_bounds = array<i64: 128, 1>}, {pipeline_mode = #tpu.pipeline_mode<synchronous>, transform_indices = @transform_5, window_bounds = array<i64: 64, 128>}, {pipeline_mode = #tpu.pipeline_mode<synchronous>, transform_indices = @transform_6, window_bounds = array<i64: 512, 256>}, {pipeline_mode = #tpu.pipeline_mode<synchronous>, transform_indices = @transform_7, window_bounds = array<i64: 64, 128>}, {pipeline_mode = #tpu.pipeline_mode<synchronous>, transform_indices = @transform_8, window_bounds = array<i64: 256, 128>}, {pipeline_mode = #tpu.pipeline_mode<synchronous>, transform_indices = @transform_9, window_bounds = array<i64: 1024, 512>}, {pipeline_mode = #tpu.pipeline_mode<synchronous>, transform_indices = @transform_10, window_bounds = array<i64: 1, 512>}, {pipeline_mode = #tpu.pipeline_mode<synchronous>, transform_indices = @transform_11, window_bounds = array<i64: 512, 128>}, {pipeline_mode = #tpu.pipeline_mode<synchronous>, transform_indices = @transform_12, window_bounds = array<i64: 1, 128>}, {pipeline_mode = #tpu.pipeline_mode<synchronous>, transform_indices = @transform_13, window_bounds = array<i64: 128, 128>}, {pipeline_mode = #tpu.pipeline_mode<synchronous>, transform_indices = @transform_14, window_bounds = array<i64: 1, 128>}, {transform_indices = @transform_15, window_bounds = array<i64: 8, 128>}]} {
    %c0 = arith.constant 0 : index
    %c0_0 = arith.constant 0 : index
    %c0_1 = arith.constant 0 : index
    %0 = vector.load %arg1[%c0, %c0_0, %c0_1] : memref<8x32x64xf32, #tpu.memory_space<vmem>>, vector<1x32x64xf32>
    %1 = vector.shape_cast %0 : vector<1x32x64xf32> to vector<32x64xf32>
    %c0_2 = arith.constant 0 : index
    %c0_3 = arith.constant 0 : index
    %2 = vector.load %arg17[%c0_2, %c0_3] : memref<32x512xf32, #tpu.memory_space<vmem>>, vector<32x64xf32>
    tpu.vector_store %arg17[%c0_2, %c0_3], %1 {strides = array<i32>} : memref<32x512xf32, #tpu.memory_space<vmem>>, vector<32x64xf32>,
    %c1 = arith.constant 1 : index
    %c0_4 = arith.constant 0 : index
    %c0_5 = arith.constant 0 : index
    %3 = vector.load %arg1[%c1, %c0_4, %c0_5] : memref<8x32x64xf32, #tpu.memory_space<vmem>>, vector<1x32x64xf32>
    %4 = vector.shape_cast %3 : vector<1x32x64xf32> to vector<32x64xf32>
    %c0_6 = arith.constant 0 : index
    %c64 = arith.constant 64 : index
    %5 = vector.load %arg17[%c0_6, %c64] : memref<32x512xf32, #tpu.memory_space<vmem>>, vector<32x64xf32>
    tpu.vector_store %arg17[%c0_6, %c64], %4 {strides = array<i32>} : memref<32x512xf32, #tpu.memory_space<vmem>>, vector<32x64xf32>,
    %c2 = arith.constant 2 : index
    %c0_7 = arith.constant 0 : index
    %c0_8 = arith.constant 0 : index
    %6 = vector.load %arg1[%c2, %c0_7, %c0_8] : memref<8x32x64xf32, #tpu.memory_space<vmem>>, vector<1x32x64xf32>
    %7 = vector.shape_cast %6 : vector<1x32x64xf32> to vector<32x64xf32>
    %c0_9 = arith.constant 0 : index
    %c128 = arith.constant 128 : index
    %8 = vector.load %arg17[%c0_9, %c128] : memref<32x512xf32, #tpu.memory_space<vmem>>, vector<32x64xf32>
    tpu.vector_store %arg17[%c0_9, %c128], %7 {strides = array<i32>} : memref<32x512xf32, #tpu.memory_space<vmem>>, vector<32x64xf32>,
    %c3 = arith.constant 3 : index
    %c0_10 = arith.constant 0 : index
    %c0_11 = arith.constant 0 : index
    %9 = vector.load %arg1[%c3, %c0_10, %c0_11] : memref<8x32x64xf32, #tpu.memory_space<vmem>>, vector<1x32x64xf32>
    %10 = vector.shape_cast %9 : vector<1x32x64xf32> to vector<32x64xf32>
    %c0_12 = arith.constant 0 : index
    %c192 = arith.constant 192 : index
    %11 = vector.load %arg17[%c0_12, %c192] : memref<32x512xf32, #tpu.memory_space<vmem>>, vector<32x64xf32>
    tpu.vector_store %arg17[%c0_12, %c192], %10 {strides = array<i32>} : memref<32x512xf32, #tpu.memory_space<vmem>>, vector<32x64xf32>,
    %c4 = arith.constant 4 : index
    %c0_13 = arith.constant 0 : index
    %c0_14 = arith.constant 0 : index
    %12 = vector.load %arg1[%c4, %c0_13, %c0_14] : memref<8x32x64xf32, #tpu.memory_space<vmem>>, vector<1x32x64xf32>
    %13 = vector.shape_cast %12 : vector<1x32x64xf32> to vector<32x64xf32>
    %c0_15 = arith.constant 0 : index
    %c256 = arith.constant 256 : index
    %14 = vector.load %arg17[%c0_15, %c256] : memref<32x512xf32, #tpu.memory_space<vmem>>, vector<32x64xf32>
    tpu.vector_store %arg17[%c0_15, %c256], %13 {strides = array<i32>} : memref<32x512xf32, #tpu.memory_space<vmem>>, vector<32x64xf32>,
    %c5 = arith.constant 5 : index
    %c0_16 = arith.constant 0 : index
    %c0_17 = arith.constant 0 : index
    %15 = vector.load %arg1[%c5, %c0_16, %c0_17] : memref<8x32x64xf32, #tpu.memory_space<vmem>>, vector<1x32x64xf32>
    %16 = vector.shape_cast %15 : vector<1x32x64xf32> to vector<32x64xf32>
    %c0_18 = arith.constant 0 : index
    %c320 = arith.constant 320 : index
    %17 = vector.load %arg17[%c0_18, %c320] : memref<32x512xf32, #tpu.memory_space<vmem>>, vector<32x64xf32>
    tpu.vector_store %arg17[%c0_18, %c320], %16 {strides = array<i32>} : memref<32x512xf32, #tpu.memory_space<vmem>>, vector<32x64xf32>,
    %c6 = arith.constant 6 : index
    %c0_19 = arith.constant 0 : index
    %c0_20 = arith.constant 0 : index
    %18 = vector.load %arg1[%c6, %c0_19, %c0_20] : memref<8x32x64xf32, #tpu.memory_space<vmem>>, vector<1x32x64xf32>
    %19 = vector.shape_cast %18 : vector<1x32x64xf32> to vector<32x64xf32>
    %c0_21 = arith.constant 0 : index
    %c384 = arith.constant 384 : index
    %20 = vector.load %arg17[%c0_21, %c384] : memref<32x512xf32, #tpu.memory_space<vmem>>, vector<32x64xf32>
    tpu.vector_store %arg17[%c0_21, %c384], %19 {strides = array<i32>} : memref<32x512xf32, #tpu.memory_space<vmem>>, vector<32x64xf32>,
    %c7 = arith.constant 7 : index
    %c0_22 = arith.constant 0 : index
    %c0_23 = arith.constant 0 : index
    %21 = vector.load %arg1[%c7, %c0_22, %c0_23] : memref<8x32x64xf32, #tpu.memory_space<vmem>>, vector<1x32x64xf32>
    %22 = vector.shape_cast %21 : vector<1x32x64xf32> to vector<32x64xf32>
    %c0_24 = arith.constant 0 : index
    %c448 = arith.constant 448 : index
    %23 = vector.load %arg17[%c0_24, %c448] : memref<32x512xf32, #tpu.memory_space<vmem>>, vector<32x64xf32>
    tpu.vector_store %arg17[%c0_24, %c448], %22 {strides = array<i32>} : memref<32x512xf32, #tpu.memory_space<vmem>>, vector<32x64xf32>,
    %c0_25 = arith.constant 0 : index
    %c0_26 = arith.constant 0 : index
    %24 = vector.load %arg17[%c0_25, %c0_26] : memref<32x512xf32, #tpu.memory_space<vmem>>, vector<32x512xf32>
    %c0_27 = arith.constant 0 : index
    %25 = memref.load %arg2[%c0_27] : memref<4xf32, #tpu.memory_space<smem>>
    %26 = vector.broadcast %25 : f32 to vector<32x512xf32>
    %27 = arith.mulf %24, %26 : vector<32x512xf32>
    %c0_28 = arith.constant 0 : index
    %28 = memref.load %arg3[%c0_28] : memref<4xf32, #tpu.memory_space<smem>>
    %29 = vector.broadcast %28 : f32 to vector<32x512xf32>
    %30 = arith.addf %27, %29 : vector<32x512xf32>
    %c0_29 = arith.constant 0 : index
    %c0_30 = arith.constant 0 : index
    %31 = vector.load %arg18[%c0_29, %c0_30] : memref<128x512xf32, #tpu.memory_space<vmem>>, vector<32x512xf32>
    tpu.vector_store %arg18[%c0_29, %c0_30], %30 {strides = array<i32>} : memref<128x512xf32, #tpu.memory_space<vmem>>, vector<32x512xf32>,
    %c1_31 = arith.constant 1 : index
    %32 = memref.load %arg2[%c1_31] : memref<4xf32, #tpu.memory_space<smem>>
    %33 = vector.broadcast %32 : f32 to vector<32x512xf32>
    %34 = arith.mulf %24, %33 : vector<32x512xf32>
    %c1_32 = arith.constant 1 : index
    %35 = memref.load %arg3[%c1_32] : memref<4xf32, #tpu.memory_space<smem>>
    %36 = vector.broadcast %35 : f32 to vector<32x512xf32>
    %37 = arith.addf %34, %36 : vector<32x512xf32>
    %c32 = arith.constant 32 : index
    %c0_33 = arith.constant 0 : index
    %38 = vector.load %arg18[%c32, %c0_33] : memref<128x512xf32, #tpu.memory_space<vmem>>, vector<32x512xf32>
    tpu.vector_store %arg18[%c32, %c0_33], %37 {strides = array<i32>} : memref<128x512xf32, #tpu.memory_space<vmem>>, vector<32x512xf32>,
    %c2_34 = arith.constant 2 : index
    %39 = memref.load %arg2[%c2_34] : memref<4xf32, #tpu.memory_space<smem>>
    %40 = vector.broadcast %39 : f32 to vector<32x512xf32>
    %41 = arith.mulf %24, %40 : vector<32x512xf32>
    %c2_35 = arith.constant 2 : index
    %42 = memref.load %arg3[%c2_35] : memref<4xf32, #tpu.memory_space<smem>>
    %43 = vector.broadcast %42 : f32 to vector<32x512xf32>
    %44 = arith.addf %41, %43 : vector<32x512xf32>
    %c64_36 = arith.constant 64 : index
    %c0_37 = arith.constant 0 : index
    %45 = vector.load %arg18[%c64_36, %c0_37] : memref<128x512xf32, #tpu.memory_space<vmem>>, vector<32x512xf32>
    tpu.vector_store %arg18[%c64_36, %c0_37], %44 {strides = array<i32>} : memref<128x512xf32, #tpu.memory_space<vmem>>, vector<32x512xf32>,
    %c3_38 = arith.constant 3 : index
    %46 = memref.load %arg2[%c3_38] : memref<4xf32, #tpu.memory_space<smem>>
    %47 = vector.broadcast %46 : f32 to vector<32x512xf32>
    %48 = arith.mulf %24, %47 : vector<32x512xf32>
    %c3_39 = arith.constant 3 : index
    %49 = memref.load %arg3[%c3_39] : memref<4xf32, #tpu.memory_space<smem>>
    %50 = vector.broadcast %49 : f32 to vector<32x512xf32>
    %51 = arith.addf %48, %50 : vector<32x512xf32>
    %c96 = arith.constant 96 : index
    %c0_40 = arith.constant 0 : index
    %52 = vector.load %arg18[%c96, %c0_40] : memref<128x512xf32, #tpu.memory_space<vmem>>, vector<32x512xf32>
    tpu.vector_store %arg18[%c96, %c0_40], %51 {strides = array<i32>} : memref<128x512xf32, #tpu.memory_space<vmem>>, vector<32x512xf32>,
    %c0_41 = arith.constant 0 : index
    %c0_42 = arith.constant 0 : index
    %53 = vector.load %arg18[%c0_41, %c0_42] : memref<128x512xf32, #tpu.memory_space<vmem>>, vector<128x512xf32>
    %c511_i32 = arith.constant 511 : i32
    %54 = tpu.dynamic_rotate %53 by %c511_i32 dim 1 : vector<128x512xf32>, i32 -> vector<128x512xf32>
    %55 = arith.maximumf %53, %54 : vector<128x512xf32>
    %c127_i32 = arith.constant 127 : i32
    %56 = tpu.dynamic_rotate %55 by %c127_i32 dim 0 : vector<128x512xf32>, i32 -> vector<128x512xf32>
    %57 = arith.maximumf %55, %56 : vector<128x512xf32>
    %c0_43 = arith.constant 0 : index
    %c0_44 = arith.constant 0 : index
    %58 = vector.load %arg6[%c0_43, %c0_44] : memref<64x128xf32, #tpu.memory_space<vmem>>, vector<64x128xf32>
    %cst = arith.constant dense<0.000000e+00> : vector<64x512xf32>
    %59 = tpu.matmul %58, %57, %cst {dimension_numbers = #tpu.dot_dimension_numbers<[1], [0], [0], [1], [0, 0, 1, 1], [], []>} : vector<64x128xf32>, vector<128x512xf32>, vector<64x512xf32> -> vector<64x512xf32>
    %c0_45 = arith.constant 0 : index
    %c0_46 = arith.constant 0 : index
    %60 = vector.load %arg7[%c0_45, %c0_46] : memref<512x256xf32, #tpu.memory_space<vmem>>, vector<512x256xf32>
    %cst_47 = arith.constant dense<0.000000e+00> : vector<64x256xf32>
    %61 = tpu.matmul %59, %60, %cst_47 {dimension_numbers = #tpu.dot_dimension_numbers<[1], [0], [0], [1], [0, 0, 1, 1], [], []>} : vector<64x512xf32>, vector<512x256xf32>, vector<64x256xf32> -> vector<64x256xf32>
    %cst_48 = arith.constant 0.000000e+00 : f32
    %62 = vector.broadcast %cst_48 : f32 to vector<64x256xf32>
    %63 = arith.maximumf %61, %62 : vector<64x256xf32>
    %c0_49 = arith.constant 0 : index
    %c0_50 = arith.constant 0 : index
    %64 = vector.load %arg19[%c0_49, %c0_50] : memref<576x256xf32, #tpu.memory_space<vmem>>, vector<64x256xf32>
    tpu.vector_store %arg19[%c0_49, %c0_50], %63 {strides = array<i32>} : memref<576x256xf32, #tpu.memory_space<vmem>>, vector<64x256xf32>,
    %c255_i32 = arith.constant 255 : i32
    %65 = tpu.dynamic_rotate %63 by %c255_i32 dim 1 : vector<64x256xf32>, i32 -> vector<64x256xf32>
    %c64_51 = arith.constant 64 : index
    %c0_52 = arith.constant 0 : index
    %66 = vector.load %arg19[%c64_51, %c0_52] : memref<576x256xf32, #tpu.memory_space<vmem>>, vector<64x256xf32>
    tpu.vector_store %arg19[%c64_51, %c0_52], %65 {strides = array<i32>} : memref<576x256xf32, #tpu.memory_space<vmem>>, vector<64x256xf32>,
    %c254_i32 = arith.constant 254 : i32
    %67 = tpu.dynamic_rotate %63 by %c254_i32 dim 1 : vector<64x256xf32>, i32 -> vector<64x256xf32>
    %c128_53 = arith.constant 128 : index
    %c0_54 = arith.constant 0 : index
    %68 = vector.load %arg19[%c128_53, %c0_54] : memref<576x256xf32, #tpu.memory_space<vmem>>, vector<64x256xf32>
    tpu.vector_store %arg19[%c128_53, %c0_54], %67 {strides = array<i32>} : memref<576x256xf32, #tpu.memory_space<vmem>>, vector<64x256xf32>,
    %c63_i32 = arith.constant 63 : i32
    %69 = tpu.dynamic_rotate %63 by %c63_i32 dim 0 : vector<64x256xf32>, i32 -> vector<64x256xf32>
    %c192_55 = arith.constant 192 : index
    %c0_56 = arith.constant 0 : index
    %70 = vector.load %arg19[%c192_55, %c0_56] : memref<576x256xf32, #tpu.memory_space<vmem>>, vector<64x256xf32>
    tpu.vector_store %arg19[%c192_55, %c0_56], %69 {strides = array<i32>} : memref<576x256xf32, #tpu.memory_space<vmem>>, vector<64x256xf32>,
    %c255_i32_57 = arith.constant 255 : i32
    %71 = tpu.dynamic_rotate %69 by %c255_i32_57 dim 1 : vector<64x256xf32>, i32 -> vector<64x256xf32>
    %c256_58 = arith.constant 256 : index
    %c0_59 = arith.constant 0 : index
    %72 = vector.load %arg19[%c256_58, %c0_59] : memref<576x256xf32, #tpu.memory_space<vmem>>, vector<64x256xf32>
    tpu.vector_store %arg19[%c256_58, %c0_59], %71 {strides = array<i32>} : memref<576x256xf32, #tpu.memory_space<vmem>>, vector<64x256xf32>,
    %c254_i32_60 = arith.constant 254 : i32
    %73 = tpu.dynamic_rotate %69 by %c254_i32_60 dim 1 : vector<64x256xf32>, i32 -> vector<64x256xf32>
    %c320_61 = arith.constant 320 : index
    %c0_62 = arith.constant 0 : index
    %74 = vector.load %arg19[%c320_61, %c0_62] : memref<576x256xf32, #tpu.memory_space<vmem>>, vector<64x256xf32>
    tpu.vector_store %arg19[%c320_61, %c0_62], %73 {strides = array<i32>} : memref<576x256xf32, #tpu.memory_space<vmem>>, vector<64x256xf32>,
    %c62_i32 = arith.constant 62 : i32
    %75 = tpu.dynamic_rotate %63 by %c62_i32 dim 0 : vector<64x256xf32>, i32 -> vector<64x256xf32>
    %c384_63 = arith.constant 384 : index
    %c0_64 = arith.constant 0 : index
    %76 = vector.load %arg19[%c384_63, %c0_64] : memref<576x256xf32, #tpu.memory_space<vmem>>, vector<64x256xf32>
    tpu.vector_store %arg19[%c384_63, %c0_64], %75 {strides = array<i32>} : memref<576x256xf32, #tpu.memory_space<vmem>>, vector<64x256xf32>,
    %c255_i32_65 = arith.constant 255 : i32
    %77 = tpu.dynamic_rotate %75 by %c255_i32_65 dim 1 : vector<64x256xf32>, i32 -> vector<64x256xf32>
    %c448_66 = arith.constant 448 : index
    %c0_67 = arith.constant 0 : index
    %78 = vector.load %arg19[%c448_66, %c0_67] : memref<576x256xf32, #tpu.memory_space<vmem>>, vector<64x256xf32>
    tpu.vector_store %arg19[%c448_66, %c0_67], %77 {strides = array<i32>} : memref<576x256xf32, #tpu.memory_space<vmem>>, vector<64x256xf32>,
    %c254_i32_68 = arith.constant 254 : i32
    %79 = tpu.dynamic_rotate %75 by %c254_i32_68 dim 1 : vector<64x256xf32>, i32 -> vector<64x256xf32>
    %c512 = arith.constant 512 : index
    %c0_69 = arith.constant 0 : index
    %80 = vector.load %arg19[%c512, %c0_69] : memref<576x256xf32, #tpu.memory_space<vmem>>, vector<64x256xf32>
    tpu.vector_store %arg19[%c512, %c0_69], %79 {strides = array<i32>} : memref<576x256xf32, #tpu.memory_space<vmem>>, vector<64x256xf32>,
    %c0_70 = arith.constant 0 : index
    %c0_71 = arith.constant 0 : index
    %81 = vector.load %arg4[%c0_70, %c0_71] : memref<128x576xf32, #tpu.memory_space<vmem>>, vector<128x576xf32>
    %c0_72 = arith.constant 0 : index
    %c0_73 = arith.constant 0 : index
    %82 = vector.load %arg19[%c0_72, %c0_73] : memref<576x256xf32, #tpu.memory_space<vmem>>, vector<576x256xf32>
    %cst_74 = arith.constant dense<0.000000e+00> : vector<128x256xf32>
    %83 = tpu.matmul %81, %82, %cst_74 {dimension_numbers = #tpu.dot_dimension_numbers<[1], [0], [0], [1], [0, 0, 1, 1], [], []>} : vector<128x576xf32>, vector<576x256xf32>, vector<128x256xf32> -> vector<128x256xf32>
    %c0_75 = arith.constant 0 : index
    %c0_76 = arith.constant 0 : index
    %84 = vector.load %arg5[%c0_75, %c0_76] : memref<128x1xf32, #tpu.memory_space<vmem>>, vector<128x1xf32>
    %85 = vector.broadcast %84 : vector<128x1xf32> to vector<128x256xf32>
    %86 = arith.addf %83, %85 : vector<128x256xf32>
    %c255_i32_77 = arith.constant 255 : i32
    %87 = tpu.dynamic_rotate %86 by %c255_i32_77 dim 1 : vector<128x256xf32>, i32 -> vector<128x256xf32>
    %88 = arith.maximumf %86, %87 : vector<128x256xf32>
    %c127_i32_78 = arith.constant 127 : i32
    %89 = tpu.dynamic_rotate %88 by %c127_i32_78 dim 0 : vector<128x256xf32>, i32 -> vector<128x256xf32>
    %90 = arith.maximumf %88, %89 : vector<128x256xf32>
    %c0_79 = arith.constant 0 : index
    %c0_80 = arith.constant 0 : index
    %91 = vector.load %arg8[%c0_79, %c0_80] : memref<64x128xf32, #tpu.memory_space<vmem>>, vector<64x128xf32>
    %cst_81 = arith.constant dense<0.000000e+00> : vector<64x256xf32>
    %92 = tpu.matmul %91, %90, %cst_81 {dimension_numbers = #tpu.dot_dimension_numbers<[1], [0], [0], [1], [0, 0, 1, 1], [], []>} : vector<64x128xf32>, vector<128x256xf32>, vector<64x256xf32> -> vector<64x256xf32>
    %c0_82 = arith.constant 0 : index
    %c0_83 = arith.constant 0 : index
    %93 = vector.load %arg9[%c0_82, %c0_83] : memref<256x128xf32, #tpu.memory_space<vmem>>, vector<256x128xf32>
    %cst_84 = arith.constant dense<0.000000e+00> : vector<64x128xf32>
    %94 = tpu.matmul %92, %93, %cst_84 {dimension_numbers = #tpu.dot_dimension_numbers<[1], [0], [0], [1], [0, 0, 1, 1], [], []>} : vector<64x256xf32>, vector<256x128xf32>, vector<64x128xf32> -> vector<64x128xf32>
    %cst_85 = arith.constant 0.000000e+00 : f32
    %95 = vector.broadcast %cst_85 : f32 to vector<64x128xf32>
    %96 = arith.maximumf %94, %95 : vector<64x128xf32>
    %97 = tpu.transpose %96, [1, 0] : vector<64x128xf32> -> vector<128x64xf32>
    %98 = vector.extract_strided_slice %97 {offsets = [0, 0], sizes = [8, 64], strides = [1, 1]} : vector<128x64xf32> to vector<8x64xf32>
    %c0_86 = arith.constant 0 : index
    %c0_87 = arith.constant 0 : index
    %99 = vector.load %arg20[%c0_86, %c0_87] : memref<8x1024xf32, #tpu.memory_space<vmem>>, vector<8x64xf32>
    tpu.vector_store %arg20[%c0_86, %c0_87], %98 {strides = array<i32>} : memref<8x1024xf32, #tpu.memory_space<vmem>>, vector<8x64xf32>,
    %100 = vector.extract_strided_slice %97 {offsets = [8, 0], sizes = [8, 64], strides = [1, 1]} : vector<128x64xf32> to vector<8x64xf32>
    %c0_88 = arith.constant 0 : index
    %c64_89 = arith.constant 64 : index
    %101 = vector.load %arg20[%c0_88, %c64_89] : memref<8x1024xf32, #tpu.memory_space<vmem>>, vector<8x64xf32>
    tpu.vector_store %arg20[%c0_88, %c64_89], %100 {strides = array<i32>} : memref<8x1024xf32, #tpu.memory_space<vmem>>, vector<8x64xf32>,
    %102 = vector.extract_strided_slice %97 {offsets = [16, 0], sizes = [8, 64], strides = [1, 1]} : vector<128x64xf32> to vector<8x64xf32>
    %c0_90 = arith.constant 0 : index
    %c128_91 = arith.constant 128 : index
    %103 = vector.load %arg20[%c0_90, %c128_91] : memref<8x1024xf32, #tpu.memory_space<vmem>>, vector<8x64xf32>
    tpu.vector_store %arg20[%c0_90, %c128_91], %102 {strides = array<i32>} : memref<8x1024xf32, #tpu.memory_space<vmem>>, vector<8x64xf32>,
    %104 = vector.extract_strided_slice %97 {offsets = [24, 0], sizes = [8, 64], strides = [1, 1]} : vector<128x64xf32> to vector<8x64xf32>
    %c0_92 = arith.constant 0 : index
    %c192_93 = arith.constant 192 : index
    %105 = vector.load %arg20[%c0_92, %c192_93] : memref<8x1024xf32, #tpu.memory_space<vmem>>, vector<8x64xf32>
    tpu.vector_store %arg20[%c0_92, %c192_93], %104 {strides = array<i32>} : memref<8x1024xf32, #tpu.memory_space<vmem>>, vector<8x64xf32>,
    %106 = vector.extract_strided_slice %97 {offsets = [32, 0], sizes = [8, 64], strides = [1, 1]} : vector<128x64xf32> to vector<8x64xf32>
    %c0_94 = arith.constant 0 : index
    %c256_95 = arith.constant 256 : index
    %107 = vector.load %arg20[%c0_94, %c256_95] : memref<8x1024xf32, #tpu.memory_space<vmem>>, vector<8x64xf32>
    tpu.vector_store %arg20[%c0_94, %c256_95], %106 {strides = array<i32>} : memref<8x1024xf32, #tpu.memory_space<vmem>>, vector<8x64xf32>,
    %108 = vector.extract_strided_slice %97 {offsets = [40, 0], sizes = [8, 64], strides = [1, 1]} : vector<128x64xf32> to vector<8x64xf32>
    %c0_96 = arith.constant 0 : index
    %c320_97 = arith.constant 320 : index
    %109 = vector.load %arg20[%c0_96, %c320_97] : memref<8x1024xf32, #tpu.memory_space<vmem>>, vector<8x64xf32>
    tpu.vector_store %arg20[%c0_96, %c320_97], %108 {strides = array<i32>} : memref<8x1024xf32, #tpu.memory_space<vmem>>, vector<8x64xf32>,
    %110 = vector.extract_strided_slice %97 {offsets = [48, 0], sizes = [8, 64], strides = [1, 1]} : vector<128x64xf32> to vector<8x64xf32>
    %c0_98 = arith.constant 0 : index
    %c384_99 = arith.constant 384 : index
    %111 = vector.load %arg20[%c0_98, %c384_99] : memref<8x1024xf32, #tpu.memory_space<vmem>>, vector<8x64xf32>
    tpu.vector_store %arg20[%c0_98, %c384_99], %110 {strides = array<i32>} : memref<8x1024xf32, #tpu.memory_space<vmem>>, vector<8x64xf32>,
    %112 = vector.extract_strided_slice %97 {offsets = [56, 0], sizes = [8, 64], strides = [1, 1]} : vector<128x64xf32> to vector<8x64xf32>
    %c0_100 = arith.constant 0 : index
    %c448_101 = arith.constant 448 : index
    %113 = vector.load %arg20[%c0_100, %c448_101] : memref<8x1024xf32, #tpu.memory_space<vmem>>, vector<8x64xf32>
    tpu.vector_store %arg20[%c0_100, %c448_101], %112 {strides = array<i32>} : memref<8x1024xf32, #tpu.memory_space<vmem>>, vector<8x64xf32>,
    %114 = vector.extract_strided_slice %97 {offsets = [64, 0], sizes = [8, 64], strides = [1, 1]} : vector<128x64xf32> to vector<8x64xf32>
    %c0_102 = arith.constant 0 : index
    %c512_103 = arith.constant 512 : index
    %115 = vector.load %arg20[%c0_102, %c512_103] : memref<8x1024xf32, #tpu.memory_space<vmem>>, vector<8x64xf32>
    tpu.vector_store %arg20[%c0_102, %c512_103], %114 {strides = array<i32>} : memref<8x1024xf32, #tpu.memory_space<vmem>>, vector<8x64xf32>,
    %116 = vector.extract_strided_slice %97 {offsets = [72, 0], sizes = [8, 64], strides = [1, 1]} : vector<128x64xf32> to vector<8x64xf32>
    %c0_104 = arith.constant 0 : index
    %c576 = arith.constant 576 : index
    %117 = vector.load %arg20[%c0_104, %c576] : memref<8x1024xf32, #tpu.memory_space<vmem>>, vector<8x64xf32>
    tpu.vector_store %arg20[%c0_104, %c576], %116 {strides = array<i32>} : memref<8x1024xf32, #tpu.memory_space<vmem>>, vector<8x64xf32>,
    %118 = vector.extract_strided_slice %97 {offsets = [80, 0], sizes = [8, 64], strides = [1, 1]} : vector<128x64xf32> to vector<8x64xf32>
    %c0_105 = arith.constant 0 : index
    %c640 = arith.constant 640 : index
    %119 = vector.load %arg20[%c0_105, %c640] : memref<8x1024xf32, #tpu.memory_space<vmem>>, vector<8x64xf32>
    tpu.vector_store %arg20[%c0_105, %c640], %118 {strides = array<i32>} : memref<8x1024xf32, #tpu.memory_space<vmem>>, vector<8x64xf32>,
    %120 = vector.extract_strided_slice %97 {offsets = [88, 0], sizes = [8, 64], strides = [1, 1]} : vector<128x64xf32> to vector<8x64xf32>
    %c0_106 = arith.constant 0 : index
    %c704 = arith.constant 704 : index
    %121 = vector.load %arg20[%c0_106, %c704] : memref<8x1024xf32, #tpu.memory_space<vmem>>, vector<8x64xf32>
    tpu.vector_store %arg20[%c0_106, %c704], %120 {strides = array<i32>} : memref<8x1024xf32, #tpu.memory_space<vmem>>, vector<8x64xf32>,
    %122 = vector.extract_strided_slice %97 {offsets = [96, 0], sizes = [8, 64], strides = [1, 1]} : vector<128x64xf32> to vector<8x64xf32>
    %c0_107 = arith.constant 0 : index
    %c768 = arith.constant 768 : index
    %123 = vector.load %arg20[%c0_107, %c768] : memref<8x1024xf32, #tpu.memory_space<vmem>>, vector<8x64xf32>
    tpu.vector_store %arg20[%c0_107, %c768], %122 {strides = array<i32>} : memref<8x1024xf32, #tpu.memory_space<vmem>>, vector<8x64xf32>,
    %124 = vector.extract_strided_slice %97 {offsets = [104, 0], sizes = [8, 64], strides = [1, 1]} : vector<128x64xf32> to vector<8x64xf32>
    %c0_108 = arith.constant 0 : index
    %c832 = arith.constant 832 : index
    %125 = vector.load %arg20[%c0_108, %c832] : memref<8x1024xf32, #tpu.memory_space<vmem>>, vector<8x64xf32>
    tpu.vector_store %arg20[%c0_108, %c832], %124 {strides = array<i32>} : memref<8x1024xf32, #tpu.memory_space<vmem>>, vector<8x64xf32>,
    %126 = vector.extract_strided_slice %97 {offsets = [112, 0], sizes = [8, 64], strides = [1, 1]} : vector<128x64xf32> to vector<8x64xf32>
    %c0_109 = arith.constant 0 : index
    %c896 = arith.constant 896 : index
    %127 = vector.load %arg20[%c0_109, %c896] : memref<8x1024xf32, #tpu.memory_space<vmem>>, vector<8x64xf32>
    tpu.vector_store %arg20[%c0_109, %c896], %126 {strides = array<i32>} : memref<8x1024xf32, #tpu.memory_space<vmem>>, vector<8x64xf32>,
    %128 = vector.extract_strided_slice %97 {offsets = [120, 0], sizes = [8, 64], strides = [1, 1]} : vector<128x64xf32> to vector<8x64xf32>
    %c0_110 = arith.constant 0 : index
    %c960 = arith.constant 960 : index
    %129 = vector.load %arg20[%c0_110, %c960] : memref<8x1024xf32, #tpu.memory_space<vmem>>, vector<8x64xf32>
    tpu.vector_store %arg20[%c0_110, %c960], %128 {strides = array<i32>} : memref<8x1024xf32, #tpu.memory_space<vmem>>, vector<8x64xf32>,
    %c0_111 = arith.constant 0 : index
    %c0_112 = arith.constant 0 : index
    %130 = vector.load %arg20[%c0_111, %c0_112] : memref<8x1024xf32, #tpu.memory_space<vmem>>, vector<8x1024xf32>
    %c0_113 = arith.constant 0 : index
    %c0_114 = arith.constant 0 : index
    %131 = vector.load %arg10[%c0_113, %c0_114] : memref<1024x512xf32, #tpu.memory_space<vmem>>, vector<1024x512xf32>
    %cst_115 = arith.constant dense<0.000000e+00> : vector<8x512xf32>
    %132 = tpu.matmul %130, %131, %cst_115 {dimension_numbers = #tpu.dot_dimension_numbers<[1], [0], [0], [1], [0, 0, 1, 1], [], []>} : vector<8x1024xf32>, vector<1024x512xf32>, vector<8x512xf32> -> vector<8x512xf32>
    %c0_116 = arith.constant 0 : index
    %c0_117 = arith.constant 0 : index
    %133 = vector.load %arg11[%c0_116, %c0_117] : memref<1x512xf32, #tpu.memory_space<vmem>>, vector<1x512xf32>
    %134 = vector.broadcast %133 : vector<1x512xf32> to vector<8x512xf32>
    %135 = arith.addf %132, %134 : vector<8x512xf32>
    %cst_118 = arith.constant 0.000000e+00 : f32
    %136 = vector.broadcast %cst_118 : f32 to vector<8x512xf32>
    %137 = arith.maximumf %135, %136 : vector<8x512xf32>
    %c0_119 = arith.constant 0 : index
    %c0_120 = arith.constant 0 : index
    %138 = vector.load %arg12[%c0_119, %c0_120] : memref<512x128xf32, #tpu.memory_space<vmem>>, vector<512x128xf32>
    %cst_121 = arith.constant dense<0.000000e+00> : vector<8x128xf32>
    %139 = tpu.matmul %137, %138, %cst_121 {dimension_numbers = #tpu.dot_dimension_numbers<[1], [0], [0], [1], [0, 0, 1, 1], [], []>} : vector<8x512xf32>, vector<512x128xf32>, vector<8x128xf32> -> vector<8x128xf32>
    %c0_122 = arith.constant 0 : index
    %c0_123 = arith.constant 0 : index
    %140 = vector.load %arg13[%c0_122, %c0_123] : memref<1x128xf32, #tpu.memory_space<vmem>>, vector<1x128xf32>
    %141 = vector.broadcast %140 : vector<1x128xf32> to vector<8x128xf32>
    %142 = arith.addf %139, %141 : vector<8x128xf32>
    %cst_124 = arith.constant 0.000000e+00 : f32
    %143 = vector.broadcast %cst_124 : f32 to vector<8x128xf32>
    %144 = arith.maximumf %142, %143 : vector<8x128xf32>
    %c0_125 = arith.constant 0 : index
    %c0_126 = arith.constant 0 : index
    %145 = vector.load %arg14[%c0_125, %c0_126] : memref<128x128xf32, #tpu.memory_space<vmem>>, vector<128x128xf32>
    %cst_127 = arith.constant dense<0.000000e+00> : vector<8x128xf32>
    %146 = tpu.matmul %144, %145, %cst_127 {dimension_numbers = #tpu.dot_dimension_numbers<[1], [0], [0], [1], [0, 0, 1, 1], [], []>} : vector<8x128xf32>, vector<128x128xf32>, vector<8x128xf32> -> vector<8x128xf32>
    %c0_128 = arith.constant 0 : index
    %c0_129 = arith.constant 0 : index
    %147 = vector.load %arg15[%c0_128, %c0_129] : memref<1x128xf32, #tpu.memory_space<vmem>>, vector<1x128xf32>
    %148 = vector.broadcast %147 : vector<1x128xf32> to vector<8x128xf32>
    %149 = arith.addf %146, %148 : vector<8x128xf32>
    %cst_130 = arith.constant dense<0xFF800000> : vector<8xf32>
    %150 = vector.multi_reduction <maximumf>, %149, %cst_130 [1] : vector<8x128xf32> to vector<8xf32>
    %151 = vector.shape_cast %150 : vector<8xf32> to vector<8x1xf32>
    %152 = vector.broadcast %151 : vector<8x1xf32> to vector<8x128xf32>
    %153 = arith.subf %149, %152 : vector<8x128xf32>
    %154 = math.exp %153 : vector<8x128xf32>
    %cst_131 = arith.constant dense<0.000000e+00> : vector<8xf32>
    %155 = vector.multi_reduction <add>, %154, %cst_131 [1] : vector<8x128xf32> to vector<8xf32>
    %156 = vector.shape_cast %155 : vector<8xf32> to vector<8x1xf32>
    %157 = math.log %156 : vector<8x1xf32>
    %158 = arith.addf %151, %157 : vector<8x1xf32>
    %159 = vector.broadcast %158 : vector<8x1xf32> to vector<8x128xf32>
    %160 = arith.subf %149, %159 : vector<8x128xf32>
    %c0_132 = arith.constant 0 : index
    %c0_133 = arith.constant 0 : index
    %161 = vector.load %arg16[%c0_132, %c0_133] : memref<8x128xf32, #tpu.memory_space<vmem>>, vector<8x128xf32>
    tpu.vector_store %arg16[%c0_132, %c0_133], %160 {strides = array<i32>} : memref<8x128xf32, #tpu.memory_space<vmem>>, vector<8x128xf32>,
    return
  }
  func.func @transform_0(%arg0: i32) -> (i32, i32, i32) {
    %c0_i32 = arith.constant 0 : i32
    %c0_i32_0 = arith.constant 0 : i32
    %c0_i32_1 = arith.constant 0 : i32
    return %arg0, %c0_i32, %c0_i32_0 : i32, i32, i32
  }
  func.func @transform_1(%arg0: i32) -> i32 {
    %c0_i32 = arith.constant 0 : i32
    %c0_i32_0 = arith.constant 0 : i32
    return %c0_i32 : i32
  }
  func.func @transform_2(%arg0: i32) -> i32 {
    %c0_i32 = arith.constant 0 : i32
    %c0_i32_0 = arith.constant 0 : i32
    return %c0_i32 : i32
  }
  func.func @transform_3(%arg0: i32) -> (i32, i32) {
    %c0_i32 = arith.constant 0 : i32
    %c0_i32_0 = arith.constant 0 : i32
    %c0_i32_1 = arith.constant 0 : i32
    return %c0_i32, %c0_i32_0 : i32, i32
  }
  func.func @transform_4(%arg0: i32) -> (i32, i32) {
    %c0_i32 = arith.constant 0 : i32
    %c0_i32_0 = arith.constant 0 : i32
    %c0_i32_1 = arith.constant 0 : i32
    return %c0_i32, %c0_i32_0 : i32, i32
  }
  func.func @transform_5(%arg0: i32) -> (i32, i32) {
    %c0_i32 = arith.constant 0 : i32
    %c0_i32_0 = arith.constant 0 : i32
    %c0_i32_1 = arith.constant 0 : i32
    return %c0_i32, %c0_i32_0 : i32, i32
  }
  func.func @transform_6(%arg0: i32) -> (i32, i32) {
    %c0_i32 = arith.constant 0 : i32
    %c0_i32_0 = arith.constant 0 : i32
    %c0_i32_1 = arith.constant 0 : i32
    return %c0_i32, %c0_i32_0 : i32, i32
  }
  func.func @transform_7(%arg0: i32) -> (i32, i32) {
    %c0_i32 = arith.constant 0 : i32
    %c0_i32_0 = arith.constant 0 : i32
    %c0_i32_1 = arith.constant 0 : i32
    return %c0_i32, %c0_i32_0 : i32, i32
  }
  func.func @transform_8(%arg0: i32) -> (i32, i32) {
    %c0_i32 = arith.constant 0 : i32
    %c0_i32_0 = arith.constant 0 : i32
    %c0_i32_1 = arith.constant 0 : i32
    return %c0_i32, %c0_i32_0 : i32, i32
  }
  func.func @transform_9(%arg0: i32) -> (i32, i32) {
    %c0_i32 = arith.constant 0 : i32
    %c0_i32_0 = arith.constant 0 : i32
    %c0_i32_1 = arith.constant 0 : i32
    return %c0_i32, %c0_i32_0 : i32, i32
  }
  func.func @transform_10(%arg0: i32) -> (i32, i32) {
    %c0_i32 = arith.constant 0 : i32
    %c0_i32_0 = arith.constant 0 : i32
    %c0_i32_1 = arith.constant 0 : i32
    return %c0_i32, %c0_i32_0 : i32, i32
  }
  func.func @transform_11(%arg0: i32) -> (i32, i32) {
    %c0_i32 = arith.constant 0 : i32
    %c0_i32_0 = arith.constant 0 : i32
    %c0_i32_1 = arith.constant 0 : i32
    return %c0_i32, %c0_i32_0 : i32, i32
  }
  func.func @transform_12(%arg0: i32) -> (i32, i32) {
    %c0_i32 = arith.constant 0 : i32
    %c0_i32_0 = arith.constant 0 : i32
    %c0_i32_1 = arith.constant 0 : i32
    return %c0_i32, %c0_i32_0 : i32, i32
  }
  func.func @transform_13(%arg0: i32) -> (i32, i32) {
    %c0_i32 = arith.constant 0 : i32
    %c0_i32_0 = arith.constant 0 : i32
    %c0_i32_1 = arith.constant 0 : i32
    return %c0_i32, %c0_i32_0 : i32, i32
  }
  func.func @transform_14(%arg0: i32) -> (i32, i32) {
    %c0_i32 = arith.constant 0 : i32
    %c0_i32_0 = arith.constant 0 : i32
    %c0_i32_1 = arith.constant 0 : i32
    return %c0_i32, %c0_i32_0 : i32, i32
  }
  func.func @transform_15(%arg0: i32) -> (i32, i32) {
    %c0_i32 = arith.constant 0 : i32
    %c0_i32_0 = arith.constant 0 : i32
    return %arg0, %c0_i32 : i32, i32
  }
}

</mosaic_0001>

<bundles_post_ra>
// kernel: net_forward.1
= control target key start
LH: loop header
LB: loop body
LE: loop exit
PB: predicated region body
PF: predicated region fallthrough
CT: control target
= control target key end

     0   :  { %s10305_s0 = inlined_call_operand.vmem [shape: f32[8,32,64], index: 0, kind: input, shape index: {}]   ;;  %s10306_s1 = inlined_call_operand.hbm [shape: f32[4], index: 1, kind: input, shape index: {}]   ;;  %s10307_s2 = inlined_call_operand.hbm [shape: f32[4], index: 2, kind: input, shape index: {}]   ;;  %s10308_s3 = inlined_call_operand.vmem [shape: f32[128,576], index: 3, kind: input, shape index: {}]   ;;  %s10309_s4 = inlined_call_operand.vmem [shape: f32[128,1], index: 4, kind: input, shape index: {}]   ;;  %s10310_s5 = inlined_call_operand.hbm [shape: f32[64,128], index: 5, kind: input, shape index: {}]   ;;  %s10311_s6 = inlined_call_operand.hbm [shape: f32[512,256], index: 6, kind: input, shape index: {}]   ;;  %s10312_s7 = inlined_call_operand.hbm [shape: f32[64,128], index: 7, kind: input, shape index: {}]   ;;  %s10313_s8 = inlined_call_operand.hbm [shape: f32[256,128], index: 8, kind: input, shape index: {}]   ;;  %s10314_s9 = inlined_call_operand.hbm [shape: f32[1024,512], index: 9, kind: input, shape index: {}]   ;;  %s10315_s10 = inlined_call_operand.hbm [shape: f32[1,512], index: 10, kind: input, shape index: {}]   ;;  %s10316_s11 = inlined_call_operand.hbm [shape: f32[512,128], index: 11, kind: input, shape index: {}]   ;;  %s10317_s12 = inlined_call_operand.hbm [shape: f32[1,128], index: 12, kind: input, shape index: {}]   ;;  %s10318_s13 = inlined_call_operand.hbm [shape: f32[128,128], index: 13, kind: input, shape index: {}]   ;;  %s10319_s14 = inlined_call_operand.hbm [shape: f32[1,128], index: 14, kind: input, shape index: {}]   ;;  %s10320_s15 = inlined_call_operand.vmem [shape: f32[8,128], index: 15, kind: output, shape index: {}]  }
   0x1   :  { %10390 = sst [smem:[#allocation65_spill]] %s10320_s15 }
   0x2   :  { %20 = vsyncpa [#allocation8], 0 }
   0x3   :  { %21 = vsyncpa [#allocation10], 0 }
   0x4   :  { %22 = vsyncpa [#allocation7], 0 }
   0x5   :  { %23 = vsyncpa [#allocation13], 0 }
   0x6   :  { %24 = vsyncpa [#allocation16], 0 }
   0x7   :  { %25 = vsyncpa [#allocation19], 0 }
   0x8   :  { %26 = vsyncpa [#allocation22], 0 }
   0x9   :  { %27 = vsyncpa [#allocation25], 0  ;;  %s7166_s18 = smov [#allocation12]   ;;  %s6910_s22 = scalar_lea.hbm %s10311_s6, 16384 }
   0xa   :  { %s67_s19 = sshll.u32 %s7166_s18, 4  ;;  %p6911_p0 = scmp.ne.s32.totalorder %s10311_s6, %s6910_s22  ;;  %s68_s19 = int_to_ptr.vmem [resolvable:$true] %s67_s19 }
   0xb   :  { %p6914_p1 = scmp.lt.u32.totalorder %s6910_s22, %s10311_s6 }
   0xd   :  { %p6916_p2 = pnand %p6914_p1, %p6911_p0 }
   0xf   :  { %6919 = shalt.err (!%p6916_p2)
}
  0x10   :  { %s6920_s27 = scalar_lea.vmem %s68_s19, 16384  ;;  %p6925_p4 = scmp.lt.s32.totalorder %s68_s19, %s68_s19 }
  0x11   :  { %p6921_p3 = scmp.ne.s32.totalorder %s68_s19, %s6920_s27  ;;  %p6926_p5 = scmp.lt.s32.totalorder %s6920_s27, %s6920_s27 }
  0x13   :  { %p6927_p6 = por %p6926_p5, %p6925_p4 }
  0x15   :  { %p6928_p7 = pnand %p6927_p6, %p6921_p3 }
  0x17   :  { %6931 = shalt.err (!%p6928_p7)
}
  0x18   :  { %s7167_s28 = smov 256   ;;  %s7168_s29 = smov 16  }
  0x19   :  { %73 = dma.hbm_to_vmem [thread:$0]  %s10311_s6, 16384, %s68_s19, [#allocation13], %s7167_s28, %s7167_s28, %s7168_s29  }
  0x1a   :  { %s7169_s17 = smov [#allocation15]   ;;  %s7170_s20 = smov [#allocation18]  }
  0x1b   :  { %s91_s18 = sshll.u32 %s7169_s17, 4  ;;  %s116_s21 = sshll.u32 %s7170_s20, 4  ;;  %s92_s18 = int_to_ptr.vmem [resolvable:$true] %s91_s18  ;;  %s117_s21 = int_to_ptr.vmem [resolvable:$true] %s116_s21 }
  0x1c   :  { %s6932_s24 = scalar_lea.hbm %s10313_s8, 4096 }
  0x1d   :  { %p6933_p8 = scmp.ne.s32.totalorder %s10313_s8, %s6932_s24  ;;  %p6936_p9 = scmp.lt.u32.totalorder %s6932_s24, %s10313_s8 }
  0x1f   :  { %p6938_p10 = pnand %p6936_p9, %p6933_p8 }
  0x21   :  { %6941 = shalt.err (!%p6938_p10)
}
  0x22   :  { %s6942_s6 = scalar_lea.vmem %s92_s18, 4096  ;;  %p6947_p12 = scmp.lt.s32.totalorder %s92_s18, %s92_s18 }
  0x23   :  { %p6943_p11 = scmp.ne.s32.totalorder %s92_s18, %s6942_s6  ;;  %p6948_p13 = scmp.lt.s32.totalorder %s6942_s6, %s6942_s6 }
  0x25   :  { %p6949_p0 = por %p6948_p13, %p6947_p12 }
  0x27   :  { %p6950_p1 = pnand %p6949_p0, %p6943_p11 }
  0x29   :  { %6953 = shalt.err (!%p6950_p1)
}
  0x2a   :  { %s7171_s19 = smov 128   ;;  %s7172_s28 = smov 8  }
  0x2b   :  { %97 = dma.hbm_to_vmem [thread:$0]  %s10313_s8, 4096, %s92_s18, [#allocation16], %s7171_s19, %s7171_s19, %s7172_s28  }
  0x2c   :  { %s6954_s17 = scalar_lea.hbm %s10315_s10, 64 }
  0x2d   :  { %p6955_p2 = scmp.ne.s32.totalorder %s10315_s10, %s6954_s17  ;;  %p6958_p3 = scmp.lt.u32.totalorder %s6954_s17, %s10315_s10 }
  0x2f   :  { %p6960_p4 = pnand %p6958_p3, %p6955_p2 }
  0x31   :  { %6963 = shalt.err (!%p6960_p4)
}
  0x32   :  { %s6964_s25 = scalar_lea.vmem %s117_s21, 64  ;;  %p6969_p6 = scmp.lt.s32.totalorder %s117_s21, %s117_s21 }
  0x33   :  { %p6965_p5 = scmp.ne.s32.totalorder %s117_s21, %s6964_s25  ;;  %p6970_p7 = scmp.lt.s32.totalorder %s6964_s25, %s6964_s25 }
  0x35   :  { %p6971_p8 = por %p6970_p7, %p6969_p6 }
  0x37   :  { %p6972_p9 = pnand %p6971_p8, %p6965_p5 }
  0x39   :  { %6975 = shalt.err (!%p6972_p9)
}
  0x3a   :  { %119 = dma.hbm_to_vmem [thread:$0]  %s10315_s10, 64, %s117_s21, [#allocation19]  }
  0x3b   :  { %s7173_s26 = smov [#allocation21]   ;;  %s6976_s30 = scalar_lea.hbm %s10317_s12, 16 }
  0x3c   :  { %s138_s27 = sshll.u32 %s7173_s26, 4  ;;  %p6977_p10 = scmp.ne.s32.totalorder %s10317_s12, %s6976_s30  ;;  %s139_s27 = int_to_ptr.vmem [resolvable:$true] %s138_s27 }
  0x3d   :  { %p6980_p11 = scmp.lt.u32.totalorder %s6976_s30, %s10317_s12 }
  0x3f   :  { %p6982_p12 = pnand %p6980_p11, %p6977_p10 }
  0x41   :  { %6985 = shalt.err (!%p6982_p12)
}
  0x42   :  { %s6986_s22 = scalar_lea.vmem %s139_s27, 16  ;;  %s6990_s10 = scalar_lea.vmem %s139_s27, 32 }
  0x43   :  { %p6987_p13 = scmp.ne.s32.totalorder %s139_s27, %s6986_s22  ;;  %p6991_p0 = scmp.lt.s32.totalorder %s139_s27, %s139_s27 }
  0x44   :  { %p6992_p1 = scmp.lt.s32.totalorder %s6990_s10, %s6986_s22 }
  0x46   :  { %p6993_p2 = por %p6992_p1, %p6991_p0 }
  0x48   :  { %p6994_p3 = pnand %p6993_p2, %p6987_p13 }
  0x4a   :  { %6997 = shalt.err (!%p6994_p3)
}
  0x4b   :  { %141 = dma.hbm_to_vmem [thread:$0]  %s10317_s12, 16, %s139_s27, [#allocation22]  }
  0x4c   :  { %s6998_s8 = scalar_lea.hbm %s10306_s1, 16 }
  0x4d   :  { %p6999_p4 = scmp.ne.s32.totalorder %s10306_s1, %s6998_s8  ;;  %p7002_p5 = scmp.lt.u32.totalorder %s6998_s8, %s10306_s1 }
  0x4f   :  { %p7004_p6 = pnand %p7002_p5, %p6999_p4 }
  0x51   :  { %7007 = shalt.err (!%p7004_p6)
}
  0x52   :  { %s7174_s30 = smov [#allocation6]   ;;  %s7008_s17 = scalar_lea.hbm %s10307_s2, 16 }
  0x53   :  { %37 = dma.hbm_to_smem %s10306_s1, 16, %s7174_s30, [#allocation8]  }
  0x54   :  { %p7009_p7 = scmp.ne.s32.totalorder %s10307_s2, %s7008_s17  ;;  %p7012_p8 = scmp.lt.u32.totalorder %s7008_s17, %s10307_s2 }
  0x56   :  { %p7014_p9 = pnand %p7012_p8, %p7009_p7 }
  0x58   :  { %7017 = shalt.err (!%p7014_p9)
}
  0x59   :  { %s7175_s23 = smov [#allocation9]   ;;  %s7176_s1 = smov [#allocation11]  }
  0x5a   :  { %45 = dma.hbm_to_smem %s10307_s2, 16, %s7175_s23, [#allocation10]  }
  0x5b   :  { %s55_s8 = sshll.u32 %s7176_s1, 4  ;;  %s7177_s18 = smov [#allocation14]   ;;  %s56_s8 = int_to_ptr.vmem [resolvable:$true] %s55_s8 }
  0x5c   :  { %s79_s26 = sshll.u32 %s7177_s18, 4  ;;  %s7018_s30 = scalar_lea.hbm %s10310_s5, 1024  ;;  %s7346_s26 = int_to_ptr.vmem [resolvable:$true] %s79_s26 }
  0x5d   :  { %p7019_p10 = scmp.ne.s32.totalorder %s10310_s5, %s7018_s30  ;;  %p7022_p11 = scmp.lt.u32.totalorder %s7018_s30, %s10310_s5 }
  0x5f   :  { %p7024_p12 = pnand %p7022_p11, %p7019_p10 }
  0x61   :  { %7027 = shalt.err (!%p7024_p12)
}
  0x62   :  { %s7028_s2 = scalar_lea.vmem %s56_s8, 1024  ;;  %p7033_p0 = scmp.lt.s32.totalorder %s56_s8, %s56_s8 }
  0x63   :  { %p7029_p13 = scmp.ne.s32.totalorder %s56_s8, %s7028_s2  ;;  %p7034_p1 = scmp.lt.s32.totalorder %s7028_s2, %s7028_s2 }
  0x65   :  { %p7035_p2 = por %p7034_p1, %p7033_p0 }
  0x67   :  { %p7036_p3 = pnand %p7035_p2, %p7029_p13 }
  0x69   :  { %7039 = shalt.err (!%p7036_p3)
}
  0x6a   :  { %61 = dma.hbm_to_vmem [thread:$0]  %s10310_s5, 1024, %s56_s8, [#allocation7], %s7171_s19, %s7171_s19, %s7172_s28  }
  0x6b   :  { %s7040_s21 = scalar_lea.hbm %s10312_s7, 1024 }
  0x6c   :  { %p7041_p4 = scmp.ne.s32.totalorder %s10312_s7, %s7040_s21  ;;  %p7044_p5 = scmp.lt.u32.totalorder %s7040_s21, %s10312_s7 }
  0x6e   :  { %p7046_p6 = pnand %p7044_p5, %p7041_p4 }
  0x70   :  { %7049 = shalt.err (!%p7046_p6)
}
  0x71   :  { %s7050_s18 = scalar_lea.vmem %s7346_s26, 1024  ;;  %p7055_p8 = scmp.lt.s32.totalorder %s7346_s26, %s7346_s26 }
  0x72   :  { %p7051_p7 = scmp.ne.s32.totalorder %s7346_s26, %s7050_s18  ;;  %p7056_p9 = scmp.lt.s32.totalorder %s7050_s18, %s7050_s18 }
  0x74   :  { %p7057_p10 = por %p7056_p9, %p7055_p8 }
  0x76   :  { %p7058_p11 = pnand %p7057_p10, %p7051_p7 }
  0x78   :  { %7061 = shalt.err (!%p7058_p11)
}
  0x79   :  { %85 = dma.hbm_to_vmem [thread:$0]  %s10312_s7, 1024, %s7346_s26, [#allocation13], %s7171_s19, %s7171_s19, %s7172_s28  }
  0x7a   :  { %s7178_s6 = smov [#allocation17]   ;;  %s7062_s16 = scalar_lea.hbm %s10314_s9, 65536 }
  0x7b   :  { %s103_s29 = sshll.u32 %s7178_s6, 4  ;;  %p7063_p12 = scmp.ne.s32.totalorder %s10314_s9, %s7062_s16  ;;  %s104_s29 = int_to_ptr.vmem [resolvable:$true] %s103_s29 }
  0x7c   :  { %p7066_p13 = scmp.lt.u32.totalorder %s7062_s16, %s10314_s9 }
  0x7e   :  { %p7068_p0 = pnand %p7066_p13, %p7063_p12 }
  0x80   :  { %7071 = shalt.err (!%p7068_p0)
}
  0x81   :  { %s7072_s20 = scalar_lea.vmem %s104_s29, 65536  ;;  %p7077_p2 = scmp.lt.s32.totalorder %s104_s29, %s104_s29 }
  0x82   :  { %p7073_p1 = scmp.ne.s32.totalorder %s104_s29, %s7072_s20  ;;  %p7078_p3 = scmp.lt.s32.totalorder %s7072_s20, %s7072_s20 }
  0x84   :  { %p7079_p4 = por %p7078_p3, %p7077_p2 }
  0x86   :  { %p7080_p5 = pnand %p7079_p4, %p7073_p1 }
  0x88   :  { %7083 = shalt.err (!%p7080_p5)
}
  0x89   :  { %s7179_s7 = smov 512   ;;  %s7180_s26 = smov 32  }
  0x8a   :  { %109 = dma.hbm_to_vmem [thread:$0]  %s10314_s9, 65536, %s104_s29, [#allocation16], %s7179_s7, %s7179_s7, %s7180_s26  }
  0x8b   :  { %s7181_s21 = smov [#allocation20]   ;;  %s7182_s24 = smov [#allocation23]  }
  0x8c   :  { %s125_s23 = sshll.u32 %s7181_s21, 4  ;;  %s147_s25 = sshll.u32 %s7182_s24, 4  ;;  %s126_s23 = int_to_ptr.vmem [resolvable:$true] %s125_s23  ;;  %s148_s25 = int_to_ptr.vmem [resolvable:$true] %s147_s25 }
  0x8d   :  { %s7084_s5 = scalar_lea.hbm %s10316_s11, 8192 }
  0x8e   :  { %p7085_p6 = scmp.ne.s32.totalorder %s10316_s11, %s7084_s5  ;;  %p7088_p7 = scmp.lt.u32.totalorder %s7084_s5, %s10316_s11 }
  0x90   :  { %p7090_p8 = pnand %p7088_p7, %p7085_p6 }
  0x92   :  { %7093 = shalt.err (!%p7090_p8)
}
  0x93   :  { %s7094_s9 = scalar_lea.vmem %s126_s23, 8192  ;;  %p7099_p10 = scmp.lt.s32.totalorder %s126_s23, %s126_s23 }
  0x94   :  { %p7095_p9 = scmp.ne.s32.totalorder %s126_s23, %s7094_s9  ;;  %p7100_p11 = scmp.lt.s32.totalorder %s7094_s9, %s7094_s9 }
  0x96   :  { %p7101_p12 = por %p7100_p11, %p7099_p10 }
  0x98   :  { %p7102_p13 = pnand %p7101_p12, %p7095_p9 }
  0x9a   :  { %7105 = shalt.err (!%p7102_p13)
}
  0x9b   :  { %131 = dma.hbm_to_vmem [thread:$0]  %s10316_s11, 8192, %s126_s23, [#allocation19], %s7171_s19, %s7171_s19, %s7172_s28  }
  0x9c   :  { %s7106_s2 = scalar_lea.hbm %s10318_s13, 2048 }
  0x9d   :  { %p7107_p0 = scmp.ne.s32.totalorder %s10318_s13, %s7106_s2  ;;  %p7110_p1 = scmp.lt.u32.totalorder %s7106_s2, %s10318_s13 }
  0x9f   :  { %p7112_p2 = pnand %p7110_p1, %p7107_p0 }
  0xa1   :  { %7115 = shalt.err (!%p7112_p2)
}
  0xa2   :  { %s7116_s22 = scalar_lea.vmem %s148_s25, 2048  ;;  %p7121_p4 = scmp.lt.s32.totalorder %s148_s25, %s148_s25 }
  0xa3   :  { %p7117_p3 = scmp.ne.s32.totalorder %s148_s25, %s7116_s22  ;;  %p7122_p5 = scmp.lt.s32.totalorder %s7116_s22, %s7116_s22 }
  0xa5   :  { %p7123_p6 = por %p7122_p5, %p7121_p4 }
  0xa7   :  { %p7124_p7 = pnand %p7123_p6, %p7117_p3 }
  0xa9   :  { %7127 = shalt.err (!%p7124_p7)
}
  0xaa   :  { %153 = dma.hbm_to_vmem [thread:$0]  %s10318_s13, 2048, %s148_s25, [#allocation22], %s7171_s19, %s7171_s19, %s7172_s28  }
  0xab   :  { %s7183_s21 = smov [#allocation24]   ;;  %s7128_s18 = scalar_lea.hbm %s10319_s14, 16 }
  0xac   :  { %s160_s23 = sshll.u32 %s7183_s21, 4  ;;  %p7129_p8 = scmp.ne.s32.totalorder %s10319_s14, %s7128_s18  ;;  %s161_s23 = int_to_ptr.vmem [resolvable:$true] %s160_s23 }
  0xad   :  { %p7132_p9 = scmp.lt.u32.totalorder %s7128_s18, %s10319_s14 }
  0xaf   :  { %p7134_p10 = pnand %p7132_p9, %p7129_p8 }
  0xb1   :  { %7137 = shalt.err (!%p7134_p10)
}
  0xb2   :  { %s7138_s15 = scalar_lea.vmem %s161_s23, 16  ;;  %s7142_s13 = scalar_lea.vmem %s161_s23, 32 }
  0xb3   :  { %p7139_p11 = scmp.ne.s32.totalorder %s161_s23, %s7138_s15  ;;  %p7143_p12 = scmp.lt.s32.totalorder %s161_s23, %s161_s23 }
  0xb4   :  { %p7144_p13 = scmp.lt.s32.totalorder %s7142_s13, %s7138_s15 }
  0xb6   :  { %p7145_p0 = por %p7144_p13, %p7143_p12 }
  0xb8   :  { %p7146_p1 = pnand %p7145_p0, %p7139_p11 }
  0xba   :  { %7149 = shalt.err (!%p7146_p1)
}
  0xbb   :  { %163 = dma.hbm_to_vmem [thread:$0]  %s10319_s14, 16, %s161_s23, [#allocation25]  }
  0xbc   :  { %7150 = dma.done.wait [#allocation8], 16  }
  0xbd   :  { %7151 = vsyncadd [#allocation8], 4294967280 }
  0xbe   :  { %7152 = dma.done.wait [#allocation10], 16  }
  0xbf   :  { %7153 = vsyncadd [#allocation10], 4294967280 }
  0xc0   :  { %7154 = dma.done.wait [#allocation7], 1024  }
  0xc1   :  { %7155 = vsyncadd [#allocation7], 4294966272 }
  0xc2   :  { %7156 = dma.done.wait [#allocation13], 17408  }
  0xc3   :  { %7157 = vsyncadd [#allocation13], 4294949888 }
  0xc4   :  { %7158 = dma.done.wait [#allocation16], 69632  }
  0xc5   :  { %7159 = vsyncadd [#allocation16], 4294897664 }
  0xc6   :  { %7160 = dma.done.wait [#allocation19], 8256  }
  0xc7   :  { %7161 = vsyncadd [#allocation19], 4294959040 }
  0xc8   :  { %7162 = dma.done.wait [#allocation22], 2064  }
  0xc9   :  { %7163 = vsyncadd [#allocation22], 4294965232 }
  0xca   :  { %7164 = dma.done.wait [#allocation25], 16  }
  0xcb   :  { %7165 = vsyncadd [#allocation25], 4294967280 }
  0xcc   :  { %200 = sfence }
  0xcd   :  { %v5056_v0 = vld [vmem:[%s10305_s0 + $0x70] sm:$0xff]  ;;  %v5054_v1 = vld [vmem:[%s10305_s0 + $0x60] sm:$0xff]  ;;  %s7184_s16 = smov 64   ;;  %v5055_v3 = vld [vmem:[%s10305_s0 + $0x68] sm:$0xff]  ;;  %vm205_vm0 = vcmask 523264   ;;  %vm231_vm1 = vcmask 1048064  }
  0xce   :  { %258 = vrot.lane.b32.xlu1 %v5056_v0, %s7184_s16  ;;  %254 = vrot.lane.b32.xlu0 %v5054_v1, %s7184_s16  ;;  %v5062_v2 = vld [vmem:[%s10305_s0 + $0xa0] sm:$0xff]  ;;  %v5064_v4 = vld [vmem:[%s10305_s0 + $0xb0] sm:$0xff]  ;;  %s354_s26 = sld [smem:[#allocation6]]  ;;  %s7185_s11 = smov 127   ;;  %vm7190_vm6 = vmmov 0  }
  0xcf   :  { %v5063_v5 = vld [vmem:[%s10305_s0 + $0xa8] sm:$0xff]  ;;  %v5052_v6 = vld [vmem:[%s10305_s0 + $0x50] sm:$0xff]  ;;  %v5050_v7 = vld [vmem:[%s10305_s0 + $0x40] sm:$0xff]  ;;  %s372_s22 = sld [smem:[#allocation9]]  ;;  %s5075_s10 = sld [smem:[#allocation9 + $0x1]] }
  0xd0   :  { %v5058_v8 = vld [vmem:[%s10305_s0 + $0x80] sm:$0xff]  ;;  %243 = vst.msk [vmem:[#allocation2 + $0x48] sm:$0xff] %vm205_vm0, %v5052_v6  ;;  %241 = vst.msk [vmem:[#allocation2 + $0x8] sm:$0xff] %vm205_vm0, %v5050_v7  ;;  %v5051_v9 = vld [vmem:[%s10305_s0 + $0x48] sm:$0xff]  ;;  %s7681_s21 = sld [smem:[#allocation6 + $0x2]]  ;;  %s5078_s24 = sld [smem:[#allocation6 + $0x3]] }
  0xd1   :  { %275 = vst.msk [vmem:[#allocation2 + $0x10] sm:$0xff] %vm205_vm0, %v5058_v8  ;;  %v5060_v10 = vld [vmem:[%s10305_s0 + $0x90] sm:$0xff]  ;;  %v5059_v11 = vld [vmem:[%s10305_s0 + $0x88] sm:$0xff]  ;;  %242 = vst.msk [vmem:[#allocation2 + $0x28] sm:$0xff] %vm205_vm0, %v5051_v9  ;;  %s5077_s23 = sld [smem:[#allocation9 + $0x2]]  ;;  %s5079_s1 = sld [smem:[#allocation9 + $0x3]] }
  0xd2   :  { %288 = vrot.lane.b32.xlu1 %v5062_v2, %s7184_s16  ;;  %256 = vrot.lane.b32.xlu0 %v5055_v3, %s7184_s16  ;;  %277 = vst.msk [vmem:[#allocation2 + $0x50] sm:$0xff] %vm205_vm0, %v5060_v10  ;;  %276 = vst.msk [vmem:[#allocation2 + $0x30] sm:$0xff] %vm205_vm0, %v5059_v11  ;;  %v202_v12 = vld [vmem:[%s10305_s0 + $0x8] sm:$0xff]  ;;  %v201_v13 = vld [vmem:[%s10305_s0] sm:$0xff]  ;;  %s7187_s18 = smov 126  }
  0xd3   :  { %v5053_v14 = vld [vmem:[%s10305_s0 + $0x58] sm:$0xff]  ;;  %207 = vst.msk [vmem:[#allocation2 + $0x20] sm:$0xff] %vm205_vm0, %v202_v12  ;;  %206 = vst.msk [vmem:[#allocation2] sm:$0xff] %vm205_vm0, %v201_v13  ;;  %v203_v15 = vld [vmem:[%s10305_s0 + $0x10] sm:$0xff] }
  0xd4   :  { %244 = vst.msk [vmem:[#allocation2 + $0x68] sm:$0xff] %vm205_vm0, %v5053_v14  ;;  %v204_v16 = vld [vmem:[%s10305_s0 + $0x18] sm:$0xff]  ;;  %v5047_v17 = vld [vmem:[%s10305_s0 + $0x28] sm:$0xff]  ;;  %v5046_v18 = vld [vmem:[%s10305_s0 + $0x20] sm:$0xff]  ;;  %v7571_v39 = vstv %s354_s26 }
  0xd5   :  { %208 = vst.msk [vmem:[#allocation2 + $0x40] sm:$0xff] %vm205_vm0, %v203_v15  ;;  %209 = vst.msk [vmem:[#allocation2 + $0x60] sm:$0xff] %vm205_vm0, %v204_v16  ;;  %v5061_v19 = vld [vmem:[%s10305_s0 + $0x98] sm:$0xff]  ;;  %v5048_v21 = vld [vmem:[%s10305_s0 + $0x30] sm:$0xff]  ;;  %v7583_v46 = vstv %s372_s22 }
  0xd6   :  { %292 = vrot.lane.b32.xlu1 %v5064_v4, %s7184_s16  ;;  %290 = vrot.lane.b32.xlu0 %v5063_v5, %s7184_s16  ;;  %278 = vst.msk [vmem:[#allocation2 + $0x70] sm:$0xff] %vm205_vm0, %v5061_v19  ;;  %v5057_v20 = vld [vmem:[%s10305_s0 + $0x78] sm:$0xff]  ;;  %v5071_v24 = vld [vmem:[%s10305_s0 + $0xe8] sm:$0xff] }
  0xd7   :  { %v5049_v22 = vld [vmem:[%s10305_s0 + $0x38] sm:$0xff]  ;;  %v5070_v25 = vld [vmem:[%s10305_s0 + $0xe0] sm:$0xff]  ;;  %v5072_v27 = vld [vmem:[%s10305_s0 + $0xf0] sm:$0xff] }
  0xd8   :  { %v5065_v23 = vld [vmem:[%s10305_s0 + $0xb8] sm:$0xff]  ;;  %v5067_v28 = vld [vmem:[%s10305_s0 + $0xc8] sm:$0xff]  ;;  %v5066_v29 = vld [vmem:[%s10305_s0 + $0xc0] sm:$0xff] }
  0xd9   :  { %v5073_v26 = vld [vmem:[%s10305_s0 + $0xf8] sm:$0xff]  ;;  %310 = vst.msk [vmem:[#allocation2 + $0x38] sm:$0xff] %vm205_vm0, %v5067_v28  ;;  %309 = vst.msk [vmem:[#allocation2 + $0x18] sm:$0xff] %vm205_vm0, %v5066_v29  ;;  %v5068_v31 = vld [vmem:[%s10305_s0 + $0xd0] sm:$0xff] }
  0xda   :  { %221 = vrot.lane.b32.xlu1 %v5047_v17, %s7184_s16  ;;  %219 = vrot.lane.b32.xlu0 %v5046_v18, %s7184_s16  ;;  %v5069_v30 = vld [vmem:[%s10305_s0 + $0xd8] sm:$0xff]  ;;  %311 = vst.msk [vmem:[#allocation2 + $0x58] sm:$0xff] %vm205_vm0, %v5068_v31  ;;  %s5074_s0 = sld [smem:[#allocation6 + $0x1]] }
  0xdb   :  { %312 = vst.msk [vmem:[#allocation2 + $0x78] sm:$0xff] %vm205_vm0, %v5069_v30 }
  0xde   :  { %260 = vrot.lane.b32.xlu1 %v5057_v20, %s7184_s16  ;;  %223 = vrot.lane.b32.xlu0 %v5048_v21, %s7184_s16 }
  0xe0   :  { %v7650_v11 = vstv %s5074_s0 }
  0xe2   :  { %225 = vrot.lane.b32.xlu1 %v5049_v22, %s7184_s16  ;;  %294 = vrot.lane.b32.xlu0 %v5065_v23, %s7184_s16  ;;  %v7673_v22 = vstv %s5075_s10 }
  0xe6   :  { %324 = vrot.lane.b32.xlu1 %v5071_v24, %s7184_s16  ;;  %322 = vrot.lane.b32.xlu0 %v5070_v25, %s7184_s16 }
  0xea   :  { %328 = vrot.lane.b32.xlu1 %v5073_v26, %s7184_s16  ;;  %326 = vrot.lane.b32.xlu0 %v5072_v27, %s7184_s16 }
 0x140   :  { %v259_v32 = vpop.permute.xlu1 %258  ;;  %v255_v33 = vpop.permute.xlu0 %254 }
 0x141   :  { %268 = vst.msk [vmem:[#allocation2 + $0x48] sm:$0xff] %vm231_vm1, %v259_v32  ;;  %266 = vst.msk [vmem:[#allocation2 + $0x8] sm:$0xff] %vm231_vm1, %v255_v33 }
 0x144   :  { %v289_v34 = vpop.permute.xlu1 %288  ;;  %v257_v35 = vpop.permute.xlu0 %256 }
 0x145   :  { %300 = vst.msk [vmem:[#allocation2 + $0x10] sm:$0xff] %vm231_vm1, %v289_v34  ;;  %267 = vst.msk [vmem:[#allocation2 + $0x28] sm:$0xff] %vm231_vm1, %v257_v35 }
 0x148   :  { %v293_v36 = vpop.permute.xlu1 %292  ;;  %v291_v37 = vpop.permute.xlu0 %290  ;;  %v7569_v38 = vld [vmem:[#allocation2 + $0x48] sm:$0xff] }
 0x149   :  { %v7573_v40 = vld [vmem:[#allocation2 + $0x8] sm:$0xff]  ;;  %302 = vst.msk [vmem:[#allocation2 + $0x50] sm:$0xff] %vm231_vm1, %v293_v36  ;;  %301 = vst.msk [vmem:[#allocation2 + $0x30] sm:$0xff] %vm231_vm1, %v291_v37  ;;  %v365_v41 = vmul.f32 %v7571_v39, %v7569_v38  ;;  %v417_v31 = vmul.f32 %v7650_v11, %v7569_v38 }
 0x14a   :  { %v357_v42 = vmul.f32 %v7571_v39, %v7573_v40  ;;  %v409_v20 = vmul.f32 %v7650_v11, %v7573_v40 }
 0x14b   :  { %v7597_v51 = vadd.f32 %v7583_v46, %v365_v41 }
 0x14c   :  { %v222_v43 = vpop.permute.xlu1 %221  ;;  %v220_v44 = vpop.permute.xlu0 %219  ;;  %v7581_v45 = vld [vmem:[#allocation2 + $0x10] sm:$0xff]  ;;  %v7585_v47 = vld [vmem:[#allocation2 + $0x28] sm:$0xff]  ;;  %v7600_v52 = vadd.f32 %v7583_v46, %v357_v42  ;;  %v7706_v36 = vadd.f32 %v7673_v22, %v409_v20 }
 0x14d   :  { %233 = vst.msk [vmem:[#allocation2 + $0x20] sm:$0xff] %vm231_vm1, %v222_v43  ;;  %232 = vst.msk [vmem:[#allocation2] sm:$0xff] %vm231_vm1, %v220_v44  ;;  %v358_v48 = vmul.f32 %v7571_v39, %v7581_v45  ;;  %v361_v49 = vmul.f32 %v7571_v39, %v7585_v47  ;;  %v410_v19 = vmul.f32 %v7650_v11, %v7581_v45 }
 0x14e   :  { %v413_v32 = vmul.f32 %v7650_v11, %v7585_v47 }
 0x14f   :  { %v7594_v50 = vadd.f32 %v7583_v46, %v358_v48  ;;  %v7603_v53 = vadd.f32 %v7583_v46, %v361_v49  ;;  %v7700_v34 = vadd.f32 %v7673_v22, %v410_v19 }
 0x150   :  { %v261_v54 = vpop.permute.xlu1 %260  ;;  %v224_v55 = vpop.permute.xlu0 %223  ;;  %v7605_v56 = vld [vmem:[#allocation2 + $0x30] sm:$0xff] }
 0x151   :  { %v7607_v57 = vld [vmem:[#allocation2 + $0x50] sm:$0xff]  ;;  %269 = vst.msk [vmem:[#allocation2 + $0x68] sm:$0xff] %vm231_vm1, %v261_v54  ;;  %234 = vst.msk [vmem:[#allocation2 + $0x40] sm:$0xff] %vm231_vm1, %v224_v55  ;;  %v6434_v58 = vpack.i.bf16 %v7594_v50, %v7597_v51  ;;  %v6429_v59 = vpack.i.bf16 %v7603_v53, %v7600_v52  ;;  %v362_v60 = vmul.f32 %v7571_v39, %v7605_v56 }
 0x152   :  { %v366_v61 = vmul.f32 %v7571_v39, %v7607_v57  ;;  %v414_v24 = vmul.f32 %v7650_v11, %v7605_v56  ;;  %v7725_v54 = vadd.f32 %v7673_v22, %v417_v31  ;;  %v7728_v55 = vadd.f32 %v7673_v22, %v413_v32 }
 0x153   :  { %6435 = vrot.lane.b32.xlu1 %v6434_v58, %s7185_s11  ;;  %6430 = vrot.lane.b32.xlu0 %v6429_v59, %s7185_s11  ;;  %v7622_v62 = vadd.f32 %v7583_v46, %v362_v60  ;;  %v418_v58 = vmul.f32 %v7650_v11, %v7607_v57 }
 0x154   :  { %v7625_v63 = vadd.f32 %v7583_v46, %v366_v61  ;;  %v226_v0 = vpop.permute.xlu1 %225  ;;  %v295_v1 = vpop.permute.xlu0 %294  ;;  %v7627_v2 = vld [vmem:[#allocation2] sm:$0xff]  ;;  %v7709_v37 = vadd.f32 %v7673_v22, %v414_v24 }
 0x155   :  { %10391 = vst [vmem:[#allocation34_spill] sm:$0xff] %v7622_v62  ;;  %v7629_v3 = vld [vmem:[#allocation2 + $0x20] sm:$0xff]  ;;  %235 = vst.msk [vmem:[#allocation2 + $0x60] sm:$0xff] %vm231_vm1, %v226_v0  ;;  %v356_v5 = vmul.f32 %v7571_v39, %v7627_v2  ;;  %v408_v25 = vmul.f32 %v7650_v11, %v7627_v2  ;;  %v7742_v0 = vstv %s7681_s21 }
 0x156   :  { %303 = vst.msk [vmem:[#allocation2 + $0x70] sm:$0xff] %vm231_vm1, %v295_v1  ;;  %v6439_v4 = vpack.i.bf16 %v7625_v63, %v7622_v62  ;;  %v360_v6 = vmul.f32 %v7571_v39, %v7629_v3  ;;  %10392 = vst [vmem:[#allocation35_spill] sm:$0xff] %v7709_v37  ;;  %v412_v42 = vmul.f32 %v7650_v11, %v7629_v3 }
 0x157   :  { %v7641_v7 = vadd.f32 %v7583_v46, %v356_v5  ;;  %v7712_v41 = vadd.f32 %v7673_v22, %v408_v25  ;;  %v6469_v59 = vpack.i.bf16 %v7709_v37, %v7725_v54  ;;  %v460_v19 = vmul.f32 %v7742_v0, %v7627_v2 }
 0x158   :  { %6440 = vrot.lane.b32.xlu0 %v6439_v4, %s7185_s11  ;;  %v7644_v8 = vadd.f32 %v7583_v46, %v360_v6  ;;  %v7646_v9 = vld [vmem:[#allocation2 + $0x40] sm:$0xff]  ;;  %v7648_v10 = vld [vmem:[#allocation2 + $0x68] sm:$0xff]  ;;  %v325_v12 = vpop.permute.xlu1 %324  ;;  %v323_v13 = vpop.permute.xlu0 %322  ;;  %v7739_v61 = vadd.f32 %v7673_v22, %v412_v42  ;;  %v464_v42 = vmul.f32 %v7742_v0, %v7629_v3 }
 0x159   :  { %v364_v15 = vmul.f32 %v7571_v39, %v7646_v9  ;;  %v369_v16 = vmul.f32 %v7571_v39, %v7648_v10  ;;  %335 = vst.msk [vmem:[#allocation2 + $0x38] sm:$0xff] %vm231_vm1, %v325_v12  ;;  %334 = vst.msk [vmem:[#allocation2 + $0x18] sm:$0xff] %vm231_vm1, %v323_v13  ;;  %v416_v48 = vmul.f32 %v7650_v11, %v7646_v9 }
 0x15a   :  { %v6444_v14 = vpack.i.bf16 %v7644_v8, %v7641_v7  ;;  %v421_v49 = vmul.f32 %v7650_v11, %v7648_v10  ;;  %v6464_v60 = vpack.i.bf16 %v7728_v55, %v7712_v41  ;;  %v7757_v12 = vadd.f32 %v7673_v22, %v418_v58 }
 0x15b   :  { %v7662_v17 = vadd.f32 %v7583_v46, %v364_v15  ;;  %v7665_v18 = vadd.f32 %v7583_v46, %v369_v16  ;;  %v7745_v1 = vadd.f32 %v7673_v22, %v416_v48  ;;  %v462_v13 = vmul.f32 %v7742_v0, %v7581_v45 }
 0x15c   :  { %6445 = vrot.lane.b32.xlu1 %v6444_v14, %s7185_s11  ;;  %v7671_v21 = vld [vmem:[#allocation2 + $0x60] sm:$0xff]  ;;  %v329_v26 = vpop.permute.xlu1 %328  ;;  %v327_v27 = vpop.permute.xlu0 %326  ;;  %v7748_v4 = vadd.f32 %v7673_v22, %v421_v49  ;;  %10393 = vst [vmem:[#allocation36_spill] sm:$0xff] %v7757_v12  ;;  %v461_v14 = vmul.f32 %v7742_v0, %v7573_v40  ;;  %v7763_v15 = vstv %s5077_s23  ;;  %v466_v16 = vmul.f32 %v7742_v0, %v7605_v56 }
 0x15d   :  { %v7675_v23 = vld [vmem:[#allocation2 + $0x70] sm:$0xff]  ;;  %v6449_v28 = vpack.i.bf16 %v7665_v18, %v7662_v17  ;;  %v368_v29 = vmul.f32 %v7571_v39, %v7671_v21  ;;  %337 = vst.msk [vmem:[#allocation2 + $0x78] sm:$0xff] %vm231_vm1, %v329_v26  ;;  %336 = vst.msk [vmem:[#allocation2 + $0x58] sm:$0xff] %vm231_vm1, %v327_v27  ;;  %v420_v5 = vmul.f32 %v7650_v11, %v7671_v21 }
 0x15e   :  { %v370_v30 = vmul.f32 %v7571_v39, %v7675_v23  ;;  %v422_v6 = vmul.f32 %v7650_v11, %v7675_v23  ;;  %v6479_v20 = vpack.i.bf16 %v7748_v4, %v7745_v1  ;;  %v6474_v24 = vpack.i.bf16 %v7739_v61, %v7757_v12 }
 0x15f   :  { %6450 = vrot.lane.b32.xlu0 %v6449_v28, %s7185_s11  ;;  %v7697_v33 = vadd.f32 %v7583_v46, %v368_v29  ;;  %v7774_v25 = vadd.f32 %v7673_v22, %v420_v5  ;;  %v469_v27 = vmul.f32 %v7742_v0, %v7569_v38  ;;  %v465_v28 = vmul.f32 %v7742_v0, %v7585_v47 }
 0x160   :  { %v7703_v35 = vadd.f32 %v7583_v46, %v370_v30  ;;  %v7777_v26 = vadd.f32 %v7673_v22, %v422_v6  ;;  %v7786_v29 = vadd.f32 %v7763_v15, %v462_v13  ;;  %v7789_v30 = vadd.f32 %v7763_v15, %v461_v14 }
 0x161   :  { %v6459_v43 = vpack.i.bf16 %v7697_v33, %v7700_v34  ;;  %v7792_v31 = vadd.f32 %v7763_v15, %v466_v16  ;;  %v7795_v32 = vadd.f32 %v7763_v15, %v460_v19  ;;  %v468_v48 = vmul.f32 %v7742_v0, %v7646_v9 }
 0x162   :  { %v6454_v44 = vpack.i.bf16 %v7703_v35, %v7706_v36  ;;  %10394 = vst [vmem:[#allocation37_spill] sm:$0xff] %v7786_v29  ;;  %v473_v49 = vmul.f32 %v7742_v0, %v7648_v10  ;;  %v7808_v58 = vadd.f32 %v7763_v15, %v469_v27  ;;  %v7822_v13 = vadd.f32 %v7763_v15, %v464_v42 }
 0x163   :  { %6460 = vrot.lane.b32.xlu0 %v6459_v43, %s7185_s11  ;;  %10395 = vst [vmem:[#allocation38_spill] sm:$0xff] %v7792_v31  ;;  %v6489_v43 = vpack.i.bf16 %v7774_v25, %v7786_v29  ;;  %v7824_v14 = vstv %s5078_s24  ;;  %v7827_v16 = vadd.f32 %v7763_v15, %v468_v48 }
 0x164   :  { %6455 = vrot.lane.b32.xlu1 %v6454_v44, %s7185_s11  ;;  %v6484_v44 = vpack.i.bf16 %v7777_v26, %v7789_v30  ;;  %v6499_v5 = vpack.i.bf16 %v7792_v31, %v7808_v58  ;;  %v7830_v19 = vadd.f32 %v7763_v15, %v473_v49  ;;  %v513_v42 = vmul.f32 %v7824_v14, %v7573_v40 }
 0x165   :  { %v512_v48 = vmul.f32 %v7824_v14, %v7627_v2  ;;  %v521_v40 = vmul.f32 %v7824_v14, %v7569_v38  ;;  %v516_v38 = vmul.f32 %v7824_v14, %v7629_v3  ;;  %v522_v3 = vmul.f32 %v7824_v14, %v7607_v57 }
 0x166   :  { %v6509_v49 = vpack.i.bf16 %v7830_v19, %v7827_v16 }
 0x167   :  { %6470 = vrot.lane.b32.xlu0 %v6469_v59, %s7185_s11  ;;  %v7811_v59 = vadd.f32 %v7763_v15, %v465_v28  ;;  %v514_v28 = vmul.f32 %v7824_v14, %v7581_v45 }
 0x168   :  { %6465 = vrot.lane.b32.xlu1 %v6464_v60, %s7185_s11  ;;  %v470_v60 = vmul.f32 %v7742_v0, %v7607_v57 }
 0x169   :  { %v6494_v6 = vpack.i.bf16 %v7811_v59, %v7795_v32 }
 0x16a   :  { %v7839_v27 = vadd.f32 %v7763_v15, %v470_v60 }
 0x16b   :  { %6480 = vrot.lane.b32.xlu0 %v6479_v20, %s7185_s11  ;;  %v472_v20 = vmul.f32 %v7742_v0, %v7671_v21 }
 0x16c   :  { %6475 = vrot.lane.b32.xlu1 %v6474_v24, %s7185_s11  ;;  %v474_v24 = vmul.f32 %v7742_v0, %v7675_v23  ;;  %10396 = vst [vmem:[#allocation39_spill] sm:$0xff] %v7839_v27  ;;  %v6504_v60 = vpack.i.bf16 %v7822_v13, %v7839_v27  ;;  %v526_v27 = vmul.f32 %v7824_v14, %v7675_v23 }
 0x16e   :  { %v7859_v45 = vadd.f32 %v7763_v15, %v474_v24  ;;  %v525_v24 = vmul.f32 %v7824_v14, %v7648_v10 }
 0x16f   :  { %6490 = vrot.lane.b32.xlu0 %v6489_v43, %s7185_s11  ;;  %v7845_v43 = vstv %s5079_s1 }
 0x170   :  { %6485 = vrot.lane.b32.xlu1 %v6484_v44, %s7185_s11  ;;  %v518_v44 = vmul.f32 %v7824_v14, %v7605_v56  ;;  %10397 = vst [vmem:[#allocation40_spill] sm:$0xff] %v7859_v45  ;;  %v7866_v56 = vadd.f32 %v7845_v43, %v514_v28  ;;  %v7869_v2 = vadd.f32 %v7845_v43, %v513_v42 }
 0x171   :  { %v7892_v10 = vadd.f32 %v7845_v43, %v521_v40  ;;  %v7908_v40 = vadd.f32 %v7845_v43, %v525_v24  ;;  %v7911_v57 = vadd.f32 %v7845_v43, %v516_v38 }
 0x172   :  { %10398 = vst [vmem:[#allocation41_spill] sm:$0xff] %v7866_v56  ;;  %v6514_v42 = vpack.i.bf16 %v7859_v45, %v7869_v2 }
 0x173   :  { %6500 = vrot.lane.b32.xlu0 %v6499_v5, %s7185_s11  ;;  %v7856_v5 = vadd.f32 %v7763_v15, %v472_v20  ;;  %v520_v20 = vmul.f32 %v7824_v14, %v7646_v9  ;;  %v7889_v9 = vadd.f32 %v7845_v43, %v512_v48  ;;  %v353_v48 = vld [vmem:[#allocation2 + $0x78] sm:$0xff]  ;;  %10400 = vst [vmem:[#allocation43_spill] sm:$0xff] %v7908_v40 }
 0x174   :  { %6495 = vrot.lane.b32.xlu1 %v6494_v6, %s7185_s11  ;;  %v517_v6 = vmul.f32 %v7824_v14, %v7585_v47  ;;  %v7886_v47 = vadd.f32 %v7845_v43, %v518_v44  ;;  %v371_v24 = vmul.f32 %v7571_v39, %v353_v48 }
 0x175   :  { %v6519_v28 = vpack.i.bf16 %v7856_v5, %v7866_v56  ;;  %v7905_v62 = vadd.f32 %v7845_v43, %v520_v20  ;;  %v7922_v20 = vadd.f32 %v7845_v43, %v522_v3 }
 0x176   :  { %10399 = vst [vmem:[#allocation42_spill] sm:$0xff] %v7886_v47  ;;  %v7899_v31 = vadd.f32 %v7845_v43, %v517_v6  ;;  %v6529_v6 = vpack.i.bf16 %v7886_v47, %v7892_v10  ;;  %v7949_v12 = vadd.f32 %v7583_v46, %v371_v24 }
 0x177   :  { %6510 = vrot.lane.b32.xlu0 %v6509_v49, %s7185_s11  ;;  %v341_v49 = vld [vmem:[#allocation2 + $0x18] sm:$0xff]  ;;  %10401 = vst [vmem:[#allocation44_spill] sm:$0xff] %v7922_v20  ;;  %v6539_v23 = vpack.i.bf16 %v7908_v40, %v7905_v62  ;;  %v6534_v3 = vpack.i.bf16 %v7911_v57, %v7922_v20 }
 0x178   :  { %6505 = vrot.lane.b32.xlu1 %v6504_v60, %s7185_s11  ;;  %v7879_v60 = vld [vmem:[#allocation2 + $0x38] sm:$0xff]  ;;  %v359_v37 = vmul.f32 %v7571_v39, %v341_v49  ;;  %v411_v47 = vmul.f32 %v7650_v11, %v341_v49 }
 0x179   :  { %v363_v44 = vmul.f32 %v7571_v39, %v7879_v60  ;;  %v415_v45 = vmul.f32 %v7650_v11, %v7879_v60 }
 0x17b   :  { %6520 = vrot.lane.b32.xlu0 %v6519_v28, %s7185_s11  ;;  %v524_v28 = vmul.f32 %v7824_v14, %v7671_v21  ;;  %v7928_v21 = vadd.f32 %v7583_v46, %v359_v37  ;;  %v7931_v38 = vadd.f32 %v7583_v46, %v363_v44  ;;  %v423_v37 = vmul.f32 %v7650_v11, %v353_v48 }
 0x17c   :  { %6515 = vrot.lane.b32.xlu1 %v6514_v42, %s7185_s11  ;;  %v6524_v42 = vpack.i.bf16 %v7899_v31, %v7889_v9  ;;  %v463_v44 = vmul.f32 %v7742_v0, %v341_v49 }
 0x17d   :  { %10402 = vst [vmem:[#allocation45_spill] sm:$0xff] %v7928_v21  ;;  %10403 = vst [vmem:[#allocation46_spill] sm:$0xff] %v7931_v38  ;;  %v7939_v56 = vadd.f32 %v7845_v43, %v524_v28  ;;  %v7957_v28 = vadd.f32 %v7673_v22, %v411_v47  ;;  %v7963_v24 = vadd.f32 %v7673_v22, %v423_v37 }
 0x17e   :  { %v475_v47 = vmul.f32 %v7742_v0, %v353_v48 }
 0x17f   :  { %6530 = vrot.lane.b32.xlu0 %v6529_v6, %s7185_s11  ;;  %10404 = vst [vmem:[#allocation47_spill] sm:$0xff] %v7939_v56  ;;  %v349_v6 = vld [vmem:[#allocation2 + $0x58] sm:$0xff]  ;;  %v6554_v37 = vpack.i.bf16 %v7957_v28, %v7949_v12 }
 0x180   :  { %6525 = vrot.lane.b32.xlu1 %v6524_v42, %s7185_s11  ;;  %v7942_v42 = vadd.f32 %v7845_v43, %v526_v27  ;;  %v419_v40 = vmul.f32 %v7650_v11, %v349_v6  ;;  %v6549_v27 = vpack.i.bf16 %v7931_v38, %v7928_v21  ;;  %v367_v20 = vmul.f32 %v7571_v39, %v349_v6 }
 0x181   :  { %v7966_v11 = vadd.f32 %v7763_v15, %v463_v44  ;;  %v515_v38 = vmul.f32 %v7824_v14, %v341_v49  ;;  %v467_v39 = vmul.f32 %v7742_v0, %v7879_v60  ;;  %v7991_v44 = vadd.f32 %v7763_v15, %v475_v47 }
 0x182   :  { %10405 = vst [vmem:[#allocation48_spill] sm:$0xff] %v7942_v42  ;;  %v6544_v29 = vpack.i.bf16 %v7939_v56, %v7942_v42  ;;  %v527_v47 = vmul.f32 %v7824_v14, %v353_v48  ;;  %v10333_v48 = vmov 0.0  }
 0x183   :  { %6540 = vrot.lane.b32.xlu0 %v6539_v23, %s7185_s11  ;;  %10406 = vst [vmem:[#allocation49_spill] sm:$0xff] %v7966_v11  ;;  %v7969_v23 = vadd.f32 %v7673_v22, %v415_v45  ;;  %v7983_v45 = vadd.f32 %v7583_v46, %v367_v20  ;;  %10409 = vst [vmem:[#allocation52_spill] sm:$0xff] %v7991_v44  ;;  %v523_v20 = vmul.f32 %v7824_v14, %v349_v6 }
 0x184   :  { %6535 = vrot.lane.b32.xlu1 %v6534_v3, %s7185_s11  ;;  %v7972_v3 = vadd.f32 %v7673_v22, %v419_v40  ;;  %v471_v22 = vmul.f32 %v7742_v0, %v349_v6  ;;  %v6564_v40 = vpack.i.bf16 %v7966_v11, %v7963_v24  ;;  %v519_v0 = vmul.f32 %v7824_v14, %v7879_v60 }
 0x185   :  { %10407 = vst [vmem:[#allocation50_spill] sm:$0xff] %v7969_v23  ;;  %v8024_v60 = vadd.f32 %v7845_v43, %v527_v47  ;;  %1152 = vmatprep.mubr.f32.mxu0 %v10333_v48  ;;  %1265 = vmatprep.mubr.f32.mxu1 %v10333_v48  ;;  %v754_v6 = vlaneseq }
 0x186   :  { %10408 = vst [vmem:[#allocation51_spill] sm:$0xff] %v7972_v3  ;;  %v6559_v49 = vpack.i.bf16 %v7972_v3, %v7969_v23  ;;  %v8003_v46 = vadd.f32 %v7763_v15, %v471_v22 }
 0x187   :  { %6550 = vrot.lane.b32.xlu0 %v6549_v27, %s7185_s11  ;;  %v7994_v27 = vadd.f32 %v7845_v43, %v515_v38  ;;  %10415 = vst [vmem:[#allocation58_spill] sm:$0xff] %v8024_v60  ;;  %v8033_v22 = vand.u32 127, %v754_v6  ;;  %v8045_v47 = vshrl.u32 %v754_v6, 7 }
 0x188   :  { %6545 = vrot.lane.b32.xlu1 %v6544_v29, %s7185_s11  ;;  %v7997_v29 = vadd.f32 %v7763_v15, %v467_v39  ;;  %10412 = vst [vmem:[#allocation55_spill] sm:$0xff] %v8003_v46  ;;  %v8016_v15 = vadd.f32 %v7845_v43, %v519_v0 }
 0x189   :  { %10410 = vst [vmem:[#allocation53_spill] sm:$0xff] %v7994_v27  ;;  %v6574_v38 = vpack.i.bf16 %v7994_v27, %v7991_v44  ;;  %vm756_vm2 = vcmp.lt.s32.totalorder %v8033_v22, 127  ;;  %vm951_vm3 = vcmp.lt.s32.totalorder %v8045_v47, 7  ;;  %vm2021_vm4 = vcmp.lt.s32.totalorder %v8045_v47, 6 }
 0x18a   :  { %10411 = vst [vmem:[#allocation54_spill] sm:$0xff] %v7997_v29  ;;  %v6569_v39 = vpack.i.bf16 %v8003_v46, %v7997_v29  ;;  %10413 = vst [vmem:[#allocation56_spill] sm:$0xff] %v8016_v15  ;;  %vm1796_vm5 = vcmp.lt.s32.totalorder %v8033_v22, 126 }
 0x18b   :  { %6555 = vrot.lane.b32.xlu0 %v6554_v37, %s7185_s11  ;;  %v8019_v37 = vadd.f32 %v7845_v43, %v523_v20 }
 0x18c   :  { %726 = vrot.lane.b32.xlu1 %v7983_v45, %s7185_s11 }
 0x18d   :  { %10414 = vst [vmem:[#allocation57_spill] sm:$0xff] %v8019_v37  ;;  %v6579_v14 = vpack.i.bf16 %v8019_v37, %v8016_v15 }
 0x18f   :  { %6565 = vrot.lane.b32.xlu0 %v6564_v40, %s7185_s11 }
 0x190   :  { %6560 = vrot.lane.b32.xlu1 %v6559_v49, %s7185_s11 }
 0x193   :  { %6575 = vrot.lane.b32.xlu0 %v6574_v38, %s7185_s11 }
 0x194   :  { %6570 = vrot.lane.b32.xlu1 %v6569_v39, %s7185_s11 }
 0x197   :  { %752 = vrot.lane.b32.xlu0 %v8024_v60, %s7185_s11 }
 0x198   :  { %6580 = vrot.lane.b32.xlu1 %v6579_v14, %s7185_s11 }
 0x1c5   :  { %v8035_v40 = vpop.permute.xlu1 %6435  ;;  %v6431_v43 = vpop.permute.xlu0 %6430 }
 0x1c6   :  { %v10338_v49 = vunpack.i.h.bf16 %v8035_v40  ;;  %v6432_v0 = vunpack.i.l.bf16 %v6431_v43  ;;  %v6437_v39 = vunpack.i.l.bf16 %v8035_v40  ;;  %v6433_v14 = vunpack.i.h.bf16 %v6431_v43 }
 0x1c8   :  { %v773_v20 = vsel %vm756_vm2, %v6432_v0, %v10338_v49 }
 0x1c9   :  { %v8051_v15 = vmax.f32 %v7600_v52, %v773_v20 }
 0x1ca   :  { %v8043_v38 = vpop.permute.xlu0 %6440 }
 0x1cb   :  { %v10340_v48 = vunpack.i.h.bf16 %v8043_v38  ;;  %v10343_v42 = vunpack.i.l.bf16 %v8043_v38  ;;  %10416 = vst [vmem:[#allocation59_spill] sm:$0xff] %v8051_v15 }
 0x1cd   :  { %v775_v60 = vsel %vm756_vm2, %v6437_v39, %v10340_v48  ;;  %v774_v6 = vsel %vm756_vm2, %v6433_v14, %v10343_v42  ;;  %v10352_v48 = vrot.slane %v8051_v15, 1 }
 0x1ce   :  { %v8062_v49 = vmax.f32 %v7597_v51, %v775_v60  ;;  %v8064_v43 = vpop.permute.xlu1 %6445  ;;  %v826_v29 = vmax.f32 %v7603_v53, %v774_v6 }
 0x1cf   :  { %10417 = vst [vmem:[#allocation60_spill] sm:$0xff] %v8064_v43  ;;  %v10347_v52 = vunpack.i.h.bf16 %v8064_v43  ;;  %v10345_v20 = vunpack.i.l.bf16 %v8064_v43 }
 0x1d0   :  { %v890_v37 = vrot.slane %v826_v29, 1  ;;  %v894_v23 = vrot.slane %v8062_v49, 1 }
 0x1d1   :  { %v789_v51 = vsel %vm756_vm2, %v10345_v20, %v6432_v0  ;;  %v790_v53 = vsel %vm756_vm2, %v10347_v52, %v6433_v14  ;;  %v8080_v60 = vpop.permute.xlu0 %6450 }
 0x1d2   :  { %v1005_v6 = vsel %vm951_vm3, %v890_v37, %v894_v23  ;;  %v1009_v42 = vsel %vm951_vm3, %v10352_v48, %v890_v37  ;;  %v8089_v46 = vmax.f32 %v7641_v7, %v789_v51  ;;  %v825_v0 = vmax.f32 %v7644_v8, %v790_v53 }
 0x1d3   :  { %v10354_v20 = vunpack.i.l.bf16 %v8080_v60  ;;  %v1017_v27 = vmax.f32 %v8051_v15, %v1009_v42  ;;  %v1021_v14 = vmax.f32 %v826_v29, %v1005_v6  ;;  %v6453_v37 = vunpack.i.h.bf16 %v8080_v60 }
 0x1d4   :  { %10418 = vst [vmem:[#allocation61_spill] sm:$0xff] %v8089_v46  ;;  %v10353_v52 = vrot.slane %v8089_v46, 1  ;;  %v889_v21 = vrot.slane %v825_v0, 1 }
 0x1d5   :  { %v791_v44 = vsel %vm756_vm2, %v10354_v20, %v6437_v39  ;;  %v5276_v43 = vpack.c.bf16 %v1021_v14, %v1017_v27  ;;  %v8103_v8 = vpop.permute.xlu0 %6460 }
 0x1d6   :  { %v8101_v7 = vmax.f32 %v7662_v17, %v791_v44  ;;  %v8105_v51 = vpop.permute.xlu1 %6455  ;;  %v10355_v42 = vunpack.i.h.bf16 %v8103_v8  ;;  %v10358_v29 = vunpack.i.l.bf16 %v8103_v8  ;;  %v1008_v17 = vsel %vm951_vm3, %v10353_v52, %v889_v21 }
 0x1d7   :  { %v10357_v53 = vunpack.i.h.bf16 %v8105_v51  ;;  %v6457_v6 = vunpack.i.l.bf16 %v8105_v51  ;;  %5277 = vmatprep.subr.bf16.mxu0 %v5276_v43 }
 0x1d8   :  { %v893_v27 = vrot.slane %v8101_v7, 1  ;;  %v792_v44 = vsel %vm756_vm2, %v10355_v42, %v6453_v37 }
 0x1d9   :  { %v776_v39 = vsel %vm756_vm2, %v6453_v37, %v10357_v53  ;;  %v777_v43 = vsel %vm756_vm2, %v6457_v6, %v10358_v29  ;;  %v8131_v48 = vpop.permute.xlu0 %6470  ;;  %v833_v15 = vmax.f32 %v7697_v33, %v792_v44  ;;  %v1016_v29 = vmax.f32 %v8089_v46, %v1008_v17 }
 0x1da   :  { %v8129_v14 = vmax.f32 %v7706_v36, %v777_v43  ;;  %10419 = vst [vmem:[#allocation62_spill] sm:$0xff] %v8131_v48  ;;  %v8133_v52 = vpop.permute.xlu1 %6465  ;;  %v1004_v20 = vsel %vm951_vm3, %v889_v21, %v893_v27  ;;  %v834_v42 = vmax.f32 %v7665_v18, %v776_v39 }
 0x1db   :  { %v10362_v53 = vunpack.i.l.bf16 %v8133_v52  ;;  %v6468_v43 = vunpack.i.h.bf16 %v8133_v52  ;;  %v1020_v56 = vmax.f32 %v825_v0, %v1004_v20  ;;  %v897_v18 = vrot.slane %v833_v15, 1 }
 0x1dc   :  { %v902_v36 = vrot.slane %v8129_v14, 1  ;;  %v898_v3 = vrot.slane %v834_v42, 1  ;;  %v6472_v0 = vunpack.i.l.bf16 %v8131_v48 }
 0x1dd   :  { %v793_v21 = vsel %vm756_vm2, %v10362_v53, %v6457_v6  ;;  %v8151_v44 = vpop.permute.xlu0 %6480  ;;  %v5278_v17 = vpack.c.bf16 %v1020_v56, %v1016_v29 }
 0x1de   :  { %v8149_v33 = vmax.f32 %v7712_v41, %v793_v21  ;;  %v8153_v39 = vpop.permute.xlu1 %6475  ;;  %v997_v37 = vsel %vm951_vm3, %v898_v3, %v902_v36  ;;  %v1001_v20 = vsel %vm951_vm3, %v894_v23, %v898_v3  ;;  %v10364_v46 = vunpack.i.l.bf16 %v8151_v44 }
 0x1df   :  { %10420 = vst [vmem:[#allocation63_spill] sm:$0xff] %v8153_v39  ;;  %v10366_v6 = vunpack.i.h.bf16 %v8153_v39  ;;  %v10365_v41 = vunpack.i.l.bf16 %v8153_v39  ;;  %v10421_v21 = vunpack.i.h.bf16 %v8131_v48  ;;  %5279 = vmatpush1.bf16.msra.mxu0 %v5278_v17  ;;  %v1025_v29 = vmax.f32 %v8062_v49, %v1001_v20 }
 0x1e0   :  { %v901_v56 = vrot.slane %v8149_v33, 1  ;;  %v1029_v11 = vmax.f32 %v834_v42, %v997_v37  ;;  %v795_v23 = vsel %vm756_vm2, %v10364_v46, %v6472_v0  ;;  %v1000_v17 = vsel %vm951_vm3, %v893_v27, %v897_v18 }
 0x1e1   :  { %v778_v53 = vsel %vm756_vm2, %v6468_v43, %v10421_v21  ;;  %v779_v3 = vsel %vm756_vm2, %v6472_v0, %v10365_v41  ;;  %v794_v21 = vsel %vm756_vm2, %v10366_v6, %v6468_v43  ;;  %v8184_v49 = vmax.f32 %v7745_v1, %v795_v23  ;;  %v8189_v37 = vpop.permute.xlu0 %6490 }
 0x1e2   :  { %v8187_v42 = vmax.f32 %v7725_v54, %v779_v3  ;;  %v8191_v20 = vpop.permute.xlu1 %6485  ;;  %v5280_v46 = vpack.c.bf16 %v1029_v11, %v1025_v29  ;;  %v996_v0 = vsel %vm951_vm3, %v897_v18, %v901_v56  ;;  %v6483_v41 = vunpack.i.h.bf16 %v8151_v44 }
 0x1e3   :  { %v10369_v43 = vunpack.i.l.bf16 %v8189_v37  ;;  %v10368_v27 = vunpack.i.h.bf16 %v8191_v20  ;;  %v6487_v1 = vunpack.i.l.bf16 %v8191_v20  ;;  %v1024_v54 = vmax.f32 %v8101_v7, %v1000_v17 }
 0x1e4   :  { %v910_v23 = vrot.slane %v8187_v42, 1  ;;  %5281 = vmatprep.subr.bf16.mxu0 %v5280_v46  ;;  %v1028_v3 = vmax.f32 %v833_v15, %v996_v0  ;;  %v842_v6 = vmax.f32 %v7728_v55, %v778_v53  ;;  %v10370_v11 = vrot.slane %v8184_v49, 1 }
 0x1e5   :  { %v780_v18 = vsel %vm756_vm2, %v6483_v41, %v10368_v27  ;;  %v781_v29 = vsel %vm756_vm2, %v6487_v1, %v10369_v43  ;;  %v841_v48 = vmax.f32 %v7739_v61, %v794_v21  ;;  %v8215_v15 = vpop.permute.xlu0 %6500 }
 0x1e6   :  { %v8213_v46 = vmax.f32 %v7789_v30, %v781_v29  ;;  %10422 = vst [vmem:[#allocation64_spill] sm:$0xff] %v8215_v15  ;;  %v8217_v55 = vpop.permute.xlu1 %6495  ;;  %v5282_v7 = vpack.c.bf16 %v1028_v3, %v1024_v54  ;;  %v906_v53 = vrot.slane %v842_v6, 1  ;;  %v850_v17 = vmax.f32 %v7748_v4, %v780_v18 }
 0x1e7   :  { %v10374_v0 = vunpack.i.l.bf16 %v8217_v55  ;;  %v905_v21 = vrot.slane %v841_v48, 1  ;;  %v6502_v29 = vunpack.i.l.bf16 %v8215_v15  ;;  %v6498_v43 = vunpack.i.h.bf16 %v8217_v55 }
 0x1e8   :  { %5283 = vmatpush1.bf16.msra.mxu0 %v5282_v7  ;;  %v989_v27 = vsel %vm951_vm3, %v906_v53, %v910_v23  ;;  %v993_v61 = vsel %vm951_vm3, %v902_v36, %v906_v53  ;;  %v914_v53 = vrot.slane %v850_v17, 1 }
 0x1e9   :  { %v1037_v54 = vmax.f32 %v842_v6, %v989_v27  ;;  %v8228_v3 = vpop.permute.xlu0 %6510  ;;  %v1033_v18 = vmax.f32 %v8129_v14, %v993_v61  ;;  %v988_v7 = vsel %vm951_vm3, %v905_v21, %v10370_v11  ;;  %v992_v36 = vsel %vm951_vm3, %v901_v56, %v905_v21 }
 0x1ea   :  { %v8230_v4 = vpop.permute.xlu1 %6505  ;;  %v797_v6 = vsel %vm756_vm2, %v10374_v0, %v6487_v1  ;;  %v1032_v61 = vmax.f32 %v8149_v33, %v992_v36  ;;  %v1036_v30 = vmax.f32 %v841_v48, %v988_v7  ;;  %v10423_v11 = vunpack.i.h.bf16 %v8189_v37 }
 0x1eb   :  { %v10373_v14 = vunpack.i.l.bf16 %v8230_v4  ;;  %v5284_v27 = vpack.c.bf16 %v1037_v54, %v1033_v18  ;;  %v10376_v21 = vunpack.i.l.bf16 %v8228_v3  ;;  %v10424_v1 = vrot.slane %v8213_v46, 1 }
 0x1ec   :  { %v796_v56 = vsel %vm756_vm2, %v10423_v11, %v6483_v41  ;;  %v8261_v33 = vmax.f32 %v7795_v32, %v797_v6  ;;  %v5286_v41 = vpack.c.bf16 %v1036_v30, %v1032_v61  ;;  %v985_v7 = vsel %vm951_vm3, %v910_v23, %v914_v53 }
 0x1ed   :  { %v783_v39 = vsel %vm756_vm2, %v6502_v29, %v10373_v14  ;;  %v981_v54 = vsel %vm951_vm3, %v914_v53, %v10424_v1  ;;  %5285 = vmatprep.subr.bf16.mxu0 %v5284_v27  ;;  %v8266_v11 = vpop.permute.xlu0 %6520  ;;  %v10425_v36 = vunpack.i.h.bf16 %v8215_v15  ;;  %v10375_v32 = vunpack.i.h.bf16 %v8230_v4 }
 0x1ee   :  { %v8264_v48 = vmax.f32 %v7808_v58, %v783_v39  ;;  %v8268_v18 = vpop.permute.xlu1 %6515  ;;  %5287 = vmatpush1.bf16.msra.mxu0 %v5286_v41  ;;  %v10377_v58 = vunpack.i.l.bf16 %v8266_v11  ;;  %v1041_v30 = vmax.f32 %v8187_v42, %v985_v7  ;;  %v1045_v6 = vmax.f32 %v850_v17, %v981_v54 }
 0x1ef   :  { %v782_v1 = vsel %vm756_vm2, %v6498_v43, %v10425_v36  ;;  %v6517_v39 = vunpack.i.l.bf16 %v8268_v18  ;;  %v799_v23 = vsel %vm756_vm2, %v10376_v21, %v6502_v29  ;;  %v849_v53 = vmax.f32 %v7774_v25, %v796_v56 }
 0x1f0   :  { %v917_v27 = vrot.slane %v8261_v33, 1  ;;  %v926_v61 = vrot.slane %v8264_v48, 1  ;;  %v5288_v36 = vpack.c.bf16 %v1045_v6, %v1041_v30  ;;  %v858_v0 = vmax.f32 %v7811_v59, %v782_v1 }
 0x1f1   :  { %v8287_v41 = vpop.permute.xlu0 %6530  ;;  %v798_v42 = vsel %vm756_vm2, %v10375_v32, %v6498_v43  ;;  %v10378_v17 = vunpack.i.h.bf16 %v8268_v18  ;;  %v8298_v25 = vmax.f32 %v7827_v16, %v799_v23  ;;  %v785_v29 = vsel %vm756_vm2, %v6517_v39, %v10377_v58 }
 0x1f2   :  { %v8289_v14 = vpop.permute.xlu1 %6525  ;;  %5289 = vmatprep.subr.bf16.mxu0 %v5288_v36  ;;  %v913_v56 = vrot.slane %v849_v53, 1  ;;  %v922_v54 = vrot.slane %v858_v0, 1  ;;  %v6513_v59 = vunpack.i.h.bf16 %v8228_v3  ;;  %v10426_v16 = vrot.slane %v8184_v49, 1 }
 0x1f3   :  { %v857_v36 = vmax.f32 %v7822_v13, %v798_v42  ;;  %v8323_v21 = vmax.f32 %v7869_v2, %v785_v29  ;;  %v10428_v42 = vunpack.i.l.bf16 %v8289_v14 }
 0x1f4   :  { %v980_v43 = vsel %vm951_vm3, %v913_v56, %v917_v27  ;;  %v984_v30 = vsel %vm951_vm3, %v10426_v16, %v913_v56  ;;  %v973_v23 = vsel %vm951_vm3, %v922_v54, %v926_v61  ;;  %v784_v32 = vsel %vm756_vm2, %v6513_v59, %v10378_v17 }
 0x1f5   :  { %v8313_v6 = vpop.permute.xlu0 %6540  ;;  %v1040_v58 = vmax.f32 %v8184_v49, %v984_v30  ;;  %v1044_v7 = vmax.f32 %v849_v53, %v980_v43  ;;  %v10427_v16 = vrot.slane %v8213_v46, 1  ;;  %v801_v17 = vsel %vm756_vm2, %v10428_v42, %v6517_v39 }
 0x1f6   :  { %v8326_v1 = vpop.permute.xlu1 %6535  ;;  %v1053_v29 = vmax.f32 %v858_v0, %v973_v23  ;;  %v10429_v49 = vunpack.i.h.bf16 %v8266_v11  ;;  %v921_v43 = vrot.slane %v857_v36, 1  ;;  %v866_v56 = vmax.f32 %v7830_v19, %v784_v32 }
 0x1f7   :  { %v977_v13 = vsel %vm951_vm3, %v10427_v16, %v922_v54  ;;  %v5290_v15 = vpack.c.bf16 %v1044_v7, %v1040_v58  ;;  %v934_v54 = vrot.slane %v8323_v21, 1  ;;  %v6542_v16 = vunpack.i.l.bf16 %v8313_v6 }
 0x1f8   :  { %v1049_v2 = vmax.f32 %v8213_v46, %v977_v13  ;;  %v800_v53 = vsel %vm756_vm2, %v10429_v49, %v6513_v59  ;;  %v8348_v58 = vmax.f32 %v7889_v9, %v801_v17  ;;  %v10380_v46 = vunpack.i.l.bf16 %v8326_v1 }
 0x1f9   :  { %v8342_v30 = vpop.permute.xlu0 %6550  ;;  %5291 = vmatpush1.bf16.msra.mxu0 %v5290_v15  ;;  %v10430_v0 = vrot.slane %v8298_v25, 1  ;;  %v976_v7 = vsel %vm951_vm3, %v917_v27, %v921_v43  ;;  %v865_v19 = vmax.f32 %v7856_v5, %v800_v53  ;;  %v6532_v15 = vunpack.i.l.bf16 %v8287_v41 }
 0x1fa   :  { %v5292_v39 = vpack.c.bf16 %v1053_v29, %v1049_v2  ;;  %v1048_v32 = vmax.f32 %v8261_v33, %v976_v7  ;;  %v8360_v9 = vpop.permute.xlu1 %6545  ;;  %v10382_v17 = vunpack.i.h.bf16 %v8287_v41  ;;  %v6528_v13 = vunpack.i.h.bf16 %v8289_v14 }
 0x1fb   :  { %v972_v59 = vsel %vm951_vm3, %v921_v43, %v10430_v0  ;;  %v6552_v42 = vunpack.i.l.bf16 %v8342_v30  ;;  %v930_v2 = vrot.slane %v866_v56, 1  ;;  %v803_v5 = vsel %vm756_vm2, %v6542_v16, %v6532_v15 }
 0x1fc   :  { %5293 = vmatprep.subr.bf16.mxu0 %v5292_v39  ;;  %v1052_v23 = vmax.f32 %v857_v36, %v972_v59  ;;  %v10381_v27 = vunpack.i.h.bf16 %v8326_v1  ;;  %v933_v36 = vrot.slane %v8348_v58, 1  ;;  %v787_v53 = vsel %vm756_vm2, %v6532_v15, %v10380_v46 }
 0x1fd   :  { %v6556_v29 = vpop.permute.xlu0 %6555  ;;  %v965_v43 = vsel %vm951_vm3, %v930_v2, %v934_v54  ;;  %v969_v39 = vsel %vm951_vm3, %v926_v61, %v930_v2  ;;  %v929_v0 = vrot.slane %v865_v19, 1  ;;  %v6543_v15 = vunpack.i.h.bf16 %v8313_v6 }
 0x1fe   :  { %v5294_v49 = vpack.c.bf16 %v1052_v23, %v1048_v32  ;;  %v6557_v33 = vunpack.i.l.bf16 %v6556_v29  ;;  %v1057_v59 = vmax.f32 %v8264_v48, %v969_v39  ;;  %v1061_v7 = vmax.f32 %v866_v56, %v965_v43 }
 0x1ff   :  { %v6558_v32 = vunpack.i.h.bf16 %v6556_v29  ;;  %v786_v23 = vsel %vm756_vm2, %v6528_v13, %v10382_v17  ;;  %v8388_v46 = vmax.f32 %v7905_v62, %v803_v5  ;;  %v10431_v61 = vunpack.i.h.bf16 %v8035_v40  ;;  %v727_v5 = vpop.permute.xlu1 %726 }
 0x200   :  { %5295 = vmatpush1.bf16.msra.mxu0 %v5294_v49  ;;  %v802_v48 = vsel %vm756_vm2, %v10381_v27, %v6528_v13  ;;  %v8401_v56 = vmax.f32 %v7892_v10, %v787_v53  ;;  %v5296_v29 = vpack.c.bf16 %v1061_v7, %v1057_v59  ;;  %v10432_v49 = vunpack.i.h.bf16 %v8105_v51 }
 0x201   :  { %v757_v2 = vsel %vm756_vm2, %v10431_v61, %v6552_v42  ;;  %v6553_v40 = vunpack.i.h.bf16 %v8342_v30  ;;  %v10384_v43 = vunpack.i.h.bf16 %v8360_v9  ;;  %v10433_v39 = vunpack.i.h.bf16 %v8103_v8  ;;  %v6566_v13 = vpop.permute.xlu0 %6565 }
 0x202   :  { %v760_v62 = vsel %vm756_vm2, %v10432_v49, %v6557_v33  ;;  %v964_v10 = vsel %vm951_vm3, %v929_v0, %v933_v36  ;;  %v8418_v51 = vmax.f32 %v7594_v50, %v757_v2  ;;  %v10383_v53 = vunpack.i.l.bf16 %v8360_v9  ;;  %5297 = vmatprep.subr.bf16.mxu0 %v5296_v29 }
 0x203   :  { %v808_v61 = vsel %vm756_vm2, %v6557_v33, %v10433_v39  ;;  %v10434_v59 = vunpack.i.l.bf16 %v8103_v8  ;;  %v10435_v49 = vunpack.i.l.bf16 %v8133_v52  ;;  %v8430_v39 = vmax.f32 %v7703_v35, %v760_v62 }
 0x204   :  { %v10436_v27 = vunpack.i.h.bf16 %v8043_v38  ;;  %v10437_v2 = vrot.slane %v8298_v25, 1  ;;  %v1060_v29 = vmax.f32 %v865_v19, %v964_v10  ;;  %v941_v35 = vrot.slane %v8388_v46, 1 }
 0x205   :  { %v761_v7 = vsel %vm756_vm2, %v10434_v59, %v6558_v32  ;;  %v809_v33 = vsel %vm756_vm2, %v6558_v32, %v10435_v49  ;;  %v8441_v59 = vmax.f32 %v7949_v12, %v808_v61  ;;  %v6568_v32 = vunpack.i.h.bf16 %v6566_v13  ;;  %v8463_v61 = vpop.permute.xlu1 %6560 }
 0x206   :  { %v759_v50 = vsel %vm756_vm2, %v10436_v27, %v727_v5  ;;  %v968_v8 = vsel %vm951_vm3, %v10437_v2, %v929_v0  ;;  %v6567_v49 = vunpack.i.l.bf16 %v6566_v13  ;;  %v942_v62 = vrot.slane %v8401_v56, 1 }
 0x207   :  { %v1056_v52 = vmax.f32 %v8298_v25, %v968_v8  ;;  %v8447_v17 = vmax.f32 %v7700_v34, %v761_v7  ;;  %v8450_v27 = vmax.f32 %v7957_v28, %v809_v33  ;;  %v10438_v19 = vunpack.i.l.bf16 %v8043_v38 }
 0x208   :  { %v8461_v25 = vmax.f32 %v7625_v63, %v759_v50  ;;  %v874_v34 = vmax.f32 %v7899_v31, %v786_v23  ;;  %v804_v28 = vsel %vm756_vm2, %v10384_v43, %v6543_v15  ;;  %v788_v38 = vsel %vm756_vm2, %v6543_v15, %v10383_v53 }
 0x209   :  { %v8458_v12 = vsel %vm756_vm2, %v10438_v19, %v6553_v40  ;;  %v5298_v0 = vpack.c.bf16 %v1060_v29, %v1056_v52  ;;  %v10439_v63 = vunpack.i.l.bf16 %v8080_v60  ;;  %v899_v7 = vrot.slane %v8430_v39, 1 }
 0x20a   :  { %v900_v31 = vrot.slane %v8441_v59, 1  ;;  %v10440_v23 = vunpack.i.h.bf16 %v8191_v20  ;;  %v10441_v50 = vunpack.i.l.bf16 %v8189_v37  ;;  %v903_v60 = vrot.slane %v8447_v17, 1 }
 0x20b   :  { %v807_v13 = vsel %vm756_vm2, %v727_v5, %v10439_v63  ;;  %5299 = vmatpush1.bf16.msra.mxu0 %v5298_v0  ;;  %v904_v2 = vrot.slane %v8450_v27, 1  ;;  %v10442_v5 = vunpack.i.h.bf16 %v8189_v37  ;;  %v6563_v29 = vunpack.i.h.bf16 %v8463_v61  ;;  %v6576_v63 = vpop.permute.xlu0 %6575 }
 0x20c   :  { %v764_v33 = vsel %vm756_vm2, %v10440_v23, %v6567_v49  ;;  %v765_v15 = vsel %vm756_vm2, %v10441_v50, %v6568_v32  ;;  %v8497_v20 = vmax.f32 %v7983_v45, %v807_v13  ;;  %v895_v52 = vrot.slane %v8461_v25, 1 }
 0x20d   :  { %v812_v8 = vsel %vm756_vm2, %v6567_v49, %v10442_v5  ;;  %v938_v19 = vrot.slane %v874_v34, 1  ;;  %v873_v0 = vmax.f32 %v7911_v57, %v802_v48  ;;  %v10443_v23 = vunpack.i.l.bf16 %v8217_v55  ;;  %v10444_v49 = vld [vmem:[#allocation37_spill] sm:$0xff] }
 0x20e   :  { %v8506_v37 = vmax.f32 %v7777_v26, %v764_v33  ;;  %v8509_v5 = vmax.f32 %v10444_v49, %v765_v15  ;;  %v6562_v45 = vunpack.i.l.bf16 %v8463_v61  ;;  %v8513_v13 = vmax.f32 %v7963_v24, %v812_v8  ;;  %v10446_v8 = vld [vmem:[#allocation49_spill] sm:$0xff]  ;;  %v10447_v49 = vld [vmem:[#allocation63_spill] sm:$0xff] }
 0x20f   :  { %v813_v50 = vsel %vm756_vm2, %v6568_v32, %v10443_v23  ;;  %v957_v57 = vsel %vm951_vm3, %v938_v19, %v942_v62  ;;  %v961_v55 = vsel %vm951_vm3, %v934_v54, %v938_v19  ;;  %v937_v26 = vrot.slane %v873_v0, 1 }
 0x210   :  { %v10445_v48 = vunpack.i.l.bf16 %v8151_v44  ;;  %v1065_v33 = vmax.f32 %v8323_v21, %v961_v55  ;;  %v1069_v24 = vmax.f32 %v874_v34, %v957_v57  ;;  %v6577_v15 = vunpack.i.l.bf16 %v6576_v63  ;;  %v8544_v57 = vpop.permute.xlu1 %6570 }
 0x211   :  { %v8529_v23 = vmax.f32 %v10446_v8, %v813_v50  ;;  %v10448_v53 = vunpack.i.l.bf16 %v10447_v49  ;;  %v956_v44 = vsel %vm951_vm3, %v937_v26, %v941_v35  ;;  %v960_v21 = vsel %vm951_vm3, %v933_v36, %v937_v26  ;;  %v10450_v8 = vld [vmem:[#allocation62_spill] sm:$0xff] }
 0x212   :  { %v811_v32 = vsel %vm756_vm2, %v6563_v29, %v10445_v48  ;;  %v5300_v54 = vpack.c.bf16 %v1069_v24, %v1065_v33  ;;  %v1064_v34 = vmax.f32 %v8348_v58, %v960_v21  ;;  %v1068_v19 = vmax.f32 %v873_v0, %v956_v44  ;;  %v10453_v24 = vld [vmem:[#allocation36_spill] sm:$0xff] }
 0x213   :  { %v763_v43 = vsel %vm756_vm2, %v10448_v53, %v6563_v29  ;;  %v6578_v50 = vunpack.i.h.bf16 %v6576_v63  ;;  %v896_v55 = vrot.slane %v8497_v20, 1  ;;  %v10449_v29 = vld [vmem:[#allocation51_spill] sm:$0xff]  ;;  %v10451_v10 = vunpack.i.h.bf16 %v10450_v8 }
 0x214   :  { %v8549_v48 = vmax.f32 %v10449_v29, %v811_v32  ;;  %v916_v0 = vrot.slane %v8513_v13, 1  ;;  %5301 = vmatprep.subr.bf16.mxu0 %v5300_v54  ;;  %v5302_v63 = vpack.c.bf16 %v1068_v19, %v1064_v34  ;;  %v10452_v26 = vunpack.i.h.bf16 %v8268_v18  ;;  %v10457_v8 = vld [vmem:[#allocation43_spill] sm:$0xff] }
 0x215   :  { %v8557_v36 = vsel %vm756_vm2, %v10451_v10, %v6562_v45  ;;  %v920_v33 = vrot.slane %v8529_v23, 1  ;;  %v8567_v44 = vmax.f32 %v10453_v24, %v763_v43  ;;  %v10454_v21 = vunpack.i.h.bf16 %v8266_v11  ;;  %v10458_v24 = vld [vmem:[#allocation40_spill] sm:$0xff] }
 0x216   :  { %v768_v32 = vsel %vm756_vm2, %v10452_v26, %v6577_v15  ;;  %v6573_v29 = vunpack.i.h.bf16 %v8544_v57  ;;  %5303 = vmatpush1.bf16.msra.mxu0 %v5302_v63  ;;  %v10455_v54 = vunpack.i.l.bf16 %v8266_v11  ;;  %v10456_v34 = vunpack.i.l.bf16 %v8289_v14  ;;  %v10460_v63 = vld [vmem:[#allocation60_spill] sm:$0xff] }
 0x217   :  { %v816_v10 = vsel %vm756_vm2, %v6577_v15, %v10454_v21  ;;  %v6572_v43 = vunpack.i.l.bf16 %v8544_v57  ;;  %v882_v26 = vmax.f32 %v10457_v8, %v788_v38  ;;  %v8585_v58 = vmax.f32 %v10458_v24, %v768_v32  ;;  %v10459_v15 = vld [vmem:[#allocation47_spill] sm:$0xff]  ;;  %v10463_v38 = vld [vmem:[#allocation52_spill] sm:$0xff]  ;;  %v10466_v24 = vld [vmem:[#allocation41_spill] sm:$0xff] }
 0x218   :  { %v769_v18 = vsel %vm756_vm2, %v10455_v54, %v6578_v50  ;;  %v817_v19 = vsel %vm756_vm2, %v6578_v50, %v10456_v34  ;;  %v881_v21 = vmax.f32 %v10459_v15, %v804_v28  ;;  %v10461_v53 = vunpack.i.l.bf16 %v10460_v63  ;;  %v10464_v54 = vld [vmem:[#allocation45_spill] sm:$0xff]  ;;  %v10465_v34 = vld [vmem:[#allocation46_spill] sm:$0xff] }
 0x219   :  { %v10462_v14 = vunpack.i.h.bf16 %v10460_v63  ;;  %v8601_v57 = vmax.f32 %v10463_v38, %v816_v10  ;;  %v946_v32 = vrot.slane %v882_v26, 1  ;;  %v8608_v15 = vmax.f32 %v10466_v24, %v769_v18 }
 0x21a   :  { %v805_v11 = vsel %vm756_vm2, %v6552_v42, %v10461_v53  ;;  %v10467_v42 = vld [vmem:[#allocation53_spill] sm:$0xff]  ;;  %v10468_v30 = vunpack.i.l.bf16 %v8228_v3  ;;  %v945_v63 = vrot.slane %v881_v21, 1 }
 0x21b   :  { %v806_v50 = vsel %vm756_vm2, %v6553_v40, %v10462_v14  ;;  %v8604_v28 = vmax.f32 %v10464_v54, %v805_v11  ;;  %v8611_v53 = vmax.f32 %v10467_v42, %v817_v19  ;;  %v953_v10 = vsel %vm951_vm3, %v942_v62, %v946_v32  ;;  %v10469_v11 = vld [vmem:[#allocation59_spill] sm:$0xff]  ;;  %v8635_v42 = vpop.permute.xlu1 %6580 }
 0x21c   :  { %v828_v8 = vmax.f32 %v10465_v34, %v806_v50  ;;  %v815_v40 = vsel %vm756_vm2, %v6573_v29, %v10468_v30  ;;  %v10470_v14 = vrot.slane %v10469_v11, 1  ;;  %v1073_v38 = vmax.f32 %v8401_v56, %v953_v10  ;;  %v10471_v34 = vld [vmem:[#allocation61_spill] sm:$0xff] }
 0x21d   :  { %v888_v50 = vrot.slane %v8604_v28, 1  ;;  %v952_v54 = vsel %vm951_vm3, %v941_v35, %v945_v63  ;;  %v10472_v24 = vrot.slane %v10471_v34, 1  ;;  %v932_v61 = vrot.slane %v8601_v57, 1 }
 0x21e   :  { %v1013_v18 = vsel %vm951_vm3, %v946_v32, %v10470_v14  ;;  %v892_v19 = vrot.slane %v828_v8, 1  ;;  %v1072_v32 = vmax.f32 %v8388_v46, %v952_v54  ;;  %v10474_v46 = vunpack.i.h.bf16 %v10447_v49 }
 0x21f   :  { %v1077_v3 = vmax.f32 %v882_v26, %v1013_v18  ;;  %v1012_v62 = vsel %vm951_vm3, %v945_v63, %v10472_v24  ;;  %v10473_v26 = vld [vmem:[#allocation55_spill] sm:$0xff]  ;;  %v10475_v18 = vunpack.i.l.bf16 %v8230_v4  ;;  %v936_v34 = vrot.slane %v8611_v53, 1  ;;  %v10476_v24 = vld [vmem:[#allocation64_spill] sm:$0xff] }
 0x220   :  { %v1076_v30 = vmax.f32 %v881_v21, %v1012_v62  ;;  %v1007_v56 = vsel %vm951_vm3, %v892_v19, %v896_v55  ;;  %v1011_v35 = vsel %vm951_vm3, %v888_v50, %v892_v19  ;;  %v8647_v10 = vmax.f32 %v10473_v26, %v815_v40  ;;  %v10479_v26 = vld [vmem:[#allocation39_spill] sm:$0xff] }
 0x221   :  { %v5304_v11 = vpack.c.bf16 %v1077_v3, %v1073_v38  ;;  %v1019_v63 = vmax.f32 %v8604_v28, %v1011_v35  ;;  %v1023_v14 = vmax.f32 %v828_v8, %v1007_v56  ;;  %v810_v21 = vsel %vm756_vm2, %v6562_v45, %v10474_v46 }
 0x222   :  { %v767_v54 = vsel %vm756_vm2, %v10475_v18, %v6573_v29  ;;  %v5306_v19 = vpack.c.bf16 %v1076_v30, %v1072_v32  ;;  %v6583_v40 = vunpack.i.h.bf16 %v8635_v42  ;;  %v912_v38 = vrot.slane %v8549_v48, 1  ;;  %v8671_v32 = vld [vmem:[#allocation11] sm:$0xff] }
 0x223   :  { %v911_v3 = vrot.slane %v8567_v44, 1  ;;  %v931_v8 = vrot.slane %v8585_v58, 1  ;;  %5305 = vmatprep.subr.bf16.mxu0 %v5304_v11  ;;  %v5308_v49 = vpack.c.bf16 %v1023_v14, %v1019_v63  ;;  %v935_v45 = vrot.slane %v8608_v15, 1  ;;  %v10480_v63 = vld [vmem:[#allocation34_spill] sm:$0xff] }
 0x224   :  { %v10477_v62 = vunpack.i.h.bf16 %v10476_v24  ;;  %5307 = vmatpush1.bf16.msra.mxu0 %v5306_v19  ;;  %v928_v30 = vrot.slane %v8647_v10, 1  ;;  %v10478_v56 = vunpack.i.h.bf16 %v8230_v4  ;;  %v8679_v11 = vmax.f32 %v10479_v26, %v767_v54  ;;  %v10481_v19 = vld [vmem:[#allocation50_spill] sm:$0xff] }
 0x225   :  { %5309 = vmatprep.subr.bf16.mxu1 %v5308_v49  ;;  %v827_v14 = vmax.f32 %v10480_v63, %v8458_v12  ;;  %v819_v46 = vsel %vm756_vm2, %v6583_v40, %v6542_v16  ;;  %v6582_v18 = vunpack.i.l.bf16 %v8635_v42  ;;  %v999_v4 = vsel %vm951_vm3, %v900_v31, %v904_v2  ;;  %v10497_v42 = vld [vmem:[#allocation58_spill] sm:$0xff] }
 0x226   :  { %v766_v29 = vsel %vm756_vm2, %v10477_v62, %v6572_v43  ;;  %v814_v35 = vsel %vm756_vm2, %v6572_v43, %v10478_v56  ;;  %v1003_v12 = vsel %vm951_vm3, %v896_v55, %v900_v31  ;;  %v1031_v43 = vmax.f32 %v8441_v59, %v999_v4  ;;  %v10482_v59 = vld [vmem:[#allocation35_spill] sm:$0xff]  ;;  %v8720_v62 = vld [vmem:[#allocation11 + $0x8] sm:$0xff] }
 0x227   :  { %v891_v6 = vrot.slane %v827_v14, 1  ;;  %1153 = vmatmul.mubr.f32.vlgmr.msra.gmra.mrb[0].mxu0 %v8671_v32  ;;  %v1027_v16 = vmax.f32 %v8497_v20, %v1003_v12  ;;  %v998_v54 = vsel %vm951_vm3, %v899_v7, %v903_v60  ;;  %v1002_v31 = vsel %vm951_vm3, %v895_v52, %v899_v7 }
 0x228   :  { %v1030_v55 = vmax.f32 %v8430_v39, %v998_v54  ;;  %v844_v20 = vmax.f32 %v10481_v19, %v810_v21  ;;  %v843_v49 = vmax.f32 %v10482_v59, %v8557_v36  ;;  %v10483_v24 = vmov 0.0  }
 0x229   :  { %1158 = vmatprep.mubr.f32.mxu0 %v10483_v24  ;;  %v1006_v56 = vsel %vm951_vm3, %v891_v6, %v895_v52  ;;  %v10484_v26 = vrot.slane %v8418_v51, 1  ;;  %v5312_v39 = vpack.c.bf16 %v1031_v43, %v1027_v16  ;;  %v1026_v21 = vmax.f32 %v8461_v25, %v1002_v31 }
 0x22a   :  { %v1022_v36 = vmax.f32 %v827_v14, %v1006_v56  ;;  %v908_v4 = vrot.slane %v844_v20, 1  ;;  %v907_v12 = vrot.slane %v843_v49, 1  ;;  %v983_v52 = vsel %vm951_vm3, %v916_v0, %v920_v33 }
 0x22b   :  { %v1010_v7 = vsel %vm951_vm3, %v10484_v26, %v891_v6  ;;  %v5314_v54 = vpack.c.bf16 %v1030_v55, %v1026_v21  ;;  %v987_v6 = vsel %vm951_vm3, %v912_v38, %v916_v0  ;;  %v10485_v25 = vrot.slane %v8509_v5, 1  ;;  %1159 = vmatmul.mubr.f32.gmra.mrb[2].mxu0 %v8720_v62  ;;  %v10487_v21 = vld [vmem:[#allocation57_spill] sm:$0xff] }
 0x22c   :  { %v1018_v63 = vmax.f32 %v8418_v51, %v1010_v7  ;;  %v10486_v16 = vrot.slane %v8506_v37, 1  ;;  %v991_v31 = vsel %vm951_vm3, %v908_v4, %v912_v38  ;;  %v995_v55 = vsel %vm951_vm3, %v904_v2, %v908_v4  ;;  %1164 = vmatprep.mubr.f32.mxu0 %v10483_v24  ;;  %v8763_v38 = vld [vmem:[#allocation11 + $0x10] sm:$0xff]  ;;  %v753_v7 = vpop.permute.xlu0 %752 }
 0x22d   :  { %v990_v0 = vsel %vm951_vm3, %v907_v12, %v911_v3  ;;  %v1035_v19 = vmax.f32 %v8450_v27, %v995_v55  ;;  %v1039_v59 = vmax.f32 %v844_v20, %v991_v31  ;;  %v994_v56 = vsel %vm951_vm3, %v903_v60, %v907_v12  ;;  %v10490_v12 = vld [vmem:[#allocation54_spill] sm:$0xff] }
 0x22e   :  { %v982_v14 = vsel %vm951_vm3, %v10486_v16, %v10485_v25  ;;  %v5310_v43 = vpack.c.bf16 %v1022_v36, %v1018_v63  ;;  %v1038_v26 = vmax.f32 %v843_v49, %v990_v0  ;;  %v8766_v63 = vmax.f32 %v10487_v21, %v819_v46 }
 0x22f   :  { %v10488_v2 = vunpack.i.l.bf16 %v8326_v1  ;;  %v1034_v27 = vmax.f32 %v8447_v17, %v994_v56  ;;  %v10489_v20 = vmov %v10486_v16  ;;  %v5316_v49 = vpack.c.bf16 %v1039_v59, %v1035_v19  ;;  %1165 = vmatmul.mubr.f32.gmra.mrb[4].mxu0 %v8763_v38 }
 0x230   :  { %5311 = vmatpush1.bf16.msra.mxu1 %v5310_v43  ;;  %v986_v60 = vsel %vm951_vm3, %v911_v3, %v10489_v20  ;;  %v1046_v46 = vmax.f32 %v8506_v37, %v982_v14  ;;  %v860_v25 = vmax.f32 %v10490_v12, %v814_v35  ;;  %v1043_v31 = vmax.f32 %v8549_v48, %v987_v6  ;;  %v10491_v43 = vld [vmem:[#allocation38_spill] sm:$0xff]  ;;  %v8792_v35 = vld [vmem:[#allocation11 + $0x18] sm:$0xff]  ;;  %v1314_v12 = vld [vmem:[#allocation12] sm:$0xff] }
 0x231   :  { %v771_v36 = vsel %vm756_vm2, %v10488_v2, %v6583_v40  ;;  %5313 = vmatprep.subr.bf16.mxu1 %v5312_v39  ;;  %v1042_v4 = vmax.f32 %v8567_v44, %v986_v60  ;;  %v5318_v16 = vpack.c.bf16 %v1038_v26, %v1034_v27  ;;  %v1047_v40 = vmax.f32 %v8513_v13, %v983_v52  ;;  %v10495_v6 = vld [vmem:[#allocation44_spill] sm:$0xff]  ;;  %v1315_v26 = vld [vmem:[#allocation12 + $0x8] sm:$0xff]  ;;  %v8847_v60 = vld [vmem:[#allocation11 + $0x20] sm:$0xff] }
 0x232   :  { %v8783_v17 = vmax.f32 %v10491_v43, %v766_v29  ;;  %v927_v3 = vrot.slane %v8679_v11, 1  ;;  %v10492_v39 = vunpack.i.h.bf16 %v8360_v9  ;;  %v924_v14 = vrot.slane %v860_v25, 1  ;;  %1170 = vmatprep.mubr.f32.mxu0 %v10483_v24  ;;  %v1319_v43 = vld [vmem:[#allocation12 + $0x28] sm:$0xff] }
 0x233   :  { %v5322_v37 = vpack.c.bf16 %v1046_v46, %v1042_v4  ;;  %v10493_v13 = vunpack.i.l.bf16 %v8360_v9  ;;  %v10494_v29 = vunpack.i.h.bf16 %v8287_v41  ;;  %v8805_v55 = vmax.f32 %v10495_v6, %v771_v36  ;;  %1171 = vmatmul.mubr.f32.gmra.mrb[6].mxu0 %v8792_v35  ;;  %v10500_v4 = vld [vmem:[#allocation42_spill] sm:$0xff] }
 0x234   :  { %v820_v44 = vsel %vm756_vm2, %v753_v7, %v10492_v39  ;;  %5315 = vmatpush1.bf16.msra.mxu1 %v5314_v54  ;;  %v923_v0 = vrot.slane %v8783_v17, 1  ;;  %v10496_v19 = vunpack.i.h.bf16 %v8326_v1  ;;  %v975_v41 = vsel %vm951_vm3, %v924_v14, %v928_v30  ;;  %1176 = vmatprep.mubr.f32.mxu0 %v10483_v24  ;;  %v1321_v39 = vld [vmem:[#allocation12 + $0x38] sm:$0xff] }
 0x235   :  { %v772_v48 = vsel %vm756_vm2, %v10493_v13, %v753_v7  ;;  %v770_v52 = vsel %vm756_vm2, %v10494_v29, %v6582_v18  ;;  %5317 = vmatprep.subr.bf16.mxu1 %v5316_v49  ;;  %v979_v54 = vsel %vm951_vm3, %v920_v33, %v924_v14  ;;  %v967_v1 = vsel %vm951_vm3, %v932_v61, %v936_v34  ;;  %v1317_v7 = vld [vmem:[#allocation12 + $0x18] sm:$0xff] }
 0x236   :  { %v818_v9 = vsel %vm756_vm2, %v6582_v18, %v10496_v19  ;;  %v8829_v18 = vmax.f32 %v10497_v42, %v820_v44  ;;  %v944_v59 = vrot.slane %v8766_v63, 1  ;;  %v5320_v56 = vpack.c.bf16 %v1047_v40, %v1043_v31  ;;  %v10499_v49 = vld [vmem:[#allocation56_spill] sm:$0xff] }
 0x237   :  { %v971_v33 = vsel %vm951_vm3, %v928_v30, %v932_v61  ;;  %v1051_v21 = vmax.f32 %v8529_v23, %v979_v54  ;;  %v1055_v2 = vmax.f32 %v860_v25, %v975_v41  ;;  %v974_v36 = vsel %vm951_vm3, %v923_v0, %v927_v3  ;;  %v1316_v25 = vld [vmem:[#allocation12 + $0x10] sm:$0xff]  ;;  %1177 = vmatmul.mubr.f32.gmra.mrb[8].mxu0 %v8847_v60 }
 0x238   :  { %v10498_v27 = vrot.slane %v8509_v5, 1  ;;  %v943_v61 = vrot.slane %v8805_v55, 1  ;;  %5319 = vmatpush1.bf16.msra.mxu1 %v5318_v16  ;;  %v1063_v30 = vmax.f32 %v8601_v57, %v967_v1  ;;  %v876_v23 = vmax.f32 %v10499_v49, %v818_v9  ;;  %1182 = vmatprep.mubr.f32.mxu0 %v10483_v24  ;;  %v10501_v9 = vld [vmem:[#allocation48_spill] sm:$0xff] }
 0x239   :  { %v8853_v46 = vmax.f32 %v10500_v4, %v770_v52  ;;  %5321 = vmatprep.subr.bf16.mxu1 %v5320_v56  ;;  %v1059_v31 = vmax.f32 %v8647_v10, %v971_v33  ;;  %v966_v40 = vsel %vm951_vm3, %v931_v8, %v935_v45  ;;  %v970_v57 = vsel %vm951_vm3, %v927_v3, %v931_v8  ;;  %v8871_v52 = vld [vmem:[#allocation11 + $0x28] sm:$0xff]  ;;  %v1318_v8 = vld [vmem:[#allocation12 + $0x20] sm:$0xff]  ;;  %v1320_v3 = vld [vmem:[#allocation12 + $0x30] sm:$0xff] }
 0x23a   :  { %v978_v20 = vsel %vm951_vm3, %v10498_v27, %v923_v0  ;;  %v5340_v16 = vpack.c.bf16 %v1317_v7, %v1315_v26  ;;  %v1054_v14 = vmax.f32 %v8783_v17, %v974_v36  ;;  %v940_v10 = vrot.slane %v876_v23, 1  ;;  %v1323_v56 = vld [vmem:[#allocation12 + $0x48] sm:$0xff]  ;;  %v1324_v36 = vld [vmem:[#allocation12 + $0x50] sm:$0xff] }
 0x23b   :  { %v1050_v44 = vmax.f32 %v8509_v5, %v978_v20  ;;  %v939_v13 = vrot.slane %v8853_v46, 1  ;;  %v5324_v29 = vpack.c.bf16 %v1055_v2, %v1051_v21  ;;  %v5342_v6 = vpack.c.bf16 %v1316_v25, %v1314_v12  ;;  %1183 = vmatmul.mubr.f32.gmra.mrb[10].mxu0 %v8871_v52  ;;  %v1327_v20 = vld [vmem:[#allocation12 + $0x68] sm:$0xff] }
 0x23c   :  { %5341 = vmatprep.subr.bf16.mxu0 %v5340_v16  ;;  %v948_v0 = vrot.slane %v8829_v18, 1  ;;  %5323 = vmatpush1.bf16.msra.mxu1 %v5322_v37  ;;  %v959_v5 = vsel %vm951_vm3, %v940_v10, %v944_v59  ;;  %v963_v17 = vsel %vm951_vm3, %v936_v34, %v940_v10  ;;  %v5344_v19 = vpack.c.bf16 %v1321_v39, %v1319_v43  ;;  %v1325_v37 = vld [vmem:[#allocation12 + $0x58] sm:$0xff] }
 0x23d   :  { %v8881_v41 = vmax.f32 %v10501_v9, %v772_v48  ;;  %5325 = vmatprep.subr.bf16.mxu1 %v5324_v29  ;;  %v5328_v54 = vpack.c.bf16 %v1063_v30, %v1059_v31  ;;  %v1058_v1 = vmax.f32 %v8679_v11, %v970_v57  ;;  %v1062_v42 = vmax.f32 %v8585_v58, %v966_v40  ;;  %v8898_v11 = vld [vmem:[#allocation11 + $0x30] sm:$0xff]  ;;  %v1333_v16 = vld [vmem:[#allocation12 + $0x98] sm:$0xff] }
 0x23e   :  { %v5326_v33 = vpack.c.bf16 %v1054_v14, %v1050_v44  ;;  %v958_v26 = vsel %vm951_vm3, %v939_v13, %v943_v61  ;;  %v955_v34 = vsel %vm951_vm3, %v944_v59, %v948_v0  ;;  %v5346_v48 = vpack.c.bf16 %v1320_v3, %v1318_v8  ;;  %1188 = vmatprep.mubr.f32.mxu0 %v10483_v24  ;;  %v1322_v59 = vld [vmem:[#allocation12 + $0x40] sm:$0xff]  ;;  %v1328_v31 = vld [vmem:[#allocation12 + $0x70] sm:$0xff] }
 0x23f   :  { %v1067_v7 = vmax.f32 %v8611_v53, %v963_v17  ;;  %v1071_v21 = vmax.f32 %v876_v23, %v959_v5  ;;  %v962_v58 = vsel %vm951_vm3, %v935_v45, %v939_v13  ;;  %5343 = vmatpush1.bf16.msra.mxu0 %v5342_v6  ;;  %v5348_v2 = vpack.c.bf16 %v1325_v37, %v1323_v56  ;;  %v1329_v45 = vld [vmem:[#allocation12 + $0x78] sm:$0xff]  ;;  %v1330_v13 = vld [vmem:[#allocation12 + $0x80] sm:$0xff]  ;;  %v1332_v29 = vld [vmem:[#allocation12 + $0x90] sm:$0xff] }
 0x240   :  { %5327 = vmatpush1.bf16.msra.mxu1 %v5326_v33  ;;  %5345 = vmatprep.subr.bf16.mxu0 %v5344_v19  ;;  %v947_v27 = vrot.slane %v8881_v41, 1  ;;  %v1015_v53 = vsel %vm951_vm3, %v948_v0, %v888_v50  ;;  %v5330_v30 = vpack.c.bf16 %v1062_v42, %v1058_v1  ;;  %v1066_v49 = vmax.f32 %v8608_v15, %v962_v58  ;;  %v8914_v50 = vld [vmem:[#allocation11 + $0x38] sm:$0xff]  ;;  %v1334_v0 = vld [vmem:[#allocation12 + $0xa0] sm:$0xff]  ;;  %v1336_v5 = vld [vmem:[#allocation12 + $0xb0] sm:$0xff] }
 0x241   :  { %5329 = vmatprep.subr.bf16.mxu1 %v5328_v54  ;;  %v1070_v23 = vmax.f32 %v8853_v46, %v958_v26  ;;  %v1075_v4 = vmax.f32 %v8766_v63, %v955_v34  ;;  %1189 = vmatmul.mubr.f32.gmra.mrb[12].mxu0 %v8898_v11  ;;  %v5332_v12 = vpack.c.bf16 %v1071_v21, %v1067_v7  ;;  %v1326_v46 = vld [vmem:[#allocation12 + $0x60] sm:$0xff]  ;;  %v10502_v63 = vrot.slane %v8418_v51, 1  ;;  %v1337_v6 = vld [vmem:[#allocation12 + $0xb8] sm:$0xff]  ;;  %v1339_v17 = vld [vmem:[#allocation12 + $0xc8] sm:$0xff] }
 0x242   :  { %v954_v28 = vsel %vm951_vm3, %v943_v61, %v947_v27  ;;  %1194 = vmatprep.mubr.f32.mxu0 %v10483_v24  ;;  %v5350_v25 = vpack.c.bf16 %v1324_v36, %v1322_v59  ;;  %v5352_v15 = vpack.c.bf16 %v1329_v45, %v1327_v20  ;;  %v1079_v57 = vmax.f32 %v8829_v18, %v1015_v53  ;;  %v1331_v61 = vld [vmem:[#allocation12 + $0x88] sm:$0xff]  ;;  %v1341_v19 = vld [vmem:[#allocation12 + $0xd8] sm:$0xff]  ;;  %v1338_v54 = vld [vmem:[#allocation12 + $0xc0] sm:$0xff] }
 0x243   :  { %5347 = vmatpush1.bf16.msra.mxu0 %v5346_v48  ;;  %v1014_v40 = vsel %vm951_vm3, %v947_v27, %v10502_v63  ;;  %v5334_v43 = vpack.c.bf16 %v1070_v23, %v1066_v49  ;;  %v1074_v39 = vmax.f32 %v8805_v55, %v954_v28  ;;  %v5354_v14 = vpack.c.bf16 %v1328_v31, %v1326_v46  ;;  %v1335_v18 = vld [vmem:[#allocation12 + $0xa8] sm:$0xff]  ;;  %v1340_v1 = vld [vmem:[#allocation12 + $0xd0] sm:$0xff]  ;;  %v1345_v56 = vld [vmem:[#allocation12 + $0xf8] sm:$0xff] }
 0x244   :  { %5331 = vmatpush1.bf16.msra.mxu1 %v5330_v30  ;;  %5349 = vmatprep.subr.bf16.mxu0 %v5348_v2  ;;  %v5336_v44 = vpack.c.bf16 %v1079_v57, %v1075_v4  ;;  %v1078_v10 = vmax.f32 %v8881_v41, %v1014_v40  ;;  %v5356_v51 = vpack.c.bf16 %v1333_v16, %v1331_v61  ;;  %v1343_v42 = vld [vmem:[#allocation12 + $0xe8] sm:$0xff]  ;;  %v1342_v26 = vld [vmem:[#allocation12 + $0xe0] sm:$0xff]  ;;  %v1349_v48 = vld [vmem:[#allocation12 + $0x118] sm:$0xff] }
 0x245   :  { %5333 = vmatprep.subr.bf16.mxu1 %v5332_v12  ;;  %1195 = vmatmul.mubr.f32.gmra.mrb[14].mxu0 %v8914_v50  ;;  %v5358_v3 = vpack.c.bf16 %v1332_v29, %v1330_v13  ;;  %v5360_v55 = vpack.c.bf16 %v1337_v6, %v1335_v18  ;;  %v5362_v9 = vpack.c.bf16 %v1336_v5, %v1334_v0  ;;  %v1347_v34 = vld [vmem:[#allocation12 + $0x108] sm:$0xff]  ;;  %v1346_v58 = vld [vmem:[#allocation12 + $0x100] sm:$0xff]  ;;  %v1353_v59 = vld [vmem:[#allocation12 + $0x138] sm:$0xff] }
 0x246   :  { %v5338_v8 = vpack.c.bf16 %v1078_v10, %v1074_v39  ;;  %v5364_v41 = vpack.c.bf16 %v1341_v19, %v1339_v17  ;;  %v5366_v37 = vpack.c.bf16 %v1340_v1, %v1338_v54  ;;  %v5368_v33 = vpack.c.bf16 %v1345_v56, %v1343_v42  ;;  %v1351_v2 = vld [vmem:[#allocation12 + $0x128] sm:$0xff]  ;;  %v1350_v53 = vld [vmem:[#allocation12 + $0x120] sm:$0xff]  ;;  %v1357_v45 = vld [vmem:[#allocation12 + $0x158] sm:$0xff] }
 0x247   :  { %5351 = vmatpush1.bf16.msra.mxu0 %v5350_v25  ;;  %v5372_v21 = vpack.c.bf16 %v1349_v48, %v1347_v34  ;;  %v5376_v27 = vpack.c.bf16 %v1353_v59, %v1351_v2  ;;  %v1355_v20 = vld [vmem:[#allocation12 + $0x148] sm:$0xff]  ;;  %v1354_v23 = vld [vmem:[#allocation12 + $0x140] sm:$0xff]  ;;  %v1361_v12 = vld [vmem:[#allocation12 + $0x178] sm:$0xff] }
 0x248   :  { %5335 = vmatpush1.bf16.msra.mxu1 %v5334_v43  ;;  %5353 = vmatprep.subr.bf16.mxu0 %v5352_v15  ;;  %v5380_v49 = vpack.c.bf16 %v1357_v45, %v1355_v20  ;;  %v1359_v4 = vld [vmem:[#allocation12 + $0x168] sm:$0xff]  ;;  %v1358_v15 = vld [vmem:[#allocation12 + $0x160] sm:$0xff]  ;;  %v1365_v31 = vld [vmem:[#allocation12 + $0x198] sm:$0xff] }
 0x249   :  { %5337 = vmatprep.subr.bf16.mxu1 %v5336_v44  ;;  %v5384_v25 = vpack.c.bf16 %v1361_v12, %v1359_v4  ;;  %v1363_v46 = vld [vmem:[#allocation12 + $0x188] sm:$0xff]  ;;  %v1362_v57 = vld [vmem:[#allocation12 + $0x180] sm:$0xff]  ;;  %v1369_v16 = vld [vmem:[#allocation12 + $0x1b8] sm:$0xff] }
 0x24a   :  { %v5388_v40 = vpack.c.bf16 %v1365_v31, %v1363_v46  ;;  %v1367_v61 = vld [vmem:[#allocation12 + $0x1a8] sm:$0xff]  ;;  %v1366_v44 = vld [vmem:[#allocation12 + $0x1a0] sm:$0xff]  ;;  %v1372_v18 = vld [vmem:[#allocation12 + $0x1d0] sm:$0xff] }
 0x24b   :  { %5355 = vmatpush1.bf16.msra.mxu0 %v5354_v14  ;;  %v5392_v39 = vpack.c.bf16 %v1369_v16, %v1367_v61  ;;  %v1368_v14 = vld [vmem:[#allocation12 + $0x1b0] sm:$0xff]  ;;  %v1371_v10 = vld [vmem:[#allocation12 + $0x1c8] sm:$0xff]  ;;  %v1370_v29 = vld [vmem:[#allocation12 + $0x1c0] sm:$0xff] }
 0x24c   :  { %5339 = vmatpush1.bf16.msra.mxu1 %v5338_v8  ;;  %5357 = vmatprep.subr.bf16.mxu0 %v5356_v51  ;;  %v5394_v51 = vpack.c.bf16 %v1368_v14, %v1366_v44  ;;  %v1375_v6 = vld [vmem:[#allocation12 + $0x1e8] sm:$0xff]  ;;  %v1377_v8 = vld [vmem:[#allocation12 + $0x1f8] sm:$0xff]  ;;  %v1376_v0 = vld [vmem:[#allocation12 + $0x1f0] sm:$0xff] }
 0x24d   :  { %v1379_v17 = vld [vmem:[#allocation12 + $0x208] sm:$0xff]  ;;  %v1381_v19 = vld [vmem:[#allocation12 + $0x218] sm:$0xff]  ;;  %v1380_v54 = vld [vmem:[#allocation12 + $0x210] sm:$0xff] }
 0x24e   :  { %v1383_v1 = vld [vmem:[#allocation12 + $0x228] sm:$0xff]  ;;  %v1385_v42 = vld [vmem:[#allocation12 + $0x238] sm:$0xff]  ;;  %v1384_v34 = vld [vmem:[#allocation12 + $0x230] sm:$0xff] }
 0x24f   :  { %1266 = vmatmul.mubr.f32.vlgmr.msra.gmra.mrb[0].mxu1 %v8671_v32  ;;  %5359 = vmatpush1.bf16.msra.mxu0 %v5358_v3  ;;  %v1344_v32 = vld [vmem:[#allocation12 + $0xf0] sm:$0xff]  ;;  %v5398_v3 = vpack.c.bf16 %v1372_v18, %v1370_v29  ;;  %v1387_v48 = vld [vmem:[#allocation12 + $0x248] sm:$0xff]  ;;  %v1386_v2 = vld [vmem:[#allocation12 + $0x240] sm:$0xff] }
 0x250   :  { %1271 = vmatprep.mubr.f32.mxu1 %v10483_v24  ;;  %5361 = vmatprep.subr.bf16.mxu0 %v5360_v55  ;;  %v5370_v7 = vpack.c.bf16 %v1344_v32, %v1342_v26  ;;  %v1374_v55 = vld [vmem:[#allocation12 + $0x1e0] sm:$0xff]  ;;  %v5408_v26 = vpack.c.bf16 %v1385_v42, %v1383_v1  ;;  %v1388_v59 = vld [vmem:[#allocation12 + $0x250] sm:$0xff]  ;;  %v1399_v46 = vld [vmem:[#allocation12 + $0x2a8] sm:$0xff] }
 0x251   :  { %v5402_v5 = vpack.c.bf16 %v1376_v0, %v1374_v55  ;;  %v1382_v32 = vld [vmem:[#allocation12 + $0x220] sm:$0xff]  ;;  %v1401_v31 = vld [vmem:[#allocation12 + $0x2b8] sm:$0xff]  ;;  %v1400_v61 = vld [vmem:[#allocation12 + $0x2b0] sm:$0xff] }
 0x252   :  { %v1390_v45 = vld [vmem:[#allocation12 + $0x260] sm:$0xff]  ;;  %v1407_v29 = vld [vmem:[#allocation12 + $0x2e8] sm:$0xff]  ;;  %v1409_v18 = vld [vmem:[#allocation12 + $0x2f8] sm:$0xff] }
 0x253   :  { %1272 = vmatmul.mubr.f32.gmra.mrb[2].mxu1 %v8720_v62  ;;  %5363 = vmatpush1.bf16.msra.mxu0 %v5362_v9  ;;  %v1348_v62 = vld [vmem:[#allocation12 + $0x110] sm:$0xff]  ;;  %v5404_v9 = vpack.c.bf16 %v1381_v19, %v1379_v17  ;;  %v1413_v17 = vld [vmem:[#allocation12 + $0x318] sm:$0xff] }
 0x254   :  { %1277 = vmatprep.mubr.f32.mxu1 %v10483_v24  ;;  %5365 = vmatprep.subr.bf16.mxu0 %v5364_v41  ;;  %v5374_v36 = vpack.c.bf16 %v1348_v62, %v1346_v58  ;;  %v1378_v41 = vld [vmem:[#allocation12 + $0x200] sm:$0xff]  ;;  %v1408_v55 = vld [vmem:[#allocation12 + $0x2f0] sm:$0xff] }
 0x255   :  { %v1412_v1 = vld [vmem:[#allocation12 + $0x310] sm:$0xff] }
 0x257   :  { %1278 = vmatmul.mubr.f32.gmra.mrb[4].mxu1 %v8763_v38  ;;  %5367 = vmatpush1.bf16.msra.mxu0 %v5366_v37  ;;  %v1352_v38 = vld [vmem:[#allocation12 + $0x130] sm:$0xff]  ;;  %v5406_v37 = vpack.c.bf16 %v1380_v54, %v1378_v41  ;;  %v1410_v54 = vld [vmem:[#allocation12 + $0x300] sm:$0xff] }
 0x258   :  { %1283 = vmatprep.mubr.f32.mxu1 %v10483_v24  ;;  %5369 = vmatprep.subr.bf16.mxu0 %v5368_v33  ;;  %v5378_v30 = vpack.c.bf16 %v1352_v38, %v1350_v53  ;;  %v1393_v53 = vld [vmem:[#allocation12 + $0x278] sm:$0xff]  ;;  %v5414_v38 = vpack.c.bf16 %v1388_v59, %v1386_v2  ;;  %v1418_v2 = vld [vmem:[#allocation12 + $0x340] sm:$0xff]  ;;  %v1420_v59 = vld [vmem:[#allocation12 + $0x350] sm:$0xff] }
 0x25b   :  { %1284 = vmatmul.mubr.f32.gmra.mrb[6].mxu1 %v8792_v35  ;;  %5371 = vmatpush1.bf16.msra.mxu0 %v5370_v7  ;;  %v1356_v35 = vld [vmem:[#allocation12 + $0x150] sm:$0xff]  ;;  %v1389_v7 = vld [vmem:[#allocation12 + $0x258] sm:$0xff] }
 0x25c   :  { %1289 = vmatprep.mubr.f32.mxu1 %v10483_v24  ;;  %5373 = vmatprep.subr.bf16.mxu0 %v5372_v21  ;;  %v5382_v28 = vpack.c.bf16 %v1356_v35, %v1354_v23  ;;  %v5410_v21 = vpack.c.bf16 %v1384_v34, %v1382_v32  ;;  %v5412_v62 = vpack.c.bf16 %v1389_v7, %v1387_v48  ;;  %v1395_v23 = vld [vmem:[#allocation12 + $0x288] sm:$0xff]  ;;  %v1397_v35 = vld [vmem:[#allocation12 + $0x298] sm:$0xff]  ;;  %v1414_v34 = vld [vmem:[#allocation12 + $0x320] sm:$0xff] }
 0x25d   :  { %v1416_v48 = vld [vmem:[#allocation12 + $0x330] sm:$0xff]  ;;  %v1419_v7 = vld [vmem:[#allocation12 + $0x348] sm:$0xff] }
 0x25f   :  { %1290 = vmatmul.mubr.f32.gmra.mrb[8].mxu1 %v8847_v60  ;;  %5375 = vmatpush1.bf16.msra.mxu0 %v5374_v36  ;;  %v1360_v60 = vld [vmem:[#allocation12 + $0x170] sm:$0xff] }
 0x260   :  { %1295 = vmatprep.mubr.f32.mxu1 %v10483_v24  ;;  %5377 = vmatprep.subr.bf16.mxu0 %v5376_v27  ;;  %v5386_v63 = vpack.c.bf16 %v1360_v60, %v1358_v15  ;;  %v1391_v27 = vld [vmem:[#allocation12 + $0x268] sm:$0xff]  ;;  %v1396_v15 = vld [vmem:[#allocation12 + $0x290] sm:$0xff] }
 0x261   :  { %v5416_v20 = vpack.c.bf16 %v1393_v53, %v1391_v27  ;;  %v1425_v27 = vld [vmem:[#allocation12 + $0x378] sm:$0xff] }
 0x263   :  { %1296 = vmatmul.mubr.f32.gmra.mrb[10].mxu1 %v8871_v52  ;;  %5379 = vmatpush1.bf16.msra.mxu0 %v5378_v30  ;;  %v1364_v52 = vld [vmem:[#allocation12 + $0x190] sm:$0xff] }
 0x264   :  { %1301 = vmatprep.mubr.f32.mxu1 %v10483_v24  ;;  %5381 = vmatprep.subr.bf16.mxu0 %v5380_v49  ;;  %v5390_v43 = vpack.c.bf16 %v1364_v52, %v1362_v57  ;;  %v1392_v30 = vld [vmem:[#allocation12 + $0x270] sm:$0xff]  ;;  %v5424_v57 = vpack.c.bf16 %v1401_v31, %v1399_v46  ;;  %v1398_v52 = vld [vmem:[#allocation12 + $0x2a0] sm:$0xff]  ;;  %v1431_v46 = vld [vmem:[#allocation12 + $0x3a8] sm:$0xff] }
 0x265   :  { %v5418_v12 = vpack.c.bf16 %v1392_v30, %v1390_v45  ;;  %v5426_v14 = vpack.c.bf16 %v1400_v61, %v1398_v52  ;;  %v1422_v30 = vld [vmem:[#allocation12 + $0x360] sm:$0xff]  ;;  %v1433_v31 = vld [vmem:[#allocation12 + $0x3b8] sm:$0xff] }
 0x266   :  { %v5456_v52 = vpack.c.bf16 %v1433_v31, %v1431_v46  ;;  %v1430_v61 = vld [vmem:[#allocation12 + $0x3a0] sm:$0xff] }
 0x267   :  { %1302 = vmatmul.mubr.f32.gmra.mrb[12].mxu1 %v8898_v11  ;;  %5383 = vmatpush1.bf16.msra.mxu0 %v5382_v28  ;;  %v1373_v11 = vld [vmem:[#allocation12 + $0x1d8] sm:$0xff]  ;;  %v5420_v28 = vpack.c.bf16 %v1397_v35, %v1395_v23  ;;  %v1427_v23 = vld [vmem:[#allocation12 + $0x388] sm:$0xff] }
 0x268   :  { %1307 = vmatprep.mubr.f32.mxu1 %v10483_v24  ;;  %5385 = vmatprep.subr.bf16.mxu0 %v5384_v25  ;;  %v5396_v13 = vpack.c.bf16 %v1373_v11, %v1371_v10  ;;  %v1394_v25 = vld [vmem:[#allocation12 + $0x280] sm:$0xff]  ;;  %v1429_v35 = vld [vmem:[#allocation12 + $0x398] sm:$0xff] }
 0x269   :  { %v1402_v11 = vld [vmem:[#allocation12 + $0x2c0] sm:$0xff] }
 0x26b   :  { %1308 = vmatmul.mubr.f32.gmra.mrb[14].mxu1 %v8914_v50  ;;  %5387 = vmatpush1.bf16.msra.mxu0 %v5386_v63  ;;  %v5400_v50 = vpack.c.bf16 %v1377_v8, %v1375_v6 }
 0x26c   :  { %5389 = vmatprep.subr.bf16.mxu0 %v5388_v40  ;;  %v5422_v40 = vpack.c.bf16 %v1396_v15, %v1394_v25  ;;  %v5452_v25 = vpack.c.bf16 %v1429_v35, %v1427_v23  ;;  %v1426_v15 = vld [vmem:[#allocation12 + $0x380] sm:$0xff] }
 0x26f   :  { %5391 = vmatpush1.bf16.msra.mxu0 %v5390_v43  ;;  %v1403_v43 = vld [vmem:[#allocation12 + $0x2c8] sm:$0xff] }
 0x270   :  { %5393 = vmatprep.subr.bf16.mxu0 %v5392_v39  ;;  %v1405_v39 = vld [vmem:[#allocation12 + $0x2d8] sm:$0xff] }
 0x271   :  { %v5428_v10 = vpack.c.bf16 %v1405_v39, %v1403_v43  ;;  %v1435_v43 = vld [vmem:[#allocation12 + $0x3c8] sm:$0xff]  ;;  %v1437_v39 = vld [vmem:[#allocation12 + $0x3d8] sm:$0xff] }
 0x273   :  { %5395 = vmatpush1.bf16.msra.mxu0 %v5394_v51  ;;  %v1404_v51 = vld [vmem:[#allocation12 + $0x2d0] sm:$0xff] }
 0x274   :  { %5397 = vmatprep.subr.bf16.mxu0 %v5396_v13  ;;  %v5430_v8 = vpack.c.bf16 %v1404_v51, %v1402_v11  ;;  %v5460_v11 = vpack.c.bf16 %v1437_v39, %v1435_v43  ;;  %v1434_v51 = vld [vmem:[#allocation12 + $0x3c0] sm:$0xff] }
 0x277   :  { %5399 = vmatpush1.bf16.msra.mxu0 %v5398_v3  ;;  %v5432_v3 = vpack.c.bf16 %v1409_v18, %v1407_v29  ;;  %v1439_v29 = vld [vmem:[#allocation12 + $0x3e8] sm:$0xff]  ;;  %v1441_v18 = vld [vmem:[#allocation12 + $0x3f8] sm:$0xff] }
 0x278   :  { %5401 = vmatprep.subr.bf16.mxu0 %v5400_v50  ;;  %v1406_v50 = vld [vmem:[#allocation12 + $0x2e0] sm:$0xff] }
 0x27b   :  { %5403 = vmatpush1.bf16.msra.mxu0 %v5402_v5  ;;  %v1411_v5 = vld [vmem:[#allocation12 + $0x308] sm:$0xff] }
 0x27c   :  { %5405 = vmatprep.subr.bf16.mxu0 %v5404_v9  ;;  %v5434_v9 = vpack.c.bf16 %v1408_v55, %v1406_v50  ;;  %v5436_v41 = vpack.c.bf16 %v1413_v17, %v1411_v5  ;;  %v5464_v50 = vpack.c.bf16 %v1441_v18, %v1439_v29  ;;  %v1438_v55 = vld [vmem:[#allocation12 + $0x3e0] sm:$0xff] }
 0x2fa   :  { %v1154_v56 = vpop.f32.mrb[0].mxu0 }
 0x2fb   :  { %v1156_v33 = vpop.f32.mrb[1].mxu0 }
 0x2fc   :  { %1506 = vmatprep.mubr.f32.mxu0 %v1156_v33 }
 0x2fd   :  { %1507 = vmatmul.mubr.f32.vlgmr.msra.gmra.mrb[16].mxu0 %v1154_v56  ;;  %v1415_v56 = vld [vmem:[#allocation12 + $0x328] sm:$0xff] }
 0x2fe   :  { %5407 = vmatpush1.bf16.msra.mxu0 %v5406_v37  ;;  %v1160_v58 = vpop.f32.mrb[2].mxu0  ;;  %v1417_v37 = vld [vmem:[#allocation12 + $0x338] sm:$0xff] }
 0x2ff   :  { %5409 = vmatprep.subr.bf16.mxu0 %v5408_v26  ;;  %v1162_v36 = vpop.f32.mrb[3].mxu0  ;;  %v5438_v26 = vpack.c.bf16 %v1412_v1, %v1410_v54  ;;  %v5440_v32 = vpack.c.bf16 %v1417_v37, %v1415_v56 }
 0x300   :  { %1512 = vmatprep.mubr.f32.mxu0 %v1162_v36  ;;  %v1423_v36 = vld [vmem:[#allocation12 + $0x368] sm:$0xff] }
 0x301   :  { %1513 = vmatmul.mubr.f32.gmra.mrb[18].mxu0 %v1160_v58  ;;  %v5442_v58 = vpack.c.bf16 %v1416_v48, %v1414_v34  ;;  %v5448_v45 = vpack.c.bf16 %v1425_v27, %v1423_v36 }
 0x302   :  { %5411 = vmatpush1.bf16.msra.mxu0 %v5410_v21  ;;  %v1166_v49 = vpop.f32.mrb[4].mxu0  ;;  %v1421_v21 = vld [vmem:[#allocation12 + $0x358] sm:$0xff] }
 0x303   :  { %5413 = vmatprep.subr.bf16.mxu0 %v5412_v62  ;;  %v1168_v4 = vpop.f32.mrb[5].mxu0  ;;  %v5444_v62 = vpack.c.bf16 %v1421_v21, %v1419_v7 }
 0x304   :  { %1518 = vmatprep.mubr.f32.mxu0 %v1168_v4 }
 0x305   :  { %1519 = vmatmul.mubr.f32.gmra.mrb[20].mxu0 %v1166_v49  ;;  %v1424_v49 = vld [vmem:[#allocation12 + $0x370] sm:$0xff] }
 0x306   :  { %5415 = vmatpush1.bf16.msra.mxu0 %v5414_v38  ;;  %v1172_v60 = vpop.f32.mrb[6].mxu0 }
 0x307   :  { %5417 = vmatprep.subr.bf16.mxu0 %v5416_v20  ;;  %v1174_v63 = vpop.f32.mrb[7].mxu0  ;;  %v5446_v20 = vpack.c.bf16 %v1420_v59, %v1418_v2 }
 0x308   :  { %1524 = vmatprep.mubr.f32.mxu0 %v1174_v63 }
 0x309   :  { %1525 = vmatmul.mubr.f32.gmra.mrb[22].mxu0 %v1172_v60  ;;  %v1428_v60 = vld [vmem:[#allocation12 + $0x390] sm:$0xff] }
 0x30a   :  { %5419 = vmatpush1.bf16.msra.mxu0 %v5418_v12  ;;  %v1178_v16 = vpop.f32.mrb[8].mxu0 }
 0x30b   :  { %5421 = vmatprep.subr.bf16.mxu0 %v5420_v28  ;;  %v1180_v44 = vpop.f32.mrb[9].mxu0  ;;  %v5450_v28 = vpack.c.bf16 %v1424_v49, %v1422_v30 }
 0x30c   :  { %1530 = vmatprep.mubr.f32.mxu0 %v1180_v44 }
 0x30d   :  { %1531 = vmatmul.mubr.f32.gmra.mrb[24].mxu0 %v1178_v16  ;;  %v1432_v16 = vld [vmem:[#allocation12 + $0x3b0] sm:$0xff] }
 0x30e   :  { %5423 = vmatpush1.bf16.msra.mxu0 %v5422_v40  ;;  %v1184_v13 = vpop.f32.mrb[10].mxu0 }
 0x30f   :  { %5425 = vmatprep.subr.bf16.mxu0 %v5424_v57  ;;  %v1186_v6 = vpop.f32.mrb[11].mxu0  ;;  %v5454_v57 = vpack.c.bf16 %v1428_v60, %v1426_v15 }
 0x310   :  { %1536 = vmatprep.mubr.f32.mxu0 %v1186_v6 }
 0x311   :  { %1537 = vmatmul.mubr.f32.gmra.mrb[26].mxu0 %v1184_v13  ;;  %v1436_v13 = vld [vmem:[#allocation12 + $0x3d0] sm:$0xff] }
 0x312   :  { %5427 = vmatpush1.bf16.msra.mxu0 %v5426_v14 }
 0x313   :  { %5429 = vmatprep.subr.bf16.mxu0 %v5428_v10  ;;  %v5458_v10 = vpack.c.bf16 %v1432_v16, %v1430_v61 }
 0x314   :  { %v1190_v0 = vpop.f32.mrb[12].mxu0 }
 0x315   :  { %v1192_v19 = vpop.f32.mrb[13].mxu0 }
 0x316   :  { %1542 = vmatprep.mubr.f32.mxu0 %v1192_v19  ;;  %5431 = vmatpush1.bf16.msra.mxu0 %v5430_v8 }
 0x317   :  { %5433 = vmatprep.subr.bf16.mxu0 %v5432_v3  ;;  %1543 = vmatmul.mubr.f32.gmra.mrb[28].mxu0 %v1190_v0  ;;  %v5462_v3 = vpack.c.bf16 %v1436_v13, %v1434_v51  ;;  %v1440_v0 = vld [vmem:[#allocation12 + $0x3f0] sm:$0xff] }
 0x318   :  { %v1196_v42 = vpop.f32.mrb[14].mxu0  ;;  %v5466_v19 = vpack.c.bf16 %v1440_v0, %v1438_v55 }
 0x319   :  { %v1198_v33 = vpop.f32.mrb[15].mxu0 }
 0x31a   :  { %1548 = vmatprep.mubr.f32.mxu0 %v1198_v33  ;;  %5435 = vmatpush1.bf16.msra.mxu0 %v5434_v9 }
 0x31b   :  { %5437 = vmatprep.subr.bf16.mxu0 %v5436_v41  ;;  %1549 = vmatmul.mubr.f32.gmra.mrb[30].mxu0 %v1196_v42 }
 0x31e   :  { %5439 = vmatpush1.bf16.msra.mxu0 %v5438_v26 }
 0x31f   :  { %5441 = vmatprep.subr.bf16.mxu0 %v5440_v32 }
 0x322   :  { %v1267_v53 = vpop.f32.mrb[0].mxu1  ;;  %5443 = vmatpush1.bf16.msra.mxu0 %v5442_v58 }
 0x323   :  { %v1269_v38 = vpop.f32.mrb[1].mxu1  ;;  %5445 = vmatprep.subr.bf16.mxu0 %v5444_v62 }
 0x324   :  { %1619 = vmatprep.mubr.f32.mxu0 %v1269_v38 }
 0x326   :  { %v1273_v4 = vpop.f32.mrb[2].mxu1  ;;  %5447 = vmatpush1.bf16.msra.mxu0 %v5446_v20 }
 0x327   :  { %v1275_v12 = vpop.f32.mrb[3].mxu1  ;;  %5449 = vmatprep.subr.bf16.mxu0 %v5448_v45 }
 0x32a   :  { %v1279_v63 = vpop.f32.mrb[4].mxu1  ;;  %5451 = vmatpush1.bf16.msra.mxu0 %v5450_v28 }
 0x32b   :  { %v1281_v40 = vpop.f32.mrb[5].mxu1  ;;  %5453 = vmatprep.subr.bf16.mxu0 %v5452_v25 }
 0x32e   :  { %v1285_v44 = vpop.f32.mrb[6].mxu1  ;;  %5455 = vmatpush1.bf16.msra.mxu0 %v5454_v57 }
 0x32f   :  { %v1287_v14 = vpop.f32.mrb[7].mxu1  ;;  %5457 = vmatprep.subr.bf16.mxu0 %v5456_v52 }
 0x332   :  { %v1291_v6 = vpop.f32.mrb[8].mxu1  ;;  %5459 = vmatpush1.bf16.msra.mxu0 %v5458_v10 }
 0x333   :  { %v1293_v8 = vpop.f32.mrb[9].mxu1  ;;  %5461 = vmatprep.subr.bf16.mxu0 %v5460_v11 }
 0x336   :  { %v1297_v5 = vpop.f32.mrb[10].mxu1  ;;  %5463 = vmatpush1.bf16.msra.mxu0 %v5462_v3 }
 0x337   :  { %v1299_v17 = vpop.f32.mrb[11].mxu1  ;;  %5465 = vmatprep.subr.bf16.mxu0 %v5464_v50 }
 0x33a   :  { %v1303_v9 = vpop.f32.mrb[12].mxu1  ;;  %5467 = vmatpush1.bf16.msra.mxu0 %v5466_v19 }
 0x33b   :  { %v1305_v41 = vpop.f32.mrb[13].mxu1 }
 0x33d   :  { %1620 = vmatmul.mubr.f32.vlgmr.msra.gmra.mrb[16].mxu0 %v1267_v53 }
 0x33e   :  { %v1309_v54 = vpop.f32.mrb[14].mxu1  ;;  %1625 = vmatprep.mubr.f32.mxu0 %v1275_v12 }
 0x33f   :  { %v1311_v1 = vpop.f32.mrb[15].mxu1 }
 0x341   :  { %1626 = vmatmul.mubr.f32.gmra.mrb[18].mxu0 %v1273_v4 }
 0x342   :  { %1631 = vmatprep.mubr.f32.mxu0 %v1281_v40 }
 0x345   :  { %1632 = vmatmul.mubr.f32.gmra.mrb[20].mxu0 %v1279_v63 }
 0x346   :  { %1637 = vmatprep.mubr.f32.mxu0 %v1287_v14 }
 0x349   :  { %1638 = vmatmul.mubr.f32.gmra.mrb[22].mxu0 %v1285_v44 }
 0x34a   :  { %1643 = vmatprep.mubr.f32.mxu0 %v1293_v8 }
 0x34d   :  { %1644 = vmatmul.mubr.f32.gmra.mrb[24].mxu0 %v1291_v6 }
 0x34e   :  { %1649 = vmatprep.mubr.f32.mxu0 %v1299_v17 }
 0x351   :  { %1650 = vmatmul.mubr.f32.gmra.mrb[26].mxu0 %v1297_v5 }
 0x352   :  { %1655 = vmatprep.mubr.f32.mxu0 %v1305_v41 }
 0x355   :  { %1656 = vmatmul.mubr.f32.gmra.mrb[28].mxu0 %v1303_v9 }
 0x356   :  { %1661 = vmatprep.mubr.f32.mxu0 %v1311_v1 }
 0x359   :  { %1662 = vmatmul.mubr.f32.gmra.mrb[30].mxu0 %v1309_v54 }
 0x35a   :  { %3329 = vmatprep.mubr.f32.mxu0 %v10483_v24 }
 0x410   :  { %v1621_v42 = vpop.f32.mrb[16].mxu0 }
 0x411   :  { %v8940_v56 = vmax.f32 %v1621_v42, 0.0  ;;  %v1623_v37 = vpop.f32.mrb[17].mxu0 }
 0x412   :  { %v8942_v33 = vmax.f32 %v1623_v37, 0.0 }
 0x413   :  { %v1829_v48 = vrot.slane %v8940_v56, 1  ;;  %v10386_v58 = vrot.slane %v8940_v56, 2 }
 0x414   :  { %v1627_v26 = vpop.f32.mrb[18].mxu0  ;;  %v10388_v21 = vrot.slane %v8942_v33, 1  ;;  %v10385_v62 = vrot.slane %v8942_v33, 2 }
 0x415   :  { %v1670_v32 = vmax.f32 %v1627_v26, 0.0  ;;  %v1629_v34 = vpop.f32.mrb[19].mxu0 }
 0x416   :  { %v1671_v7 = vmax.f32 %v1629_v34, 0.0 }
 0x417   :  { %v8950_v2 = vpack.i.bf16 %v1670_v32, %v8940_v56  ;;  %v5470_v59 = vpack.c.bf16 %v1670_v32, %v8940_v56  ;;  %v1831_v36 = vrot.slane %v1670_v32, 1  ;;  %v2007_v23 = vrot.slane %v1670_v32, 2 }
 0x418   :  { %v1633_v27 = vpop.f32.mrb[20].mxu0  ;;  %v8954_v53 = vpack.i.bf16 %v1671_v7, %v8942_v33  ;;  %v5468_v38 = vpack.c.bf16 %v1671_v7, %v8942_v33  ;;  %v1832_v20 = vrot.slane %v1671_v7, 1  ;;  %v2008_v35 = vrot.slane %v1671_v7, 2 }
 0x419   :  { %v1672_v45 = vmax.f32 %v1633_v27, 0.0  ;;  %6585 = vrot.lane.b32.xlu1 %v8950_v2, %s7185_s11  ;;  %v1635_v30 = vpop.f32.mrb[21].mxu0  ;;  %v8963_v49 = vsel %vm951_vm3, %v1829_v48, %v1831_v36  ;;  %v8979_v15 = vsel %vm2021_vm4, %v10386_v58, %v2007_v23 }
 0x41a   :  { %v8965_v4 = vmax.f32 %v1635_v30, 0.0  ;;  %6590 = vrot.lane.b32.xlu0 %v8954_v53, %s7185_s11  ;;  %5469 = vmatprep.subr.bf16.mxu1 %v5468_v38  ;;  %v8973_v12 = vsel %vm951_vm3, %v10388_v21, %v1832_v20  ;;  %v8985_v60 = vsel %vm2021_vm4, %v10385_v62, %v2008_v35 }
 0x41b   :  { %5471 = vmatpush1.bf16.msra.mxu1 %v5470_v59  ;;  %v1833_v28 = vrot.slane %v1672_v45, 1  ;;  %v2009_v25 = vrot.slane %v1672_v45, 2 }
 0x41c   :  { %v1639_v46 = vpop.f32.mrb[22].mxu0  ;;  %v1834_v31 = vrot.slane %v8965_v4, 1  ;;  %v2010_v61 = vrot.slane %v8965_v4, 2 }
 0x41d   :  { %v1674_v63 = vmax.f32 %v1639_v46, 0.0  ;;  %v1641_v40 = vpop.f32.mrb[23].mxu0  ;;  %v8990_v57 = vsel %vm951_vm3, %v1831_v36, %v1833_v28  ;;  %v8994_v52 = vsel %vm2021_vm4, %v2007_v23, %v2009_v25 }
 0x41e   :  { %v1675_v16 = vmax.f32 %v1641_v40, 0.0  ;;  %v8999_v43 = vpack.i.bf16 %v8990_v57, %v8963_v49  ;;  %v9003_v39 = vsel %vm951_vm3, %v1832_v20, %v1834_v31  ;;  %v9019_v3 = vpack.i.bf16 %v8994_v52, %v8979_v15 }
 0x41f   :  { %v9005_v44 = vpack.i.bf16 %v1674_v63, %v1672_v45  ;;  %v5474_v14 = vpack.c.bf16 %v1674_v63, %v1672_v45  ;;  %v9009_v10 = vpack.i.bf16 %v9003_v39, %v8973_v12  ;;  %v1835_v29 = vrot.slane %v1674_v63, 1 }
 0x420   :  { %v1645_v11 = vpop.f32.mrb[24].mxu0  ;;  %v9012_v51 = vpack.i.bf16 %v1675_v16, %v8965_v4  ;;  %v5472_v13 = vpack.c.bf16 %v1675_v16, %v8965_v4  ;;  %v1836_v8 = vrot.slane %v1675_v16, 1  ;;  %v9031_v0 = vsel %vm2021_vm4, %v2008_v35, %v2010_v61 }
 0x421   :  { %v1676_v18 = vmax.f32 %v1645_v11, 0.0  ;;  %6595 = vrot.lane.b32.xlu1 %v9005_v44, %s7185_s11  ;;  %v1647_v6 = vpop.f32.mrb[25].mxu0  ;;  %v9027_v55 = vsel %vm951_vm3, %v1833_v28, %v1835_v29  ;;  %v2011_v5 = vrot.slane %v1674_v63, 2  ;;  %v9039_v9 = vpack.i.bf16 %v9031_v0, %v8985_v60 }
 0x422   :  { %v9021_v50 = vmax.f32 %v1647_v6, 0.0  ;;  %6600 = vrot.lane.b32.xlu0 %v9012_v51, %s7185_s11  ;;  %5473 = vmatprep.subr.bf16.mxu1 %v5472_v13  ;;  %v9035_v19 = vsel %vm951_vm3, %v1834_v31, %v1836_v8  ;;  %v2012_v37 = vrot.slane %v1675_v16, 2 }
 0x423   :  { %5475 = vmatpush1.bf16.msra.mxu1 %v5474_v14  ;;  %v1837_v17 = vrot.slane %v1676_v18, 1  ;;  %v2013_v41 = vrot.slane %v1676_v18, 2  ;;  %v9044_v42 = vsel %vm2021_vm4, %v2009_v25, %v2011_v5 }
 0x424   :  { %v1651_v54 = vpop.f32.mrb[26].mxu0  ;;  %v1838_v1 = vrot.slane %v9021_v50, 1  ;;  %v10387_v26 = vrot.slane %v9021_v50, 2  ;;  %v9093_v11 = vsel %vm2021_vm4, %v2010_v61, %v2012_v37 }
 0x425   :  { %v1678_v32 = vmax.f32 %v1651_v54, 0.0  ;;  %v1653_v34 = vpop.f32.mrb[27].mxu0  ;;  %v9049_v7 = vsel %vm951_vm3, %v1835_v29, %v1837_v17  ;;  %v9053_v59 = vsel %vm2021_vm4, %v2011_v5, %v2013_v41 }
 0x426   :  { %v1679_v36 = vmax.f32 %v1653_v34, 0.0  ;;  %v9057_v27 = vpack.i.bf16 %v9049_v7, %v9027_v55  ;;  %v9061_v38 = vsel %vm951_vm3, %v1836_v8, %v1838_v1  ;;  %v9077_v63 = vpack.i.bf16 %v9053_v59, %v9044_v42 }
 0x427   :  { %v9063_v20 = vpack.i.bf16 %v1678_v32, %v1676_v18  ;;  %v5478_v45 = vpack.c.bf16 %v1678_v32, %v1676_v18  ;;  %v9067_v30 = vpack.i.bf16 %v9061_v38, %v9035_v19  ;;  %v1839_v28 = vrot.slane %v1678_v32, 1 }
 0x428   :  { %v1657_v23 = vpop.f32.mrb[28].mxu0  ;;  %v9070_v35 = vpack.i.bf16 %v1679_v36, %v9021_v50  ;;  %v5476_v4 = vpack.c.bf16 %v1679_v36, %v9021_v50  ;;  %v1840_v31 = vrot.slane %v1679_v36, 1  ;;  %v9089_v14 = vsel %vm2021_vm4, %v2012_v37, %v10387_v26 }
 0x429   :  { %v1680_v25 = vmax.f32 %v1657_v23, 0.0  ;;  %6605 = vrot.lane.b32.xlu1 %v9063_v20, %s7185_s11  ;;  %v1659_v46 = vpop.f32.mrb[29].mxu0  ;;  %v9083_v16 = vsel %vm951_vm3, %v1837_v17, %v1839_v28  ;;  %v9101_v18 = vpack.i.bf16 %v9089_v14, %v9093_v11  ;;  %v2015_v6 = vrot.slane %v1678_v32, 2 }
 0x42a   :  { %v1681_v40 = vmax.f32 %v1659_v46, 0.0  ;;  %6610 = vrot.lane.b32.xlu0 %v9070_v35, %s7185_s11  ;;  %5477 = vmatprep.subr.bf16.mxu1 %v5476_v4  ;;  %v9097_v29 = vsel %vm951_vm3, %v1838_v1, %v1840_v31  ;;  %v2016_v54 = vrot.slane %v1679_v36, 2 }
 0x42b   :  { %5479 = vmatpush1.bf16.msra.mxu1 %v5478_v45  ;;  %v1841_v13 = vrot.slane %v1680_v25, 1  ;;  %v2017_v17 = vrot.slane %v1680_v25, 2  ;;  %v9109_v1 = vsel %vm2021_vm4, %v2013_v41, %v2015_v6 }
 0x42c   :  { %v1663_v8 = vpop.f32.mrb[30].mxu0  ;;  %v1842_v5 = vrot.slane %v1681_v40, 1  ;;  %v2018_v34 = vrot.slane %v1681_v40, 2 }
 0x42d   :  { %v1682_v23 = vmax.f32 %v1663_v8, 0.0  ;;  %v1665_v4 = vpop.f32.mrb[31].mxu0  ;;  %v9105_v61 = vsel %vm951_vm3, %v1839_v28, %v1841_v13 }
 0x42e   :  { %v1683_v37 = vmax.f32 %v1665_v4, 0.0  ;;  %v9113_v45 = vpack.i.bf16 %v9105_v61, %v9083_v16  ;;  %v9117_v32 = vsel %vm951_vm3, %v1840_v31, %v1842_v5  ;;  %v9126_v4 = vsel %vm2021_vm4, %v2015_v6, %v2017_v17 }
 0x42f   :  { %v6614_v36 = vpack.i.bf16 %v1682_v23, %v1680_v25  ;;  %v5482_v46 = vpack.c.bf16 %v1682_v23, %v1680_v25  ;;  %v9121_v8 = vpack.i.bf16 %v9117_v32, %v9097_v29  ;;  %v1843_v58 = vrot.slane %v1682_v23, 1 }
 0x430   :  { %v6624_v28 = vpack.i.bf16 %v1683_v37, %v1681_v40  ;;  %v5480_v62 = vpack.c.bf16 %v1683_v37, %v1681_v40  ;;  %v1844_v41 = vrot.slane %v1683_v37, 1  ;;  %v9130_v31 = vsel %vm2021_vm4, %v2016_v54, %v2018_v34 }
 0x431   :  { %6615 = vrot.lane.b32.xlu1 %v6614_v36, %s7185_s11  ;;  %v9135_v25 = vsel %vm951_vm3, %v1841_v13, %v1843_v58  ;;  %v9141_v40 = vsel %vm951_vm3, %v1843_v58, %v1829_v48  ;;  %v9145_v6 = vpack.i.bf16 %v9126_v4, %v9109_v1  ;;  %v2019_v26 = vrot.slane %v1682_v23, 2 }
 0x432   :  { %6625 = vrot.lane.b32.xlu0 %v6624_v28, %s7185_s11  ;;  %5481 = vmatprep.subr.bf16.mxu1 %v5480_v62  ;;  %v6694_v21 = vpack.i.bf16 %v9141_v40, %v9135_v25  ;;  %v9151_v62 = vsel %vm951_vm3, %v1842_v5, %v1844_v41  ;;  %v10503_v13 = vrot.slane %v8942_v33, 1  ;;  %v10504_v58 = vrot.slane %v9021_v50, 2 }
 0x433   :  { %5483 = vmatpush1.bf16.msra.mxu1 %v5482_v46  ;;  %v9169_v46 = vsel %vm2021_vm4, %v2017_v17, %v2019_v26 }
 0x434   :  { %v9157_v24 = vsel %vm951_vm3, %v1844_v41, %v10503_v13  ;;  %v9165_v23 = vsel %vm2021_vm4, %v10504_v58, %v2016_v54  ;;  %v10505_v41 = vrot.slane %v8940_v56, 2  ;;  %v2020_v13 = vrot.slane %v1683_v37, 2 }
 0x435   :  { %v6704_v48 = vpack.i.bf16 %v9157_v24, %v9151_v62  ;;  %6620 = vrot.lane.b32.xlu1 %v8950_v2, %s7187_s18  ;;  %v6769_v5 = vpack.i.bf16 %v9130_v31, %v9165_v23  ;;  %v10506_v2 = vrot.slane %v8942_v33, 2  ;;  %v5516_v37 = vpack.c.bf16 %v9003_v39, %v8973_v12 }
 0x436   :  { %v9179_v50 = vsel %vm2021_vm4, %v2019_v26, %v10505_v41  ;;  %6630 = vrot.lane.b32.xlu0 %v8954_v53, %s7187_s18  ;;  %v9187_v54 = vsel %vm2021_vm4, %v2018_v34, %v2020_v13  ;;  %v5518_v53 = vpack.c.bf16 %v8990_v57, %v8963_v49  ;;  %v5520_v34 = vpack.c.bf16 %v9061_v38, %v9035_v19 }
 0x437   :  { %v6774_v17 = vpack.i.bf16 %v9179_v50, %v9169_v46  ;;  %v9193_v56 = vsel %vm2021_vm4, %v2020_v13, %v10506_v2  ;;  %v5566_v33 = vpack.c.bf16 %v8994_v52, %v8979_v15  ;;  %v5568_v58 = vpack.c.bf16 %v9089_v14, %v9093_v11  ;;  %v2232_v14 = vld [vmem:[%s10308_s3 + $0x190] sm:$0xff] }
 0x438   :  { %v6779_v26 = vpack.i.bf16 %v9193_v56, %v9187_v54  ;;  %v5570_v41 = vpack.c.bf16 %v9053_v59, %v9044_v42  ;;  %v5574_v13 = vpack.c.bf16 %v9126_v4, %v9109_v1  ;;  %v5578_v2 = vpack.c.bf16 %v9179_v50, %v9169_v46 }
 0x439   :  { %6635 = vrot.lane.b32.xlu1 %v9005_v44, %s7187_s18  ;;  %v5576_v44 = vpack.c.bf16 %v9193_v56, %v9187_v54  ;;  %v10507_v12 = vpack.c.bf16 %v9049_v7, %v9027_v55  ;;  %v10508_v39 = vpack.c.bf16 %v9117_v32, %v9097_v29  ;;  %v10509_v55 = vpack.c.bf16 %v9105_v61, %v9083_v16 }
 0x43a   :  { %6640 = vrot.lane.b32.xlu0 %v9012_v51, %s7187_s18  ;;  %v5572_v51 = vpack.c.bf16 %v9130_v31, %v9165_v23  ;;  %v10510_v7 = vpack.c.bf16 %v9157_v24, %v9151_v62  ;;  %v10511_v16 = vpack.c.bf16 %v9141_v40, %v9135_v25  ;;  %v2182_v24 = vld [vmem:[%s10308_s3] sm:$0xff]  ;;  %v2237_v31 = vld [vmem:[%s10308_s3 + $0x1b8] sm:$0xff] }
 0x43d   :  { %6645 = vrot.lane.b32.xlu1 %v9063_v20, %s7187_s18  ;;  %v2183_v20 = vld [vmem:[%s10308_s3 + $0x8] sm:$0xff] }
 0x43e   :  { %6650 = vrot.lane.b32.xlu0 %v9070_v35, %s7187_s18  ;;  %2614 = vmatprep.mubr.f32.mxu1 %v2183_v20 }
 0x441   :  { %6655 = vrot.lane.b32.xlu1 %v6614_v36, %s7187_s18 }
 0x442   :  { %6660 = vrot.lane.b32.xlu0 %v6624_v28, %s7187_s18 }
 0x445   :  { %6665 = vrot.lane.b32.xlu1 %v8999_v43, %s7185_s11 }
 0x446   :  { %6670 = vrot.lane.b32.xlu0 %v9009_v10, %s7185_s11 }
 0x449   :  { %6675 = vrot.lane.b32.xlu1 %v9057_v27, %s7185_s11 }
 0x44a   :  { %6680 = vrot.lane.b32.xlu0 %v9067_v30, %s7185_s11 }
 0x44d   :  { %6685 = vrot.lane.b32.xlu1 %v9113_v45, %s7185_s11 }
 0x44e   :  { %6690 = vrot.lane.b32.xlu0 %v9121_v8, %s7185_s11 }
 0x451   :  { %6695 = vrot.lane.b32.xlu1 %v6694_v21, %s7185_s11 }
 0x452   :  { %6705 = vrot.lane.b32.xlu0 %v6704_v48, %s7185_s11 }
 0x455   :  { %6700 = vrot.lane.b32.xlu1 %v8999_v43, %s7187_s18 }
 0x456   :  { %6710 = vrot.lane.b32.xlu0 %v9009_v10, %s7187_s18 }
 0x459   :  { %6715 = vrot.lane.b32.xlu1 %v9057_v27, %s7187_s18 }
 0x45a   :  { %6720 = vrot.lane.b32.xlu0 %v9067_v30, %s7187_s18 }
 0x45d   :  { %6725 = vrot.lane.b32.xlu1 %v9113_v45, %s7187_s18 }
 0x45e   :  { %6730 = vrot.lane.b32.xlu0 %v9121_v8, %s7187_s18 }
 0x461   :  { %6735 = vrot.lane.b32.xlu1 %v6694_v21, %s7187_s18 }
 0x462   :  { %6740 = vrot.lane.b32.xlu0 %v6704_v48, %s7187_s18 }
 0x465   :  { %6745 = vrot.lane.b32.xlu1 %v9019_v3, %s7185_s11 }
 0x466   :  { %6750 = vrot.lane.b32.xlu0 %v9039_v9, %s7185_s11 }
 0x469   :  { %6755 = vrot.lane.b32.xlu1 %v9077_v63, %s7185_s11 }
 0x46a   :  { %6760 = vrot.lane.b32.xlu0 %v9101_v18, %s7185_s11 }
 0x46d   :  { %6765 = vrot.lane.b32.xlu1 %v9145_v6, %s7185_s11 }
 0x46e   :  { %6770 = vrot.lane.b32.xlu0 %v6769_v5, %s7185_s11 }
 0x471   :  { %6775 = vrot.lane.b32.xlu1 %v6774_v17, %s7185_s11 }
 0x472   :  { %6780 = vrot.lane.b32.xlu0 %v6779_v26, %s7185_s11 }
 0x475   :  { %6785 = vrot.lane.b32.xlu1 %v9019_v3, %s7187_s18 }
 0x476   :  { %6790 = vrot.lane.b32.xlu0 %v9039_v9, %s7187_s18 }
 0x479   :  { %6795 = vrot.lane.b32.xlu1 %v9077_v63, %s7187_s18 }
 0x47a   :  { %6800 = vrot.lane.b32.xlu0 %v9101_v18, %s7187_s18 }
 0x47d   :  { %6805 = vrot.lane.b32.xlu1 %v9145_v6, %s7187_s18 }
 0x47e   :  { %6810 = vrot.lane.b32.xlu0 %v6769_v5, %s7187_s18 }
 0x481   :  { %6815 = vrot.lane.b32.xlu1 %v6774_v17, %s7187_s18 }
 0x482   :  { %6820 = vrot.lane.b32.xlu0 %v6779_v26, %s7187_s18 }
 0x48b   :  { %v6586_v21 = vpop.permute.xlu1 %6585 }
 0x48c   :  { %v6588_v43 = vunpack.i.h.bf16 %v6586_v21  ;;  %v6587_v10 = vunpack.i.l.bf16 %v6586_v21  ;;  %v6591_v3 = vpop.permute.xlu0 %6590 }
 0x48d   :  { %v6593_v9 = vunpack.i.h.bf16 %v6591_v3  ;;  %v6592_v27 = vunpack.i.l.bf16 %v6591_v3 }
 0x48f   :  { %v1733_v30 = vsel %vm756_vm2, %v6588_v43, %v6593_v9  ;;  %v1732_v35 = vsel %vm756_vm2, %v6587_v10, %v6592_v27  ;;  %v1740_v63 = vsel %vm756_vm2, %v6592_v27, %v6587_v10  ;;  %v1741_v18 = vsel %vm756_vm2, %v6593_v9, %v6588_v43 }
 0x490   :  { %v5486_v45 = vpack.c.bf16 %v1733_v30, %v1732_v35  ;;  %v5484_v36 = vpack.c.bf16 %v1741_v18, %v1740_v63 }
 0x492   :  { %5485 = vmatprep.subr.bf16.mxu1 %v5484_v36 }
 0x493   :  { %v6596_v8 = vpop.permute.xlu1 %6595  ;;  %5487 = vmatpush1.bf16.msra.mxu1 %v5486_v45 }
 0x494   :  { %v6598_v28 = vunpack.i.h.bf16 %v6596_v8  ;;  %v6597_v6 = vunpack.i.l.bf16 %v6596_v8  ;;  %v6601_v48 = vpop.permute.xlu0 %6600 }
 0x495   :  { %v6603_v5 = vunpack.i.h.bf16 %v6601_v48  ;;  %v6602_v17 = vunpack.i.l.bf16 %v6601_v48 }
 0x497   :  { %v1735_v26 = vsel %vm756_vm2, %v6598_v28, %v6603_v5  ;;  %v1734_v20 = vsel %vm756_vm2, %v6597_v6, %v6602_v17  ;;  %v1742_v21 = vsel %vm756_vm2, %v6602_v17, %v6597_v6  ;;  %v1743_v43 = vsel %vm756_vm2, %v6603_v5, %v6598_v28 }
 0x498   :  { %v5490_v10 = vpack.c.bf16 %v1735_v26, %v1734_v20  ;;  %v5488_v3 = vpack.c.bf16 %v1743_v43, %v1742_v21 }
 0x49a   :  { %5489 = vmatprep.subr.bf16.mxu1 %v5488_v3 }
 0x49b   :  { %v6606_v9 = vpop.permute.xlu1 %6605  ;;  %5491 = vmatpush1.bf16.msra.mxu1 %v5490_v10 }
 0x49c   :  { %v6608_v27 = vunpack.i.h.bf16 %v6606_v9  ;;  %v6607_v30 = vunpack.i.l.bf16 %v6606_v9  ;;  %v6611_v35 = vpop.permute.xlu0 %6610 }
 0x49d   :  { %v6613_v63 = vunpack.i.h.bf16 %v6611_v35  ;;  %v6612_v18 = vunpack.i.l.bf16 %v6611_v35 }
 0x49f   :  { %v1737_v45 = vsel %vm756_vm2, %v6608_v27, %v6613_v63  ;;  %v1736_v36 = vsel %vm756_vm2, %v6607_v30, %v6612_v18  ;;  %v1744_v8 = vsel %vm756_vm2, %v6612_v18, %v6607_v30  ;;  %v1745_v28 = vsel %vm756_vm2, %v6613_v63, %v6608_v27 }
 0x4a0   :  { %v5494_v6 = vpack.c.bf16 %v1737_v45, %v1736_v36  ;;  %v5492_v48 = vpack.c.bf16 %v1745_v28, %v1744_v8 }
 0x4a2   :  { %5493 = vmatprep.subr.bf16.mxu1 %v5492_v48 }
 0x4a3   :  { %v6616_v5 = vpop.permute.xlu1 %6615  ;;  %5495 = vmatpush1.bf16.msra.mxu1 %v5494_v6 }
 0x4a4   :  { %v6618_v17 = vunpack.i.h.bf16 %v6616_v5  ;;  %v6617_v26 = vunpack.i.l.bf16 %v6616_v5  ;;  %v6626_v20 = vpop.permute.xlu0 %6625 }
 0x4a5   :  { %v6628_v21 = vunpack.i.h.bf16 %v6626_v20  ;;  %v6627_v43 = vunpack.i.l.bf16 %v6626_v20 }
 0x4a7   :  { %v1739_v10 = vsel %vm756_vm2, %v6618_v17, %v6628_v21  ;;  %v1738_v3 = vsel %vm756_vm2, %v6617_v26, %v6627_v43  ;;  %v6621_v9 = vpop.permute.xlu1 %6620  ;;  %v1746_v27 = vsel %vm756_vm2, %v6627_v43, %v6617_v26  ;;  %v1747_v30 = vsel %vm756_vm2, %v6628_v21, %v6618_v17 }
 0x4a8   :  { %v5498_v35 = vpack.c.bf16 %v1739_v10, %v1738_v3  ;;  %v6623_v63 = vunpack.i.h.bf16 %v6621_v9  ;;  %v6622_v18 = vunpack.i.l.bf16 %v6621_v9  ;;  %v6631_v45 = vpop.permute.xlu0 %6630  ;;  %v5496_v36 = vpack.c.bf16 %v1747_v30, %v1746_v27 }
 0x4a9   :  { %v6633_v8 = vunpack.i.h.bf16 %v6631_v45  ;;  %v6632_v28 = vunpack.i.l.bf16 %v6631_v45 }
 0x4aa   :  { %5497 = vmatprep.subr.bf16.mxu1 %v5496_v36 }
 0x4ab   :  { %v1798_v6 = vsel %vm1796_vm5, %v6623_v63, %v6633_v8  ;;  %v1797_v48 = vsel %vm1796_vm5, %v6622_v18, %v6632_v28  ;;  %v6636_v5 = vpop.permute.xlu1 %6635  ;;  %5499 = vmatpush1.bf16.msra.mxu1 %v5498_v35  ;;  %v1805_v26 = vsel %vm1796_vm5, %v6632_v28, %v6622_v18  ;;  %v1806_v17 = vsel %vm1796_vm5, %v6633_v8, %v6623_v63 }
 0x4ac   :  { %v5502_v20 = vpack.c.bf16 %v1798_v6, %v1797_v48  ;;  %v6638_v21 = vunpack.i.h.bf16 %v6636_v5  ;;  %v6637_v43 = vunpack.i.l.bf16 %v6636_v5  ;;  %v6641_v10 = vpop.permute.xlu0 %6640  ;;  %v5500_v3 = vpack.c.bf16 %v1806_v17, %v1805_v26 }
 0x4ad   :  { %v6643_v9 = vunpack.i.h.bf16 %v6641_v10  ;;  %v6642_v27 = vunpack.i.l.bf16 %v6641_v10 }
 0x4ae   :  { %5501 = vmatprep.subr.bf16.mxu1 %v5500_v3 }
 0x4af   :  { %v1800_v30 = vsel %vm1796_vm5, %v6638_v21, %v6643_v9  ;;  %v1799_v35 = vsel %vm1796_vm5, %v6637_v43, %v6642_v27  ;;  %v6646_v45 = vpop.permute.xlu1 %6645  ;;  %5503 = vmatpush1.bf16.msra.mxu1 %v5502_v20  ;;  %v1807_v18 = vsel %vm1796_vm5, %v6642_v27, %v6637_v43  ;;  %v1808_v63 = vsel %vm1796_vm5, %v6643_v9, %v6638_v21 }
 0x4b0   :  { %v6648_v36 = vunpack.i.h.bf16 %v6646_v45  ;;  %v6647_v8 = vunpack.i.l.bf16 %v6646_v45  ;;  %v6651_v28 = vpop.permute.xlu0 %6650  ;;  %v5504_v6 = vpack.c.bf16 %v1808_v63, %v1807_v18  ;;  %v5506_v48 = vpack.c.bf16 %v1800_v30, %v1799_v35 }
 0x4b1   :  { %v6653_v5 = vunpack.i.h.bf16 %v6651_v28  ;;  %v6652_v26 = vunpack.i.l.bf16 %v6651_v28 }
 0x4b2   :  { %5505 = vmatprep.subr.bf16.mxu1 %v5504_v6 }
 0x4b3   :  { %v1802_v17 = vsel %vm1796_vm5, %v6648_v36, %v6653_v5  ;;  %v1801_v20 = vsel %vm1796_vm5, %v6647_v8, %v6652_v26  ;;  %v6656_v10 = vpop.permute.xlu1 %6655  ;;  %5507 = vmatpush1.bf16.msra.mxu1 %v5506_v48  ;;  %v1809_v43 = vsel %vm1796_vm5, %v6652_v26, %v6647_v8  ;;  %v1810_v21 = vsel %vm1796_vm5, %v6653_v5, %v6648_v36 }
 0x4b4   :  { %v6658_v3 = vunpack.i.h.bf16 %v6656_v10  ;;  %v6657_v9 = vunpack.i.l.bf16 %v6656_v10  ;;  %v6661_v27 = vpop.permute.xlu0 %6660  ;;  %v5508_v30 = vpack.c.bf16 %v1810_v21, %v1809_v43  ;;  %v5510_v35 = vpack.c.bf16 %v1802_v17, %v1801_v20 }
 0x4b5   :  { %v6663_v45 = vunpack.i.h.bf16 %v6661_v27  ;;  %v6662_v18 = vunpack.i.l.bf16 %v6661_v27 }
 0x4b6   :  { %5509 = vmatprep.subr.bf16.mxu1 %v5508_v30 }
 0x4b7   :  { %v1804_v63 = vsel %vm1796_vm5, %v6658_v3, %v6663_v45  ;;  %v1803_v28 = vsel %vm1796_vm5, %v6657_v9, %v6662_v18  ;;  %v6666_v6 = vpop.permute.xlu1 %6665  ;;  %5511 = vmatpush1.bf16.msra.mxu1 %v5510_v35  ;;  %v1811_v8 = vsel %vm1796_vm5, %v6662_v18, %v6657_v9  ;;  %v1812_v36 = vsel %vm1796_vm5, %v6663_v45, %v6658_v3 }
 0x4b8   :  { %v5514_v48 = vpack.c.bf16 %v1804_v63, %v1803_v28  ;;  %v6671_v5 = vpop.permute.xlu0 %6670  ;;  %v5512_v26 = vpack.c.bf16 %v1812_v36, %v1811_v8  ;;  %v6668_v21 = vunpack.i.h.bf16 %v6666_v6  ;;  %v6667_v3 = vunpack.i.l.bf16 %v6666_v6  ;;  %v2188_v36 = vld [vmem:[%s10308_s3 + $0x30] sm:$0xff] }
 0x4b9   :  { %v6673_v9 = vunpack.i.h.bf16 %v6671_v5  ;;  %v6672_v27 = vunpack.i.l.bf16 %v6671_v5 }
 0x4ba   :  { %5513 = vmatprep.subr.bf16.mxu1 %v5512_v26 }
 0x4bb   :  { %v6676_v17 = vpop.permute.xlu1 %6675  ;;  %5515 = vmatpush1.bf16.msra.mxu1 %v5514_v48  ;;  %v1917_v57 = vsel %vm756_vm2, %v6672_v27, %v6667_v3  ;;  %v1918_v19 = vsel %vm756_vm2, %v6673_v9, %v6668_v21  ;;  %v1910_v29 = vsel %vm756_vm2, %v6668_v21, %v6673_v9  ;;  %v1909_v32 = vsel %vm756_vm2, %v6667_v3, %v6672_v27  ;;  %v2187_v9 = vld [vmem:[%s10308_s3 + $0x28] sm:$0xff] }
 0x4bc   :  { %v6681_v20 = vpop.permute.xlu0 %6680  ;;  %5517 = vmatprep.subr.bf16.mxu1 %v5516_v37  ;;  %v6678_v38 = vunpack.i.h.bf16 %v6676_v17  ;;  %v6677_v37 = vunpack.i.l.bf16 %v6676_v17  ;;  %v5532_v45 = vpack.c.bf16 %v1918_v19, %v1917_v57  ;;  %v5534_v48 = vpack.c.bf16 %v1910_v29, %v1909_v32  ;;  %v2198_v29 = vld [vmem:[%s10308_s3 + $0x80] sm:$0xff] }
 0x4bf   :  { %v6686_v10 = vpop.permute.xlu1 %6685  ;;  %5519 = vmatpush1.bf16.msra.mxu1 %v5518_v53  ;;  %v6683_v53 = vunpack.i.h.bf16 %v6681_v20 }
 0x4c0   :  { %v6691_v43 = vpop.permute.xlu0 %6690  ;;  %5521 = vmatprep.subr.bf16.mxu1 %v5520_v34  ;;  %v6682_v34 = vunpack.i.l.bf16 %v6681_v20  ;;  %v6688_v18 = vunpack.i.h.bf16 %v6686_v10  ;;  %v6687_v63 = vunpack.i.l.bf16 %v6686_v10 }
 0x4c1   :  { %v6693_v28 = vunpack.i.h.bf16 %v6691_v43  ;;  %v6692_v6 = vunpack.i.l.bf16 %v6691_v43  ;;  %v1920_v62 = vsel %vm756_vm2, %v6683_v53, %v6678_v38  ;;  %v1912_v25 = vsel %vm756_vm2, %v6678_v38, %v6683_v53 }
 0x4c2   :  { %v1919_v61 = vsel %vm756_vm2, %v6682_v34, %v6677_v37  ;;  %v1911_v40 = vsel %vm756_vm2, %v6677_v37, %v6682_v34  ;;  %v2192_v34 = vld [vmem:[%s10308_s3 + $0x50] sm:$0xff] }
 0x4c3   :  { %v9370_v30 = vpop.permute.xlu1 %6695  ;;  %5523 = vmatpush1.bf16.msra.mxu1 %v10507_v12  ;;  %v5536_v5 = vpack.c.bf16 %v1920_v62, %v1919_v61  ;;  %v1921_v26 = vsel %vm756_vm2, %v6692_v6, %v6687_v63  ;;  %v1922_v17 = vsel %vm756_vm2, %v6693_v28, %v6688_v18  ;;  %v2193_v12 = vld [vmem:[%s10308_s3 + $0x58] sm:$0xff] }
 0x4c4   :  { %5525 = vmatprep.subr.bf16.mxu1 %v10508_v39  ;;  %v9378_v49 = vpop.permute.xlu0 %6705  ;;  %v6698_v20 = vunpack.i.h.bf16 %v9370_v30  ;;  %v6697_v10 = vunpack.i.l.bf16 %v9370_v30  ;;  %v5538_v39 = vpack.c.bf16 %v1912_v25, %v1911_v40  ;;  %v1914_v30 = vsel %vm756_vm2, %v6688_v18, %v6693_v28 }
 0x4c5   :  { %v6708_v43 = vunpack.i.h.bf16 %v9378_v49  ;;  %v6707_v21 = vunpack.i.l.bf16 %v9378_v49  ;;  %v1913_v49 = vsel %vm756_vm2, %v6687_v63, %v6692_v6  ;;  %v5540_v57 = vpack.c.bf16 %v1922_v17, %v1921_v26 }
 0x4c6   :  { %v5542_v32 = vpack.c.bf16 %v1914_v30, %v1913_v49 }
 0x4c7   :  { %5527 = vmatpush1.bf16.msra.mxu1 %v10509_v55  ;;  %v9394_v35 = vpop.permute.xlu1 %6700  ;;  %v1923_v55 = vsel %vm756_vm2, %v6707_v21, %v6697_v10  ;;  %v1915_v18 = vsel %vm756_vm2, %v6697_v10, %v6707_v21 }
 0x4c8   :  { %5529 = vmatprep.subr.bf16.mxu1 %v10510_v7  ;;  %v9396_v8 = vpop.permute.xlu0 %6710  ;;  %v6703_v19 = vunpack.i.h.bf16 %v9394_v35  ;;  %v6702_v38 = vunpack.i.l.bf16 %v9394_v35  ;;  %v1924_v7 = vsel %vm756_vm2, %v6708_v43, %v6698_v20  ;;  %v1916_v35 = vsel %vm756_vm2, %v6698_v20, %v6708_v43 }
 0x4c9   :  { %v6713_v37 = vunpack.i.h.bf16 %v9396_v8  ;;  %v6712_v53 = vunpack.i.l.bf16 %v9396_v8  ;;  %v5544_v28 = vpack.c.bf16 %v1924_v7, %v1923_v55  ;;  %v5546_v25 = vpack.c.bf16 %v1916_v35, %v1915_v18  ;;  %v2207_v7 = vld [vmem:[%s10308_s3 + $0xc8] sm:$0xff] }
 0x4cb   :  { %5531 = vmatpush1.bf16.msra.mxu1 %v10511_v16  ;;  %v9423_v3 = vpop.permute.xlu1 %6715  ;;  %v1981_v6 = vsel %vm1796_vm5, %v6712_v53, %v6702_v38  ;;  %v1982_v8 = vsel %vm1796_vm5, %v6713_v37, %v6703_v19  ;;  %v1974_v40 = vsel %vm1796_vm5, %v6703_v19, %v6713_v37 }
 0x4cc   :  { %5533 = vmatprep.subr.bf16.mxu1 %v5532_v45  ;;  %v6721_v27 = vpop.permute.xlu0 %6720  ;;  %v6718_v16 = vunpack.i.h.bf16 %v9423_v3  ;;  %v5548_v20 = vpack.c.bf16 %v1982_v8, %v1981_v6  ;;  %v2212_v8 = vld [vmem:[%s10308_s3 + $0xf0] sm:$0xff] }
 0x4cd   :  { %v6723_v61 = vunpack.i.h.bf16 %v6721_v27  ;;  %v6722_v62 = vunpack.i.l.bf16 %v6721_v27 }
 0x4ce   :  { %2615 = vmatmul.mubr.f32.vlgmr.msra.gmra.mrb[16].mxu1 %v2182_v24  ;;  %v6717_v24 = vunpack.i.l.bf16 %v9423_v3  ;;  %v2202_v3 = vld [vmem:[%s10308_s3 + $0xa0] sm:$0xff] }
 0x4cf   :  { %5535 = vmatpush1.bf16.msra.mxu1 %v5534_v48  ;;  %2620 = vmatprep.mubr.f32.mxu1 %v2188_v36  ;;  %v6726_v45 = vpop.permute.xlu1 %6725  ;;  %v2197_v36 = vld [vmem:[%s10308_s3 + $0x78] sm:$0xff]  ;;  %v2203_v48 = vld [vmem:[%s10308_s3 + $0xa8] sm:$0xff]  ;;  %v1984_v27 = vsel %vm1796_vm5, %v6723_v61, %v6718_v16  ;;  %v1976_v49 = vsel %vm1796_vm5, %v6718_v16, %v6723_v61  ;;  %v2218_v61 = vld [vmem:[%s10308_s3 + $0x120] sm:$0xff] }
 0x4d0   :  { %5537 = vmatprep.subr.bf16.mxu1 %v5536_v5  ;;  %v6731_v63 = vpop.permute.xlu0 %6730  ;;  %v1973_v5 = vsel %vm1796_vm5, %v6702_v38, %v6712_v53  ;;  %v6727_v26 = vunpack.i.l.bf16 %v6726_v45  ;;  %v6728_v10 = vunpack.i.h.bf16 %v6726_v45 }
 0x4d1   :  { %v6732_v17 = vunpack.i.l.bf16 %v6731_v63  ;;  %v6733_v43 = vunpack.i.h.bf16 %v6731_v63  ;;  %v5550_v30 = vpack.c.bf16 %v1974_v40, %v1973_v5  ;;  %v2217_v5 = vld [vmem:[%s10308_s3 + $0x118] sm:$0xff] }
 0x4d2   :  { %2621 = vmatmul.mubr.f32.gmra.mrb[18].mxu1 %v2187_v9  ;;  %v1983_v9 = vsel %vm1796_vm5, %v6722_v62, %v6717_v24 }
 0x4d3   :  { %5539 = vmatpush1.bf16.msra.mxu1 %v5538_v39  ;;  %2626 = vmatprep.mubr.f32.mxu1 %v2193_v12  ;;  %v6736_v21 = vpop.permute.xlu1 %6735  ;;  %v2208_v39 = vld [vmem:[%s10308_s3 + $0xd0] sm:$0xff]  ;;  %v5552_v38 = vpack.c.bf16 %v1984_v27, %v1983_v9  ;;  %v1985_v37 = vsel %vm1796_vm5, %v6732_v17, %v6727_v26  ;;  %v1978_v18 = vsel %vm1796_vm5, %v6728_v10, %v6733_v43  ;;  %v2227_v27 = vld [vmem:[%s10308_s3 + $0x168] sm:$0xff] }
 0x4d4   :  { %5541 = vmatprep.subr.bf16.mxu1 %v5540_v57  ;;  %v6741_v12 = vpop.permute.xlu0 %6740  ;;  %v1975_v57 = vsel %vm1796_vm5, %v6717_v24, %v6722_v62  ;;  %v6738_v19 = vunpack.i.h.bf16 %v6736_v21  ;;  %v6737_v53 = vunpack.i.l.bf16 %v6736_v21  ;;  %v1977_v63 = vsel %vm1796_vm5, %v6727_v26, %v6732_v17  ;;  %v2223_v17 = vld [vmem:[%s10308_s3 + $0x148] sm:$0xff]  ;;  %v2228_v21 = vld [vmem:[%s10308_s3 + $0x170] sm:$0xff] }
 0x4d5   :  { %v6742_v55 = vunpack.i.l.bf16 %v6741_v12  ;;  %v5554_v35 = vpack.c.bf16 %v1976_v49, %v1975_v57  ;;  %v5558_v62 = vpack.c.bf16 %v1978_v18, %v1977_v63  ;;  %v2247_v63 = vld [vmem:[%s10308_s3 + $0x208] sm:$0xff] }
 0x4d6   :  { %2627 = vmatmul.mubr.f32.gmra.mrb[20].mxu1 %v2192_v34  ;;  %v6743_v34 = vunpack.i.h.bf16 %v6741_v12 }
 0x4d7   :  { %5543 = vmatpush1.bf16.msra.mxu1 %v5542_v32  ;;  %2632 = vmatprep.mubr.f32.mxu1 %v2198_v29  ;;  %v1986_v29 = vsel %vm1796_vm5, %v6733_v43, %v6728_v10  ;;  %v2213_v32 = vld [vmem:[%s10308_s3 + $0xf8] sm:$0xff]  ;;  %v9493_v45 = vpop.permute.xlu1 %6745  ;;  %v1987_v16 = vsel %vm1796_vm5, %v6742_v55, %v6737_v53  ;;  %v2222_v10 = vld [vmem:[%s10308_s3 + $0x140] sm:$0xff]  ;;  %v10512_v43 = vpack.c.bf16 %v9031_v0, %v8985_v60 }
 0x4d8   :  { %5545 = vmatprep.subr.bf16.mxu1 %v5544_v28  ;;  %v9499_v28 = vpop.permute.xlu0 %6750  ;;  %v5556_v6 = vpack.c.bf16 %v1986_v29, %v1985_v37  ;;  %v1988_v24 = vsel %vm1796_vm5, %v6743_v34, %v6738_v19  ;;  %v2233_v60 = vld [vmem:[%s10308_s3 + $0x198] sm:$0xff]  ;;  %v6747_v0 = vunpack.i.l.bf16 %v9493_v45  ;;  %v6748_v15 = vunpack.i.h.bf16 %v9493_v45 }
 0x4d9   :  { %v6752_v12 = vunpack.i.l.bf16 %v9499_v28  ;;  %v6753_v52 = vunpack.i.h.bf16 %v9499_v28 }
 0x4da   :  { %2633 = vmatmul.mubr.f32.gmra.mrb[22].mxu1 %v2197_v36  ;;  %v1980_v36 = vsel %vm1796_vm5, %v6738_v19, %v6743_v34  ;;  %v2248_v34 = vld [vmem:[%s10308_s3 + $0x210] sm:$0xff] }
 0x4db   :  { %5547 = vmatpush1.bf16.msra.mxu1 %v5546_v25  ;;  %2638 = vmatprep.mubr.f32.mxu1 %v2203_v48  ;;  %v1979_v48 = vsel %vm1796_vm5, %v6737_v53, %v6742_v55  ;;  %v5560_v25 = vpack.c.bf16 %v1988_v24, %v1987_v16  ;;  %v9515_v40 = vpop.permute.xlu1 %6755  ;;  %v2094_v42 = vsel %vm756_vm2, %v6752_v12, %v6747_v0 }
 0x4dc   :  { %5549 = vmatprep.subr.bf16.mxu1 %v5548_v20  ;;  %v9520_v26 = vpop.permute.xlu0 %6760  ;;  %v5562_v20 = vpack.c.bf16 %v1980_v36, %v1979_v48  ;;  %v6757_v59 = vunpack.i.l.bf16 %v9515_v40  ;;  %v2095_v23 = vsel %vm756_vm2, %v6753_v52, %v6748_v15  ;;  %v2087_v1 = vsel %vm756_vm2, %v6748_v15, %v6753_v52 }
 0x4dd   :  { %v5580_v54 = vpack.c.bf16 %v2095_v23, %v2094_v42 }
 0x4de   :  { %2639 = vmatmul.mubr.f32.gmra.mrb[24].mxu1 %v2202_v3 }
 0x4df   :  { %5551 = vmatpush1.bf16.msra.mxu1 %v5550_v30  ;;  %2644 = vmatprep.mubr.f32.mxu1 %v2208_v39  ;;  %v9534_v3 = vpop.permute.xlu1 %6765  ;;  %v6758_v39 = vunpack.i.h.bf16 %v9515_v40  ;;  %v6762_v30 = vunpack.i.l.bf16 %v9520_v26 }
 0x4e0   :  { %5553 = vmatprep.subr.bf16.mxu1 %v5552_v38  ;;  %v9536_v9 = vpop.permute.xlu0 %6770  ;;  %v6767_v49 = vunpack.i.l.bf16 %v9534_v3  ;;  %v6768_v56 = vunpack.i.h.bf16 %v9534_v3  ;;  %v2242_v38 = vld [vmem:[%s10308_s3 + $0x1e0] sm:$0xff] }
 0x4e1   :  { %v6772_v57 = vunpack.i.l.bf16 %v9536_v9  ;;  %v2096_v37 = vsel %vm756_vm2, %v6762_v30, %v6757_v59  ;;  %v2088_v50 = vsel %vm756_vm2, %v6757_v59, %v6762_v30 }
 0x4e2   :  { %2645 = vmatmul.mubr.f32.gmra.mrb[26].mxu1 %v2207_v7 }
 0x4e3   :  { %5555 = vmatpush1.bf16.msra.mxu1 %v5554_v35  ;;  %2650 = vmatprep.mubr.f32.mxu1 %v2213_v32  ;;  %v2098_v29 = vsel %vm756_vm2, %v6772_v57, %v6767_v49 }
 0x4e4   :  { %5557 = vmatprep.subr.bf16.mxu1 %v5556_v6  ;;  %v9562_v11 = vpop.permute.xlu0 %6780 }
 0x4e5   :  { %v6783_v35 = vunpack.i.h.bf16 %v9562_v11  ;;  %v6782_v45 = vunpack.i.l.bf16 %v9562_v11  ;;  %v2185_v11 = vld [vmem:[%s10308_s3 + $0x18] sm:$0xff] }
 0x4e6   :  { %2651 = vmatmul.mubr.f32.gmra.mrb[28].mxu1 %v2212_v8  ;;  %v2253_v8 = vld [vmem:[%s10308_s3 + $0x238] sm:$0xff] }
 0x4e7   :  { %5559 = vmatpush1.bf16.msra.mxu1 %v5558_v62  ;;  %2656 = vmatprep.mubr.f32.mxu1 %v2218_v61  ;;  %v2090_v61 = vsel %vm756_vm2, %v6767_v49, %v6772_v57  ;;  %v2407_v57 = vld [vmem:[%s10309_s4 + $0x8] sm:$0xff] }
 0x4e8   :  { %5561 = vmatprep.subr.bf16.mxu1 %v5560_v25  ;;  %v9598_v19 = vpop.permute.xlu0 %6790 }
 0x4e9   :  { %v6792_v36 = vunpack.i.l.bf16 %v9598_v19  ;;  %v6793_v40 = vunpack.i.h.bf16 %v9598_v19 }
 0x4ea   :  { %2657 = vmatmul.mubr.f32.gmra.mrb[30].mxu1 %v2217_v5  ;;  %v2252_v5 = vld [vmem:[%s10308_s3 + $0x230] sm:$0xff] }
 0x4eb   :  { %5563 = vmatpush1.bf16.msra.mxu1 %v5562_v20  ;;  %2662 = vmatprep.mubr.f32.mxu1 %v2223_v17  ;;  %v2258_v20 = vld [vmem:[%s10308_s3 + $0x260] sm:$0xff] }
 0x4ec   :  { %5565 = vmatprep.subr.bf16.mxu1 %v10512_v43  ;;  %v9632_v6 = vpop.permute.xlu0 %6800 }
 0x4ed   :  { %v6803_v15 = vunpack.i.h.bf16 %v9632_v6  ;;  %v6802_v52 = vunpack.i.l.bf16 %v9632_v6 }
 0x4ee   :  { %2663 = vmatmul.mubr.f32.gmra.mrb[32].mxu1 %v2222_v10 }
 0x4ef   :  { %5567 = vmatpush1.bf16.msra.mxu1 %v5566_v33  ;;  %2668 = vmatprep.mubr.f32.mxu1 %v2228_v21  ;;  %v9554_v33 = vpop.permute.xlu1 %6775 }
 0x4f0   :  { %5569 = vmatprep.subr.bf16.mxu1 %v5568_v58  ;;  %v2238_v58 = vld [vmem:[%s10308_s3 + $0x1c0] sm:$0xff]  ;;  %v6777_v32 = vunpack.i.l.bf16 %v9554_v33 }
 0x4f2   :  { %2669 = vmatmul.mubr.f32.gmra.mrb[34].mxu1 %v2227_v27  ;;  %v2092_v3 = vsel %vm756_vm2, %v6777_v32, %v6782_v45  ;;  %v6811_v27 = vpop.permute.xlu0 %6810 }
 0x4f3   :  { %5571 = vmatpush1.bf16.msra.mxu1 %v5570_v41  ;;  %2674 = vmatprep.mubr.f32.mxu1 %v2233_v60  ;;  %v6763_v41 = vunpack.i.h.bf16 %v9520_v26  ;;  %v9592_v4 = vpop.permute.xlu1 %6785  ;;  %v2100_v26 = vsel %vm756_vm2, %v6782_v45, %v6777_v32  ;;  %v2195_v45 = vld [vmem:[%s10308_s3 + $0x68] sm:$0xff] }
 0x4f4   :  { %5573 = vmatprep.subr.bf16.mxu1 %v5572_v51  ;;  %v2243_v51 = vld [vmem:[%s10308_s3 + $0x1e8] sm:$0xff]  ;;  %v6787_v62 = vunpack.i.l.bf16 %v9592_v4  ;;  %v6788_v25 = vunpack.i.h.bf16 %v9592_v4  ;;  %v2184_v4 = vld [vmem:[%s10308_s3 + $0x10] sm:$0xff] }
 0x4f5   :  { %v2097_v53 = vsel %vm756_vm2, %v6763_v41, %v6758_v39  ;;  %v2089_v46 = vsel %vm756_vm2, %v6758_v39, %v6763_v41  ;;  %v6812_v41 = vunpack.i.l.bf16 %v6811_v27 }
 0x4f6   :  { %2675 = vmatmul.mubr.f32.gmra.mrb[36].mxu1 %v2232_v14  ;;  %v5584_v7 = vpack.c.bf16 %v2097_v53, %v2096_v37  ;;  %v5586_v16 = vpack.c.bf16 %v2089_v46, %v2088_v50  ;;  %v2159_v14 = vsel %vm1796_vm5, %v6793_v40, %v6788_v25  ;;  %v2151_v39 = vsel %vm1796_vm5, %v6788_v25, %v6793_v40  ;;  %v6821_v19 = vpop.permute.xlu0 %6820  ;;  %v2408_v46 = vld [vmem:[%s10309_s4 + $0x10] sm:$0xff] }
 0x4f7   :  { %5575 = vmatpush1.bf16.msra.mxu1 %v5574_v13  ;;  %2680 = vmatprep.mubr.f32.mxu1 %v2238_v58  ;;  %v2086_v13 = vsel %vm756_vm2, %v6747_v0, %v6752_v12  ;;  %v9625_v18 = vpop.permute.xlu1 %6795  ;;  %v2158_v0 = vsel %vm1796_vm5, %v6792_v36, %v6787_v62  ;;  %v2150_v42 = vsel %vm1796_vm5, %v6787_v62, %v6792_v36  ;;  %v2412_v62 = vld [vmem:[%s10309_s4 + $0x30] sm:$0xff] }
 0x4f8   :  { %5577 = vmatprep.subr.bf16.mxu1 %v5576_v44  ;;  %v6773_v44 = vunpack.i.h.bf16 %v9536_v9  ;;  %v5582_v55 = vpack.c.bf16 %v2087_v1, %v2086_v13  ;;  %v6798_v9 = vunpack.i.h.bf16 %v9625_v18  ;;  %v6797_v12 = vunpack.i.l.bf16 %v9625_v18  ;;  %v2200_v36 = vld [vmem:[%s10308_s3 + $0x90] sm:$0xff] }
 0x4f9   :  { %v5596_v30 = vpack.c.bf16 %v2159_v14, %v2158_v0  ;;  %v2209_v0 = vld [vmem:[%s10308_s3 + $0xd8] sm:$0xff]  ;;  %v2420_v14 = vld [vmem:[%s10309_s4 + $0x70] sm:$0xff] }
 0x4fa   :  { %2681 = vmatmul.mubr.f32.gmra.mrb[38].mxu1 %v2237_v31  ;;  %v2099_v28 = vsel %vm756_vm2, %v6773_v44, %v6768_v56  ;;  %v2091_v24 = vsel %vm756_vm2, %v6768_v56, %v6773_v44  ;;  %v2406_v31 = vld [vmem:[%s10309_s4] sm:$0xff]  ;;  %v2160_v13 = vsel %vm1796_vm5, %v6802_v52, %v6797_v12  ;;  %v2161_v49 = vsel %vm1796_vm5, %v6803_v15, %v6798_v9 }
 0x4fb   :  { %5579 = vmatpush1.bf16.msra.mxu1 %v5578_v2  ;;  %2686 = vmatprep.mubr.f32.mxu1 %v2243_v51  ;;  %v6778_v2 = vunpack.i.h.bf16 %v9554_v33  ;;  %v5588_v48 = vpack.c.bf16 %v2099_v28, %v2098_v29  ;;  %v5590_v10 = vpack.c.bf16 %v2091_v24, %v2090_v61  ;;  %v9657_v21 = vpop.permute.xlu1 %6805  ;;  %v2257_v33 = vld [vmem:[%s10308_s3 + $0x258] sm:$0xff]  ;;  %v6813_v51 = vunpack.i.h.bf16 %v6811_v27  ;;  %v2210_v27 = vld [vmem:[%s10308_s3 + $0xe0] sm:$0xff] }
 0x4fc   :  { %5581 = vmatprep.subr.bf16.mxu1 %v5580_v54  ;;  %v6807_v59 = vunpack.i.l.bf16 %v9657_v21  ;;  %v6808_v23 = vunpack.i.h.bf16 %v9657_v21  ;;  %v2190_v54 = vld [vmem:[%s10308_s3 + $0x40] sm:$0xff]  ;;  %v7188_v56 = vmov 0   ;;  %v5598_v44 = vpack.c.bf16 %v2151_v39, %v2150_v42  ;;  %v2189_v29 = vld [vmem:[%s10308_s3 + $0x38] sm:$0xff]  ;;  %v2219_v39 = vld [vmem:[%s10308_s3 + $0x128] sm:$0xff] }
 0x4fd   :  { %v2101_v17 = vsel %vm756_vm2, %v6783_v35, %v6778_v2  ;;  %v2093_v43 = vsel %vm756_vm2, %v6778_v2, %v6783_v35  ;;  %6824 = vset.pattern.permute.xlu1 %v7188_v56  ;;  %6825 = vset.pattern.permute.xlu0 %v7188_v56  ;;  %v2152_v37 = vsel %vm1796_vm5, %v6797_v12, %v6802_v52  ;;  %v6823_v2 = vunpack.i.h.bf16 %v6821_v19  ;;  %v2410_v35 = vld [vmem:[%s10309_s4 + $0x20] sm:$0xff]  ;;  %v2413_v21 = vld [vmem:[%s10309_s4 + $0x38] sm:$0xff] }
 0x4fe   :  { %2687 = vmatmul.mubr.f32.gmra.mrb[40].mxu1 %v2242_v38  ;;  %v5592_v60 = vpack.c.bf16 %v2101_v17, %v2100_v26  ;;  %v5594_v58 = vpack.c.bf16 %v2093_v43, %v2092_v3  ;;  %v2153_v38 = vsel %vm1796_vm5, %v6798_v9, %v6803_v15  ;;  %2424 = vperm.xlu1 %6824, %v2406_v31   ;;  %v2411_v26 = vld [vmem:[%s10309_s4 + $0x28] sm:$0xff]  ;;  %v2204_v3 = vld [vmem:[%s10308_s3 + $0xb0] sm:$0xff]  ;;  %v2418_v12 = vld [vmem:[%s10309_s4 + $0x60] sm:$0xff] }
 0x4ff   :  { %5583 = vmatpush1.bf16.msra.mxu1 %v5582_v55  ;;  %2692 = vmatprep.mubr.f32.mxu1 %v2248_v34  ;;  %v6816_v1 = vpop.permute.xlu1 %6815  ;;  %v5600_v34 = vpack.c.bf16 %v2161_v49, %v2160_v13  ;;  %v2162_v55 = vsel %vm1796_vm5, %v6812_v41, %v6807_v59  ;;  %v2163_v32 = vsel %vm1796_vm5, %v6813_v51, %v6808_v23  ;;  %v2199_v17 = vld [vmem:[%s10308_s3 + $0x88] sm:$0xff]  ;;  %v2416_v9 = vld [vmem:[%s10309_s4 + $0x50] sm:$0xff]  ;;  %v2417_v52 = vld [vmem:[%s10309_s4 + $0x58] sm:$0xff] }
 0x500   :  { %5585 = vmatprep.subr.bf16.mxu1 %v5584_v7  ;;  %v6818_v53 = vunpack.i.h.bf16 %v6816_v1  ;;  %2429 = vperm.xlu0 %6825, %v2407_v57   ;;  %v6817_v50 = vunpack.i.l.bf16 %v6816_v1  ;;  %v6822_v7 = vunpack.i.l.bf16 %v6821_v19  ;;  %v5602_v18 = vpack.c.bf16 %v2153_v38, %v2152_v37  ;;  %v2215_v15 = vld [vmem:[%s10308_s3 + $0x108] sm:$0xff]  ;;  %v2225_v42 = vld [vmem:[%s10308_s3 + $0x158] sm:$0xff]  ;;  %v2240_v1 = vld [vmem:[%s10308_s3 + $0x1d0] sm:$0xff] }
 0x501   :  { %v2154_v28 = vsel %vm1796_vm5, %v6807_v59, %v6812_v41  ;;  %v5604_v6 = vpack.c.bf16 %v2163_v32, %v2162_v55  ;;  %v2421_v59 = vld [vmem:[%s10309_s4 + $0x78] sm:$0xff]  ;;  %v2224_v41 = vld [vmem:[%s10308_s3 + $0x150] sm:$0xff]  ;;  %v2250_v57 = vld [vmem:[%s10308_s3 + $0x220] sm:$0xff]  ;;  %v10513_v37 = vmov 0.0  }
 0x502   :  { %2693 = vmatmul.mubr.f32.gmra.mrb[42].mxu1 %v2247_v63  ;;  %2434 = vperm.xlu1 %6824, %v2408_v46   ;;  %v2155_v63 = vsel %vm1796_vm5, %v6808_v23, %v6813_v51  ;;  %v2164_v24 = vsel %vm1796_vm5, %v6822_v7, %v6817_v50  ;;  %v2165_v61 = vsel %vm1796_vm5, %v6823_v2, %v6818_v53  ;;  %v2229_v31 = vld [vmem:[%s10308_s3 + $0x178] sm:$0xff]  ;;  %v2235_v23 = vld [vmem:[%s10308_s3 + $0x1a8] sm:$0xff]  ;;  %v2234_v51 = vld [vmem:[%s10308_s3 + $0x1a0] sm:$0xff] }
 0x503   :  { %5587 = vmatpush1.bf16.msra.mxu1 %v5586_v16  ;;  %2698 = vmatprep.mubr.f32.mxu1 %v2253_v8  ;;  %v2409_v8 = vld [vmem:[%s10309_s4 + $0x18] sm:$0xff]  ;;  %v2194_v16 = vld [vmem:[%s10308_s3 + $0x60] sm:$0xff]  ;;  %v2157_v25 = vsel %vm1796_vm5, %v6818_v53, %v6823_v2  ;;  %v2156_v40 = vsel %vm1796_vm5, %v6817_v50, %v6822_v7  ;;  %v2244_v49 = vld [vmem:[%s10308_s3 + $0x1f0] sm:$0xff] }
 0x504   :  { %5589 = vmatprep.subr.bf16.mxu1 %v5588_v48  ;;  %2444 = vperm.xlu0 %6825, %v2410_v35   ;;  %v5606_v48 = vpack.c.bf16 %v2155_v63, %v2154_v28  ;;  %v5610_v43 = vpack.c.bf16 %v2157_v25, %v2156_v40  ;;  %v2245_v13 = vld [vmem:[%s10308_s3 + $0x1f8] sm:$0xff]  ;;  %v2254_v56 = vld [vmem:[%s10308_s3 + $0x240] sm:$0xff]  ;;  %v2259_v38 = vld [vmem:[%s10308_s3 + $0x268] sm:$0xff] }
 0x505   :  { %v2249_v19 = vld [vmem:[%s10308_s3 + $0x218] sm:$0xff]  ;;  %v2186_v53 = vld [vmem:[%s10308_s3 + $0x20] sm:$0xff]  ;;  %v2196_v55 = vld [vmem:[%s10308_s3 + $0x70] sm:$0xff] }
 0x506   :  { %2699 = vmatmul.mubr.f32.gmra.mrb[44].mxu1 %v2252_v5  ;;  %2439 = vperm.xlu1 %6824, %v2409_v8   ;;  %v5608_v5 = vpack.c.bf16 %v2165_v61, %v2164_v24  ;;  %v2201_v46 = vld [vmem:[%s10308_s3 + $0x98] sm:$0xff]  ;;  %v2206_v50 = vld [vmem:[%s10308_s3 + $0xc0] sm:$0xff]  ;;  %v2211_v2 = vld [vmem:[%s10308_s3 + $0xe8] sm:$0xff] }
 0x507   :  { %5591 = vmatpush1.bf16.msra.mxu1 %v5590_v10  ;;  %2704 = vmatprep.mubr.f32.mxu1 %v2258_v20  ;;  %v2414_v20 = vld [vmem:[%s10309_s4 + $0x40] sm:$0xff]  ;;  %v2205_v10 = vld [vmem:[%s10308_s3 + $0xb8] sm:$0xff]  ;;  %v2216_v7 = vld [vmem:[%s10308_s3 + $0x110] sm:$0xff] }
 0x508   :  { %5593 = vmatprep.subr.bf16.mxu1 %v5592_v60  ;;  %2454 = vperm.xlu0 %6825, %v2412_v62   ;;  %v2415_v60 = vld [vmem:[%s10309_s4 + $0x48] sm:$0xff]  ;;  %v2226_v32 = vld [vmem:[%s10308_s3 + $0x160] sm:$0xff]  ;;  %v2261_v8 = vld [vmem:[%s10308_s3 + $0x278] sm:$0xff] }
 0x509   :  { %v2231_v35 = vld [vmem:[%s10308_s3 + $0x188] sm:$0xff]  ;;  %v2246_v63 = vld [vmem:[%s10308_s3 + $0x200] sm:$0xff] }
 0x50a   :  { %2705 = vmatmul.mubr.f32.gmra.mrb[46].mxu1 %v2257_v33  ;;  %2449 = vperm.xlu1 %6824, %v2411_v26   ;;  %v2214_v33 = vld [vmem:[%s10308_s3 + $0x100] sm:$0xff]  ;;  %v2251_v28 = vld [vmem:[%s10308_s3 + $0x228] sm:$0xff] }
 0x50b   :  { %5595 = vmatpush1.bf16.msra.mxu1 %v5594_v58  ;;  %2775 = vmatprep.mubr.f32.mxu1 %v2185_v11  ;;  %v2220_v11 = vld [vmem:[%s10308_s3 + $0x130] sm:$0xff]  ;;  %v2419_v58 = vld [vmem:[%s10309_s4 + $0x68] sm:$0xff] }
 0x50c   :  { %5597 = vmatprep.subr.bf16.mxu1 %v5596_v30  ;;  %2464 = vperm.xlu0 %6825, %v2414_v20   ;;  %v2230_v30 = vld [vmem:[%s10308_s3 + $0x180] sm:$0xff] }
 0x50e   :  { %2776 = vmatmul.mubr.f32.vlgmr.msra.gmra.mrb[16].mxu1 %v2184_v4  ;;  %2459 = vperm.xlu1 %6824, %v2413_v21   ;;  %v2239_v4 = vld [vmem:[%s10308_s3 + $0x1c8] sm:$0xff] }
 0x50f   :  { %5599 = vmatpush1.bf16.msra.mxu1 %v5598_v44  ;;  %2781 = vmatprep.mubr.f32.mxu1 %v2190_v54  ;;  %v2255_v54 = vld [vmem:[%s10308_s3 + $0x248] sm:$0xff]  ;;  %v2260_v44 = vld [vmem:[%s10308_s3 + $0x270] sm:$0xff] }
 0x510   :  { %5601 = vmatprep.subr.bf16.mxu1 %v5600_v34  ;;  %2474 = vperm.xlu0 %6825, %v2416_v9   ;;  %v2191_v34 = vld [vmem:[%s10308_s3 + $0x48] sm:$0xff] }
 0x512   :  { %2782 = vmatmul.mubr.f32.gmra.mrb[18].mxu1 %v2189_v29  ;;  %2469 = vperm.xlu1 %6824, %v2415_v60   ;;  %v2221_v29 = vld [vmem:[%s10308_s3 + $0x138] sm:$0xff] }
 0x513   :  { %5603 = vmatpush1.bf16.msra.mxu1 %v5602_v18  ;;  %2787 = vmatprep.mubr.f32.mxu1 %v2195_v45  ;;  %v2236_v45 = vld [vmem:[%s10308_s3 + $0x1b0] sm:$0xff]  ;;  %v2241_v18 = vld [vmem:[%s10308_s3 + $0x1d8] sm:$0xff] }
 0x514   :  { %5605 = vmatprep.subr.bf16.mxu1 %v5604_v6  ;;  %2484 = vperm.xlu0 %6825, %v2418_v12   ;;  %v2256_v6 = vld [vmem:[%s10308_s3 + $0x250] sm:$0xff] }
 0x516   :  { %2788 = vmatmul.mubr.f32.gmra.mrb[20].mxu1 %v2194_v16  ;;  %2479 = vperm.xlu1 %6824, %v2417_v52  }
 0x517   :  { %5607 = vmatpush1.bf16.msra.mxu1 %v5606_v48  ;;  %2793 = vmatprep.mubr.f32.mxu1 %v2200_v36 }
 0x518   :  { %5609 = vmatprep.subr.bf16.mxu1 %v5608_v5  ;;  %2494 = vperm.xlu0 %6825, %v2420_v14  }
 0x51a   :  { %2794 = vmatmul.mubr.f32.gmra.mrb[22].mxu1 %v2199_v17  ;;  %2489 = vperm.xlu1 %6824, %v2419_v58  }
 0x51b   :  { %5611 = vmatpush1.bf16.msra.mxu1 %v5610_v43  ;;  %2799 = vmatprep.mubr.f32.mxu1 %v2205_v10 }
 0x51e   :  { %2800 = vmatmul.mubr.f32.gmra.mrb[24].mxu1 %v2204_v3  ;;  %2499 = vperm.xlu1 %6824, %v2421_v59  }
 0x51f   :  { %2805 = vmatprep.mubr.f32.mxu1 %v2210_v27 }
 0x522   :  { %2806 = vmatmul.mubr.f32.gmra.mrb[26].mxu1 %v2209_v0 }
 0x523   :  { %2811 = vmatprep.mubr.f32.mxu1 %v2215_v15 }
 0x526   :  { %2812 = vmatmul.mubr.f32.gmra.mrb[28].mxu1 %v2214_v33 }
 0x527   :  { %2817 = vmatprep.mubr.f32.mxu1 %v2220_v11 }
 0x52a   :  { %2818 = vmatmul.mubr.f32.gmra.mrb[30].mxu1 %v2219_v39 }
 0x52b   :  { %2823 = vmatprep.mubr.f32.mxu1 %v2225_v42 }
 0x52e   :  { %2824 = vmatmul.mubr.f32.gmra.mrb[32].mxu1 %v2224_v41 }
 0x52f   :  { %2829 = vmatprep.mubr.f32.mxu1 %v2230_v30 }
 0x532   :  { %2830 = vmatmul.mubr.f32.gmra.mrb[34].mxu1 %v2229_v31 }
 0x533   :  { %2835 = vmatprep.mubr.f32.mxu1 %v2235_v23 }
 0x536   :  { %2836 = vmatmul.mubr.f32.gmra.mrb[36].mxu1 %v2234_v51 }
 0x537   :  { %2841 = vmatprep.mubr.f32.mxu1 %v2240_v1 }
 0x53a   :  { %2842 = vmatmul.mubr.f32.gmra.mrb[38].mxu1 %v2239_v4 }
 0x53b   :  { %2847 = vmatprep.mubr.f32.mxu1 %v2245_v13 }
 0x53e   :  { %2848 = vmatmul.mubr.f32.gmra.mrb[40].mxu1 %v2244_v49 }
 0x53f   :  { %2853 = vmatprep.mubr.f32.mxu1 %v2250_v57 }
 0x542   :  { %2854 = vmatmul.mubr.f32.gmra.mrb[42].mxu1 %v2249_v19 }
 0x543   :  { %2859 = vmatprep.mubr.f32.mxu1 %v2255_v54 }
 0x546   :  { %2860 = vmatmul.mubr.f32.gmra.mrb[44].mxu1 %v2254_v56 }
 0x547   :  { %2865 = vmatprep.mubr.f32.mxu1 %v2260_v44 }
 0x54a   :  { %2866 = vmatmul.mubr.f32.gmra.mrb[46].mxu1 %v2259_v38 }
 0x54b   :  { %2936 = vmatprep.mubr.f32.mxu1 %v10513_v37 }
 0x54e   :  { %5080 = vmatmul.mubr.msk.f32.vlgmr.msra.gmra.mrb[16].mxu1 %vm205_vm0, %v2186_v53 }
 0x54f   :  { %2942 = vmatprep.mubr.f32.mxu1 %v10513_v37 }
 0x552   :  { %5081 = vmatmul.mubr.msk.f32.gmra.mrb[18].mxu1 %vm205_vm0, %v2191_v34 }
 0x553   :  { %2948 = vmatprep.mubr.f32.mxu1 %v10513_v37 }
 0x556   :  { %5082 = vmatmul.mubr.msk.f32.gmra.mrb[20].mxu1 %vm205_vm0, %v2196_v55 }
 0x557   :  { %2954 = vmatprep.mubr.f32.mxu1 %v10513_v37 }
 0x55a   :  { %5083 = vmatmul.mubr.msk.f32.gmra.mrb[22].mxu1 %vm205_vm0, %v2201_v46 }
 0x55b   :  { %2960 = vmatprep.mubr.f32.mxu1 %v10513_v37 }
 0x55e   :  { %5084 = vmatmul.mubr.msk.f32.gmra.mrb[24].mxu1 %vm205_vm0, %v2206_v50 }
 0x55f   :  { %2966 = vmatprep.mubr.f32.mxu1 %v10513_v37 }
 0x562   :  { %5085 = vmatmul.mubr.msk.f32.gmra.mrb[26].mxu1 %vm205_vm0, %v2211_v2 }
 0x563   :  { %2972 = vmatprep.mubr.f32.mxu1 %v10513_v37 }
 0x566   :  { %5086 = vmatmul.mubr.msk.f32.gmra.mrb[28].mxu1 %vm205_vm0, %v2216_v7 }
 0x567   :  { %2978 = vmatprep.mubr.f32.mxu1 %v10513_v37 }
 0x56a   :  { %5087 = vmatmul.mubr.msk.f32.gmra.mrb[30].mxu1 %vm205_vm0, %v2221_v29 }
 0x56b   :  { %2984 = vmatprep.mubr.f32.mxu1 %v10513_v37 }
 0x56e   :  { %5088 = vmatmul.mubr.msk.f32.gmra.mrb[32].mxu1 %vm205_vm0, %v2226_v32 }
 0x56f   :  { %2990 = vmatprep.mubr.f32.mxu1 %v10513_v37 }
 0x572   :  { %5089 = vmatmul.mubr.msk.f32.gmra.mrb[34].mxu1 %vm205_vm0, %v2231_v35 }
 0x573   :  { %2996 = vmatprep.mubr.f32.mxu1 %v10513_v37 }
 0x576   :  { %5090 = vmatmul.mubr.msk.f32.gmra.mrb[36].mxu1 %vm205_vm0, %v2236_v45 }
 0x577   :  { %3002 = vmatprep.mubr.f32.mxu1 %v10513_v37 }
 0x57a   :  { %5091 = vmatmul.mubr.msk.f32.gmra.mrb[38].mxu1 %vm205_vm0, %v2241_v18 }
 0x57b   :  { %3008 = vmatprep.mubr.f32.mxu1 %v10513_v37 }
 0x57d   :  { %v2425_v61 = vpop.permute.xlu1 %2424 }
 0x57e   :  { %5092 = vmatmul.mubr.msk.f32.gmra.mrb[40].mxu1 %vm205_vm0, %v2246_v63 }
 0x57f   :  { %3014 = vmatprep.mubr.f32.mxu1 %v10513_v37  ;;  %v2430_v62 = vpop.permute.xlu0 %2429 }
 0x581   :  { %v2435_v26 = vpop.permute.xlu1 %2434 }
 0x582   :  { %5093 = vmatmul.mubr.msk.f32.gmra.mrb[42].mxu1 %vm205_vm0, %v2251_v28 }
 0x583   :  { %3020 = vmatprep.mubr.f32.mxu1 %v10513_v37  ;;  %v2445_v15 = vpop.permute.xlu0 %2444 }
 0x585   :  { %v2440_v12 = vpop.permute.xlu1 %2439 }
 0x586   :  { %5094 = vmatmul.mubr.msk.f32.gmra.mrb[44].mxu1 %vm205_vm0, %v2256_v6 }
 0x587   :  { %3026 = vmatprep.mubr.f32.mxu1 %v10513_v37  ;;  %v2455_v23 = vpop.permute.xlu0 %2454 }
 0x589   :  { %v2450_v31 = vpop.permute.xlu1 %2449 }
 0x58a   :  { %5095 = vmatmul.mubr.msk.f32.gmra.mrb[46].mxu1 %vm205_vm0, %v2261_v8 }
 0x58b   :  { %v2465_v53 = vpop.permute.xlu0 %2464 }
 0x58d   :  { %v2460_v38 = vpop.permute.xlu1 %2459 }
 0x58f   :  { %v2475_v63 = vpop.permute.xlu0 %2474 }
 0x591   :  { %v2470_v18 = vpop.permute.xlu1 %2469 }
 0x621   :  { %v2938_v16 = vpop.f32.mrb[16].mxu1 }
 0x622   :  { %v2940_v24 = vpop.f32.mrb[17].mxu1  ;;  %v9926_v48 = vadd.f32 %v2938_v16, %v2425_v61 }
 0x623   :  { %v9932_v20 = vadd.f32 %v2940_v24, %v2425_v61 }
 0x625   :  { %v2944_v36 = vpop.f32.mrb[18].mxu1 }
 0x626   :  { %v9928_v25 = vadd.f32 %v2944_v36, %v2430_v62  ;;  %v2946_v40 = vpop.f32.mrb[19].mxu1 }
 0x627   :  { %v9937_v21 = vadd.f32 %v2946_v40, %v2430_v62 }
 0x628   :  { %v6826_v5 = vpack.i.bf16 %v9928_v25, %v9926_v48 }
 0x629   :  { %v2950_v17 = vpop.f32.mrb[20].mxu1 }
 0x62a   :  { %v9934_v10 = vadd.f32 %v2950_v17, %v2435_v26  ;;  %v2952_v43 = vpop.f32.mrb[21].mxu1  ;;  %6827 = vrot.lane.b32.xlu0 %v6826_v5, %s7185_s11  ;;  %v2485_v17 = vpop.permute.xlu0 %2484 }
 0x62b   :  { %v9939_v3 = vadd.f32 %v2952_v43, %v2435_v26  ;;  %v2480_v26 = vpop.permute.xlu1 %2479 }
 0x62c   :  { %v6831_v9 = vpack.i.bf16 %v9932_v20, %v9934_v10 }
 0x62d   :  { %v6836_v27 = vpack.i.bf16 %v9939_v3, %v9937_v21  ;;  %v2956_v60 = vpop.f32.mrb[22].mxu1 }
 0x62e   :  { %v2958_v0 = vpop.f32.mrb[23].mxu1  ;;  %6832 = vrot.lane.b32.xlu1 %v6831_v9, %s7185_s11  ;;  %v9947_v33 = vadd.f32 %v2956_v60, %v2440_v12 }
 0x62f   :  { %6837 = vrot.lane.b32.xlu0 %v6836_v27, %s7185_s11  ;;  %v9951_v58 = vadd.f32 %v2958_v0, %v2440_v12 }
 0x631   :  { %v2962_v52 = vpop.f32.mrb[24].mxu1 }
 0x632   :  { %v9949_v14 = vadd.f32 %v2962_v52, %v2445_v15  ;;  %v2964_v11 = vpop.f32.mrb[25].mxu1 }
 0x633   :  { %v9953_v39 = vadd.f32 %v2964_v11, %v2445_v15 }
 0x634   :  { %v6841_v42 = vpack.i.bf16 %v9949_v14, %v9947_v33 }
 0x635   :  { %v6846_v59 = vpack.i.bf16 %v9953_v39, %v9951_v58  ;;  %v2968_v41 = vpop.f32.mrb[26].mxu1 }
 0x636   :  { %v2970_v30 = vpop.f32.mrb[27].mxu1  ;;  %6842 = vrot.lane.b32.xlu1 %v6841_v42, %s7185_s11  ;;  %v9961_v1 = vadd.f32 %v2968_v41, %v2450_v31  ;;  %v2495_v41 = vpop.permute.xlu0 %2494 }
 0x637   :  { %6847 = vrot.lane.b32.xlu0 %v6846_v59, %s7185_s11  ;;  %v9965_v49 = vadd.f32 %v2970_v30, %v2450_v31  ;;  %v2490_v59 = vpop.permute.xlu1 %2489 }
 0x639   :  { %v2974_v51 = vpop.f32.mrb[28].mxu1 }
 0x63a   :  { %v9963_v4 = vadd.f32 %v2974_v51, %v2455_v23  ;;  %v2976_v13 = vpop.f32.mrb[29].mxu1 }
 0x63b   :  { %v9967_v57 = vadd.f32 %v2976_v13, %v2455_v23 }
 0x63c   :  { %v6851_v19 = vpack.i.bf16 %v9963_v4, %v9961_v1 }
 0x63d   :  { %v6856_v54 = vpack.i.bf16 %v9967_v57, %v9965_v49  ;;  %v2980_v56 = vpop.f32.mrb[30].mxu1 }
 0x63e   :  { %v2982_v44 = vpop.f32.mrb[31].mxu1  ;;  %6852 = vrot.lane.b32.xlu1 %v6851_v19, %s7185_s11  ;;  %v9975_v55 = vadd.f32 %v2980_v56, %v2460_v38  ;;  %v2500_v56 = vpop.permute.xlu1 %2499 }
 0x63f   :  { %6857 = vrot.lane.b32.xlu0 %v6856_v54, %s7185_s11  ;;  %v9979_v2 = vadd.f32 %v2982_v44, %v2460_v38 }
 0x641   :  { %v2986_v34 = vpop.f32.mrb[32].mxu1 }
 0x642   :  { %v9977_v46 = vadd.f32 %v2986_v34, %v2465_v53  ;;  %v2988_v50 = vpop.f32.mrb[33].mxu1 }
 0x643   :  { %v9981_v7 = vadd.f32 %v2988_v50, %v2465_v53 }
 0x644   :  { %v6861_v29 = vpack.i.bf16 %v9977_v46, %v9975_v55 }
 0x645   :  { %v6866_v32 = vpack.i.bf16 %v9981_v7, %v9979_v2  ;;  %v2992_v35 = vpop.f32.mrb[34].mxu1 }
 0x646   :  { %v2994_v45 = vpop.f32.mrb[35].mxu1  ;;  %6862 = vrot.lane.b32.xlu1 %v6861_v29, %s7185_s11  ;;  %v9989_v6 = vadd.f32 %v2992_v35, %v2470_v18 }
 0x647   :  { %6867 = vrot.lane.b32.xlu0 %v6866_v32, %s7185_s11  ;;  %v9993_v24 = vadd.f32 %v2994_v45, %v2470_v18 }
 0x649   :  { %v2998_v28 = vpop.f32.mrb[36].mxu1 }
 0x64a   :  { %v9991_v8 = vadd.f32 %v2998_v28, %v2475_v63  ;;  %v3000_v16 = vpop.f32.mrb[37].mxu1 }
 0x64b   :  { %v9995_v61 = vadd.f32 %v3000_v16, %v2475_v63 }
 0x64c   :  { %v6871_v62 = vpack.i.bf16 %v9991_v8, %v9989_v6 }
 0x64d   :  { %v6876_v36 = vpack.i.bf16 %v9995_v61, %v9993_v24  ;;  %v3004_v40 = vpop.f32.mrb[38].mxu1 }
 0x64e   :  { %v3006_v5 = vpop.f32.mrb[39].mxu1  ;;  %6872 = vrot.lane.b32.xlu1 %v6871_v62, %s7185_s11  ;;  %v10003_v9 = vadd.f32 %v3004_v40, %v2480_v26 }
 0x64f   :  { %6877 = vrot.lane.b32.xlu0 %v6876_v36, %s7185_s11  ;;  %v10007_v0 = vadd.f32 %v3006_v5, %v2480_v26 }
 0x651   :  { %v3010_v43 = vpop.f32.mrb[40].mxu1 }
 0x652   :  { %v10005_v27 = vadd.f32 %v3010_v43, %v2485_v17  ;;  %v3012_v60 = vpop.f32.mrb[41].mxu1 }
 0x653   :  { %v10009_v12 = vadd.f32 %v3012_v60, %v2485_v17 }
 0x654   :  { %v6881_v15 = vpack.i.bf16 %v10005_v27, %v10003_v9 }
 0x655   :  { %v6886_v52 = vpack.i.bf16 %v10009_v12, %v10007_v0  ;;  %v3016_v11 = vpop.f32.mrb[42].mxu1 }
 0x656   :  { %v3018_v42 = vpop.f32.mrb[43].mxu1  ;;  %6882 = vrot.lane.b32.xlu1 %v6881_v15, %s7185_s11  ;;  %v10017_v31 = vadd.f32 %v3016_v11, %v2490_v59 }
 0x657   :  { %6887 = vrot.lane.b32.xlu0 %v6886_v52, %s7185_s11  ;;  %v10021_v13 = vadd.f32 %v3018_v42, %v2490_v59 }
 0x659   :  { %v3022_v30 = vpop.f32.mrb[44].mxu1 }
 0x65a   :  { %v10019_v23 = vadd.f32 %v3022_v30, %v2495_v41  ;;  %v3024_v51 = vpop.f32.mrb[45].mxu1 }
 0x65b   :  { %v10023_v19 = vadd.f32 %v3024_v51, %v2495_v41 }
 0x65c   :  { %v6891_v54 = vpack.i.bf16 %v10019_v23, %v10017_v31 }
 0x65d   :  { %v6896_v44 = vpack.i.bf16 %v10023_v19, %v10021_v13  ;;  %v3028_v38 = vpop.f32.mrb[46].mxu1 }
 0x65e   :  { %v10029_v53 = vadd.f32 %v3028_v38, %v2500_v56  ;;  %v3030_v34 = vpop.f32.mrb[47].mxu1  ;;  %6892 = vrot.lane.b32.xlu1 %v6891_v54, %s7185_s11 }
 0x65f   :  { %v10032_v50 = vadd.f32 %v3030_v34, %v2500_v56  ;;  %6897 = vrot.lane.b32.xlu0 %v6896_v44, %s7185_s11 }
 0x661   :  { %v6901_v29 = vpack.i.bf16 %v10032_v50, %v10029_v53 }
 0x663   :  { %6902 = vrot.lane.b32.xlu1 %v6901_v29, %s7185_s11  ;;  %s10514_s11 = sld [smem:[#allocation65_spill]] }
 0x69c   :  { %v6828_v32 = vpop.permute.xlu0 %6827 }
 0x69d   :  { %v6829_v45 = vunpack.i.l.bf16 %v6828_v32  ;;  %v6830_v36 = vunpack.i.h.bf16 %v6828_v32 }
 0x6a0   :  { %v6833_v35 = vpop.permute.xlu1 %6832 }
 0x6a1   :  { %v6835_v18 = vunpack.i.h.bf16 %v6833_v35  ;;  %v6834_v63 = vunpack.i.l.bf16 %v6833_v35  ;;  %v6838_v28 = vpop.permute.xlu0 %6837 }
 0x6a2   :  { %v6840_v16 = vunpack.i.h.bf16 %v6838_v28  ;;  %v6839_v62 = vunpack.i.l.bf16 %v6838_v28 }
 0x6a3   :  { %v3097_v40 = vsel %vm756_vm2, %v6829_v45, %v6835_v18  ;;  %v3113_v5 = vsel %vm756_vm2, %v6835_v18, %v6829_v45 }
 0x6a4   :  { %v10043_v26 = vmax.f32 %v9926_v48, %v3097_v40  ;;  %v10046_v17 = vmax.f32 %v9932_v20, %v3113_v5  ;;  %v3099_v43 = vsel %vm756_vm2, %v6834_v63, %v6840_v16  ;;  %v3115_v60 = vsel %vm756_vm2, %v6840_v16, %v6834_v63 }
 0x6a5   :  { %v10053_v15 = vmax.f32 %v9934_v10, %v3099_v43  ;;  %v10056_v52 = vmax.f32 %v9939_v3, %v3115_v60  ;;  %v3098_v11 = vsel %vm756_vm2, %v6830_v36, %v6839_v62  ;;  %v3114_v48 = vsel %vm756_vm2, %v6839_v62, %v6830_v36 }
 0x6a6   :  { %v3131_v20 = vmax.f32 %v9928_v25, %v3098_v11  ;;  %v3132_v42 = vmax.f32 %v9937_v21, %v3114_v48  ;;  %v3161_v59 = vrot.slane %v10043_v26, 1  ;;  %v3162_v41 = vrot.slane %v10046_v17, 1 }
 0x6a7   :  { %v3165_v10 = vrot.slane %v10053_v15, 1  ;;  %v3166_v30 = vrot.slane %v10056_v52, 1 }
 0x6a8   :  { %v3163_v3 = vrot.slane %v3131_v20, 1  ;;  %v3164_v51 = vrot.slane %v3132_v42, 1  ;;  %v6843_v54 = vpop.permute.xlu1 %6842 }
 0x6a9   :  { %v6845_v56 = vunpack.i.h.bf16 %v6843_v54  ;;  %v6844_v44 = vunpack.i.l.bf16 %v6843_v54  ;;  %v6848_v38 = vpop.permute.xlu0 %6847 }
 0x6aa   :  { %v3219_v34 = vsel %vm951_vm3, %v3163_v3, %v3165_v10  ;;  %v6850_v25 = vunpack.i.h.bf16 %v6848_v38  ;;  %v6849_v29 = vunpack.i.l.bf16 %v6848_v38  ;;  %v3220_v21 = vsel %vm951_vm3, %v3164_v51, %v3166_v30 }
 0x6ab   :  { %v3227_v32 = vmax.f32 %v3131_v20, %v3219_v34  ;;  %v3222_v35 = vsel %vm951_vm3, %v3162_v41, %v3164_v51  ;;  %v3228_v45 = vmax.f32 %v3132_v42, %v3220_v21  ;;  %v3221_v18 = vsel %vm951_vm3, %v3161_v59, %v3163_v3 }
 0x6ac   :  { %v3101_v63 = vsel %vm756_vm2, %v6845_v56, %v6850_v25  ;;  %v3117_v28 = vsel %vm756_vm2, %v6850_v25, %v6845_v56  ;;  %v3100_v16 = vsel %vm756_vm2, %v6844_v44, %v6849_v29  ;;  %v3116_v62 = vsel %vm756_vm2, %v6849_v29, %v6844_v44 }
 0x6ad   :  { %v10089_v36 = vmax.f32 %v9949_v14, %v3101_v63  ;;  %v10092_v40 = vmax.f32 %v9953_v39, %v3117_v28  ;;  %v3135_v5 = vmax.f32 %v9947_v33, %v3100_v16  ;;  %v3136_v43 = vmax.f32 %v9951_v58, %v3116_v62 }
 0x6ae   :  { %v3226_v60 = vmax.f32 %v10046_v17, %v3222_v35  ;;  %v3225_v11 = vmax.f32 %v10043_v26, %v3221_v18  ;;  %v3395_v26 = vld [vmem:[#allocation15 + $0x88] sm:$0xff]  ;;  %v3397_v17 = vld [vmem:[#allocation15 + $0x98] sm:$0xff] }
 0x6af   :  { %v3169_v48 = vrot.slane %v10089_v36, 1  ;;  %v3170_v20 = vrot.slane %v10092_v40, 1  ;;  %v3167_v42 = vrot.slane %v3135_v5, 1  ;;  %v3168_v3 = vrot.slane %v3136_v43, 1 }
 0x6b0   :  { %v5612_v51 = vpack.c.bf16 %v3228_v45, %v3226_v60  ;;  %v5614_v14 = vpack.c.bf16 %v3227_v32, %v3225_v11  ;;  %v6853_v54 = vpop.permute.xlu1 %6852 }
 0x6b1   :  { %v3215_v39 = vsel %vm951_vm3, %v3167_v42, %v3169_v48  ;;  %v6855_v56 = vunpack.i.h.bf16 %v6853_v54  ;;  %v6854_v33 = vunpack.i.l.bf16 %v6853_v54  ;;  %v6858_v44 = vpop.permute.xlu0 %6857  ;;  %v3216_v58 = vsel %vm951_vm3, %v3168_v3, %v3170_v20 }
 0x6b2   :  { %5613 = vmatprep.subr.bf16.mxu0 %v5612_v51  ;;  %v6860_v38 = vunpack.i.h.bf16 %v6858_v44  ;;  %v6859_v34 = vunpack.i.l.bf16 %v6858_v44  ;;  %v3218_v25 = vsel %vm951_vm3, %v3166_v30, %v3168_v3  ;;  %v3231_v29 = vmax.f32 %v3135_v5, %v3215_v39 }
 0x6b3   :  { %5615 = vmatpush1.bf16.msra.mxu0 %v5614_v14  ;;  %v3230_v21 = vmax.f32 %v10056_v52, %v3218_v25  ;;  %v3232_v32 = vmax.f32 %v3136_v43, %v3216_v58  ;;  %v3217_v35 = vsel %vm951_vm3, %v3165_v10, %v3167_v42 }
 0x6b4   :  { %v3103_v45 = vsel %vm756_vm2, %v6855_v56, %v6860_v38  ;;  %v3119_v18 = vsel %vm756_vm2, %v6860_v38, %v6855_v56  ;;  %v3102_v63 = vsel %vm756_vm2, %v6854_v33, %v6859_v34  ;;  %v3118_v30 = vsel %vm756_vm2, %v6859_v34, %v6854_v33 }
 0x6b5   :  { %v10118_v28 = vmax.f32 %v9963_v4, %v3103_v45  ;;  %v10121_v52 = vmax.f32 %v9967_v57, %v3119_v18  ;;  %v3139_v10 = vmax.f32 %v9961_v1, %v3102_v63  ;;  %v3140_v16 = vmax.f32 %v9965_v49, %v3118_v30 }
 0x6b6   :  { %v5616_v62 = vpack.c.bf16 %v3232_v32, %v3230_v21  ;;  %v3229_v5 = vmax.f32 %v10053_v15, %v3217_v35 }
 0x6b7   :  { %v3173_v43 = vrot.slane %v10118_v28, 1  ;;  %v3174_v60 = vrot.slane %v10121_v52, 1  ;;  %v3171_v11 = vrot.slane %v3139_v10, 1  ;;  %v3172_v42 = vrot.slane %v3140_v16, 1 }
 0x6b8   :  { %5617 = vmatprep.subr.bf16.mxu0 %v5616_v62  ;;  %v5618_v3 = vpack.c.bf16 %v3231_v29, %v3229_v5  ;;  %v6863_v4 = vpop.permute.xlu1 %6862 }
 0x6b9   :  { %v3211_v57 = vsel %vm951_vm3, %v3171_v11, %v3173_v43  ;;  %v6865_v51 = vunpack.i.h.bf16 %v6863_v4  ;;  %v6864_v14 = vunpack.i.l.bf16 %v6863_v4  ;;  %v6868_v1 = vpop.permute.xlu0 %6867  ;;  %v3212_v49 = vsel %vm951_vm3, %v3172_v42, %v3174_v60 }
 0x6ba   :  { %5619 = vmatpush1.bf16.msra.mxu0 %v5618_v3  ;;  %v6870_v15 = vunpack.i.h.bf16 %v6868_v1  ;;  %v6869_v54 = vunpack.i.l.bf16 %v6868_v1  ;;  %v3214_v39 = vsel %vm951_vm3, %v3170_v20, %v3172_v42  ;;  %v3235_v56 = vmax.f32 %v3139_v10, %v3211_v57 }
 0x6bb   :  { %v3234_v33 = vmax.f32 %v10092_v40, %v3214_v39  ;;  %v3236_v44 = vmax.f32 %v3140_v16, %v3212_v49  ;;  %v3213_v58 = vsel %vm951_vm3, %v3169_v48, %v3171_v11 }
 0x6bc   :  { %v3105_v38 = vsel %vm756_vm2, %v6865_v51, %v6870_v15  ;;  %v3121_v34 = vsel %vm756_vm2, %v6870_v15, %v6865_v51  ;;  %v3104_v25 = vsel %vm756_vm2, %v6864_v14, %v6869_v54  ;;  %v3120_v29 = vsel %vm756_vm2, %v6869_v54, %v6864_v14 }
 0x6bd   :  { %v10146_v20 = vmax.f32 %v9977_v46, %v3105_v38  ;;  %v10149_v40 = vmax.f32 %v9981_v7, %v3121_v34  ;;  %v3143_v48 = vmax.f32 %v9975_v55, %v3104_v25  ;;  %v3144_v21 = vmax.f32 %v9979_v2, %v3120_v29 }
 0x6be   :  { %v5620_v32 = vpack.c.bf16 %v3236_v44, %v3234_v33  ;;  %v3233_v35 = vmax.f32 %v10089_v36, %v3213_v58 }
 0x6bf   :  { %v3177_v45 = vrot.slane %v10146_v20, 1  ;;  %v3178_v18 = vrot.slane %v10149_v40, 1  ;;  %v3175_v63 = vrot.slane %v3143_v48, 1  ;;  %v3176_v30 = vrot.slane %v3144_v21, 1 }
 0x6c0   :  { %5621 = vmatprep.subr.bf16.mxu0 %v5620_v32  ;;  %v5622_v10 = vpack.c.bf16 %v3235_v56, %v3233_v35  ;;  %v6873_v46 = vpop.permute.xlu1 %6872 }
 0x6c1   :  { %v3207_v7 = vsel %vm951_vm3, %v3175_v63, %v3177_v45  ;;  %v6875_v16 = vunpack.i.h.bf16 %v6873_v46  ;;  %v6874_v62 = vunpack.i.l.bf16 %v6873_v46  ;;  %v6878_v55 = vpop.permute.xlu0 %6877  ;;  %v3208_v2 = vsel %vm951_vm3, %v3176_v30, %v3178_v18 }
 0x6c2   :  { %5623 = vmatpush1.bf16.msra.mxu0 %v5622_v10  ;;  %v6880_v36 = vunpack.i.h.bf16 %v6878_v55  ;;  %v6879_v5 = vunpack.i.l.bf16 %v6878_v55  ;;  %v3210_v11 = vsel %vm951_vm3, %v3174_v60, %v3176_v30  ;;  %v3239_v42 = vmax.f32 %v3143_v48, %v3207_v7 }
 0x6c3   :  { %v3238_v3 = vmax.f32 %v10121_v52, %v3210_v11  ;;  %v3240_v4 = vmax.f32 %v3144_v21, %v3208_v2  ;;  %v3209_v57 = vsel %vm951_vm3, %v3173_v43, %v3175_v63 }
 0x6c4   :  { %v3107_v51 = vsel %vm756_vm2, %v6875_v16, %v6880_v36  ;;  %v3123_v14 = vsel %vm756_vm2, %v6880_v36, %v6875_v16  ;;  %v3106_v1 = vsel %vm756_vm2, %v6874_v62, %v6879_v5  ;;  %v3122_v49 = vsel %vm756_vm2, %v6879_v5, %v6874_v62 }
 0x6c5   :  { %v10174_v60 = vmax.f32 %v9991_v8, %v3107_v51  ;;  %v10177_v52 = vmax.f32 %v9995_v61, %v3123_v14  ;;  %v3147_v43 = vmax.f32 %v9989_v6, %v3106_v1  ;;  %v3148_v15 = vmax.f32 %v9993_v24, %v3122_v49 }
 0x6c6   :  { %v5624_v54 = vpack.c.bf16 %v3240_v4, %v3238_v3  ;;  %v3237_v39 = vmax.f32 %v10118_v28, %v3209_v57 }
 0x6c7   :  { %v3181_v56 = vrot.slane %v10174_v60, 1  ;;  %v3182_v33 = vrot.slane %v10177_v52, 1  ;;  %v3179_v44 = vrot.slane %v3147_v43, 1  ;;  %v3180_v58 = vrot.slane %v3148_v15, 1 }
 0x6c8   :  { %5625 = vmatprep.subr.bf16.mxu0 %v5624_v54  ;;  %v5626_v38 = vpack.c.bf16 %v3239_v42, %v3237_v39  ;;  %v6883_v8 = vpop.permute.xlu1 %6882 }
 0x6c9   :  { %v3203_v61 = vsel %vm951_vm3, %v3179_v44, %v3181_v56  ;;  %v6885_v34 = vunpack.i.h.bf16 %v6883_v8  ;;  %v6884_v25 = vunpack.i.l.bf16 %v6883_v8  ;;  %v6888_v6 = vpop.permute.xlu0 %6887  ;;  %v3204_v24 = vsel %vm951_vm3, %v3180_v58, %v3182_v33 }
 0x6ca   :  { %5627 = vmatpush1.bf16.msra.mxu0 %v5626_v38  ;;  %v6890_v28 = vunpack.i.h.bf16 %v6888_v6  ;;  %v6889_v29 = vunpack.i.l.bf16 %v6888_v6  ;;  %v3206_v48 = vsel %vm951_vm3, %v3178_v18, %v3180_v58  ;;  %v3243_v21 = vmax.f32 %v3147_v43, %v3203_v61 }
 0x6cb   :  { %v3242_v32 = vmax.f32 %v10149_v40, %v3206_v48  ;;  %v3244_v35 = vmax.f32 %v3148_v15, %v3204_v24  ;;  %v3205_v63 = vsel %vm951_vm3, %v3177_v45, %v3179_v44 }
 0x6cc   :  { %v3109_v30 = vsel %vm756_vm2, %v6885_v34, %v6890_v28  ;;  %v3125_v10 = vsel %vm756_vm2, %v6890_v28, %v6885_v34  ;;  %v3108_v46 = vsel %vm756_vm2, %v6884_v25, %v6889_v29  ;;  %v3124_v7 = vsel %vm756_vm2, %v6889_v29, %v6884_v25 }
 0x6cd   :  { %v10202_v18 = vmax.f32 %v10005_v27, %v3109_v30  ;;  %v3154_v40 = vmax.f32 %v10009_v12, %v3125_v10  ;;  %v3151_v16 = vmax.f32 %v10003_v9, %v3108_v46  ;;  %v3152_v45 = vmax.f32 %v10007_v0, %v3124_v7 }
 0x6ce   :  { %v5628_v62 = vpack.c.bf16 %v3244_v35, %v3242_v32  ;;  %v3241_v55 = vmax.f32 %v10146_v20, %v3205_v63 }
 0x6cf   :  { %v3185_v2 = vrot.slane %v10202_v18, 1  ;;  %v3186_v36 = vrot.slane %v3154_v40, 1  ;;  %v3183_v5 = vrot.slane %v3151_v16, 1  ;;  %v3184_v11 = vrot.slane %v3152_v45, 1 }
 0x6d0   :  { %5629 = vmatprep.subr.bf16.mxu0 %v5628_v62  ;;  %v5630_v42 = vpack.c.bf16 %v3243_v21, %v3241_v55  ;;  %v6893_v3 = vpop.permute.xlu1 %6892 }
 0x6d1   :  { %v3199_v27 = vsel %vm951_vm3, %v3183_v5, %v3185_v2  ;;  %v6895_v4 = vunpack.i.h.bf16 %v6893_v3  ;;  %v6894_v12 = vunpack.i.l.bf16 %v6893_v3  ;;  %v6898_v57 = vpop.permute.xlu0 %6897  ;;  %v3200_v9 = vsel %vm951_vm3, %v3184_v11, %v3186_v36  ;;  %v3378_v3 = vld [vmem:[#allocation15] sm:$0xff] }
 0x6d2   :  { %5631 = vmatpush1.bf16.msra.mxu0 %v5630_v42  ;;  %v6900_v0 = vunpack.i.h.bf16 %v6898_v57  ;;  %v6899_v20 = vunpack.i.l.bf16 %v6898_v57  ;;  %v3202_v51 = vsel %vm951_vm3, %v3182_v33, %v3184_v11  ;;  %v3247_v14 = vmax.f32 %v3151_v16, %v3199_v27  ;;  %v3379_v27 = vld [vmem:[#allocation15 + $0x8] sm:$0xff] }
 0x6d3   :  { %v3246_v1 = vmax.f32 %v10177_v52, %v3202_v51  ;;  %v3248_v49 = vmax.f32 %v3152_v45, %v3200_v9  ;;  %v3201_v43 = vsel %vm951_vm3, %v3181_v56, %v3183_v5  ;;  %v3380_v9 = vld [vmem:[#allocation15 + $0x10] sm:$0xff]  ;;  %v3399_v51 = vld [vmem:[#allocation15 + $0xa8] sm:$0xff] }
 0x6d4   :  { %v3111_v15 = vsel %vm756_vm2, %v6895_v4, %v6900_v0  ;;  %v3127_v54 = vsel %vm756_vm2, %v6900_v0, %v6895_v4  ;;  %v3110_v39 = vsel %vm756_vm2, %v6894_v12, %v6899_v20  ;;  %v3126_v44 = vsel %vm756_vm2, %v6899_v20, %v6894_v12  ;;  %v3396_v4 = vld [vmem:[#allocation15 + $0x90] sm:$0xff]  ;;  %v3381_v0 = vld [vmem:[#allocation15 + $0x18] sm:$0xff]  ;;  %v3398_v20 = vld [vmem:[#allocation15 + $0xa0] sm:$0xff] }
 0x6d5   :  { %v3157_v33 = vmax.f32 %v10019_v23, %v3111_v15  ;;  %v3158_v52 = vmax.f32 %v10023_v19, %v3127_v54  ;;  %v3155_v58 = vmax.f32 %v10017_v31, %v3110_v39  ;;  %v3156_v56 = vmax.f32 %v10021_v13, %v3126_v44  ;;  %v6903_v38 = vpop.permute.xlu1 %6902  ;;  %v3383_v15 = vld [vmem:[#allocation15 + $0x28] sm:$0xff]  ;;  %v3400_v54 = vld [vmem:[#allocation15 + $0xb0] sm:$0xff]  ;;  %v3401_v39 = vld [vmem:[#allocation15 + $0xb8] sm:$0xff] }
 0x6d6   :  { %v6905_v8 = vunpack.i.h.bf16 %v6903_v38  ;;  %v6904_v61 = vunpack.i.l.bf16 %v6903_v38  ;;  %v5632_v34 = vpack.c.bf16 %v3248_v49, %v3246_v1  ;;  %v3245_v25 = vmax.f32 %v10174_v60, %v3201_v43  ;;  %v3382_v43 = vld [vmem:[#allocation15 + $0x20] sm:$0xff]  ;;  %v3259_v44 = vld [vmem:[#allocation14 + $0x10] sm:$0xff] }
 0x6d7   :  { %v3189_v6 = vrot.slane %v3157_v33, 1  ;;  %v3190_v24 = vrot.slane %v3158_v52, 1  ;;  %v3187_v28 = vrot.slane %v3155_v58, 1  ;;  %v3188_v29 = vrot.slane %v3156_v56, 1  ;;  %v3402_v38 = vld [vmem:[#allocation15 + $0xc0] sm:$0xff] }
 0x6d8   :  { %v3112_v48 = vsel %vm756_vm2, %v6904_v61, %v6905_v8  ;;  %v3128_v23 = vsel %vm756_vm2, %v6905_v8, %v6904_v61  ;;  %5633 = vmatprep.subr.bf16.mxu0 %v5632_v34  ;;  %v5634_v31 = vpack.c.bf16 %v3247_v14, %v3245_v25  ;;  %v5646_v12 = vpack.c.bf16 %v3379_v27, %v3378_v3  ;;  %v3258_v14 = vld [vmem:[#allocation14 + $0x8] sm:$0xff]  ;;  %v3260_v61 = vld [vmem:[#allocation14 + $0x18] sm:$0xff] }
 0x6d9   :  { %v3195_v13 = vsel %vm951_vm3, %v3187_v28, %v3189_v6  ;;  %v3159_v19 = vmax.f32 %v10029_v53, %v3112_v48  ;;  %v3160_v21 = vmax.f32 %v10032_v50, %v3128_v23  ;;  %v3196_v60 = vsel %vm951_vm3, %v3188_v29, %v3190_v24  ;;  %v3403_v8 = vld [vmem:[#allocation15 + $0xc8] sm:$0xff]  ;;  %v3261_v48 = vld [vmem:[#allocation14 + $0x20] sm:$0xff] }
 0x6da   :  { %v3251_v32 = vmax.f32 %v3155_v58, %v3195_v13  ;;  %5635 = vmatpush1.bf16.msra.mxu0 %v5634_v31  ;;  %v3198_v35 = vsel %vm951_vm3, %v3186_v36, %v3188_v29  ;;  %v3252_v63 = vmax.f32 %v3156_v56, %v3196_v60  ;;  %v3197_v22 = vsel %vm951_vm3, %v3185_v2, %v3187_v28  ;;  %v3384_v58 = vld [vmem:[#allocation15 + $0x30] sm:$0xff]  ;;  %v3385_v56 = vld [vmem:[#allocation15 + $0x38] sm:$0xff]  ;;  %v3407_v60 = vld [vmem:[#allocation15 + $0xe8] sm:$0xff] }
 0x6db   :  { %v3191_v30 = vrot.slane %v3159_v19, 1  ;;  %v3192_v10 = vrot.slane %v3160_v21, 1  ;;  %v3250_v46 = vmax.f32 %v3154_v40, %v3198_v35  ;;  %v3249_v7 = vmax.f32 %v10202_v18, %v3197_v22  ;;  %v3394_v40 = vld [vmem:[#allocation15 + $0x80] sm:$0xff]  ;;  %v3404_v28 = vld [vmem:[#allocation15 + $0xd0] sm:$0xff]  ;;  %v3405_v29 = vld [vmem:[#allocation15 + $0xd8] sm:$0xff] }
 0x6dc   :  { %v5644_v42 = vpack.c.bf16 %v3395_v26, %v3394_v40  ;;  %v5648_v57 = vpack.c.bf16 %v3397_v17, %v3396_v4  ;;  %v5650_v1 = vpack.c.bf16 %v3381_v0, %v3380_v9  ;;  %v5652_v49 = vpack.c.bf16 %v3399_v51, %v3398_v20  ;;  %v3388_v13 = vld [vmem:[#allocation15 + $0x50] sm:$0xff]  ;;  %v3390_v22 = vld [vmem:[#allocation15 + $0x60] sm:$0xff] }
 0x6dd   :  { %v3223_v53 = vsel %vm951_vm3, %v3191_v30, %v3161_v59  ;;  %v5636_v50 = vpack.c.bf16 %v3252_v63, %v3250_v46  ;;  %v5638_v16 = vpack.c.bf16 %v3251_v32, %v3249_v7  ;;  %v3194_v45 = vsel %vm951_vm3, %v3190_v24, %v3192_v10  ;;  %v3387_v24 = vld [vmem:[#allocation15 + $0x48] sm:$0xff]  ;;  %v3409_v46 = vld [vmem:[#allocation15 + $0xf8] sm:$0xff]  ;;  %v3263_v7 = vld [vmem:[#allocation14 + $0x30] sm:$0xff] }
 0x6de   :  { %v3255_v62 = vmax.f32 %v3159_v19, %v3223_v53  ;;  %v3224_v55 = vsel %vm951_vm3, %v3192_v10, %v3162_v41  ;;  %v3254_v2 = vmax.f32 %v3158_v52, %v3194_v45  ;;  %v3193_v18 = vsel %vm951_vm3, %v3189_v6, %v3191_v30  ;;  %v3257_v41 = vld [vmem:[#allocation14] sm:$0xff]  ;;  %v3389_v19 = vld [vmem:[#allocation15 + $0x58] sm:$0xff]  ;;  %v3262_v32 = vld [vmem:[#allocation14 + $0x28] sm:$0xff] }
 0x6df   :  { %5637 = vmatprep.subr.bf16.mxu0 %v5636_v50  ;;  %v3256_v36 = vmax.f32 %v3160_v21, %v3224_v55  ;;  %v3253_v59 = vmax.f32 %v3157_v33, %v3193_v18  ;;  %v5654_v33 = vpack.c.bf16 %v3383_v15, %v3382_v43  ;;  %v5656_v52 = vpack.c.bf16 %v3401_v39, %v3400_v54  ;;  %v3386_v6 = vld [vmem:[#allocation15 + $0x40] sm:$0xff]  ;;  %v3391_v30 = vld [vmem:[#allocation15 + $0x68] sm:$0xff]  ;;  %v3408_v10 = vld [vmem:[#allocation15 + $0xf0] sm:$0xff] }
 0x6e0   :  { %5639 = vmatpush1.bf16.msra.mxu0 %v5638_v16  ;;  %v5658_v34 = vpack.c.bf16 %v3385_v56, %v3384_v58  ;;  %v5660_v25 = vpack.c.bf16 %v3403_v8, %v3402_v38  ;;  %v5662_v23 = vpack.c.bf16 %v3387_v24, %v3386_v6  ;;  %v5664_v31 = vpack.c.bf16 %v3405_v29, %v3404_v28  ;;  %v3406_v21 = vld [vmem:[#allocation15 + $0xe0] sm:$0xff]  ;;  %v3264_v16 = vld [vmem:[#allocation14 + $0x38] sm:$0xff]  ;;  %v3392_v45 = vld [vmem:[#allocation15 + $0x70] sm:$0xff] }
 0x6e1   :  { %v5640_v5 = vpack.c.bf16 %v3256_v36, %v3254_v2  ;;  %v5642_v11 = vpack.c.bf16 %v3255_v62, %v3253_v59  ;;  %v5666_v35 = vpack.c.bf16 %v3389_v19, %v3388_v13  ;;  %v5668_v63 = vpack.c.bf16 %v3407_v60, %v3406_v21  ;;  %v3393_v62 = vld [vmem:[#allocation15 + $0x78] sm:$0xff] }
 0x6e2   :  { %v5670_v53 = vpack.c.bf16 %v3391_v30, %v3390_v22  ;;  %v5672_v50 = vpack.c.bf16 %v3409_v46, %v3408_v10  ;;  %v5674_v55 = vpack.c.bf16 %v3393_v62, %v3392_v45  ;;  %v3618_v30 = vld [vmem:[#allocation17 + $0x38] sm:$0xff]  ;;  %v3611_v10 = vld [vmem:[#allocation17] sm:$0xff]  ;;  %v3620_v45 = vld [vmem:[#allocation17 + $0x48] sm:$0xff] }
 0x6e3   :  { %5641 = vmatprep.subr.bf16.mxu0 %v5640_v5  ;;  %v3615_v46 = vld [vmem:[#allocation17 + $0x20] sm:$0xff] }
 0x6e4   :  { %5643 = vmatpush1.bf16.msra.mxu0 %v5642_v11 }
 0x6e5   :  { %5645 = vmatprep.subr.bf16.mxu0 %v5644_v42 }
 0x6e7   :  { %3330 = vmatmul.mubr.f32.vlgmr.msra.gmra.mrb[32].mxu0 %v3257_v41 }
 0x6e8   :  { %3335 = vmatprep.mubr.f32.mxu0 %v10513_v37  ;;  %5647 = vmatpush3.bf16.msra.mxu0 %v5646_v12 }
 0x6e9   :  { %5649 = vmatprep.subr.bf16.mxu0 %v5648_v57 }
 0x6eb   :  { %3336 = vmatmul.mubr.f32.gmra.mrb[34].mxu0 %v3258_v14 }
 0x6ec   :  { %3341 = vmatprep.mubr.f32.mxu0 %v10513_v37  ;;  %5651 = vmatpush3.bf16.msra.mxu0 %v5650_v1 }
 0x6ed   :  { %5653 = vmatprep.subr.bf16.mxu0 %v5652_v49 }
 0x6ef   :  { %3342 = vmatmul.mubr.f32.gmra.mrb[36].mxu0 %v3259_v44 }
 0x6f0   :  { %3347 = vmatprep.mubr.f32.mxu0 %v10513_v37  ;;  %5655 = vmatpush3.bf16.msra.mxu0 %v5654_v33 }
 0x6f1   :  { %5657 = vmatprep.subr.bf16.mxu0 %v5656_v52 }
 0x6f3   :  { %3348 = vmatmul.mubr.f32.gmra.mrb[38].mxu0 %v3260_v61 }
 0x6f4   :  { %3353 = vmatprep.mubr.f32.mxu0 %v10513_v37  ;;  %5659 = vmatpush3.bf16.msra.mxu0 %v5658_v34 }
 0x6f5   :  { %5661 = vmatprep.subr.bf16.mxu0 %v5660_v25 }
 0x6f7   :  { %3354 = vmatmul.mubr.f32.gmra.mrb[40].mxu0 %v3261_v48 }
 0x6f8   :  { %3359 = vmatprep.mubr.f32.mxu0 %v10513_v37  ;;  %5663 = vmatpush3.bf16.msra.mxu0 %v5662_v23 }
 0x6f9   :  { %5665 = vmatprep.subr.bf16.mxu0 %v5664_v31 }
 0x6fb   :  { %3360 = vmatmul.mubr.f32.gmra.mrb[42].mxu0 %v3262_v32  ;;  %v3612_v32 = vld [vmem:[#allocation17 + $0x8] sm:$0xff] }
 0x6fc   :  { %3365 = vmatprep.mubr.f32.mxu0 %v10513_v37  ;;  %5667 = vmatpush3.bf16.msra.mxu0 %v5666_v35  ;;  %v3616_v35 = vld [vmem:[#allocation17 + $0x28] sm:$0xff] }
 0x6fd   :  { %5669 = vmatprep.subr.bf16.mxu0 %v5668_v63  ;;  %v3614_v63 = vld [vmem:[#allocation17 + $0x18] sm:$0xff]  ;;  %v5676_v22 = vpack.c.bf16 %v3616_v35, %v3612_v32 }
 0x6ff   :  { %3366 = vmatmul.mubr.f32.gmra.mrb[44].mxu0 %v3263_v7  ;;  %v5932_v7 = vpack.c.bf16 %v3618_v30, %v3614_v63  ;;  %v3655_v30 = vld [vmem:[#allocation17 + $0x160] sm:$0xff] }
 0x700   :  { %3371 = vmatprep.mubr.f32.mxu0 %v10513_v37  ;;  %5671 = vmatpush3.bf16.msra.mxu0 %v5670_v53  ;;  %v5678_v53 = vpack.c.bf16 %v3615_v46, %v3611_v10  ;;  %v3653_v10 = vld [vmem:[#allocation17 + $0x150] sm:$0xff] }
 0x701   :  { %5673 = vmatprep.subr.bf16.mxu0 %v5672_v50  ;;  %v3613_v50 = vld [vmem:[#allocation17 + $0x10] sm:$0xff]  ;;  %5933 = vmatprep.subr.bf16.mxu1 %v5932_v7 }
 0x702   :  { %v3657_v7 = vld [vmem:[#allocation17 + $0x170] sm:$0xff] }
 0x703   :  { %3372 = vmatmul.mubr.f32.gmra.mrb[46].mxu0 %v3264_v16  ;;  %v3617_v16 = vld [vmem:[#allocation17 + $0x30] sm:$0xff] }
 0x704   :  { %5675 = vmatpush3.bf16.msra.mxu0 %v5674_v55  ;;  %v5934_v62 = vpack.c.bf16 %v3617_v16, %v3613_v50  ;;  %v3624_v55 = vld [vmem:[#allocation17 + $0x68] sm:$0xff]  ;;  %v3662_v16 = vld [vmem:[#allocation17 + $0x198] sm:$0xff] }
 0x705   :  { %5677 = vmatprep.subr.bf16.mxu0 %v5676_v22  ;;  %v3651_v22 = vld [vmem:[#allocation17 + $0x140] sm:$0xff]  ;;  %v3664_v50 = vld [vmem:[#allocation17 + $0x1a8] sm:$0xff] }
 0x706   :  { %5935 = vmatpush1.bf16.msra.mxu1 %v5934_v62  ;;  %v5698_v62 = vpack.c.bf16 %v3655_v30, %v3651_v22  ;;  %v3693_v22 = vld [vmem:[#allocation17 + $0x290] sm:$0xff] }
 0x7ba   :  { %v3331_v2 = vpop.f32.mrb[32].mxu0 }
 0x7bb   :  { %v3333_v18 = vpop.f32.mrb[33].mxu0 }
 0x7bc   :  { %3474 = vmatprep.mubr.f32.mxu0 %v3333_v18  ;;  %v3626_v18 = vld [vmem:[#allocation17 + $0x78] sm:$0xff] }
 0x7bd   :  { %3475 = vmatmul.mubr.f32.vlgmr.msra.gmra.mrb[48].mxu0 %v3331_v2  ;;  %v3622_v2 = vld [vmem:[#allocation17 + $0x58] sm:$0xff] }
 0x7be   :  { %v3337_v40 = vpop.f32.mrb[34].mxu0  ;;  %5679 = vmatpush1.bf16.msra.mxu0 %v5678_v53  ;;  %v3660_v53 = vld [vmem:[#allocation17 + $0x188] sm:$0xff] }
 0x7bf   :  { %v3339_v26 = vpop.f32.mrb[35].mxu0 }
 0x7c0   :  { %3479 = vmatprep.mubr.f32.mxu0 %v3339_v26  ;;  %v5936_v26 = vpack.c.bf16 %v3626_v18, %v3622_v2  ;;  %v5700_v2 = vpack.c.bf16 %v3664_v50, %v3660_v53  ;;  %v3659_v18 = vld [vmem:[#allocation17 + $0x180] sm:$0xff]  ;;  %v3702_v53 = vld [vmem:[#allocation17 + $0x2d8] sm:$0xff] }
 0x7c1   :  { %3480 = vmatmul.mubr.f32.gmra.mrb[50].mxu0 %v3337_v40  ;;  %v5680_v40 = vpack.c.bf16 %v3624_v55, %v3620_v45  ;;  %v3666_v45 = vld [vmem:[#allocation17 + $0x1b8] sm:$0xff]  ;;  %v5954_v55 = vpack.c.bf16 %v3657_v7, %v3653_v10  ;;  %v3697_v10 = vld [vmem:[#allocation17 + $0x2b0] sm:$0xff]  ;;  %v3704_v7 = vld [vmem:[#allocation17 + $0x2e8] sm:$0xff] }
 0x7c2   :  { %v3343_v36 = vpop.f32.mrb[36].mxu0  ;;  %5937 = vmatprep.subr.bf16.mxu1 %v5936_v26  ;;  %v3661_v26 = vld [vmem:[#allocation17 + $0x190] sm:$0xff]  ;;  %v3706_v50 = vld [vmem:[#allocation17 + $0x2f8] sm:$0xff] }
 0x7c3   :  { %v3345_v59 = vpop.f32.mrb[37].mxu0  ;;  %5681 = vmatprep.subr.bf16.mxu0 %v5680_v40  ;;  %v3663_v40 = vld [vmem:[#allocation17 + $0x1a0] sm:$0xff] }
 0x7c4   :  { %3484 = vmatprep.mubr.f32.mxu0 %v3345_v59  ;;  %v3623_v59 = vld [vmem:[#allocation17 + $0x60] sm:$0xff] }
 0x7c5   :  { %3485 = vmatmul.mubr.f32.gmra.mrb[52].mxu0 %v3343_v36  ;;  %v3619_v36 = vld [vmem:[#allocation17 + $0x40] sm:$0xff] }
 0x7c6   :  { %v3349_v5 = vpop.f32.mrb[38].mxu0 }
 0x7c7   :  { %v3351_v11 = vpop.f32.mrb[39].mxu0 }
 0x7c8   :  { %3489 = vmatprep.mubr.f32.mxu0 %v3351_v11  ;;  %v5682_v11 = vpack.c.bf16 %v3623_v59, %v3619_v36  ;;  %v5956_v36 = vpack.c.bf16 %v3666_v45, %v3662_v16  ;;  %v3665_v59 = vld [vmem:[#allocation17 + $0x1b0] sm:$0xff]  ;;  %v5974_v45 = vpack.c.bf16 %v3697_v10, %v3693_v22  ;;  %v3735_v22 = vld [vmem:[#allocation17 + $0x3e0] sm:$0xff] }
 0x7c9   :  { %3490 = vmatmul.mubr.f32.gmra.mrb[54].mxu0 %v3349_v5  ;;  %v3621_v5 = vld [vmem:[#allocation17 + $0x50] sm:$0xff] }
 0x7ca   :  { %v3355_v42 = vpop.f32.mrb[40].mxu0  ;;  %5683 = vmatpush1.bf16.msra.mxu0 %v5682_v11  ;;  %v3672_v11 = vld [vmem:[#allocation17 + $0x1e8] sm:$0xff]  ;;  %v3737_v10 = vld [vmem:[#allocation17 + $0x3f0] sm:$0xff] }
 0x7cb   :  { %v3357_v3 = vpop.f32.mrb[41].mxu0 }
 0x7cc   :  { %3494 = vmatprep.mubr.f32.mxu0 %v3357_v3  ;;  %v3628_v3 = vld [vmem:[#allocation17 + $0x88] sm:$0xff] }
 0x7cd   :  { %3495 = vmatmul.mubr.f32.gmra.mrb[56].mxu0 %v3355_v42  ;;  %v3625_v42 = vld [vmem:[#allocation17 + $0x70] sm:$0xff] }
 0x7ce   :  { %v3361_v27 = vpop.f32.mrb[42].mxu0 }
 0x7cf   :  { %v3363_v4 = vpop.f32.mrb[43].mxu0 }
 0x7d0   :  { %3499 = vmatprep.mubr.f32.mxu0 %v3363_v4  ;;  %v5938_v4 = vpack.c.bf16 %v3625_v42, %v3621_v5  ;;  %v3668_v5 = vld [vmem:[#allocation17 + $0x1c8] sm:$0xff]  ;;  %v3670_v42 = vld [vmem:[#allocation17 + $0x1d8] sm:$0xff] }
 0x7d1   :  { %3500 = vmatmul.mubr.f32.gmra.mrb[58].mxu0 %v3361_v27  ;;  %v3632_v27 = vld [vmem:[#allocation17 + $0xa8] sm:$0xff] }
 0x7d2   :  { %v3367_v17 = vpop.f32.mrb[44].mxu0  ;;  %5939 = vmatpush1.bf16.msra.mxu1 %v5938_v4  ;;  %v5958_v4 = vpack.c.bf16 %v3665_v59, %v3661_v26  ;;  %v3705_v26 = vld [vmem:[#allocation17 + $0x2f0] sm:$0xff]  ;;  %v3712_v59 = vld [vmem:[#allocation17 + $0x328] sm:$0xff] }
 0x7d3   :  { %v3369_v41 = vpop.f32.mrb[45].mxu0 }
 0x7d4   :  { %3504 = vmatprep.mubr.f32.mxu0 %v3369_v41  ;;  %v3630_v41 = vld [vmem:[#allocation17 + $0x98] sm:$0xff] }
 0x7d5   :  { %3505 = vmatmul.mubr.f32.gmra.mrb[60].mxu0 %v3367_v17  ;;  %v5684_v17 = vpack.c.bf16 %v3632_v27, %v3628_v3  ;;  %v3674_v3 = vld [vmem:[#allocation17 + $0x1f8] sm:$0xff]  ;;  %v5702_v27 = vpack.c.bf16 %v3663_v40, %v3659_v18  ;;  %v3701_v18 = vld [vmem:[#allocation17 + $0x2d0] sm:$0xff]  ;;  %v5976_v40 = vpack.c.bf16 %v3706_v50, %v3702_v53  ;;  %v3740_v50 = vld [vmem:[#allocation17 + $0x408] sm:$0xff] }
 0x7d6   :  { %v3373_v12 = vpop.f32.mrb[46].mxu0 }
 0x7d7   :  { %v3375_v57 = vpop.f32.mrb[47].mxu0  ;;  %5685 = vmatprep.subr.bf16.mxu0 %v5684_v17  ;;  %v5704_v17 = vpack.c.bf16 %v3672_v11, %v3668_v5  ;;  %v3710_v5 = vld [vmem:[#allocation17 + $0x318] sm:$0xff] }
 0x7d8   :  { %3509 = vmatprep.mubr.f32.mxu0 %v3375_v57  ;;  %v3627_v57 = vld [vmem:[#allocation17 + $0x80] sm:$0xff]  ;;  %v3714_v11 = vld [vmem:[#allocation17 + $0x338] sm:$0xff] }
 0x7d9   :  { %3510 = vmatmul.mubr.f32.gmra.mrb[62].mxu0 %v3373_v12  ;;  %v3634_v12 = vld [vmem:[#allocation17 + $0xb8] sm:$0xff] }
 0x890   :  { %v5130_v9 = vpop.f32.mrb[48].mxu0 }
 0x891   :  { %v5131_v0 = vpop.f32.mrb[49].mxu0 }
 0x892   :  { %v5132_v20 = vadd.f32 %v5131_v0, %v5130_v9  ;;  %v5940_v9 = vpack.c.bf16 %v3634_v12, %v3630_v41  ;;  %v3631_v0 = vld [vmem:[#allocation17 + $0xa0] sm:$0xff] }
 0x893   :  { %v3667_v41 = vld [vmem:[#allocation17 + $0x1c0] sm:$0xff] }
 0x894   :  { %v3515_v51 = vmax.f32 %v5132_v20, 0.0  ;;  %v5133_v14 = vpop.f32.mrb[50].mxu0  ;;  %v3629_v20 = vld [vmem:[#allocation17 + $0x90] sm:$0xff]  ;;  %5941 = vmatprep.subr.bf16.mxu1 %v5940_v9  ;;  %v3671_v12 = vld [vmem:[#allocation17 + $0x1e0] sm:$0xff]  ;;  %v5960_v9 = vpack.c.bf16 %v3674_v3, %v3670_v42  ;;  %v5978_v3 = vpack.c.bf16 %v3705_v26, %v3701_v18 }
 0x895   :  { %v5134_v1 = vpop.f32.mrb[51].mxu0 }
 0x896   :  { %v5135_v49 = vadd.f32 %v5134_v1, %v5133_v14  ;;  %3523 = vxpose.xlu0.b32.start [1/8] (short) %v3515_v51, 128  ;;  %v3633_v51 = vld [vmem:[#allocation17 + $0xb0] sm:$0xff]  ;;  %v5686_v14 = vpack.c.bf16 %v3631_v0, %v3627_v57  ;;  %v3636_v1 = vld [vmem:[#allocation17 + $0xc8] sm:$0xff] }
 0x897   :  { %v3669_v57 = vld [vmem:[#allocation17 + $0x1d0] sm:$0xff] }
 0x898   :  { %v3516_v43 = vmax.f32 %v5135_v49, 0.0  ;;  %v5136_v15 = vpop.f32.mrb[52].mxu0  ;;  %v3640_v49 = vld [vmem:[#allocation17 + $0xe8] sm:$0xff]  ;;  %5687 = vmatpush1.bf16.msra.mxu0 %v5686_v14  ;;  %v3673_v0 = vld [vmem:[#allocation17 + $0x1f0] sm:$0xff]  ;;  %v3678_v14 = vld [vmem:[#allocation17 + $0x218] sm:$0xff] }
 0x899   :  { %v5137_v54 = vpop.f32.mrb[53].mxu0 }
 0x89a   :  { %v5138_v39 = vadd.f32 %v5137_v54, %v5136_v15  ;;  %3524 = vxpose.xlu0.b32.cont [2/8] (short) %v3516_v43, 128  ;;  %v3638_v43 = vld [vmem:[#allocation17 + $0xd8] sm:$0xff]  ;;  %v5942_v15 = vpack.c.bf16 %v3633_v51, %v3629_v20  ;;  %v5688_v54 = vpack.c.bf16 %v3640_v49, %v3636_v1  ;;  %v3676_v20 = vld [vmem:[#allocation17 + $0x208] sm:$0xff]  ;;  %v5706_v49 = vpack.c.bf16 %v3671_v12, %v3667_v41  ;;  %v3709_v41 = vld [vmem:[#allocation17 + $0x310] sm:$0xff] }
 0x89b   :  { %v3680_v51 = vld [vmem:[#allocation17 + $0x228] sm:$0xff]  ;;  %v3682_v1 = vld [vmem:[#allocation17 + $0x238] sm:$0xff]  ;;  %v5980_v12 = vpack.c.bf16 %v3714_v11, %v3710_v5 }
 0x89c   :  { %v3517_v44 = vmax.f32 %v5138_v39, 0.0  ;;  %v5139_v33 = vpop.f32.mrb[54].mxu0  ;;  %v3642_v39 = vld [vmem:[#allocation17 + $0xf8] sm:$0xff]  ;;  %5943 = vmatpush1.bf16.msra.mxu1 %v5942_v15  ;;  %5689 = vmatprep.subr.bf16.mxu0 %v5688_v54  ;;  %v5708_v15 = vpack.c.bf16 %v3680_v51, %v3676_v20  ;;  %v3675_v54 = vld [vmem:[#allocation17 + $0x200] sm:$0xff] }
 0x89d   :  { %v5140_v52 = vpop.f32.mrb[55].mxu0  ;;  %v3718_v20 = vld [vmem:[#allocation17 + $0x358] sm:$0xff] }
 0x89e   :  { %v5141_v58 = vadd.f32 %v5140_v52, %v5139_v33  ;;  %3525 = vxpose.xlu0.b32.cont [3/8] (short) %v3517_v44, 128  ;;  %v3635_v44 = vld [vmem:[#allocation17 + $0xc0] sm:$0xff]  ;;  %v5944_v52 = vpack.c.bf16 %v3642_v39, %v3638_v43  ;;  %v5962_v43 = vpack.c.bf16 %v3673_v0, %v3669_v57  ;;  %v3713_v57 = vld [vmem:[#allocation17 + $0x330] sm:$0xff]  ;;  %v3720_v0 = vld [vmem:[#allocation17 + $0x368] sm:$0xff] }
 0x89f   :  { %v3639_v33 = vld [vmem:[#allocation17 + $0xe0] sm:$0xff]  ;;  %v3722_v51 = vld [vmem:[#allocation17 + $0x378] sm:$0xff] }
 0x8a0   :  { %v3518_v56 = vmax.f32 %v5141_v58, 0.0  ;;  %v5142_v38 = vpop.f32.mrb[56].mxu0  ;;  %v3637_v58 = vld [vmem:[#allocation17 + $0xd0] sm:$0xff]  ;;  %5945 = vmatprep.subr.bf16.mxu1 %v5944_v52  ;;  %v3679_v39 = vld [vmem:[#allocation17 + $0x220] sm:$0xff] }
 0x8a1   :  { %v5143_v8 = vpop.f32.mrb[57].mxu0  ;;  %v3681_v52 = vld [vmem:[#allocation17 + $0x230] sm:$0xff] }
 0x8a2   :  { %v5144_v61 = vadd.f32 %v5143_v8, %v5142_v38  ;;  %3526 = vxpose.xlu0.b32.cont [4/8] (short) %v3518_v56, 128  ;;  %v3641_v56 = vld [vmem:[#allocation17 + $0xf0] sm:$0xff]  ;;  %v3644_v38 = vld [vmem:[#allocation17 + $0x108] sm:$0xff] }
 0x8a3   :  { %v3648_v8 = vld [vmem:[#allocation17 + $0x128] sm:$0xff] }
 0x8a4   :  { %v3519_v34 = vmax.f32 %v5144_v61, 0.0  ;;  %v5145_v25 = vpop.f32.mrb[58].mxu0  ;;  %v3646_v61 = vld [vmem:[#allocation17 + $0x118] sm:$0xff] }
 0x8a5   :  { %v5146_v6 = vpop.f32.mrb[59].mxu0 }
 0x8a6   :  { %v5147_v24 = vadd.f32 %v5146_v6, %v5145_v25  ;;  %3527 = vxpose.xlu0.b32.cont [5/8] (short) %v3519_v34, 128  ;;  %v3650_v34 = vld [vmem:[#allocation17 + $0x138] sm:$0xff]  ;;  %v5690_v25 = vpack.c.bf16 %v3639_v33, %v3635_v44  ;;  %v5946_v6 = vpack.c.bf16 %v3641_v56, %v3637_v58  ;;  %v3677_v44 = vld [vmem:[#allocation17 + $0x210] sm:$0xff]  ;;  %v5964_v33 = vpack.c.bf16 %v3682_v1, %v3678_v14  ;;  %v3684_v58 = vld [vmem:[#allocation17 + $0x248] sm:$0xff] }
 0x8a7   :  { %v3688_v56 = vld [vmem:[#allocation17 + $0x268] sm:$0xff]  ;;  %v5982_v1 = vpack.c.bf16 %v3713_v57, %v3709_v41 }
 0x8a8   :  { %v3520_v28 = vmax.f32 %v5147_v24, 0.0  ;;  %v5148_v29 = vpop.f32.mrb[60].mxu0  ;;  %v5692_v24 = vpack.c.bf16 %v3648_v8, %v3644_v38  ;;  %5691 = vmatpush1.bf16.msra.mxu0 %v5690_v25  ;;  %5947 = vmatpush1.bf16.msra.mxu1 %v5946_v6  ;;  %v3686_v38 = vld [vmem:[#allocation17 + $0x258] sm:$0xff]  ;;  %v5712_v25 = vpack.c.bf16 %v3688_v56, %v3684_v58  ;;  %v3683_v6 = vld [vmem:[#allocation17 + $0x240] sm:$0xff]  ;;  %v3724_v58 = vld [vmem:[#allocation17 + $0x388] sm:$0xff] }
 0x8a9   :  { %v5149_v48 = vpop.f32.mrb[61].mxu0  ;;  %v3690_v8 = vld [vmem:[#allocation17 + $0x278] sm:$0xff]  ;;  %v3728_v56 = vld [vmem:[#allocation17 + $0x3a8] sm:$0xff] }
 0x8aa   :  { %v5150_v23 = vadd.f32 %v5149_v48, %v5148_v29  ;;  %3528 = vxpose.xlu0.b32.cont [6/8] (short) %v3520_v28, 128  ;;  %v3643_v28 = vld [vmem:[#allocation17 + $0x100] sm:$0xff]  ;;  %v3645_v48 = vld [vmem:[#allocation17 + $0x110] sm:$0xff]  ;;  %5693 = vmatprep.subr.bf16.mxu0 %v5692_v24 }
 0x8ab   :  { %v3647_v29 = vld [vmem:[#allocation17 + $0x120] sm:$0xff] }
 0x8ac   :  { %v3521_v31 = vmax.f32 %v5150_v23, 0.0  ;;  %v5151_v13 = vpop.f32.mrb[62].mxu0  ;;  %v5948_v23 = vpack.c.bf16 %v3650_v34, %v3646_v61  ;;  %v5694_v32 = vpack.c.bf16 %v3647_v29, %v3643_v28  ;;  %v5710_v61 = vpack.c.bf16 %v3679_v39, %v3675_v54  ;;  %v3687_v24 = vld [vmem:[#allocation17 + $0x260] sm:$0xff]  ;;  %v3685_v28 = vld [vmem:[#allocation17 + $0x250] sm:$0xff] }
 0x8ad   :  { %v5152_v19 = vpop.f32.mrb[63].mxu0  ;;  %v5966_v34 = vpack.c.bf16 %v3681_v52, %v3677_v44  ;;  %v5968_v29 = vpack.c.bf16 %v3690_v8, %v3686_v38  ;;  %v3715_v54 = vld [vmem:[#allocation17 + $0x340] sm:$0xff]  ;;  %v3717_v44 = vld [vmem:[#allocation17 + $0x350] sm:$0xff]  ;;  %v5732_v8 = vpack.c.bf16 %v3728_v56, %v3724_v58 }
 0x8ae   :  { %v5153_v21 = vadd.f32 %v5152_v19, %v5151_v13  ;;  %3529 = vxpose.xlu0.b32.cont [7/8] (short) %v3521_v31, 128  ;;  %v3649_v31 = vld [vmem:[#allocation17 + $0x130] sm:$0xff]  ;;  %v3652_v13 = vld [vmem:[#allocation17 + $0x148] sm:$0xff]  ;;  %5949 = vmatprep.subr.bf16.mxu1 %v5948_v23  ;;  %v3719_v39 = vld [vmem:[#allocation17 + $0x360] sm:$0xff] }
 0x8af   :  { %v3656_v19 = vld [vmem:[#allocation17 + $0x168] sm:$0xff]  ;;  %v5950_v35 = vpack.c.bf16 %v3649_v31, %v3645_v48  ;;  %5695 = vmatpush1.bf16.msra.mxu0 %v5694_v32  ;;  %v3689_v48 = vld [vmem:[#allocation17 + $0x270] sm:$0xff] }
 0x8b0   :  { %v3522_v60 = vmax.f32 %v5153_v21, 0.0  ;;  %v3654_v21 = vld [vmem:[#allocation17 + $0x158] sm:$0xff]  ;;  %v5696_v63 = vpack.c.bf16 %v3656_v19, %v3652_v13  ;;  %v3692_v23 = vld [vmem:[#allocation17 + $0x288] sm:$0xff]  ;;  %v3721_v52 = vld [vmem:[#allocation17 + $0x370] sm:$0xff] }
 0x8b1   :  { %5951 = vmatpush1.bf16.msra.mxu1 %v5950_v35  ;;  %v3696_v31 = vld [vmem:[#allocation17 + $0x2a8] sm:$0xff]  ;;  %v3694_v13 = vld [vmem:[#allocation17 + $0x298] sm:$0xff]  ;;  %v3691_v35 = vld [vmem:[#allocation17 + $0x280] sm:$0xff]  ;;  %v5986_v38 = vpack.c.bf16 %v3721_v52, %v3717_v44 }
 0x8b2   :  { %3530 = vxpose.xlu0.b32.end [8/8] (short) %v3522_v60, 128  ;;  %v3658_v60 = vld [vmem:[#allocation17 + $0x178] sm:$0xff]  ;;  %5697 = vmatprep.subr.bf16.mxu0 %v5696_v63  ;;  %v5716_v32 = vpack.c.bf16 %v3696_v31, %v3692_v23  ;;  %v3695_v63 = vld [vmem:[#allocation17 + $0x2a0] sm:$0xff]  ;;  %v3729_v23 = vld [vmem:[#allocation17 + $0x3b0] sm:$0xff] }
 0x8b3   :  { %v5952_v46 = vpack.c.bf16 %v3658_v60, %v3654_v21  ;;  %5699 = vmatpush1.bf16.msra.mxu0 %v5698_v62  ;;  %v3698_v19 = vld [vmem:[#allocation17 + $0x2b8] sm:$0xff]  ;;  %v5714_v21 = vpack.c.bf16 %v3687_v24, %v3683_v6  ;;  %v5970_v60 = vpack.c.bf16 %v3689_v48, %v3685_v28  ;;  %v5718_v16 = vpack.c.bf16 %v3695_v63, %v3691_v35  ;;  %v3723_v24 = vld [vmem:[#allocation17 + $0x380] sm:$0xff]  ;;  %v3732_v31 = vld [vmem:[#allocation17 + $0x3c8] sm:$0xff] }
 0x8b4   :  { %5701 = vmatprep.subr.bf16.mxu0 %v5700_v2  ;;  %v5972_v30 = vpack.c.bf16 %v3698_v19, %v3694_v13  ;;  %v3703_v2 = vld [vmem:[#allocation17 + $0x2e0] sm:$0xff]  ;;  %v3736_v13 = vld [vmem:[#allocation17 + $0x3e8] sm:$0xff]  ;;  %v3749_v52 = vld [vmem:[#allocation17 + $0x450] sm:$0xff] }
 0x8b5   :  { %5953 = vmatprep.subr.bf16.mxu1 %v5952_v46  ;;  %v3700_v46 = vld [vmem:[#allocation17 + $0x2c8] sm:$0xff]  ;;  %v3727_v28 = vld [vmem:[#allocation17 + $0x3a0] sm:$0xff] }
 0x8b6   :  { %5955 = vmatpush1.bf16.msra.mxu1 %v5954_v55  ;;  %v5720_v62 = vpack.c.bf16 %v3704_v7, %v3700_v46  ;;  %v3699_v55 = vld [vmem:[#allocation17 + $0x2c0] sm:$0xff]  ;;  %v5734_v48 = vpack.c.bf16 %v3727_v28, %v3723_v24 }
 0x8b7   :  { %5957 = vmatprep.subr.bf16.mxu1 %v5956_v36  ;;  %5703 = vmatpush1.bf16.msra.mxu0 %v5702_v27  ;;  %v3708_v36 = vld [vmem:[#allocation17 + $0x308] sm:$0xff]  ;;  %v5722_v42 = vpack.c.bf16 %v3703_v2, %v3699_v55  ;;  %v3731_v35 = vld [vmem:[#allocation17 + $0x3c0] sm:$0xff]  ;;  %v3746_v55 = vld [vmem:[#allocation17 + $0x438] sm:$0xff] }
 0x8b8   :  { %5705 = vmatprep.subr.bf16.mxu0 %v5704_v17  ;;  %v5724_v27 = vpack.c.bf16 %v3712_v59, %v3708_v36  ;;  %v3711_v17 = vld [vmem:[#allocation17 + $0x320] sm:$0xff]  ;;  %v5738_v7 = vpack.c.bf16 %v3735_v22, %v3731_v35  ;;  %v3770_v35 = vld [vmem:[#allocation17 + $0x4f8] sm:$0xff] }
 0x8b9   :  { %v3747_v44 = vld [vmem:[#allocation17 + $0x440] sm:$0xff] }
 0x8ba   :  { %5959 = vmatpush1.bf16.msra.mxu1 %v5958_v4  ;;  %v3707_v4 = vld [vmem:[#allocation17 + $0x300] sm:$0xff] }
 0x8bb   :  { %5961 = vmatprep.subr.bf16.mxu1 %v5960_v9  ;;  %5707 = vmatpush1.bf16.msra.mxu0 %v5706_v49  ;;  %v3716_v9 = vld [vmem:[#allocation17 + $0x348] sm:$0xff]  ;;  %v5726_v14 = vpack.c.bf16 %v3711_v17, %v3707_v4 }
 0x8bc   :  { %5709 = vmatprep.subr.bf16.mxu0 %v5708_v15  ;;  %v5728_v49 = vpack.c.bf16 %v3720_v0, %v3716_v9  ;;  %v3739_v9 = vld [vmem:[#allocation17 + $0x400] sm:$0xff] }
 0x8bd   :  { %v3743_v0 = vld [vmem:[#allocation17 + $0x420] sm:$0xff] }
 0x8be   :  { %5963 = vmatpush1.bf16.msra.mxu1 %v5962_v43  ;;  %v5984_v43 = vpack.c.bf16 %v3722_v51, %v3718_v20  ;;  %v3741_v20 = vld [vmem:[#allocation17 + $0x410] sm:$0xff] }
 0x8bf   :  { %5965 = vmatprep.subr.bf16.mxu1 %v5964_v33  ;;  %5711 = vmatpush1.bf16.msra.mxu0 %v5710_v61  ;;  %v5730_v33 = vpack.c.bf16 %v3719_v39, %v3715_v54  ;;  %v3726_v61 = vld [vmem:[#allocation17 + $0x398] sm:$0xff]  ;;  %v3745_v51 = vld [vmem:[#allocation17 + $0x430] sm:$0xff]  ;;  %v5742_v54 = vpack.c.bf16 %v3743_v0, %v3739_v9  ;;  %v3779_v0 = vld [vmem:[#allocation17 + $0x540] sm:$0xff] }
 0x8c0   :  { %5713 = vmatprep.subr.bf16.mxu0 %v5712_v25  ;;  %v5998_v39 = vpack.c.bf16 %v3745_v51, %v3741_v20  ;;  %v3783_v20 = vld [vmem:[#allocation17 + $0x560] sm:$0xff] }
 0x8c2   :  { %5967 = vmatpush1.bf16.msra.mxu1 %v5966_v34  ;;  %v3730_v34 = vld [vmem:[#allocation17 + $0x3b8] sm:$0xff] }
 0x8c3   :  { %5969 = vmatprep.subr.bf16.mxu1 %v5968_v29  ;;  %5715 = vmatpush1.bf16.msra.mxu0 %v5714_v21  ;;  %v5988_v25 = vpack.c.bf16 %v3730_v34, %v3726_v61  ;;  %v3725_v29 = vld [vmem:[#allocation17 + $0x390] sm:$0xff]  ;;  %v5736_v21 = vpack.c.bf16 %v3736_v13, %v3732_v31  ;;  %v3760_v61 = vld [vmem:[#allocation17 + $0x4a8] sm:$0xff] }
 0x8c4   :  { %5717 = vmatprep.subr.bf16.mxu0 %v5716_v32  ;;  %v5990_v19 = vpack.c.bf16 %v3729_v23, %v3725_v29  ;;  %v3738_v32 = vld [vmem:[#allocation17 + $0x3f8] sm:$0xff]  ;;  %v3755_v29 = vld [vmem:[#allocation17 + $0x480] sm:$0xff]  ;;  %v3757_v13 = vld [vmem:[#allocation17 + $0x490] sm:$0xff] }
 0x8c6   :  { %5971 = vmatpush1.bf16.msra.mxu1 %v5970_v60  ;;  %v3734_v60 = vld [vmem:[#allocation17 + $0x3d8] sm:$0xff] }
 0x8c7   :  { %5973 = vmatprep.subr.bf16.mxu1 %v5972_v30  ;;  %5719 = vmatpush1.bf16.msra.mxu0 %v5718_v16  ;;  %v5992_v63 = vpack.c.bf16 %v3738_v32, %v3734_v60  ;;  %v3733_v30 = vld [vmem:[#allocation17 + $0x3d0] sm:$0xff]  ;;  %v3744_v16 = vld [vmem:[#allocation17 + $0x428] sm:$0xff]  ;;  %v3766_v32 = vld [vmem:[#allocation17 + $0x4d8] sm:$0xff] }
 0x8c8   :  { %5721 = vmatprep.subr.bf16.mxu0 %v5720_v62  ;;  %v5994_v53 = vpack.c.bf16 %v3737_v10, %v3733_v30  ;;  %v5740_v62 = vpack.c.bf16 %v3744_v16, %v3740_v50  ;;  %v3768_v60 = vld [vmem:[#allocation17 + $0x4e8] sm:$0xff]  ;;  %v3763_v10 = vld [vmem:[#allocation17 + $0x4c0] sm:$0xff]  ;;  %v3765_v50 = vld [vmem:[#allocation17 + $0x4d0] sm:$0xff] }
 0x8c9   :  { %v3769_v16 = vld [vmem:[#allocation17 + $0x4f0] sm:$0xff] }
 0x8ca   :  { %5975 = vmatpush1.bf16.msra.mxu1 %v5974_v45  ;;  %v3742_v45 = vld [vmem:[#allocation17 + $0x418] sm:$0xff] }
 0x8cb   :  { %5977 = vmatprep.subr.bf16.mxu1 %v5976_v40  ;;  %5723 = vmatpush1.bf16.msra.mxu0 %v5722_v42  ;;  %v5996_v2 = vpack.c.bf16 %v3746_v55, %v3742_v45  ;;  %v3772_v45 = vld [vmem:[#allocation17 + $0x508] sm:$0xff]  ;;  %v3774_v55 = vld [vmem:[#allocation17 + $0x518] sm:$0xff] }
 0x8cc   :  { %5725 = vmatprep.subr.bf16.mxu0 %v5724_v27 }
 0x8ce   :  { %5979 = vmatpush1.bf16.msra.mxu1 %v5978_v3 }
 0x8cf   :  { %5981 = vmatprep.subr.bf16.mxu1 %v5980_v12  ;;  %5727 = vmatpush1.bf16.msra.mxu0 %v5726_v14  ;;  %v3748_v14 = vld [vmem:[#allocation17 + $0x448] sm:$0xff] }
 0x8d0   :  { %5729 = vmatprep.subr.bf16.mxu0 %v5728_v49 }
 0x8d2   :  { %5983 = vmatpush1.bf16.msra.mxu1 %v5982_v1  ;;  %v3752_v1 = vld [vmem:[#allocation17 + $0x468] sm:$0xff] }
 0x8d3   :  { %5985 = vmatprep.subr.bf16.mxu1 %v5984_v43  ;;  %5731 = vmatpush1.bf16.msra.mxu0 %v5730_v33  ;;  %v3750_v43 = vld [vmem:[#allocation17 + $0x458] sm:$0xff]  ;;  %v3751_v33 = vld [vmem:[#allocation17 + $0x460] sm:$0xff]  ;;  %v5744_v58 = vpack.c.bf16 %v3752_v1, %v3748_v14  ;;  %v3781_v1 = vld [vmem:[#allocation17 + $0x550] sm:$0xff] }
 0x8d4   :  { %5733 = vmatprep.subr.bf16.mxu0 %v5732_v8  ;;  %v3756_v8 = vld [vmem:[#allocation17 + $0x488] sm:$0xff]  ;;  %v5746_v24 = vpack.c.bf16 %v3751_v33, %v3747_v44  ;;  %v5762_v44 = vpack.c.bf16 %v3783_v20, %v3779_v0  ;;  %v3819_v0 = vld [vmem:[#allocation17 + $0x680] sm:$0xff] }
 0x8d5   :  { %v5748_v23 = vpack.c.bf16 %v3760_v61, %v3756_v8  ;;  %v3789_v8 = vld [vmem:[#allocation17 + $0x590] sm:$0xff]  ;;  %v3823_v20 = vld [vmem:[#allocation17 + $0x6a0] sm:$0xff] }
 0x8d6   :  { %5987 = vmatpush1.bf16.msra.mxu1 %v5986_v38  ;;  %v3753_v38 = vld [vmem:[#allocation17 + $0x470] sm:$0xff] }
 0x8d7   :  { %5989 = vmatprep.subr.bf16.mxu1 %v5988_v25  ;;  %5735 = vmatpush1.bf16.msra.mxu0 %v5734_v48  ;;  %v3758_v25 = vld [vmem:[#allocation17 + $0x498] sm:$0xff]  ;;  %v6002_v28 = vpack.c.bf16 %v3753_v38, %v3749_v52  ;;  %v3759_v48 = vld [vmem:[#allocation17 + $0x4a0] sm:$0xff]  ;;  %v3793_v61 = vld [vmem:[#allocation17 + $0x5b0] sm:$0xff] }
 0x8d8   :  { %5737 = vmatprep.subr.bf16.mxu0 %v5736_v21  ;;  %v3764_v21 = vld [vmem:[#allocation17 + $0x4c8] sm:$0xff]  ;;  %v5750_v22 = vpack.c.bf16 %v3759_v48, %v3755_v29  ;;  %v3787_v52 = vld [vmem:[#allocation17 + $0x580] sm:$0xff]  ;;  %v6022_v48 = vpack.c.bf16 %v3793_v61, %v3789_v8  ;;  %v3829_v8 = vld [vmem:[#allocation17 + $0x6d0] sm:$0xff] }
 0x8d9   :  { %v3833_v61 = vld [vmem:[#allocation17 + $0x6f0] sm:$0xff] }
 0x8da   :  { %5991 = vmatpush1.bf16.msra.mxu1 %v5990_v19  ;;  %v3761_v19 = vld [vmem:[#allocation17 + $0x4b0] sm:$0xff] }
 0x8db   :  { %5993 = vmatprep.subr.bf16.mxu1 %v5992_v63  ;;  %5739 = vmatpush1.bf16.msra.mxu0 %v5738_v7  ;;  %v6006_v30 = vpack.c.bf16 %v3761_v19, %v3757_v13  ;;  %v5752_v7 = vpack.c.bf16 %v3768_v60, %v3764_v21  ;;  %v3797_v21 = vld [vmem:[#allocation17 + $0x5d0] sm:$0xff] }
 0x8dc   :  { %5741 = vmatprep.subr.bf16.mxu0 %v5740_v62  ;;  %v3776_v62 = vld [vmem:[#allocation17 + $0x528] sm:$0xff]  ;;  %v3801_v60 = vld [vmem:[#allocation17 + $0x5f0] sm:$0xff] }
 0x8de   :  { %5995 = vmatpush1.bf16.msra.mxu1 %v5994_v53  ;;  %v6008_v53 = vpack.c.bf16 %v3770_v35, %v3766_v32  ;;  %v3804_v32 = vld [vmem:[#allocation17 + $0x608] sm:$0xff] }
 0x8df   :  { %5997 = vmatprep.subr.bf16.mxu1 %v5996_v2  ;;  %v3778_v2 = vld [vmem:[#allocation17 + $0x538] sm:$0xff]  ;;  %v3808_v35 = vld [vmem:[#allocation17 + $0x628] sm:$0xff] }
 0x916   :  { %v3539_v15 = vpop.trf.xlu0 }
 0x917   :  { %3555 = vst.msk [vmem:[#allocation5] sm:$0xff] %vm205_vm0, %v3539_v15  ;;  %v3754_v15 = vld [vmem:[#allocation17 + $0x478] sm:$0xff] }
 0x918   :  { %v6000_v56 = vpack.c.bf16 %v3754_v15, %v3750_v43  ;;  %v3788_v43 = vld [vmem:[#allocation17 + $0x588] sm:$0xff] }
 0x919   :  { %v3792_v15 = vld [vmem:[#allocation17 + $0x5a8] sm:$0xff] }
 0x91a   :  { %v3540_v6 = vpop.trf.xlu0 }
 0x91e   :  { %v3541_v46 = vpop.trf.xlu0 }
 0x91f   :  { %3561 = vst.msk [vmem:[#allocation5 + $0x8] sm:$0xff] %vm205_vm0, %v3541_v46  ;;  %v3767_v46 = vld [vmem:[#allocation17 + $0x4e0] sm:$0xff] }
 0x922   :  { %v3542_v18 = vpop.trf.xlu0 }
 0x923   :  { %3563 = vrot.lane.b32.xlu1 %v3542_v18, %s7184_s16 }
 0x926   :  { %v3543_v40 = vpop.trf.xlu0 }
 0x927   :  { %3557 = vrot.lane.b32.xlu1 %v3540_v6, %s7184_s16  ;;  %3567 = vst.msk [vmem:[#allocation5 + $0x10] sm:$0xff] %vm205_vm0, %v3543_v40  ;;  %v3762_v6 = vld [vmem:[#allocation17 + $0x4b8] sm:$0xff]  ;;  %v5754_v40 = vpack.c.bf16 %v3767_v46, %v3763_v10  ;;  %v6026_v46 = vpack.c.bf16 %v3801_v60, %v3797_v21  ;;  %v3837_v21 = vld [vmem:[#allocation17 + $0x710] sm:$0xff] }
 0x928   :  { %v6004_v31 = vpack.c.bf16 %v3762_v6, %v3758_v25  ;;  %v3800_v25 = vld [vmem:[#allocation17 + $0x5e8] sm:$0xff]  ;;  %v3798_v6 = vld [vmem:[#allocation17 + $0x5d8] sm:$0xff]  ;;  %v3841_v60 = vld [vmem:[#allocation17 + $0x730] sm:$0xff] }
 0x92a   :  { %v3544_v26 = vpop.trf.xlu0 }
 0x92e   :  { %v3545_v36 = vpop.trf.xlu0 }
 0x92f   :  { %3573 = vst.msk [vmem:[#allocation5 + $0x18] sm:$0xff] %vm205_vm0, %v3545_v36  ;;  %v3771_v36 = vld [vmem:[#allocation17 + $0x500] sm:$0xff] }
 0x932   :  { %v3546_v59 = vpop.trf.xlu0 }
 0x933   :  { %3575 = vrot.lane.b32.xlu1 %v3546_v59, %s7184_s16  ;;  %v3775_v59 = vld [vmem:[#allocation17 + $0x520] sm:$0xff] }
 0x936   :  { %v3547_v5 = vpop.trf.xlu0 }
 0x937   :  { %3569 = vrot.lane.b32.xlu1 %v3544_v26, %s7184_s16  ;;  %3579 = vst.msk [vmem:[#allocation5 + $0x20] sm:$0xff] %vm205_vm0, %v3547_v5  ;;  %v6010_v26 = vpack.c.bf16 %v3769_v16, %v3765_v50  ;;  %v3773_v5 = vld [vmem:[#allocation17 + $0x510] sm:$0xff]  ;;  %v5772_v50 = vpack.c.bf16 %v3808_v35, %v3804_v32  ;;  %v3844_v32 = vld [vmem:[#allocation17 + $0x748] sm:$0xff] }
 0x938   :  { %v3848_v35 = vld [vmem:[#allocation17 + $0x768] sm:$0xff] }
 0x93a   :  { %v3548_v11 = vpop.trf.xlu0 }
 0x93e   :  { %v3549_v42 = vpop.trf.xlu0 }
 0x93f   :  { %3585 = vst.msk [vmem:[#allocation5 + $0x28] sm:$0xff] %vm205_vm0, %v3549_v42  ;;  %v6012_v42 = vpack.c.bf16 %v3778_v2, %v3774_v55  ;;  %v3812_v55 = vld [vmem:[#allocation17 + $0x648] sm:$0xff] }
 0x940   :  { %v3816_v2 = vld [vmem:[#allocation17 + $0x668] sm:$0xff] }
 0x942   :  { %v3550_v3 = vpop.trf.xlu0 }
 0x943   :  { %3587 = vrot.lane.b32.xlu1 %v3550_v3, %s7184_s16  ;;  %v3777_v3 = vld [vmem:[#allocation17 + $0x530] sm:$0xff] }
 0x944   :  { %v6014_v9 = vpack.c.bf16 %v3777_v3, %v3773_v5  ;;  %v3815_v5 = vld [vmem:[#allocation17 + $0x660] sm:$0xff]  ;;  %v3813_v3 = vld [vmem:[#allocation17 + $0x650] sm:$0xff] }
 0x946   :  { %v3551_v27 = vpop.trf.xlu0 }
 0x947   :  { %3581 = vrot.lane.b32.xlu1 %v3548_v11, %s7184_s16  ;;  %3591 = vst.msk [vmem:[#allocation5 + $0x30] sm:$0xff] %vm205_vm0, %v3551_v27  ;;  %v5756_v11 = vpack.c.bf16 %v3776_v62, %v3772_v45  ;;  %v3780_v27 = vld [vmem:[#allocation17 + $0x548] sm:$0xff]  ;;  %v3805_v45 = vld [vmem:[#allocation17 + $0x610] sm:$0xff] }
 0x948   :  { %v3809_v62 = vld [vmem:[#allocation17 + $0x630] sm:$0xff] }
 0x94a   :  { %v3552_v4 = vpop.trf.xlu0 }
 0x94e   :  { %v3553_v17 = vpop.trf.xlu0 }
 0x94f   :  { %3597 = vst.msk [vmem:[#allocation5 + $0x38] sm:$0xff] %vm205_vm0, %v3553_v17  ;;  %v3782_v17 = vld [vmem:[#allocation17 + $0x558] sm:$0xff] }
 0x952   :  { %v3554_v41 = vpop.trf.xlu0 }
 0x953   :  { %3599 = vrot.lane.b32.xlu1 %v3554_v41, %s7184_s16  ;;  %v3786_v41 = vld [vmem:[#allocation17 + $0x578] sm:$0xff] }
 0x954   :  { %v6016_v14 = vpack.c.bf16 %v3786_v41, %v3782_v17  ;;  %v3824_v17 = vld [vmem:[#allocation17 + $0x6a8] sm:$0xff]  ;;  %v3822_v41 = vld [vmem:[#allocation17 + $0x698] sm:$0xff] }
 0x957   :  { %3593 = vrot.lane.b32.xlu1 %v3552_v4, %s7184_s16  ;;  %v3784_v4 = vld [vmem:[#allocation17 + $0x568] sm:$0xff] }
 0x958   :  { %v5760_v51 = vpack.c.bf16 %v3784_v4, %v3780_v27  ;;  %v3817_v27 = vld [vmem:[#allocation17 + $0x670] sm:$0xff]  ;;  %v3820_v4 = vld [vmem:[#allocation17 + $0x688] sm:$0xff] }
 0x995   :  { %v3564_v12 = vpop.permute.xlu1 %3563 }
 0x996   :  { %3566 = vst.msk [vmem:[#allocation5 + $0x8] sm:$0xff] %vm231_vm1, %v3564_v12 }
 0x999   :  { %v3558_v57 = vpop.permute.xlu1 %3557 }
 0x99a   :  { %3560 = vst.msk [vmem:[#allocation5] sm:$0xff] %vm231_vm1, %v3558_v57  ;;  %v5758_v57 = vpack.c.bf16 %v3775_v59, %v3771_v36  ;;  %v6030_v36 = vpack.c.bf16 %v3809_v62, %v3805_v45  ;;  %v3811_v59 = vld [vmem:[#allocation17 + $0x640] sm:$0xff]  ;;  %v3845_v45 = vld [vmem:[#allocation17 + $0x750] sm:$0xff] }
 0x99b   :  { %v3849_v62 = vld [vmem:[#allocation17 + $0x770] sm:$0xff] }
 0x99d   :  { %v3604_v49 = vld [vmem:[#allocation5 + $0x8] sm:$0xff] }
 0x99e   :  { %4209 = vmatprep.mubr.f32.mxu0 %v3604_v49  ;;  %4493 = vmatprep.mubr.f32.mxu1 %v3604_v49  ;;  %v3785_v49 = vld [vmem:[#allocation17 + $0x570] sm:$0xff] }
 0x99f   :  { %v6018_v33 = vpack.c.bf16 %v3785_v49, %v3781_v1  ;;  %v3821_v1 = vld [vmem:[#allocation17 + $0x690] sm:$0xff] }
 0x9a0   :  { %v3825_v49 = vld [vmem:[#allocation17 + $0x6b0] sm:$0xff] }
 0x9a1   :  { %v3603_v34 = vld [vmem:[#allocation5] sm:$0xff] }
 0x9a2   :  { %4210 = vmatmul.mubr.f32.vlgmr.msra.gmra.mrb[64].mxu0 %v3603_v34  ;;  %4494 = vmatmul.mubr.f32.vlgmr.msra.gmra.mrb[48].mxu1 %v3603_v34  ;;  %v3796_v34 = vld [vmem:[#allocation17 + $0x5c8] sm:$0xff] }
 0x9a3   :  { %5743 = vmatpush1.bf16.msra.mxu0 %v5742_v54  ;;  %5999 = vmatpush1.bf16.msra.mxu1 %v5998_v39  ;;  %v3790_v54 = vld [vmem:[#allocation17 + $0x598] sm:$0xff]  ;;  %v5768_v13 = vpack.c.bf16 %v3800_v25, %v3796_v34  ;;  %v3836_v34 = vld [vmem:[#allocation17 + $0x708] sm:$0xff] }
 0x9a4   :  { %5745 = vmatprep.subr.bf16.mxu0 %v5744_v58  ;;  %6001 = vmatprep.subr.bf16.mxu1 %v6000_v56  ;;  %v3794_v39 = vld [vmem:[#allocation17 + $0x5b8] sm:$0xff]  ;;  %v3791_v58 = vld [vmem:[#allocation17 + $0x5a0] sm:$0xff]  ;;  %v5764_v56 = vpack.c.bf16 %v3792_v15, %v3788_v43  ;;  %v3828_v43 = vld [vmem:[#allocation17 + $0x6c8] sm:$0xff] }
 0x9a5   :  { %v3576_v63 = vpop.permute.xlu1 %3575  ;;  %v6020_v38 = vpack.c.bf16 %v3794_v39, %v3790_v54  ;;  %v5766_v29 = vpack.c.bf16 %v3791_v58, %v3787_v52  ;;  %v3832_v15 = vld [vmem:[#allocation17 + $0x6e8] sm:$0xff]  ;;  %v3830_v54 = vld [vmem:[#allocation17 + $0x6d8] sm:$0xff]  ;;  %v3827_v52 = vld [vmem:[#allocation17 + $0x6c0] sm:$0xff] }
 0x9a6   :  { %3578 = vst.msk [vmem:[#allocation5 + $0x18] sm:$0xff] %vm231_vm1, %v3576_v63  ;;  %v3806_v63 = vld [vmem:[#allocation17 + $0x618] sm:$0xff]  ;;  %v3831_v58 = vld [vmem:[#allocation17 + $0x6e0] sm:$0xff]  ;;  %v3840_v25 = vld [vmem:[#allocation17 + $0x728] sm:$0xff] }
 0x9a7   :  { %5747 = vmatpush1.bf16.msra.mxu0 %v5746_v24  ;;  %6003 = vmatpush1.bf16.msra.mxu1 %v6002_v28  ;;  %v3802_v24 = vld [vmem:[#allocation17 + $0x5f8] sm:$0xff] }
 0x9a8   :  { %5749 = vmatprep.subr.bf16.mxu0 %v5748_v23  ;;  %6005 = vmatprep.subr.bf16.mxu1 %v6004_v31  ;;  %v3795_v23 = vld [vmem:[#allocation17 + $0x5c0] sm:$0xff]  ;;  %v6024_v19 = vpack.c.bf16 %v3802_v24, %v3798_v6  ;;  %v3834_v39 = vld [vmem:[#allocation17 + $0x6f8] sm:$0xff] }
 0x9a9   :  { %v3570_v18 = vpop.permute.xlu1 %3569  ;;  %v3799_v31 = vld [vmem:[#allocation17 + $0x5e0] sm:$0xff]  ;;  %v3838_v6 = vld [vmem:[#allocation17 + $0x718] sm:$0xff] }
 0x9aa   :  { %3572 = vst.msk [vmem:[#allocation5 + $0x10] sm:$0xff] %vm231_vm1, %v3570_v18  ;;  %v5770_v10 = vpack.c.bf16 %v3799_v31, %v3795_v23  ;;  %v3814_v18 = vld [vmem:[#allocation17 + $0x658] sm:$0xff]  ;;  %v3835_v23 = vld [vmem:[#allocation17 + $0x700] sm:$0xff] }
 0x9ab   :  { %5751 = vmatpush1.bf16.msra.mxu0 %v5750_v22  ;;  %6007 = vmatpush1.bf16.msra.mxu1 %v6006_v30  ;;  %v3810_v22 = vld [vmem:[#allocation17 + $0x638] sm:$0xff]  ;;  %v3839_v31 = vld [vmem:[#allocation17 + $0x720] sm:$0xff] }
 0x9ac   :  { %5753 = vmatprep.subr.bf16.mxu0 %v5752_v7  ;;  %6009 = vmatprep.subr.bf16.mxu1 %v6008_v53  ;;  %v3803_v7 = vld [vmem:[#allocation17 + $0x600] sm:$0xff]  ;;  %v6028_v16 = vpack.c.bf16 %v3810_v22, %v3806_v63  ;;  %v3842_v24 = vld [vmem:[#allocation17 + $0x738] sm:$0xff] }
 0x9ad   :  { %v3606_v12 = vld [vmem:[#allocation5 + $0x18] sm:$0xff]  ;;  %v3807_v53 = vld [vmem:[#allocation17 + $0x620] sm:$0xff] }
 0x9ae   :  { %4280 = vmatprep.mubr.f32.mxu0 %v3606_v12  ;;  %4564 = vmatprep.mubr.f32.mxu1 %v3606_v12  ;;  %v3826_v12 = vld [vmem:[#allocation17 + $0x6b8] sm:$0xff] }
 0x9af   :  { %5755 = vmatpush1.bf16.msra.mxu0 %v5754_v40  ;;  %6011 = vmatpush1.bf16.msra.mxu1 %v6010_v26  ;;  %v3818_v40 = vld [vmem:[#allocation17 + $0x678] sm:$0xff]  ;;  %v5774_v26 = vpack.c.bf16 %v3807_v53, %v3803_v7  ;;  %v3843_v7 = vld [vmem:[#allocation17 + $0x740] sm:$0xff] }
 0x9b0   :  { %5757 = vmatprep.subr.bf16.mxu0 %v5756_v11  ;;  %6013 = vmatprep.subr.bf16.mxu1 %v6012_v42  ;;  %v5776_v11 = vpack.c.bf16 %v3816_v2, %v3812_v55  ;;  %v6032_v42 = vpack.c.bf16 %v3818_v40, %v3814_v18  ;;  %v3846_v63 = vld [vmem:[#allocation17 + $0x758] sm:$0xff]  ;;  %v3847_v53 = vld [vmem:[#allocation17 + $0x760] sm:$0xff]  ;;  %v3852_v55 = vld [vmem:[#allocation17 + $0x788] sm:$0xff] }
 0x9b1   :  { %v3850_v22 = vld [vmem:[#allocation17 + $0x778] sm:$0xff]  ;;  %v3856_v2 = vld [vmem:[#allocation17 + $0x7a8] sm:$0xff] }
 0x9b2   :  { %v3854_v18 = vld [vmem:[#allocation17 + $0x798] sm:$0xff] }
 0x9b3   :  { %5759 = vmatpush1.bf16.msra.mxu0 %v5758_v57  ;;  %6015 = vmatpush1.bf16.msra.mxu1 %v6014_v9  ;;  %v5778_v57 = vpack.c.bf16 %v3815_v5, %v3811_v59  ;;  %v6034_v9 = vpack.c.bf16 %v3817_v27, %v3813_v3  ;;  %v3858_v40 = vld [vmem:[#allocation17 + $0x7b8] sm:$0xff]  ;;  %v3851_v59 = vld [vmem:[#allocation17 + $0x780] sm:$0xff]  ;;  %v3853_v3 = vld [vmem:[#allocation17 + $0x790] sm:$0xff] }
 0x9b4   :  { %5761 = vmatprep.subr.bf16.mxu0 %v5760_v51  ;;  %6017 = vmatprep.subr.bf16.mxu1 %v6016_v14  ;;  %v5780_v51 = vpack.c.bf16 %v3824_v17, %v3820_v4  ;;  %v6036_v14 = vpack.c.bf16 %v3826_v12, %v3822_v41  ;;  %v3855_v5 = vld [vmem:[#allocation17 + $0x7a0] sm:$0xff]  ;;  %v3857_v27 = vld [vmem:[#allocation17 + $0x7b0] sm:$0xff]  ;;  %v3860_v4 = vld [vmem:[#allocation17 + $0x7c8] sm:$0xff] }
 0x9b5   :  { %v3588_v28 = vpop.permute.xlu1 %3587  ;;  %v3864_v17 = vld [vmem:[#allocation17 + $0x7e8] sm:$0xff]  ;;  %v3862_v41 = vld [vmem:[#allocation17 + $0x7d8] sm:$0xff] }
 0x9b6   :  { %3590 = vst.msk [vmem:[#allocation5 + $0x28] sm:$0xff] %vm231_vm1, %v3588_v28  ;;  %v3866_v12 = vld [vmem:[#allocation17 + $0x7f8] sm:$0xff] }
 0x9b7   :  { %5763 = vmatpush1.bf16.msra.mxu0 %v5762_v44  ;;  %6019 = vmatpush1.bf16.msra.mxu1 %v6018_v33  ;;  %v5782_v44 = vpack.c.bf16 %v3823_v20, %v3819_v0  ;;  %v6038_v33 = vpack.c.bf16 %v3825_v49, %v3821_v1  ;;  %v3859_v0 = vld [vmem:[#allocation17 + $0x7c0] sm:$0xff]  ;;  %v3861_v1 = vld [vmem:[#allocation17 + $0x7d0] sm:$0xff] }
 0x9b8   :  { %5765 = vmatprep.subr.bf16.mxu0 %v5764_v56  ;;  %6021 = vmatprep.subr.bf16.mxu1 %v6020_v38  ;;  %v5784_v56 = vpack.c.bf16 %v3832_v15, %v3828_v43  ;;  %v6040_v38 = vpack.c.bf16 %v3834_v39, %v3830_v54  ;;  %v3863_v20 = vld [vmem:[#allocation17 + $0x7e0] sm:$0xff]  ;;  %v3865_v49 = vld [vmem:[#allocation17 + $0x7f0] sm:$0xff]  ;;  %v3868_v43 = vld [vmem:[#allocation17 + $0x808] sm:$0xff] }
 0x9b9   :  { %v3582_v30 = vpop.permute.xlu1 %3581  ;;  %v3872_v15 = vld [vmem:[#allocation17 + $0x828] sm:$0xff]  ;;  %v3870_v54 = vld [vmem:[#allocation17 + $0x818] sm:$0xff] }
 0x9ba   :  { %3584 = vst.msk [vmem:[#allocation5 + $0x20] sm:$0xff] %vm231_vm1, %v3582_v30  ;;  %v3874_v39 = vld [vmem:[#allocation17 + $0x838] sm:$0xff] }
 0x9bb   :  { %5767 = vmatpush1.bf16.msra.mxu0 %v5766_v29  ;;  %6023 = vmatpush1.bf16.msra.mxu1 %v6022_v48  ;;  %v5786_v29 = vpack.c.bf16 %v3831_v58, %v3827_v52  ;;  %v6042_v48 = vpack.c.bf16 %v3833_v61, %v3829_v8  ;;  %v3867_v52 = vld [vmem:[#allocation17 + $0x800] sm:$0xff]  ;;  %v3869_v8 = vld [vmem:[#allocation17 + $0x810] sm:$0xff] }
 0x9bc   :  { %5769 = vmatprep.subr.bf16.mxu0 %v5768_v13  ;;  %6025 = vmatprep.subr.bf16.mxu1 %v6024_v19  ;;  %v5788_v13 = vpack.c.bf16 %v3840_v25, %v3836_v34  ;;  %v6044_v19 = vpack.c.bf16 %v3842_v24, %v3838_v6  ;;  %v3871_v58 = vld [vmem:[#allocation17 + $0x820] sm:$0xff]  ;;  %v3873_v61 = vld [vmem:[#allocation17 + $0x830] sm:$0xff]  ;;  %v3876_v34 = vld [vmem:[#allocation17 + $0x848] sm:$0xff] }
 0x9bd   :  { %v3880_v25 = vld [vmem:[#allocation17 + $0x868] sm:$0xff]  ;;  %v3878_v6 = vld [vmem:[#allocation17 + $0x858] sm:$0xff] }
 0x9be   :  { %v3882_v24 = vld [vmem:[#allocation17 + $0x878] sm:$0xff] }
 0x9bf   :  { %5771 = vmatpush1.bf16.msra.mxu0 %v5770_v10  ;;  %6027 = vmatpush1.bf16.msra.mxu1 %v6026_v46  ;;  %v5790_v10 = vpack.c.bf16 %v3839_v31, %v3835_v23  ;;  %v6046_v46 = vpack.c.bf16 %v3841_v60, %v3837_v21  ;;  %v3879_v23 = vld [vmem:[#allocation17 + $0x860] sm:$0xff]  ;;  %v3877_v31 = vld [vmem:[#allocation17 + $0x850] sm:$0xff]  ;;  %v3884_v60 = vld [vmem:[#allocation17 + $0x888] sm:$0xff] }
 0x9c0   :  { %5773 = vmatprep.subr.bf16.mxu0 %v5772_v50  ;;  %6029 = vmatprep.subr.bf16.mxu1 %v6028_v16  ;;  %v5792_v50 = vpack.c.bf16 %v3848_v35, %v3844_v32  ;;  %v6048_v16 = vpack.c.bf16 %v3850_v22, %v3846_v63  ;;  %v3881_v21 = vld [vmem:[#allocation17 + $0x870] sm:$0xff]  ;;  %v3888_v32 = vld [vmem:[#allocation17 + $0x8a8] sm:$0xff]  ;;  %v3886_v63 = vld [vmem:[#allocation17 + $0x898] sm:$0xff] }
 0x9c1   :  { %v3605_v35 = vld [vmem:[#allocation5 + $0x10] sm:$0xff]  ;;  %v3890_v22 = vld [vmem:[#allocation17 + $0x8b8] sm:$0xff] }
 0x9c3   :  { %5775 = vmatpush1.bf16.msra.mxu0 %v5774_v26  ;;  %6031 = vmatpush1.bf16.msra.mxu1 %v6030_v36  ;;  %v5794_v26 = vpack.c.bf16 %v3847_v53, %v3843_v7  ;;  %v6050_v36 = vpack.c.bf16 %v3849_v62, %v3845_v45  ;;  %v3883_v7 = vld [vmem:[#allocation17 + $0x880] sm:$0xff]  ;;  %v3885_v45 = vld [vmem:[#allocation17 + $0x890] sm:$0xff] }
 0x9c4   :  { %5777 = vmatprep.subr.bf16.mxu0 %v5776_v11  ;;  %6033 = vmatprep.subr.bf16.mxu1 %v6032_v42  ;;  %v5796_v11 = vpack.c.bf16 %v3856_v2, %v3852_v55  ;;  %v6052_v42 = vpack.c.bf16 %v3858_v40, %v3854_v18  ;;  %v3887_v53 = vld [vmem:[#allocation17 + $0x8a0] sm:$0xff]  ;;  %v3889_v62 = vld [vmem:[#allocation17 + $0x8b0] sm:$0xff]  ;;  %v3892_v55 = vld [vmem:[#allocation17 + $0x8c8] sm:$0xff] }
 0x9c5   :  { %v3600_v28 = vpop.permute.xlu1 %3599  ;;  %v3896_v2 = vld [vmem:[#allocation17 + $0x8e8] sm:$0xff]  ;;  %v3894_v18 = vld [vmem:[#allocation17 + $0x8d8] sm:$0xff] }
 0x9c6   :  { %3602 = vst.msk [vmem:[#allocation5 + $0x38] sm:$0xff] %vm231_vm1, %v3600_v28  ;;  %v5806_v28 = vpack.c.bf16 %v3871_v58, %v3867_v52  ;;  %v3898_v40 = vld [vmem:[#allocation17 + $0x8f8] sm:$0xff]  ;;  %v3907_v52 = vld [vmem:[#allocation17 + $0x940] sm:$0xff] }
 0x9c7   :  { %5779 = vmatpush1.bf16.msra.mxu0 %v5778_v57  ;;  %6035 = vmatpush1.bf16.msra.mxu1 %v6034_v9  ;;  %v5798_v57 = vpack.c.bf16 %v3855_v5, %v3851_v59  ;;  %v6054_v9 = vpack.c.bf16 %v3857_v27, %v3853_v3  ;;  %v3891_v59 = vld [vmem:[#allocation17 + $0x8c0] sm:$0xff]  ;;  %v3893_v3 = vld [vmem:[#allocation17 + $0x8d0] sm:$0xff] }
 0x9c8   :  { %5781 = vmatprep.subr.bf16.mxu0 %v5780_v51  ;;  %6037 = vmatprep.subr.bf16.mxu1 %v6036_v14  ;;  %v5800_v51 = vpack.c.bf16 %v3864_v17, %v3860_v4  ;;  %v6056_v14 = vpack.c.bf16 %v3866_v12, %v3862_v41  ;;  %v3895_v5 = vld [vmem:[#allocation17 + $0x8e0] sm:$0xff]  ;;  %v3897_v27 = vld [vmem:[#allocation17 + $0x8f0] sm:$0xff]  ;;  %v3900_v4 = vld [vmem:[#allocation17 + $0x908] sm:$0xff] }
 0x9c9   :  { %v3594_v30 = vpop.permute.xlu1 %3593  ;;  %v3904_v17 = vld [vmem:[#allocation17 + $0x928] sm:$0xff]  ;;  %v3902_v41 = vld [vmem:[#allocation17 + $0x918] sm:$0xff]  ;;  %v3911_v58 = vld [vmem:[#allocation17 + $0x960] sm:$0xff] }
 0x9ca   :  { %3596 = vst.msk [vmem:[#allocation5 + $0x30] sm:$0xff] %vm231_vm1, %v3594_v30  ;;  %v3608_v30 = vld [vmem:[#allocation5 + $0x28] sm:$0xff]  ;;  %v3906_v12 = vld [vmem:[#allocation17 + $0x938] sm:$0xff] }
 0x9cb   :  { %5783 = vmatpush1.bf16.msra.mxu0 %v5782_v44  ;;  %6039 = vmatpush1.bf16.msra.mxu1 %v6038_v33  ;;  %v5802_v44 = vpack.c.bf16 %v3863_v20, %v3859_v0  ;;  %v6058_v33 = vpack.c.bf16 %v3865_v49, %v3861_v1  ;;  %v3899_v0 = vld [vmem:[#allocation17 + $0x900] sm:$0xff]  ;;  %v3901_v1 = vld [vmem:[#allocation17 + $0x910] sm:$0xff] }
 0x9cc   :  { %5785 = vmatprep.subr.bf16.mxu0 %v5784_v56  ;;  %6041 = vmatprep.subr.bf16.mxu1 %v6040_v38  ;;  %v5804_v56 = vpack.c.bf16 %v3872_v15, %v3868_v43  ;;  %v6060_v38 = vpack.c.bf16 %v3874_v39, %v3870_v54  ;;  %v3903_v20 = vld [vmem:[#allocation17 + $0x920] sm:$0xff]  ;;  %v3905_v49 = vld [vmem:[#allocation17 + $0x930] sm:$0xff]  ;;  %v3908_v43 = vld [vmem:[#allocation17 + $0x948] sm:$0xff] }
 0x9cd   :  { %v3912_v15 = vld [vmem:[#allocation17 + $0x968] sm:$0xff]  ;;  %v3910_v54 = vld [vmem:[#allocation17 + $0x958] sm:$0xff] }
 0x9ce   :  { %v3914_v39 = vld [vmem:[#allocation17 + $0x978] sm:$0xff] }
 0x9cf   :  { %5787 = vmatpush1.bf16.msra.mxu0 %v5786_v29  ;;  %6043 = vmatpush1.bf16.msra.mxu1 %v6042_v48  ;;  %v6062_v29 = vpack.c.bf16 %v3873_v61, %v3869_v8  ;;  %v3875_v48 = vld [vmem:[#allocation17 + $0x840] sm:$0xff]  ;;  %v3909_v8 = vld [vmem:[#allocation17 + $0x950] sm:$0xff] }
 0x9d0   :  { %5789 = vmatprep.subr.bf16.mxu0 %v5788_v13  ;;  %6045 = vmatprep.subr.bf16.mxu1 %v6044_v19  ;;  %v5808_v13 = vpack.c.bf16 %v3880_v25, %v3876_v34  ;;  %v6064_v19 = vpack.c.bf16 %v3882_v24, %v3878_v6  ;;  %v3913_v61 = vld [vmem:[#allocation17 + $0x970] sm:$0xff]  ;;  %v3916_v34 = vld [vmem:[#allocation17 + $0x988] sm:$0xff]  ;;  %v3918_v6 = vld [vmem:[#allocation17 + $0x998] sm:$0xff] }
 0x9d1   :  { %v3920_v25 = vld [vmem:[#allocation17 + $0x9a8] sm:$0xff]  ;;  %v3922_v24 = vld [vmem:[#allocation17 + $0x9b8] sm:$0xff] }
 0x9d3   :  { %5791 = vmatpush1.bf16.msra.mxu0 %v5790_v10  ;;  %6047 = vmatpush1.bf16.msra.mxu1 %v6046_v46  ;;  %v5810_v10 = vpack.c.bf16 %v3879_v23, %v3875_v48  ;;  %v6066_v46 = vpack.c.bf16 %v3881_v21, %v3877_v31  ;;  %v3915_v48 = vld [vmem:[#allocation17 + $0x980] sm:$0xff]  ;;  %v5828_v31 = vpack.c.bf16 %v3920_v25, %v3916_v34  ;;  %v3921_v21 = vld [vmem:[#allocation17 + $0x9b0] sm:$0xff]  ;;  %v3958_v34 = vld [vmem:[#allocation17 + $0xad8] sm:$0xff] }
 0x9d4   :  { %5793 = vmatprep.subr.bf16.mxu0 %v5792_v50  ;;  %6049 = vmatprep.subr.bf16.mxu1 %v6048_v16  ;;  %v5812_v50 = vpack.c.bf16 %v3888_v32, %v3884_v60  ;;  %v6068_v16 = vpack.c.bf16 %v3890_v22, %v3886_v63  ;;  %v3919_v23 = vld [vmem:[#allocation17 + $0x9a0] sm:$0xff]  ;;  %v3924_v60 = vld [vmem:[#allocation17 + $0x9c8] sm:$0xff]  ;;  %v3930_v63 = vld [vmem:[#allocation17 + $0x9f8] sm:$0xff] }
 0x9d5   :  { %v3928_v32 = vld [vmem:[#allocation17 + $0x9e8] sm:$0xff]  ;;  %v5830_v22 = vpack.c.bf16 %v3919_v23, %v3915_v48  ;;  %v3962_v25 = vld [vmem:[#allocation17 + $0xaf8] sm:$0xff] }
 0x9d6   :  { %v6104_v23 = vpack.c.bf16 %v3962_v25, %v3958_v34 }
 0x9d7   :  { %5795 = vmatpush1.bf16.msra.mxu0 %v5794_v26  ;;  %6051 = vmatpush1.bf16.msra.mxu1 %v6050_v36  ;;  %v5814_v26 = vpack.c.bf16 %v3887_v53, %v3883_v7  ;;  %v6070_v36 = vpack.c.bf16 %v3889_v62, %v3885_v45  ;;  %v5832_v7 = vpack.c.bf16 %v3928_v32, %v3924_v60  ;;  %v3932_v45 = vld [vmem:[#allocation17 + $0xa08] sm:$0xff]  ;;  %v3966_v60 = vld [vmem:[#allocation17 + $0xb18] sm:$0xff] }
 0x9d8   :  { %5797 = vmatprep.subr.bf16.mxu0 %v5796_v11  ;;  %6053 = vmatprep.subr.bf16.mxu1 %v6052_v42  ;;  %v5816_v11 = vpack.c.bf16 %v3896_v2, %v3892_v55  ;;  %v6072_v42 = vpack.c.bf16 %v3898_v40, %v3894_v18  ;;  %v3936_v62 = vld [vmem:[#allocation17 + $0xa28] sm:$0xff]  ;;  %v3934_v55 = vld [vmem:[#allocation17 + $0xa18] sm:$0xff] }
 0x9d9   :  { %v3938_v2 = vld [vmem:[#allocation17 + $0xa38] sm:$0xff] }
 0x9da   :  { %v3970_v32 = vld [vmem:[#allocation17 + $0xb38] sm:$0xff] }
 0x9db   :  { %5799 = vmatpush1.bf16.msra.mxu0 %v5798_v57  ;;  %6055 = vmatpush1.bf16.msra.mxu1 %v6054_v9  ;;  %v5818_v57 = vpack.c.bf16 %v3895_v5, %v3891_v59  ;;  %v6074_v9 = vpack.c.bf16 %v3897_v27, %v3893_v3  ;;  %v5836_v59 = vpack.c.bf16 %v3936_v62, %v3932_v45  ;;  %v3940_v3 = vld [vmem:[#allocation17 + $0xa48] sm:$0xff]  ;;  %v3974_v45 = vld [vmem:[#allocation17 + $0xb58] sm:$0xff] }
 0x9dc   :  { %5801 = vmatprep.subr.bf16.mxu0 %v5800_v51  ;;  %6057 = vmatprep.subr.bf16.mxu1 %v6056_v14  ;;  %v5820_v51 = vpack.c.bf16 %v3904_v17, %v3900_v4  ;;  %v6076_v14 = vpack.c.bf16 %v3906_v12, %v3902_v41  ;;  %v6092_v5 = vpack.c.bf16 %v3938_v2, %v3934_v55  ;;  %v3944_v27 = vld [vmem:[#allocation17 + $0xa68] sm:$0xff]  ;;  %v3942_v4 = vld [vmem:[#allocation17 + $0xa58] sm:$0xff] }
 0x9dd   :  { %v3946_v17 = vld [vmem:[#allocation17 + $0xa78] sm:$0xff] }
 0x9de   :  { %v3978_v62 = vld [vmem:[#allocation17 + $0xb78] sm:$0xff] }
 0x9df   :  { %5803 = vmatpush1.bf16.msra.mxu0 %v5802_v44  ;;  %6059 = vmatpush1.bf16.msra.mxu1 %v6058_v33  ;;  %v5822_v44 = vpack.c.bf16 %v3903_v20, %v3899_v0  ;;  %v6078_v33 = vpack.c.bf16 %v3905_v49, %v3901_v1  ;;  %v5840_v0 = vpack.c.bf16 %v3944_v27, %v3940_v3  ;;  %v3948_v1 = vld [vmem:[#allocation17 + $0xa88] sm:$0xff]  ;;  %v3982_v3 = vld [vmem:[#allocation17 + $0xb98] sm:$0xff] }
 0x9e0   :  { %5805 = vmatprep.subr.bf16.mxu0 %v5804_v56  ;;  %6061 = vmatprep.subr.bf16.mxu1 %v6060_v38  ;;  %v5824_v56 = vpack.c.bf16 %v3912_v15, %v3908_v43  ;;  %v6080_v38 = vpack.c.bf16 %v3914_v39, %v3910_v54  ;;  %v6096_v20 = vpack.c.bf16 %v3946_v17, %v3942_v4  ;;  %v3952_v49 = vld [vmem:[#allocation17 + $0xaa8] sm:$0xff]  ;;  %v3950_v43 = vld [vmem:[#allocation17 + $0xa98] sm:$0xff] }
 0x9e1   :  { %v3954_v15 = vld [vmem:[#allocation17 + $0xab8] sm:$0xff] }
 0x9e2   :  { %4281 = vmatmul.mubr.f32.vlgmr.msra.gmra.mrb[64].mxu0 %v3605_v35  ;;  %4565 = vmatmul.mubr.f32.vlgmr.msra.gmra.mrb[48].mxu1 %v3605_v35  ;;  %v3926_v35 = vld [vmem:[#allocation17 + $0x9d8] sm:$0xff] }
 0x9e3   :  { %5807 = vmatpush1.bf16.msra.mxu0 %v5806_v28  ;;  %6063 = vmatpush1.bf16.msra.mxu1 %v6062_v29  ;;  %v5826_v28 = vpack.c.bf16 %v3911_v58, %v3907_v52  ;;  %v6082_v29 = vpack.c.bf16 %v3913_v61, %v3909_v8  ;;  %v6088_v53 = vpack.c.bf16 %v3930_v63, %v3926_v35  ;;  %v3956_v8 = vld [vmem:[#allocation17 + $0xac8] sm:$0xff]  ;;  %v3986_v27 = vld [vmem:[#allocation17 + $0xbb8] sm:$0xff] }
 0x9e4   :  { %5809 = vmatprep.subr.bf16.mxu0 %v5808_v13  ;;  %6065 = vmatprep.subr.bf16.mxu1 %v6064_v19  ;;  %v6084_v13 = vpack.c.bf16 %v3922_v24, %v3918_v6  ;;  %v3917_v19 = vld [vmem:[#allocation17 + $0x990] sm:$0xff]  ;;  %v5844_v52 = vpack.c.bf16 %v3952_v49, %v3948_v1  ;;  %v6100_v58 = vpack.c.bf16 %v3954_v15, %v3950_v43  ;;  %v3960_v61 = vld [vmem:[#allocation17 + $0xae8] sm:$0xff]  ;;  %v3990_v1 = vld [vmem:[#allocation17 + $0xbd8] sm:$0xff] }
 0x9e5   :  { %4351 = vmatprep.mubr.f32.mxu0 %v3608_v30  ;;  %4635 = vmatprep.mubr.f32.mxu1 %v3608_v30  ;;  %v6086_v30 = vpack.c.bf16 %v3921_v21, %v3917_v19  ;;  %v5848_v48 = vpack.c.bf16 %v3960_v61, %v3956_v8  ;;  %v3964_v19 = vld [vmem:[#allocation17 + $0xb08] sm:$0xff]  ;;  %v3994_v49 = vld [vmem:[#allocation17 + $0xbf8] sm:$0xff] }
 0x9e6   :  { %v3968_v21 = vld [vmem:[#allocation17 + $0xb28] sm:$0xff]  ;;  %v3998_v8 = vld [vmem:[#allocation17 + $0xc18] sm:$0xff] }
 0x9e7   :  { %5811 = vmatpush1.bf16.msra.mxu0 %v5810_v10  ;;  %6067 = vmatpush1.bf16.msra.mxu1 %v6066_v46  ;;  %v3923_v10 = vld [vmem:[#allocation17 + $0x9c0] sm:$0xff]  ;;  %v4002_v61 = vld [vmem:[#allocation17 + $0xc38] sm:$0xff] }
 0x9e8   :  { %5813 = vmatprep.subr.bf16.mxu0 %v5812_v50  ;;  %6069 = vmatprep.subr.bf16.mxu1 %v6068_v16  ;;  %v3927_v46 = vld [vmem:[#allocation17 + $0x9e0] sm:$0xff]  ;;  %v3925_v50 = vld [vmem:[#allocation17 + $0x9d0] sm:$0xff] }
 0x9e9   :  { %v3929_v16 = vld [vmem:[#allocation17 + $0x9f0] sm:$0xff]  ;;  %v5834_v18 = vpack.c.bf16 %v3927_v46, %v3923_v10  ;;  %v5852_v10 = vpack.c.bf16 %v3968_v21, %v3964_v19  ;;  %v6108_v46 = vpack.c.bf16 %v3970_v32, %v3966_v60  ;;  %v4006_v19 = vld [vmem:[#allocation17 + $0xc58] sm:$0xff] }
 0x9ea   :  { %v6090_v40 = vpack.c.bf16 %v3929_v16, %v3925_v50  ;;  %v3972_v50 = vld [vmem:[#allocation17 + $0xb48] sm:$0xff]  ;;  %v4010_v21 = vld [vmem:[#allocation17 + $0xc78] sm:$0xff] }
 0x9eb   :  { %5815 = vmatpush1.bf16.msra.mxu0 %v5814_v26  ;;  %6071 = vmatpush1.bf16.msra.mxu1 %v6070_v36  ;;  %v3931_v26 = vld [vmem:[#allocation17 + $0xa00] sm:$0xff]  ;;  %v3976_v16 = vld [vmem:[#allocation17 + $0xb68] sm:$0xff] }
 0x9ec   :  { %5817 = vmatprep.subr.bf16.mxu0 %v5816_v11  ;;  %6073 = vmatprep.subr.bf16.mxu1 %v6072_v42  ;;  %v3935_v36 = vld [vmem:[#allocation17 + $0xa20] sm:$0xff]  ;;  %v3933_v11 = vld [vmem:[#allocation17 + $0xa10] sm:$0xff] }
 0x9ed   :  { %v3937_v42 = vld [vmem:[#allocation17 + $0xa30] sm:$0xff]  ;;  %v5838_v41 = vpack.c.bf16 %v3935_v36, %v3931_v26  ;;  %v5856_v26 = vpack.c.bf16 %v3976_v16, %v3972_v50  ;;  %v6112_v36 = vpack.c.bf16 %v3978_v62, %v3974_v45  ;;  %v3607_v50 = vld [vmem:[#allocation5 + $0x20] sm:$0xff]  ;;  %v4014_v16 = vld [vmem:[#allocation17 + $0xc98] sm:$0xff] }
 0x9ee   :  { %v6094_v12 = vpack.c.bf16 %v3937_v42, %v3933_v11  ;;  %v3980_v11 = vld [vmem:[#allocation17 + $0xb88] sm:$0xff]  ;;  %v4018_v45 = vld [vmem:[#allocation17 + $0xcb8] sm:$0xff] }
 0x9ef   :  { %5819 = vmatpush1.bf16.msra.mxu0 %v5818_v57  ;;  %6075 = vmatpush1.bf16.msra.mxu1 %v6074_v9  ;;  %v3939_v57 = vld [vmem:[#allocation17 + $0xa40] sm:$0xff]  ;;  %v3984_v42 = vld [vmem:[#allocation17 + $0xba8] sm:$0xff]  ;;  %v3610_v62 = vld [vmem:[#allocation5 + $0x38] sm:$0xff] }
 0x9f0   :  { %5821 = vmatprep.subr.bf16.mxu0 %v5820_v51  ;;  %6077 = vmatprep.subr.bf16.mxu1 %v6076_v14  ;;  %v3943_v9 = vld [vmem:[#allocation17 + $0xa60] sm:$0xff]  ;;  %v3941_v51 = vld [vmem:[#allocation17 + $0xa50] sm:$0xff] }
 0x9f1   :  { %v3945_v14 = vld [vmem:[#allocation17 + $0xa70] sm:$0xff]  ;;  %v5842_v54 = vpack.c.bf16 %v3943_v9, %v3939_v57  ;;  %v5860_v57 = vpack.c.bf16 %v3984_v42, %v3980_v11  ;;  %v6116_v9 = vpack.c.bf16 %v3986_v27, %v3982_v3  ;;  %v4020_v11 = vld [vmem:[#allocation17 + $0xcc8] sm:$0xff]  ;;  %v4022_v3 = vld [vmem:[#allocation17 + $0xcd8] sm:$0xff] }
 0x9f2   :  { %v6098_v39 = vpack.c.bf16 %v3945_v14, %v3941_v51  ;;  %v3988_v51 = vld [vmem:[#allocation17 + $0xbc8] sm:$0xff]  ;;  %v4026_v27 = vld [vmem:[#allocation17 + $0xcf8] sm:$0xff] }
 0x9f3   :  { %5823 = vmatpush1.bf16.msra.mxu0 %v5822_v44  ;;  %6079 = vmatpush1.bf16.msra.mxu1 %v6078_v33  ;;  %v3947_v44 = vld [vmem:[#allocation17 + $0xa80] sm:$0xff]  ;;  %v3992_v14 = vld [vmem:[#allocation17 + $0xbe8] sm:$0xff] }
 0x9f4   :  { %5825 = vmatprep.subr.bf16.mxu0 %v5824_v56  ;;  %6081 = vmatprep.subr.bf16.mxu1 %v6080_v38  ;;  %v3951_v33 = vld [vmem:[#allocation17 + $0xaa0] sm:$0xff]  ;;  %v3949_v56 = vld [vmem:[#allocation17 + $0xa90] sm:$0xff]  ;;  %v4024_v42 = vld [vmem:[#allocation17 + $0xce8] sm:$0xff] }
 0x9f5   :  { %v3953_v38 = vld [vmem:[#allocation17 + $0xab0] sm:$0xff]  ;;  %v5846_v6 = vpack.c.bf16 %v3951_v33, %v3947_v44  ;;  %v5864_v44 = vpack.c.bf16 %v3992_v14, %v3988_v51  ;;  %v6120_v33 = vpack.c.bf16 %v3994_v49, %v3990_v1  ;;  %v4028_v51 = vld [vmem:[#allocation17 + $0xd08] sm:$0xff]  ;;  %v4030_v1 = vld [vmem:[#allocation17 + $0xd18] sm:$0xff] }
 0x9f6   :  { %v6102_v24 = vpack.c.bf16 %v3953_v38, %v3949_v56  ;;  %v3996_v56 = vld [vmem:[#allocation17 + $0xc08] sm:$0xff]  ;;  %v4034_v49 = vld [vmem:[#allocation17 + $0xd38] sm:$0xff] }
 0x9f7   :  { %5827 = vmatpush1.bf16.msra.mxu0 %v5826_v28  ;;  %6083 = vmatpush1.bf16.msra.mxu1 %v6082_v29  ;;  %v3955_v28 = vld [vmem:[#allocation17 + $0xac0] sm:$0xff]  ;;  %v4000_v38 = vld [vmem:[#allocation17 + $0xc28] sm:$0xff] }
 0x9f8   :  { %5829 = vmatprep.subr.bf16.mxu0 %v5828_v31  ;;  %6085 = vmatprep.subr.bf16.mxu1 %v6084_v13  ;;  %v3959_v29 = vld [vmem:[#allocation17 + $0xae0] sm:$0xff]  ;;  %v3957_v31 = vld [vmem:[#allocation17 + $0xad0] sm:$0xff]  ;;  %v4032_v14 = vld [vmem:[#allocation17 + $0xd28] sm:$0xff] }
 0x9f9   :  { %v3961_v13 = vld [vmem:[#allocation17 + $0xaf0] sm:$0xff]  ;;  %v5850_v35 = vpack.c.bf16 %v3959_v29, %v3955_v28  ;;  %v5868_v28 = vpack.c.bf16 %v4000_v38, %v3996_v56  ;;  %v6124_v29 = vpack.c.bf16 %v4002_v61, %v3998_v8  ;;  %v4036_v56 = vld [vmem:[#allocation17 + $0xd48] sm:$0xff]  ;;  %v4038_v8 = vld [vmem:[#allocation17 + $0xd58] sm:$0xff] }
 0x9fa   :  { %v6106_v63 = vpack.c.bf16 %v3961_v13, %v3957_v31  ;;  %v4004_v31 = vld [vmem:[#allocation17 + $0xc48] sm:$0xff]  ;;  %v4042_v61 = vld [vmem:[#allocation17 + $0xd78] sm:$0xff] }
 0x9fb   :  { %5831 = vmatpush1.bf16.msra.mxu0 %v5830_v22  ;;  %6087 = vmatpush1.bf16.msra.mxu1 %v6086_v30  ;;  %v3963_v22 = vld [vmem:[#allocation17 + $0xb00] sm:$0xff]  ;;  %v4008_v13 = vld [vmem:[#allocation17 + $0xc68] sm:$0xff] }
 0x9fc   :  { %5833 = vmatprep.subr.bf16.mxu0 %v5832_v7  ;;  %6089 = vmatprep.subr.bf16.mxu1 %v6088_v53  ;;  %v3967_v30 = vld [vmem:[#allocation17 + $0xb20] sm:$0xff]  ;;  %v3965_v7 = vld [vmem:[#allocation17 + $0xb10] sm:$0xff]  ;;  %v4040_v38 = vld [vmem:[#allocation17 + $0xd68] sm:$0xff] }
 0x9fd   :  { %v3969_v53 = vld [vmem:[#allocation17 + $0xb30] sm:$0xff]  ;;  %v5854_v55 = vpack.c.bf16 %v3967_v30, %v3963_v22  ;;  %v5872_v30 = vpack.c.bf16 %v4008_v13, %v4004_v31  ;;  %v4044_v31 = vld [vmem:[#allocation17 + $0xd88] sm:$0xff] }
 0x9fe   :  { %v6110_v2 = vpack.c.bf16 %v3969_v53, %v3965_v7  ;;  %v4005_v22 = vld [vmem:[#allocation17 + $0xc50] sm:$0xff]  ;;  %v4012_v7 = vld [vmem:[#allocation17 + $0xc88] sm:$0xff] }
 0x9ff   :  { %5835 = vmatpush1.bf16.msra.mxu0 %v5834_v18  ;;  %6091 = vmatpush1.bf16.msra.mxu1 %v6090_v40  ;;  %v3971_v18 = vld [vmem:[#allocation17 + $0xb40] sm:$0xff]  ;;  %v4016_v53 = vld [vmem:[#allocation17 + $0xca8] sm:$0xff] }
 0xa00   :  { %5837 = vmatprep.subr.bf16.mxu0 %v5836_v59  ;;  %6093 = vmatprep.subr.bf16.mxu1 %v6092_v5  ;;  %v3975_v40 = vld [vmem:[#allocation17 + $0xb60] sm:$0xff]  ;;  %v3973_v59 = vld [vmem:[#allocation17 + $0xb50] sm:$0xff]  ;;  %v4048_v13 = vld [vmem:[#allocation17 + $0xda8] sm:$0xff] }
 0xa01   :  { %v3977_v5 = vld [vmem:[#allocation17 + $0xb70] sm:$0xff]  ;;  %v5858_v4 = vpack.c.bf16 %v3975_v40, %v3971_v18  ;;  %v4011_v18 = vld [vmem:[#allocation17 + $0xc80] sm:$0xff] }
 0xa02   :  { %v6114_v17 = vpack.c.bf16 %v3977_v5, %v3973_v59  ;;  %v4015_v40 = vld [vmem:[#allocation17 + $0xca0] sm:$0xff]  ;;  %v4013_v59 = vld [vmem:[#allocation17 + $0xc90] sm:$0xff] }
 0xa03   :  { %5839 = vmatpush1.bf16.msra.mxu0 %v5838_v41  ;;  %6095 = vmatpush1.bf16.msra.mxu1 %v6094_v12  ;;  %v3979_v41 = vld [vmem:[#allocation17 + $0xb80] sm:$0xff]  ;;  %v4017_v5 = vld [vmem:[#allocation17 + $0xcb0] sm:$0xff] }
 0xa04   :  { %5841 = vmatprep.subr.bf16.mxu0 %v5840_v0  ;;  %6097 = vmatprep.subr.bf16.mxu1 %v6096_v20  ;;  %v3983_v12 = vld [vmem:[#allocation17 + $0xba0] sm:$0xff]  ;;  %v3981_v0 = vld [vmem:[#allocation17 + $0xb90] sm:$0xff] }
 0xa05   :  { %v3985_v20 = vld [vmem:[#allocation17 + $0xbb0] sm:$0xff]  ;;  %v5862_v43 = vpack.c.bf16 %v3983_v12, %v3979_v41  ;;  %v4019_v41 = vld [vmem:[#allocation17 + $0xcc0] sm:$0xff] }
 0xa06   :  { %v6118_v15 = vpack.c.bf16 %v3985_v20, %v3981_v0  ;;  %v4023_v12 = vld [vmem:[#allocation17 + $0xce0] sm:$0xff]  ;;  %v4021_v0 = vld [vmem:[#allocation17 + $0xcd0] sm:$0xff] }
 0xa07   :  { %5843 = vmatpush1.bf16.msra.mxu0 %v5842_v54  ;;  %6099 = vmatpush1.bf16.msra.mxu1 %v6098_v39  ;;  %v3987_v54 = vld [vmem:[#allocation17 + $0xbc0] sm:$0xff]  ;;  %v4025_v20 = vld [vmem:[#allocation17 + $0xcf0] sm:$0xff] }
 0xa08   :  { %5845 = vmatprep.subr.bf16.mxu0 %v5844_v52  ;;  %6101 = vmatprep.subr.bf16.mxu1 %v6100_v58  ;;  %v3991_v39 = vld [vmem:[#allocation17 + $0xbe0] sm:$0xff]  ;;  %v3989_v52 = vld [vmem:[#allocation17 + $0xbd0] sm:$0xff] }
 0xa09   :  { %v3993_v58 = vld [vmem:[#allocation17 + $0xbf0] sm:$0xff]  ;;  %v5866_v34 = vpack.c.bf16 %v3991_v39, %v3987_v54  ;;  %v4027_v54 = vld [vmem:[#allocation17 + $0xd00] sm:$0xff] }
 0xa0a   :  { %v6122_v25 = vpack.c.bf16 %v3993_v58, %v3989_v52  ;;  %v4031_v39 = vld [vmem:[#allocation17 + $0xd20] sm:$0xff]  ;;  %v4029_v52 = vld [vmem:[#allocation17 + $0xd10] sm:$0xff] }
 0xa0b   :  { %5847 = vmatpush1.bf16.msra.mxu0 %v5846_v6  ;;  %6103 = vmatpush1.bf16.msra.mxu1 %v6102_v24  ;;  %v3995_v6 = vld [vmem:[#allocation17 + $0xc00] sm:$0xff]  ;;  %v4033_v58 = vld [vmem:[#allocation17 + $0xd30] sm:$0xff] }
 0xa0c   :  { %5849 = vmatprep.subr.bf16.mxu0 %v5848_v48  ;;  %6105 = vmatprep.subr.bf16.mxu1 %v6104_v23  ;;  %v3999_v24 = vld [vmem:[#allocation17 + $0xc20] sm:$0xff]  ;;  %v3997_v48 = vld [vmem:[#allocation17 + $0xc10] sm:$0xff] }
 0xa0d   :  { %v4001_v23 = vld [vmem:[#allocation17 + $0xc30] sm:$0xff]  ;;  %v5870_v60 = vpack.c.bf16 %v3999_v24, %v3995_v6  ;;  %v4035_v6 = vld [vmem:[#allocation17 + $0xd40] sm:$0xff] }
 0xa0e   :  { %v6126_v32 = vpack.c.bf16 %v4001_v23, %v3997_v48  ;;  %v4039_v24 = vld [vmem:[#allocation17 + $0xd60] sm:$0xff]  ;;  %v4037_v48 = vld [vmem:[#allocation17 + $0xd50] sm:$0xff] }
 0xa0f   :  { %5851 = vmatpush1.bf16.msra.mxu0 %v5850_v35  ;;  %6107 = vmatpush1.bf16.msra.mxu1 %v6106_v63  ;;  %v4003_v35 = vld [vmem:[#allocation17 + $0xc40] sm:$0xff]  ;;  %v4041_v23 = vld [vmem:[#allocation17 + $0xd70] sm:$0xff] }
 0xa10   :  { %5853 = vmatprep.subr.bf16.mxu0 %v5852_v10  ;;  %6109 = vmatprep.subr.bf16.mxu1 %v6108_v46  ;;  %v4007_v63 = vld [vmem:[#allocation17 + $0xc60] sm:$0xff]  ;;  %v6128_v10 = vpack.c.bf16 %v4010_v21, %v4006_v19  ;;  %v4009_v46 = vld [vmem:[#allocation17 + $0xc70] sm:$0xff]  ;;  %v4046_v19 = vld [vmem:[#allocation17 + $0xd98] sm:$0xff] }
 0xa11   :  { %v4050_v21 = vld [vmem:[#allocation17 + $0xdb8] sm:$0xff] }
 0xa13   :  { %5855 = vmatpush1.bf16.msra.mxu0 %v5854_v55  ;;  %6111 = vmatpush1.bf16.msra.mxu1 %v6110_v2  ;;  %v5874_v55 = vpack.c.bf16 %v4007_v63, %v4003_v35  ;;  %v6130_v2 = vpack.c.bf16 %v4009_v46, %v4005_v22  ;;  %v4043_v35 = vld [vmem:[#allocation17 + $0xd80] sm:$0xff]  ;;  %v5892_v22 = vpack.c.bf16 %v4048_v13, %v4044_v31  ;;  %v4049_v46 = vld [vmem:[#allocation17 + $0xdb0] sm:$0xff]  ;;  %v4086_v31 = vld [vmem:[#allocation17 + $0xed8] sm:$0xff] }
 0xa14   :  { %5857 = vmatprep.subr.bf16.mxu0 %v5856_v26  ;;  %6113 = vmatprep.subr.bf16.mxu1 %v6112_v36  ;;  %v5876_v26 = vpack.c.bf16 %v4016_v53, %v4012_v7  ;;  %v6132_v36 = vpack.c.bf16 %v4018_v45, %v4014_v16  ;;  %v4047_v63 = vld [vmem:[#allocation17 + $0xda0] sm:$0xff]  ;;  %v4052_v7 = vld [vmem:[#allocation17 + $0xdc8] sm:$0xff]  ;;  %v4058_v16 = vld [vmem:[#allocation17 + $0xdf8] sm:$0xff] }
 0xa15   :  { %v4056_v53 = vld [vmem:[#allocation17 + $0xde8] sm:$0xff]  ;;  %v5894_v45 = vpack.c.bf16 %v4047_v63, %v4043_v35  ;;  %v4090_v13 = vld [vmem:[#allocation17 + $0xef8] sm:$0xff] }
 0xa16   :  { %v6168_v63 = vpack.c.bf16 %v4090_v13, %v4086_v31 }
 0xa17   :  { %5859 = vmatpush1.bf16.msra.mxu0 %v5858_v4  ;;  %6115 = vmatpush1.bf16.msra.mxu1 %v6114_v17  ;;  %v5878_v4 = vpack.c.bf16 %v4015_v40, %v4011_v18  ;;  %v6134_v17 = vpack.c.bf16 %v4017_v5, %v4013_v59  ;;  %v5896_v18 = vpack.c.bf16 %v4056_v53, %v4052_v7  ;;  %v4060_v59 = vld [vmem:[#allocation17 + $0xe08] sm:$0xff]  ;;  %v4094_v7 = vld [vmem:[#allocation17 + $0xf18] sm:$0xff] }
 0xa18   :  { %5861 = vmatprep.subr.bf16.mxu0 %v5860_v57  ;;  %6117 = vmatprep.subr.bf16.mxu1 %v6116_v9  ;;  %v5880_v57 = vpack.c.bf16 %v4024_v42, %v4020_v11  ;;  %v6136_v9 = vpack.c.bf16 %v4026_v27, %v4022_v3  ;;  %v4064_v5 = vld [vmem:[#allocation17 + $0xe28] sm:$0xff]  ;;  %v4062_v11 = vld [vmem:[#allocation17 + $0xe18] sm:$0xff] }
 0xa19   :  { %v4066_v42 = vld [vmem:[#allocation17 + $0xe38] sm:$0xff] }
 0xa1a   :  { %v4098_v53 = vld [vmem:[#allocation17 + $0xf38] sm:$0xff] }
 0xa1b   :  { %5863 = vmatpush1.bf16.msra.mxu0 %v5862_v43  ;;  %6119 = vmatpush1.bf16.msra.mxu1 %v6118_v15  ;;  %v5882_v43 = vpack.c.bf16 %v4023_v12, %v4019_v41  ;;  %v6138_v15 = vpack.c.bf16 %v4025_v20, %v4021_v0  ;;  %v5900_v41 = vpack.c.bf16 %v4064_v5, %v4060_v59  ;;  %v4068_v0 = vld [vmem:[#allocation17 + $0xe48] sm:$0xff]  ;;  %v4102_v59 = vld [vmem:[#allocation17 + $0xf58] sm:$0xff] }
 0xa1c   :  { %5865 = vmatprep.subr.bf16.mxu0 %v5864_v44  ;;  %6121 = vmatprep.subr.bf16.mxu1 %v6120_v33  ;;  %v5884_v44 = vpack.c.bf16 %v4032_v14, %v4028_v51  ;;  %v6140_v33 = vpack.c.bf16 %v4034_v49, %v4030_v1  ;;  %v6156_v12 = vpack.c.bf16 %v4066_v42, %v4062_v11  ;;  %v4072_v20 = vld [vmem:[#allocation17 + $0xe68] sm:$0xff]  ;;  %v4070_v51 = vld [vmem:[#allocation17 + $0xe58] sm:$0xff] }
 0xa1d   :  { %v4074_v14 = vld [vmem:[#allocation17 + $0xe78] sm:$0xff] }
 0xa1e   :  { %v4106_v5 = vld [vmem:[#allocation17 + $0xf78] sm:$0xff] }
 0xa1f   :  { %5867 = vmatpush1.bf16.msra.mxu0 %v5866_v34  ;;  %6123 = vmatpush1.bf16.msra.mxu1 %v6122_v25  ;;  %v5886_v34 = vpack.c.bf16 %v4031_v39, %v4027_v54  ;;  %v6142_v25 = vpack.c.bf16 %v4033_v58, %v4029_v52  ;;  %v5904_v54 = vpack.c.bf16 %v4072_v20, %v4068_v0  ;;  %v4076_v52 = vld [vmem:[#allocation17 + $0xe88] sm:$0xff]  ;;  %v4110_v0 = vld [vmem:[#allocation17 + $0xf98] sm:$0xff] }
 0xa20   :  { %5869 = vmatprep.subr.bf16.mxu0 %v5868_v28  ;;  %6125 = vmatprep.subr.bf16.mxu1 %v6124_v29  ;;  %v5888_v28 = vpack.c.bf16 %v4040_v38, %v4036_v56  ;;  %v6144_v29 = vpack.c.bf16 %v4042_v61, %v4038_v8  ;;  %v6160_v39 = vpack.c.bf16 %v4074_v14, %v4070_v51  ;;  %v4080_v58 = vld [vmem:[#allocation17 + $0xea8] sm:$0xff]  ;;  %v4078_v56 = vld [vmem:[#allocation17 + $0xe98] sm:$0xff] }
 0xa21   :  { %v4082_v38 = vld [vmem:[#allocation17 + $0xeb8] sm:$0xff] }
 0xa22   :  { %4352 = vmatmul.mubr.f32.vlgmr.msra.gmra.mrb[64].mxu0 %v3607_v50  ;;  %4636 = vmatmul.mubr.f32.vlgmr.msra.gmra.mrb[48].mxu1 %v3607_v50  ;;  %v4054_v50 = vld [vmem:[#allocation17 + $0xdd8] sm:$0xff] }
 0xa23   :  { %5871 = vmatpush1.bf16.msra.mxu0 %v5870_v60  ;;  %6127 = vmatpush1.bf16.msra.mxu1 %v6126_v32  ;;  %v5890_v60 = vpack.c.bf16 %v4039_v24, %v4035_v6  ;;  %v6146_v32 = vpack.c.bf16 %v4041_v23, %v4037_v48  ;;  %v6152_v40 = vpack.c.bf16 %v4058_v16, %v4054_v50  ;;  %v4084_v48 = vld [vmem:[#allocation17 + $0xec8] sm:$0xff]  ;;  %v4114_v20 = vld [vmem:[#allocation17 + $0xfb8] sm:$0xff] }
 0xa24   :  { %5873 = vmatprep.subr.bf16.mxu0 %v5872_v30  ;;  %6129 = vmatprep.subr.bf16.mxu1 %v6128_v10  ;;  %v6148_v30 = vpack.c.bf16 %v4050_v21, %v4046_v19  ;;  %v4045_v10 = vld [vmem:[#allocation17 + $0xd90] sm:$0xff]  ;;  %v5908_v6 = vpack.c.bf16 %v4080_v58, %v4076_v52  ;;  %v6164_v24 = vpack.c.bf16 %v4082_v38, %v4078_v56  ;;  %v4088_v23 = vld [vmem:[#allocation17 + $0xee8] sm:$0xff]  ;;  %v4118_v52 = vld [vmem:[#allocation17 + $0xfd8] sm:$0xff] }
 0xa25   :  { %4422 = vmatprep.mubr.f32.mxu0 %v3610_v62  ;;  %4706 = vmatprep.mubr.f32.mxu1 %v3610_v62  ;;  %v6150_v62 = vpack.c.bf16 %v4049_v46, %v4045_v10  ;;  %v5912_v35 = vpack.c.bf16 %v4088_v23, %v4084_v48  ;;  %v4092_v10 = vld [vmem:[#allocation17 + $0xf08] sm:$0xff]  ;;  %v4122_v58 = vld [vmem:[#allocation17 + $0xff8] sm:$0xff] }
 0xa26   :  { %v4096_v46 = vld [vmem:[#allocation17 + $0xf28] sm:$0xff] }
 0xa27   :  { %5875 = vmatpush1.bf16.msra.mxu0 %v5874_v55  ;;  %6131 = vmatpush1.bf16.msra.mxu1 %v6130_v2  ;;  %v4051_v55 = vld [vmem:[#allocation17 + $0xdc0] sm:$0xff]  ;;  %v4766_v23 = vld [vmem:[#allocation20 + $0x188] sm:$0xff] }
 0xa28   :  { %5877 = vmatprep.subr.bf16.mxu0 %v5876_v26  ;;  %6133 = vmatprep.subr.bf16.mxu1 %v6132_v36  ;;  %v4055_v2 = vld [vmem:[#allocation17 + $0xde0] sm:$0xff]  ;;  %v4053_v26 = vld [vmem:[#allocation17 + $0xdd0] sm:$0xff] }
 0xa29   :  { %v4057_v36 = vld [vmem:[#allocation17 + $0xdf0] sm:$0xff]  ;;  %v5898_v3 = vpack.c.bf16 %v4055_v2, %v4051_v55  ;;  %v5916_v55 = vpack.c.bf16 %v4096_v46, %v4092_v10  ;;  %v6172_v2 = vpack.c.bf16 %v4098_v53, %v4094_v7  ;;  %v4765_v48 = vld [vmem:[#allocation20 + $0x180] sm:$0xff]  ;;  %v4768_v46 = vld [vmem:[#allocation20 + $0x198] sm:$0xff] }
 0xa2a   :  { %v6154_v27 = vpack.c.bf16 %v4057_v36, %v4053_v26  ;;  %v4100_v26 = vld [vmem:[#allocation17 + $0xf48] sm:$0xff]  ;;  %v4767_v10 = vld [vmem:[#allocation20 + $0x190] sm:$0xff] }
 0xa2b   :  { %5879 = vmatpush1.bf16.msra.mxu0 %v5878_v4  ;;  %6135 = vmatpush1.bf16.msra.mxu1 %v6134_v17  ;;  %v4059_v4 = vld [vmem:[#allocation17 + $0xe00] sm:$0xff]  ;;  %v4104_v36 = vld [vmem:[#allocation17 + $0xf68] sm:$0xff]  ;;  %v3609_v7 = vld [vmem:[#allocation5 + $0x30] sm:$0xff] }
 0xa2c   :  { %5881 = vmatprep.subr.bf16.mxu0 %v5880_v57  ;;  %6137 = vmatprep.subr.bf16.mxu1 %v6136_v9  ;;  %v4063_v17 = vld [vmem:[#allocation17 + $0xe20] sm:$0xff]  ;;  %v4061_v57 = vld [vmem:[#allocation17 + $0xe10] sm:$0xff] }
 0xa2d   :  { %v4065_v9 = vld [vmem:[#allocation17 + $0xe30] sm:$0xff]  ;;  %v5902_v1 = vpack.c.bf16 %v4063_v17, %v4059_v4  ;;  %v5920_v4 = vpack.c.bf16 %v4104_v36, %v4100_v26  ;;  %v6176_v17 = vpack.c.bf16 %v4106_v5, %v4102_v59  ;;  %v4769_v36 = vld [vmem:[#allocation20 + $0x1a0] sm:$0xff] }
 0xa2e   :  { %v6158_v49 = vpack.c.bf16 %v4065_v9, %v4061_v57  ;;  %v4108_v57 = vld [vmem:[#allocation17 + $0xf88] sm:$0xff] }
 0xa2f   :  { %5883 = vmatpush1.bf16.msra.mxu0 %v5882_v43  ;;  %6139 = vmatpush1.bf16.msra.mxu1 %v6138_v15  ;;  %v4067_v43 = vld [vmem:[#allocation17 + $0xe40] sm:$0xff]  ;;  %v4112_v9 = vld [vmem:[#allocation17 + $0xfa8] sm:$0xff] }
 0xa30   :  { %5885 = vmatprep.subr.bf16.mxu0 %v5884_v44  ;;  %6141 = vmatprep.subr.bf16.mxu1 %v6140_v33  ;;  %v4071_v15 = vld [vmem:[#allocation17 + $0xe60] sm:$0xff]  ;;  %v4069_v44 = vld [vmem:[#allocation17 + $0xe50] sm:$0xff] }
 0xa31   :  { %v4073_v33 = vld [vmem:[#allocation17 + $0xe70] sm:$0xff]  ;;  %v5906_v8 = vpack.c.bf16 %v4071_v15, %v4067_v43  ;;  %v5924_v43 = vpack.c.bf16 %v4112_v9, %v4108_v57  ;;  %v6180_v15 = vpack.c.bf16 %v4114_v20, %v4110_v0  ;;  %v4740_v57 = vld [vmem:[#allocation20 + $0xb8] sm:$0xff] }
 0xa32   :  { %v6162_v61 = vpack.c.bf16 %v4073_v33, %v4069_v44  ;;  %v4116_v44 = vld [vmem:[#allocation17 + $0xfc8] sm:$0xff]  ;;  %v4771_v9 = vld [vmem:[#allocation20 + $0x1b0] sm:$0xff]  ;;  %v4772_v0 = vld [vmem:[#allocation20 + $0x1b8] sm:$0xff] }
 0xa33   :  { %5887 = vmatpush1.bf16.msra.mxu0 %v5886_v34  ;;  %6143 = vmatpush1.bf16.msra.mxu1 %v6142_v25  ;;  %v4075_v34 = vld [vmem:[#allocation17 + $0xe80] sm:$0xff]  ;;  %v4120_v33 = vld [vmem:[#allocation17 + $0xfe8] sm:$0xff] }
 0xa34   :  { %5889 = vmatprep.subr.bf16.mxu0 %v5888_v28  ;;  %6145 = vmatprep.subr.bf16.mxu1 %v6144_v29  ;;  %v4079_v25 = vld [vmem:[#allocation17 + $0xea0] sm:$0xff]  ;;  %v4077_v28 = vld [vmem:[#allocation17 + $0xe90] sm:$0xff] }
 0xa35   :  { %v4081_v29 = vld [vmem:[#allocation17 + $0xeb0] sm:$0xff]  ;;  %v5910_v19 = vpack.c.bf16 %v4079_v25, %v4075_v34  ;;  %v5928_v34 = vpack.c.bf16 %v4120_v33, %v4116_v44  ;;  %v6184_v25 = vpack.c.bf16 %v4122_v58, %v4118_v52  ;;  %v4773_v33 = vld [vmem:[#allocation20 + $0x1c0] sm:$0xff] }
 0xa36   :  { %v6166_v21 = vpack.c.bf16 %v4081_v29, %v4077_v28  ;;  %v4733_v28 = vld [vmem:[#allocation20 + $0x80] sm:$0xff]  ;;  %v4734_v29 = vld [vmem:[#allocation20 + $0x88] sm:$0xff] }
 0xa37   :  { %5891 = vmatpush1.bf16.msra.mxu0 %v5890_v60  ;;  %6147 = vmatpush1.bf16.msra.mxu1 %v6146_v32  ;;  %v4083_v60 = vld [vmem:[#allocation17 + $0xec0] sm:$0xff]  ;;  %v4738_v26 = vld [vmem:[#allocation20 + $0xa8] sm:$0xff] }
 0xa38   :  { %5893 = vmatprep.subr.bf16.mxu0 %v5892_v22  ;;  %6149 = vmatprep.subr.bf16.mxu1 %v6148_v30  ;;  %v4087_v32 = vld [vmem:[#allocation17 + $0xee0] sm:$0xff]  ;;  %v4085_v22 = vld [vmem:[#allocation17 + $0xed0] sm:$0xff] }
 0xa39   :  { %v4089_v30 = vld [vmem:[#allocation17 + $0xef0] sm:$0xff]  ;;  %v5914_v50 = vpack.c.bf16 %v4087_v32, %v4083_v60  ;;  %v6188_v60 = vpack.c.bf16 %v4734_v29, %v4733_v28  ;;  %v6220_v32 = vpack.c.bf16 %v4766_v23, %v4765_v48  ;;  %v4744_v28 = vld [vmem:[#allocation20 + $0xd8] sm:$0xff] }
 0xa3a   :  { %v6170_v16 = vpack.c.bf16 %v4089_v30, %v4085_v22  ;;  %v4735_v22 = vld [vmem:[#allocation20 + $0x90] sm:$0xff]  ;;  %v4736_v30 = vld [vmem:[#allocation20 + $0x98] sm:$0xff]  ;;  %v4770_v59 = vld [vmem:[#allocation20 + $0x1a8] sm:$0xff] }
 0xa3b   :  { %5895 = vmatpush1.bf16.msra.mxu0 %v5894_v45  ;;  %6151 = vmatpush1.bf16.msra.mxu1 %v6150_v62  ;;  %v4091_v45 = vld [vmem:[#allocation17 + $0xf00] sm:$0xff]  ;;  %v4742_v44 = vld [vmem:[#allocation20 + $0xc8] sm:$0xff]  ;;  %v4775_v29 = vld [vmem:[#allocation20 + $0x1d0] sm:$0xff] }
 0xa3c   :  { %5897 = vmatprep.subr.bf16.mxu0 %v5896_v18  ;;  %6153 = vmatprep.subr.bf16.mxu1 %v6152_v40  ;;  %v4095_v62 = vld [vmem:[#allocation17 + $0xf20] sm:$0xff]  ;;  %v4093_v18 = vld [vmem:[#allocation17 + $0xf10] sm:$0xff] }
 0xa3d   :  { %v4097_v40 = vld [vmem:[#allocation17 + $0xf30] sm:$0xff]  ;;  %v5918_v11 = vpack.c.bf16 %v4095_v62, %v4091_v45  ;;  %v4720_v45 = vld [vmem:[#allocation20 + $0x18] sm:$0xff]  ;;  %v6192_v62 = vpack.c.bf16 %v4736_v30, %v4735_v22  ;;  %v4777_v30 = vld [vmem:[#allocation20 + $0x1e0] sm:$0xff] }
 0xa3e   :  { %v6174_v42 = vpack.c.bf16 %v4097_v40, %v4093_v18  ;;  %v4752_v18 = vld [vmem:[#allocation20 + $0x118] sm:$0xff]  ;;  %v4737_v40 = vld [vmem:[#allocation20 + $0xa0] sm:$0xff]  ;;  %v4774_v52 = vld [vmem:[#allocation20 + $0x1c8] sm:$0xff] }
 0xa3f   :  { %5899 = vmatpush1.bf16.msra.mxu0 %v5898_v3  ;;  %6155 = vmatpush1.bf16.msra.mxu1 %v6154_v27  ;;  %v4099_v3 = vld [vmem:[#allocation17 + $0xf40] sm:$0xff]  ;;  %v4746_v22 = vld [vmem:[#allocation20 + $0xe8] sm:$0xff] }
 0xa40   :  { %5901 = vmatprep.subr.bf16.mxu0 %v5900_v41  ;;  %6157 = vmatprep.subr.bf16.mxu1 %v6156_v12  ;;  %v4103_v27 = vld [vmem:[#allocation17 + $0xf60] sm:$0xff]  ;;  %v4101_v41 = vld [vmem:[#allocation17 + $0xf50] sm:$0xff] }
 0xa41   :  { %v4105_v12 = vld [vmem:[#allocation17 + $0xf70] sm:$0xff]  ;;  %v5922_v51 = vpack.c.bf16 %v4103_v27, %v4099_v3  ;;  %v6196_v27 = vpack.c.bf16 %v4738_v26, %v4737_v40  ;;  %v4776_v48 = vld [vmem:[#allocation20 + $0x1d8] sm:$0xff] }
 0xa42   :  { %v6178_v14 = vpack.c.bf16 %v4105_v12, %v4101_v41  ;;  %v4722_v3 = vld [vmem:[#allocation20 + $0x28] sm:$0xff]  ;;  %v4739_v12 = vld [vmem:[#allocation20 + $0xb0] sm:$0xff]  ;;  %v4748_v40 = vld [vmem:[#allocation20 + $0xf8] sm:$0xff] }
 0xa43   :  { %5903 = vmatpush1.bf16.msra.mxu0 %v5902_v1  ;;  %6159 = vmatpush1.bf16.msra.mxu1 %v6158_v49  ;;  %v4107_v1 = vld [vmem:[#allocation17 + $0xf80] sm:$0xff]  ;;  %v4754_v41 = vld [vmem:[#allocation20 + $0x128] sm:$0xff] }
 0xa44   :  { %5905 = vmatprep.subr.bf16.mxu0 %v5904_v54  ;;  %6161 = vmatprep.subr.bf16.mxu1 %v6160_v39  ;;  %v4111_v49 = vld [vmem:[#allocation17 + $0xfa0] sm:$0xff]  ;;  %v4109_v54 = vld [vmem:[#allocation17 + $0xf90] sm:$0xff] }
 0xa45   :  { %v4113_v39 = vld [vmem:[#allocation17 + $0xfb0] sm:$0xff]  ;;  %v5926_v56 = vpack.c.bf16 %v4111_v49, %v4107_v1  ;;  %v4724_v1 = vld [vmem:[#allocation20 + $0x38] sm:$0xff]  ;;  %v6200_v49 = vpack.c.bf16 %v4740_v57, %v4739_v12  ;;  %v7189_v12 = vmov 0.0|0.0   ;;  %v4127_v57 = vsub.s32 0, %v8045_v47 }
 0xa46   :  { %v6182_v38 = vpack.c.bf16 %v4113_v39, %v4109_v54  ;;  %v4756_v54 = vld [vmem:[#allocation20 + $0x138] sm:$0xff]  ;;  %v4741_v39 = vld [vmem:[#allocation20 + $0xc0] sm:$0xff] }
 0xa47   :  { %5907 = vmatpush1.bf16.msra.mxu0 %v5906_v8  ;;  %6163 = vmatpush1.bf16.msra.mxu1 %v6162_v61  ;;  %v4115_v8 = vld [vmem:[#allocation17 + $0xfc0] sm:$0xff] }
 0xa48   :  { %5909 = vmatprep.subr.bf16.mxu0 %v5908_v6  ;;  %6165 = vmatprep.subr.bf16.mxu1 %v6164_v24  ;;  %v4119_v61 = vld [vmem:[#allocation17 + $0xfe0] sm:$0xff]  ;;  %v4117_v6 = vld [vmem:[#allocation17 + $0xfd0] sm:$0xff] }
 0xa49   :  { %v4121_v24 = vld [vmem:[#allocation17 + $0xff0] sm:$0xff]  ;;  %v5930_v31 = vpack.c.bf16 %v4119_v61, %v4115_v8  ;;  %v6204_v61 = vpack.c.bf16 %v4742_v44, %v4741_v39 }
 0xa4a   :  { %v6186_v13 = vpack.c.bf16 %v4121_v24, %v4117_v6  ;;  %v4726_v8 = vld [vmem:[#allocation20 + $0x48] sm:$0xff]  ;;  %v4743_v24 = vld [vmem:[#allocation20 + $0xd0] sm:$0xff] }
 0xa4b   :  { %5911 = vmatpush1.bf16.msra.mxu0 %v5910_v19  ;;  %6167 = vmatpush1.bf16.msra.mxu1 %v6166_v21  ;;  %v4717_v19 = vld [vmem:[#allocation20] sm:$0xff]  ;;  %v4718_v21 = vld [vmem:[#allocation20 + $0x8] sm:$0xff] }
 0xa4c   :  { %5913 = vmatprep.subr.bf16.mxu0 %v5912_v35  ;;  %6169 = vmatprep.subr.bf16.mxu1 %v6168_v63  ;;  %v4749_v35 = vld [vmem:[#allocation20 + $0x100] sm:$0xff]  ;;  %v4750_v63 = vld [vmem:[#allocation20 + $0x108] sm:$0xff]  ;;  %v6190_v53 = vpack.c.bf16 %v4718_v21, %v4717_v19  ;;  %v4728_v19 = vld [vmem:[#allocation20 + $0x58] sm:$0xff]  ;;  %v6208_v21 = vpack.c.bf16 %v4744_v28, %v4743_v24 }
 0xa4d   :  { %v4758_v6 = vld [vmem:[#allocation20 + $0x148] sm:$0xff]  ;;  %v4932_v28 = vld [vmem:[#allocation23 + $0x18] sm:$0xff] }
 0xa4f   :  { %5915 = vmatpush1.bf16.msra.mxu0 %v5914_v50  ;;  %6171 = vmatpush1.bf16.msra.mxu1 %v6170_v16  ;;  %v6222_v50 = vpack.c.bf16 %v4750_v63, %v4749_v35  ;;  %v4719_v16 = vld [vmem:[#allocation20 + $0x10] sm:$0xff]  ;;  %v4760_v35 = vld [vmem:[#allocation20 + $0x158] sm:$0xff]  ;;  %v4745_v63 = vld [vmem:[#allocation20 + $0xe0] sm:$0xff] }
 0xa50   :  { %5917 = vmatprep.subr.bf16.mxu0 %v5916_v55  ;;  %6173 = vmatprep.subr.bf16.mxu1 %v6172_v2  ;;  %v6224_v55 = vpack.c.bf16 %v4768_v46, %v4767_v10  ;;  %v4751_v2 = vld [vmem:[#allocation20 + $0x110] sm:$0xff]  ;;  %v6194_v5 = vpack.c.bf16 %v4720_v45, %v4719_v16  ;;  %v4778_v10 = vld [vmem:[#allocation20 + $0x1e8] sm:$0xff]  ;;  %v4729_v16 = vld [vmem:[#allocation20 + $0x60] sm:$0xff] }
 0xa51   :  { %v4730_v45 = vld [vmem:[#allocation20 + $0x68] sm:$0xff] }
 0xa53   :  { %5919 = vmatpush1.bf16.msra.mxu0 %v5918_v11  ;;  %6175 = vmatpush1.bf16.msra.mxu1 %v6174_v42  ;;  %v6226_v11 = vpack.c.bf16 %v4752_v18, %v4751_v2  ;;  %v4721_v42 = vld [vmem:[#allocation20 + $0x20] sm:$0xff]  ;;  %v4762_v2 = vld [vmem:[#allocation20 + $0x168] sm:$0xff]  ;;  %v4747_v18 = vld [vmem:[#allocation20 + $0xf0] sm:$0xff] }
 0xa54   :  { %5921 = vmatprep.subr.bf16.mxu0 %v5920_v4  ;;  %6177 = vmatprep.subr.bf16.mxu1 %v6176_v17  ;;  %v6228_v4 = vpack.c.bf16 %v4770_v59, %v4769_v36  ;;  %v4753_v17 = vld [vmem:[#allocation20 + $0x120] sm:$0xff]  ;;  %v6198_v20 = vpack.c.bf16 %v4722_v3, %v4721_v42  ;;  %v6216_v36 = vpack.c.bf16 %v4748_v40, %v4747_v18  ;;  %v4779_v59 = vld [vmem:[#allocation20 + $0x1f0] sm:$0xff]  ;;  %v4732_v3 = vld [vmem:[#allocation20 + $0x78] sm:$0xff] }
 0xa57   :  { %5923 = vmatpush1.bf16.msra.mxu0 %v5922_v51  ;;  %6179 = vmatpush1.bf16.msra.mxu1 %v6178_v14  ;;  %v6230_v51 = vpack.c.bf16 %v4754_v41, %v4753_v17  ;;  %v4723_v14 = vld [vmem:[#allocation20 + $0x30] sm:$0xff] }
 0xa58   :  { %5925 = vmatprep.subr.bf16.mxu0 %v5924_v43  ;;  %6181 = vmatprep.subr.bf16.mxu1 %v6180_v15  ;;  %v6232_v43 = vpack.c.bf16 %v4772_v0, %v4771_v9  ;;  %v4755_v15 = vld [vmem:[#allocation20 + $0x130] sm:$0xff]  ;;  %v6202_v58 = vpack.c.bf16 %v4724_v1, %v4723_v14  ;;  %v4135_v9 = vsub.s32 2, %v8045_v47  ;;  %v4123_v0 = vld [vmem:[#allocation18] sm:$0xf] }
 0xa59   :  { %v4128_v14 = vrot.slane %v4123_v0, %v4127_v57 }
 0xa5a   :  { %v4136_v1 = vrot.slane %v4123_v0, %v4135_v9 }
 0xa5b   :  { %5927 = vmatpush1.bf16.msra.mxu0 %v5926_v56  ;;  %6183 = vmatpush1.bf16.msra.mxu1 %v6182_v38  ;;  %v6234_v56 = vpack.c.bf16 %v4756_v54, %v4755_v15  ;;  %v4725_v38 = vld [vmem:[#allocation20 + $0x40] sm:$0xff] }
 0xa5c   :  { %5929 = vmatprep.subr.bf16.mxu0 %v5928_v34  ;;  %6185 = vmatprep.subr.bf16.mxu1 %v6184_v25  ;;  %v6236_v34 = vpack.c.bf16 %v4774_v52, %v4773_v33  ;;  %v4757_v25 = vld [vmem:[#allocation20 + $0x140] sm:$0xff]  ;;  %v6206_v23 = vpack.c.bf16 %v4726_v8, %v4725_v38 }
 0xa5f   :  { %5931 = vmatpush1.bf16.msra.mxu0 %v5930_v31  ;;  %6187 = vmatpush1.bf16.msra.mxu1 %v6186_v13  ;;  %v6238_v31 = vpack.c.bf16 %v4758_v6, %v4757_v25  ;;  %v4727_v13 = vld [vmem:[#allocation20 + $0x50] sm:$0xff] }
 0xa60   :  { %6189 = vmatprep.subr.bf16.mxu0 %v6188_v60  ;;  %6221 = vmatprep.subr.bf16.mxu1 %v6220_v32  ;;  %v6240_v60 = vpack.c.bf16 %v4776_v48, %v4775_v29  ;;  %v4759_v32 = vld [vmem:[#allocation20 + $0x150] sm:$0xff]  ;;  %v6210_v46 = vpack.c.bf16 %v4728_v19, %v4727_v13  ;;  %v4933_v48 = vld [vmem:[#allocation23 + $0x20] sm:$0xff]  ;;  %v4936_v19 = vld [vmem:[#allocation23 + $0x38] sm:$0xff] }
 0xa61   :  { %v4935_v13 = vld [vmem:[#allocation23 + $0x30] sm:$0xff] }
 0xa62   :  { %4423 = vmatmul.mubr.f32.vlgmr.msra.gmra.mrb[64].mxu0 %v3609_v7  ;;  %4707 = vmatmul.mubr.f32.vlgmr.msra.gmra.mrb[48].mxu1 %v3609_v7  ;;  %v6242_v7 = vpack.c.bf16 %v4760_v35, %v4759_v32  ;;  %v4938_v32 = vld [vmem:[#allocation23 + $0x48] sm:$0xff] }
 0xa63   :  { %6191 = vmatpush3.bf16.msra.mxu0 %v6190_v53  ;;  %6223 = vmatpush3.bf16.msra.mxu1 %v6222_v50  ;;  %v6212_v53 = vpack.c.bf16 %v4746_v22, %v4745_v63  ;;  %v6244_v50 = vpack.c.bf16 %v4778_v10, %v4777_v30  ;;  %v4939_v63 = vld [vmem:[#allocation23 + $0x50] sm:$0xff]  ;;  %v4940_v22 = vld [vmem:[#allocation23 + $0x58] sm:$0xff]  ;;  %v4941_v10 = vld [vmem:[#allocation23 + $0x60] sm:$0xff] }
 0xa64   :  { %6193 = vmatprep.subr.bf16.mxu0 %v6192_v62  ;;  %6225 = vmatprep.subr.bf16.mxu1 %v6224_v55  ;;  %v4761_v62 = vld [vmem:[#allocation20 + $0x160] sm:$0xff]  ;;  %v6214_v55 = vpack.c.bf16 %v4730_v45, %v4729_v16  ;;  %v6268_v30 = vpack.c.bf16 %v4940_v22, %v4939_v63 }
 0xa65   :  { %v6246_v26 = vpack.c.bf16 %v4762_v2, %v4761_v62 }
 0xa67   :  { %6195 = vmatpush3.bf16.msra.mxu0 %v6194_v5  ;;  %6227 = vmatpush3.bf16.msra.mxu1 %v6226_v11  ;;  %v4780_v5 = vld [vmem:[#allocation20 + $0x1f8] sm:$0xff]  ;;  %v4731_v11 = vld [vmem:[#allocation20 + $0x70] sm:$0xff] }
 0xa68   :  { %6197 = vmatprep.subr.bf16.mxu0 %v6196_v27  ;;  %6229 = vmatprep.subr.bf16.mxu1 %v6228_v4  ;;  %v6248_v42 = vpack.c.bf16 %v4780_v5, %v4779_v59  ;;  %v4763_v27 = vld [vmem:[#allocation20 + $0x170] sm:$0xff]  ;;  %v4764_v4 = vld [vmem:[#allocation20 + $0x178] sm:$0xff]  ;;  %v6218_v17 = vpack.c.bf16 %v4732_v3, %v4731_v11  ;;  %v5097_v11 = vld [vmem:[#allocation24] ss:$0 sm:$0xff] }
 0xa69   :  { %v6250_v41 = vpack.c.bf16 %v4764_v4, %v4763_v27 }
 0xa6b   :  { %6199 = vmatpush3.bf16.msra.mxu0 %v6198_v20  ;;  %6231 = vmatpush3.bf16.msra.mxu1 %v6230_v51  ;;  %v4131_v20 = vsub.s32 1, %v8045_v47  ;;  %v4139_v51 = vsub.s32 3, %v8045_v47  ;;  %v4931_v47 = vld [vmem:[#allocation23 + $0x10] sm:$0xff] }
 0xa6c   :  { %6201 = vmatprep.subr.bf16.mxu0 %v6200_v49  ;;  %6233 = vmatprep.subr.bf16.mxu1 %v6232_v43  ;;  %v6256_v29 = vpack.c.bf16 %v4932_v28, %v4931_v47 }
 0xa6d   :  { %v4132_v49 = vrot.slane %v4123_v0, %v4131_v20  ;;  %v4140_v43 = vrot.slane %v4123_v0, %v4139_v51 }
 0xa6f   :  { %6203 = vmatpush3.bf16.msra.mxu0 %v6202_v58  ;;  %6235 = vmatpush3.bf16.msra.mxu1 %v6234_v56  ;;  %v4929_v58 = vld [vmem:[#allocation23] sm:$0xff]  ;;  %v4930_v56 = vld [vmem:[#allocation23 + $0x8] sm:$0xff] }
 0xa70   :  { %6205 = vmatprep.subr.bf16.mxu0 %v6204_v61  ;;  %6237 = vmatprep.subr.bf16.mxu1 %v6236_v34  ;;  %v6253_v25 = vpack.c.bf16 %v4930_v56, %v4929_v58 }
 0xa73   :  { %6207 = vmatpush3.bf16.msra.mxu0 %v6206_v23  ;;  %6239 = vmatpush3.bf16.msra.mxu1 %v6238_v31  ;;  %v4934_v23 = vld [vmem:[#allocation23 + $0x28] sm:$0xff] }
 0xa74   :  { %6209 = vmatprep.subr.bf16.mxu0 %v6208_v21  ;;  %6241 = vmatprep.subr.bf16.mxu1 %v6240_v60  ;;  %v6259_v31 = vpack.c.bf16 %v4934_v23, %v4933_v48  ;;  %v6262_v21 = vpack.c.bf16 %v4936_v19, %v4935_v13  ;;  %v4937_v60 = vld [vmem:[#allocation23 + $0x40] sm:$0xff] }
 0xa75   :  { %v6265_v35 = vpack.c.bf16 %v4938_v32, %v4937_v60 }
 0xa77   :  { %6211 = vmatpush3.bf16.msra.mxu0 %v6210_v46  ;;  %6243 = vmatpush3.bf16.msra.mxu1 %v6242_v7  ;;  %v4942_v46 = vld [vmem:[#allocation23 + $0x68] sm:$0xff]  ;;  %v4943_v7 = vld [vmem:[#allocation23 + $0x70] sm:$0xff] }
 0xa78   :  { %6213 = vmatprep.subr.bf16.mxu0 %v6212_v53  ;;  %6245 = vmatprep.subr.bf16.mxu1 %v6244_v50  ;;  %v6271_v53 = vpack.c.bf16 %v4942_v46, %v4941_v10  ;;  %v4944_v50 = vld [vmem:[#allocation23 + $0x78] sm:$0xff] }
 0xa79   :  { %v6274_v16 = vpack.c.bf16 %v4944_v50, %v4943_v7 }
 0xa7b   :  { %6215 = vmatpush3.bf16.msra.mxu0 %v6214_v55  ;;  %6247 = vmatpush3.bf16.msra.mxu1 %v6246_v26  ;;  %v5096_v55 = vld [vmem:[#allocation21] ss:$0 sm:$0xff] }
 0xa7c   :  { %6217 = vmatprep.subr.bf16.mxu0 %v6216_v36  ;;  %6249 = vmatprep.subr.bf16.mxu1 %v6248_v42 }
 0xa7f   :  { %6219 = vmatpush3.bf16.msra.mxu0 %v6218_v17  ;;  %6251 = vmatpush3.bf16.msra.mxu1 %v6250_v41 }
 0xa80   :  { %6252 = vmatprep.subr.bf16.mxu0 %v7189_v12 }
 0xb35   :  { %v4424_v15 = vpop.f32.mrb[64].mxu0  ;;  %v4708_v54 = vpop.f32.mrb[48].mxu1 }
 0xb36   :  { %v6308_v39 = vadd.f32 %v4424_v15, %v4128_v14  ;;  %v6310_v44 = vadd.f32 %v4708_v54, %v4136_v1  ;;  %v4426_v33 = vpop.f32.mrb[65].mxu0  ;;  %v4710_v52 = vpop.f32.mrb[49].mxu1 }
 0xb37   :  { %v6309_v38 = vadd.f32 %v4426_v33, %v4132_v49  ;;  %v6311_v8 = vadd.f32 %v4710_v52, %v4140_v43 }
 0xb38   :  { %v4713_v6 = vmax.f32 %v6308_v39, 0.0  ;;  %v4715_v24 = vmax.f32 %v6310_v44, 0.0 }
 0xb39   :  { %v4714_v61 = vmax.f32 %v6309_v38, 0.0  ;;  %v4716_v34 = vmax.f32 %v6311_v8, 0.0 }
 0xb3b   :  { %4852 = vmatprep.mubr.f32.mxu0 %v4714_v61  ;;  %4922 = vmatprep.mubr.f32.mxu1 %v4716_v34 }
 0xb3c   :  { %4853 = vmatmul.mubr.f32.vlgmr.msra.gmra.mrb[66].mxu0 %v4713_v6  ;;  %4923 = vmatmul.mubr.f32.vlgmr.msra.gmra.mrb[50].mxu1 %v4715_v24 }
 0xb3d   :  { %6254 = vmatpush3.bf16.msra.mxu0 %v6253_v25  ;;  %5273 = vmatprep.mubr.msk.f32.mxu0 %vm7190_vm6, %v10513_v37 }
 0xb3e   :  { %6255 = vmatprep.subr.bf16.mxu0 %v7189_v12 }
 0xb41   :  { %6257 = vmatpush3.bf16.msra.mxu0 %v6256_v29 }
 0xb42   :  { %6258 = vmatprep.subr.bf16.mxu0 %v7189_v12 }
 0xb45   :  { %6260 = vmatpush3.bf16.msra.mxu0 %v6259_v31 }
 0xb46   :  { %6261 = vmatprep.subr.bf16.mxu0 %v7189_v12 }
 0xb49   :  { %6263 = vmatpush3.bf16.msra.mxu0 %v6262_v21 }
 0xb4a   :  { %6264 = vmatprep.subr.bf16.mxu0 %v7189_v12 }
 0xb4d   :  { %6266 = vmatpush3.bf16.msra.mxu0 %v6265_v35 }
 0xb4e   :  { %6267 = vmatprep.subr.bf16.mxu0 %v7189_v12 }
 0xb51   :  { %6269 = vmatpush3.bf16.msra.mxu0 %v6268_v30 }
 0xb52   :  { %6270 = vmatprep.subr.bf16.mxu0 %v7189_v12 }
 0xb55   :  { %6272 = vmatpush3.bf16.msra.mxu0 %v6271_v53 }
 0xb56   :  { %6273 = vmatprep.subr.bf16.mxu0 %v7189_v12 }
 0xb59   :  { %6275 = vmatpush3.bf16.msra.mxu0 %v6274_v16 }
 0xc0f   :  { %v5186_v45 = vpop.f32.mrb[66].mxu0  ;;  %v5221_v62 = vpop.f32.mrb[50].mxu1 }
 0xc10   :  { %v5187_v2 = vpop.f32.mrb[67].mxu0  ;;  %v5222_v18 = vpop.f32.mrb[51].mxu1 }
 0xc11   :  { %v5188_v40 = vadd.f32 %v5187_v2, %v5186_v45  ;;  %v5223_v26 = vadd.f32 %v5222_v18, %v5221_v62 }
 0xc13   :  { %v4855_v36 = vadd.f32 %v5188_v40, %v5096_v55 }
 0xc15   :  { %v4925_v59 = vadd.f32 %v5223_v26, %v4855_v36 }
 0xc17   :  { %v4928_v5 = vmax.f32 %v4925_v59, 0.0 }
 0xc19   :  { %5274 = vmatmul.mubr.f32.vlgmr.msra.gmra.mrb[68].mxu0 %v4928_v5 }
 0xcec   :  { %v5018_v42 = vpop.f32.mrb[68].mxu0 }
 0xced   :  { %v5019_v3 = vadd.f32 %v5097_v11, %v5018_v42  ;;  %v5275_v37 = vpop.f32.mrb[69].mxu0 }
 0xcef   :  { %5022 = vmax.xlane.f32.xlu1 %v5019_v3 }
 0xd7c   :  { %v5023_v27 = vpop.xlane.xlu1 %5022 }
 0xd7d   :  { %v5024_v4 = vsub.f32 %v5019_v3, %v5023_v27 }
 0xd7f   :  { %v5025_v17 = vmul.f32 1.442695, %v5024_v4 }
 0xd81   :  { %6906 = vpow2.f32 %v5025_v17 }
 0xd8b   :  { %v6907_v41 = vpop.eup %6906 }
 0xd8c   :  { %5027 = vadd.xlane.f32.xlu0 %v6907_v41 }
 0xe19   :  { %v5028_v12 = vpop.xlane.xlu0 %5027 }
 0xe1a   :  { %6908 = vlog2.f32 %v5028_v12 }
 0xe24   :  { %v6909_v57 = vpop.eup %6908 }
 0xe25   :  { %v5030_v9 = vmul.f32 0.6931472, %v6909_v57 }
 0xe27   :  { %v5031_v0 = vadd.f32 %v5030_v9, %v5023_v27 }
 0xe29   :  { %v5032_v20 = vsub.f32 %v5019_v3, %v5031_v0 }
 0xe2b   :  { %5033 = vst [vmem:[%s10514_s11] sm:$0xff] %v5032_v20 }
 0xe2c   :  { %5038 = vsyncpa [#allocation7], 1 }
 0xe2d   :  { %5039 = vsyncpa [#allocation13], 1 }
 0xe2e   :  { %5040 = vsyncpa [#allocation16], 1 }
 0xe2f   :  { %5041 = vsyncpa [#allocation19], 1 }
 0xe30   :  { %5042 = vsyncpa [#allocation22], 1 }
 0xe31   :  { %5043 = vsyncpa [#allocation25], 1 }
 0xe32   :  { %5044 = vsyncpa [#allocation8], 1 }
 0xe33   :  { %5045 = vsyncpa [#allocation10], 1 }

</bundles_post_ra>
